<compile_context>
chip_gen: v7x
topology: tpu7x:2x2x1
jax: 0.10.0
libtpu: 0.0.40
codegen_flags: <defaults>
</compile_context>

<pallas_src>
import functools
import math

import numpy as np
import jax
import jax.numpy as jnp
from jax.experimental import pallas as pl
from jax.experimental.pallas import tpu as pltpu

D_MODEL = 128          # multiple of 128 -> MXU-friendly contractions
N_HEADS = 4            # head_dim = 32, but heads ride the batch dim (see below)
D_FF = 256
N_BANDS = 8
N_LAYERS_T = 2
N_LAYERS_S = 1
RGS_LOSS_SCALE = 1.0
LN_EPS = 1e-5


# ---------------------------------------------------------------------------
# In-kernel helpers
# ---------------------------------------------------------------------------
def _mm(a, b):
    """Matmul with bf16 MXU operands and f32 accumulation."""
    return jnp.dot(a.astype(jnp.bfloat16), b.astype(jnp.bfloat16),
                   preferred_element_type=jnp.float32)


def _layer_norm(y, g, b):
    mu = jnp.mean(y, axis=-1, keepdims=True)
    var = jnp.mean(jnp.square(y - mu), axis=-1, keepdims=True)
    return (y - mu) * jax.lax.rsqrt(var + LN_EPS) * g + b


def _encoder_layer(x, wqkvo, w1, b1, w2, vec, head_masks, *, n_heads):
    """Post-norm transformer encoder layer with head-batched attention.

    x          : (Bk, S, D)
    wqkvo      : (4, D, D)   [Wq, Wk, Wv, Wo]
    w1, b1     : (D, F), (1, F)
    w2         : (F, D)
    vec        : (9, D)      [bq, bk, bv, bo, b2, ln1_g, ln1_b, ln2_g, ln2_b]
    head_masks : list of (1, 1, D) bf16 0/1 lane masks, one per head
    """
    bk, s, d = x.shape
    hd = d // n_heads
    scale = 1.0 / math.sqrt(hd)
    bq, bk_b, bv, bo, b2 = vec[0:1], vec[1:2], vec[2:3], vec[3:4], vec[4:5]
    g1, be1, g2, be2 = vec[5:6], vec[6:7], vec[7:8], vec[8:9]

    xf = x.reshape(bk * s, d)                              # tall M for the MXU
    # fold 1/sqrt(hd) into q; cast q/k/v to bf16 exactly once
    q = ((_mm(xf, wqkvo[0]) + bq) * scale).astype(jnp.bfloat16)
    k = (_mm(xf, wqkvo[1]) + bk_b).astype(jnp.bfloat16)
    v = (_mm(xf, wqkvo[2]) + bv).astype(jnp.bfloat16)
    q3 = q.reshape(bk, s, d)
    k3 = k.reshape(bk, s, d)
    v3 = v.reshape(bk, s, d)

    # Heads folded into the batch dim of ONE batched QK^T / PV pair: masking q
    # and v to each head's lanes keeps the contraction at full K=D (no sub-128
    # lane slices, no per-head Wo matmuls); the MXU is idle at these sizes so
    # the wider contraction is free while all relayouts disappear.
    q_all = jnp.concatenate([q3 * m for m in head_masks], axis=0)   # (H*Bk,S,D)
    k_all = jnp.concatenate([k3] * n_heads, axis=0)                 # (H*Bk,S,D)
    v_all = jnp.concatenate([v3 * m for m in head_masks], axis=0)   # (H*Bk,S,D)

    sc = jnp.einsum("bqd,bkd->bqk", q_all, k_all,
                    preferred_element_type=jnp.float32)             # (H*Bk,S,S)
    sc = sc - jnp.max(sc, axis=-1, keepdims=True)
    p = jnp.exp(sc)
    p = p * pl.reciprocal(jnp.sum(p, axis=-1, keepdims=True), approx=True)
    ctx_all = jnp.einsum("bqk,bkd->bqd", p.astype(jnp.bfloat16), v_all,
                         preferred_element_type=jnp.float32)        # (H*Bk,S,D)
    # per-head contexts live in disjoint lanes -> summing over the head axis
    # reassembles the standard concat-of-heads layout.
    ctx = jnp.sum(ctx_all.reshape(n_heads, bk * s, d), axis=0)      # (Bk*S, D)
    attn = _mm(ctx, wqkvo[3]) + bo                                  # one full-K Wo

    y = _layer_norm(xf + attn, g1, be1)
    # TODO(synk): PyTorch nn.GELU defaults to exact erf; tanh approximation used
    # here (erf has no reliable Mosaic lowering).
    h1 = jax.nn.gelu(_mm(y, w1) + b1)
    ff = _mm(h1, w2) + b2
    out = _layer_norm(y + ff, g2, be2)
    return out.reshape(bk, s, d)


# ---------------------------------------------------------------------------
# Fused kernel: tokenizer -> time encoder -> spatial encoder -> rgs head + mse
# ---------------------------------------------------------------------------
def fused_kernel(x_ref, s_ref, m_ref,
                 tkw_in, tkw_s, tkpos, tkvec,
                 twqkvo, tw1, tb1, tw2, tvec,
                 swqkvo, sw1, sb1, sw2, svec,
                 rgsw, rgsb, pfwd, pbwd,
                 xr_ref, mse_ref, *, n_heads, n_channels, n_segs):
    bk, cn, seg_len = x_ref.shape                 # (B_blk, C*N, L)
    c, n = n_channels, n_segs
    d = tkw_in.shape[1]
    hd = d // n_heads
    rows = bk * cn

    x = x_ref[...].astype(jnp.float32)            # (B_blk, C*N, L)
    xf = x.reshape(rows, seg_len)
    sf = s_ref[...].astype(jnp.float32).reshape(rows, s_ref.shape[-1])
    m = m_ref[...].astype(jnp.float32).reshape(rows, 1)   # 1.0 == masked

    # per-head lane masks (hoisted: JAX does not CSE broadcast_in_dim)
    lane = jax.lax.broadcasted_iota(jnp.int32, (1, 1, d), 2)
    head_masks = [((lane >= h * hd) & (lane < (h + 1) * hd)).astype(jnp.bfloat16)
                  for h in range(n_heads)]

    # --- tokenizer: patch embedding + band-power embedding + positional emb.
    tkv = tkvec[...]                              # (3, D): b_in, b_s, mask_token
    b_in, b_s, mtok = tkv[0:1], tkv[1:2], tkv[2:3]
    proj = _mm(xf, tkw_in[...]) + b_in
    band = _mm(sf, tkw_s[...]) + b_s
    # TODO(synk): verify brant only replaces the patch embedding on masked segs;
    # band-power + positional embeddings are still added here.
    tok = jnp.where(m > 0.5, mtok, proj)          # masked segs -> mask token
    e = (tok + band).reshape(bk * c, n, d) + tkpos[...]    # (B_blk*C, N, D)

    # --- time encoder: attention over segments, batched over (B_blk, C)
    for l in range(twqkvo.shape[0]):
        e = _encoder_layer(e, twqkvo[l], tw1[l], tb1[l], tw2[l], tvec[l],
                           head_masks, n_heads=n_heads)

    # --- spatial encoder: attention over channels, batched over (B_blk, N)
    if swqkvo.shape[0] > 0:
        # token-row permutation (b,c,n)->(b,n,c) as a one-hot f32 matmul on the
        # idle MXU (exact row copies); no strided scratch stores, no scratch.
        es = jnp.dot(pfwd[...], e.reshape(rows, d),
                     preferred_element_type=jnp.float32).reshape(bk * n, c, d)
        for l in range(swqkvo.shape[0]):
            es = _encoder_layer(es, swqkvo[l], sw1[l], sb1[l], sw2[l], svec[l],
                                head_masks, n_heads=n_heads)
        e = jnp.dot(pbwd[...], es.reshape(rows, d),
                    preferred_element_type=jnp.float32)    # back to (b,c,n)
    else:
        e = e.reshape(rows, d)

    # --- regression head + per-segment MSE
    xr = _mm(e, rgsw[...]) + rgsb[...]            # (rows, L)
    xr3 = xr.reshape(bk, cn, seg_len)
    # TODO(synk): at real seg_len emit xr as a lane-dense (B_blk, C*N*L) slab
    # (and bf16 on v5e); with L=16 the masked stores here are negligible.
    xr_ref[...] = xr3.astype(xr_ref.dtype)
    diff = x - xr3
    mse = jnp.mean(diff * diff, axis=-1)          # (B_blk, C*N)
    mse_ref[...] = jnp.expand_dims(mse, 1)        # lane-dense (B_blk, 1, C*N)


# ---------------------------------------------------------------------------
# Wrapper
# ---------------------------------------------------------------------------
def _pick_batch_block(batch, max_blk=8):
    """Largest divisor of `batch` (<= max_blk) leaving >=2 grid steps (v7x TCs)."""
    if batch <= 1:
        return 1
    best = 1
    for blk in range(1, min(batch // 2, max_blk) + 1):
        if batch % blk == 0:
            best = blk
    return best


def _cost_estimate(B, C, N, L, NB, D, F, H, nt, ns, bytes_accessed):
    tokens = B * C * N
    flops = 2 * tokens * (L + NB) * D                         # tokenizer
    flops += (nt + ns) * tokens * 2 * (4 * D * D + 2 * D * F) # qkv+o + ffn
    flops += nt * 4 * H * (B * C) * N * N * D                 # time attention
    flops += ns * 4 * H * (B * N) * C * C * D                 # spatial attention
    flops += ns * 4 * tokens * (C * N) * D                    # permutation matmuls
    flops += 2 * tokens * D * L                               # rgs head
    trans = nt * H * (B * C) * N * N + ns * H * (B * N) * C * C   # softmax exp
    trans += (nt + ns) * tokens * F                                # gelu tanh
    return pl.CostEstimate(flops=int(flops), transcendentals=int(trans),
                           bytes_accessed=int(bytes_accessed))


def brant_mae_forward(params, X, S, mask):
    B, C, N, L = X.shape
    NB = S.shape[-1]
    CN = C * N

    B_blk = _pick_batch_block(B)
    n_steps = B // B_blk

    # wrapper-side layout plumbing: present token-major slabs to the kernel
    Xf = X.reshape(B, CN, L).astype(jnp.float32)
    Sf = S.reshape(B, CN, NB).astype(jnp.float32)
    mask_f = mask.astype(jnp.float32)
    Mf = mask_f.reshape(B, CN, 1)

    # channel<->segment row permutation as one-hot matrices (exact in f32)
    T = B_blk * CN
    bb, nn, cc = np.meshgrid(np.arange(B_blk), np.arange(N), np.arange(C),
                             indexing="ij")
    dest = ((bb * N + nn) * C + cc).reshape(-1)
    src = ((bb * C + cc) * N + nn).reshape(-1)
    p_fwd_np = np.zeros((T, T), np.float32)
    p_fwd_np[dest, src] = 1.0
    p_fwd = jnp.asarray(p_fwd_np)
    p_bwd = jnp.asarray(p_fwd_np.T)

    tk = params["tokenizer"]
    te = params["encoder_t"]
    se = params["encoder_s"]
    rg = params["rgs"]
    weights = [tk["w_in"], tk["w_s"], tk["pos"], tk["vec"],
               te["wqkvo"], te["w1"], te["b1"], te["w2"], te["vec"],
               se["wqkvo"], se["w1"], se["b1"], se["w2"], se["vec"],
               rg["w"], rg["b"], p_fwd, p_bwd]

    def full_spec(arr):
        nd = arr.ndim
        return pl.BlockSpec(arr.shape, lambda b, _nd=nd: (0,) * _nd)
    # TODO(synk): at real d_model/layer counts, mark these weight specs
    # pipeline_mode=pl.Buffered(1) or add an "arbitrary" grid axis over layers
    # so only one layer's weights are resident (v7x: 64 MiB VMEM).

    act_bytes = 4 * (B * CN * (L + NB + 1) + B * CN * L + B * CN)
    w_bytes = sum(int(np.prod(w.shape)) * 4 for w in weights)
    cost = _cost_estimate(B, C, N, L, NB, D_MODEL, D_FF, N_HEADS,
                          int(te["wqkvo"].shape[0]), int(se["wqkvo"].shape[0]),
                          act_bytes + w_bytes)

    kernel = functools.partial(fused_kernel, n_heads=N_HEADS,
                               n_channels=C, n_segs=N)
    xr, mse = pl.pallas_call(
        kernel,
        out_shape=(jax.ShapeDtypeStruct((B, CN, L), jnp.float32),
                   jax.ShapeDtypeStruct((B, 1, CN), jnp.float32)),
        grid=(n_steps,),
        in_specs=[pl.BlockSpec((B_blk, CN, L), lambda b: (b, 0, 0)),
                  pl.BlockSpec((B_blk, CN, NB), lambda b: (b, 0, 0)),
                  pl.BlockSpec((B_blk, CN, 1), lambda b: (b, 0, 0))]
                 + [full_spec(w) for w in weights],
        out_specs=(pl.BlockSpec((B_blk, CN, L), lambda b: (b, 0, 0)),
                   pl.BlockSpec((B_blk, 1, CN), lambda b: (b, 0, 0))),
        compiler_params=pltpu.CompilerParams(
            dimension_semantics=("parallel",),
            vmem_limit_bytes=64 * 1024 * 1024),
        cost_estimate=cost,
    )(Xf, Sf, Mf, *weights)

    X_reconstr = xr.reshape(B, C, N, L)
    mse = mse.reshape(B, C, N)
    # masked MSE exactly as brant_mae._loss_rgs
    loss_rgs = jnp.sum(mse * mask_f) / (jnp.sum(mask_f) + 1e-12)
    loss = {"total": RGS_LOSS_SCALE * loss_rgs, "rgs": loss_rgs}
    return X_reconstr, loss


# ---------------------------------------------------------------------------
# Deterministic parameter init (synthetic; no checkpoint load)
# ---------------------------------------------------------------------------
def init_params(key, seg_len, n_segs, n_bands=N_BANDS):
    keys = iter(jax.random.split(key, 32))

    def nrm(shape, scale=0.02):
        return (scale * jax.random.normal(next(keys), shape)).astype(jnp.float32)

    D, F = D_MODEL, D_FF
    tok = {
        "w_in": nrm((seg_len, D)),
        "w_s": nrm((n_bands, D)),
        "pos": nrm((n_segs, D)),
        # packed rows: [b_in, b_s, mask_token]
        "vec": jnp.concatenate(
            [jnp.zeros((2, D), jnp.float32), nrm((1, D))], axis=0),
    }

    def encoder(n_layers):
        # packed rows: [bq, bk, bv, bo, b2, ln1_g, ln1_b, ln2_g, ln2_b]
        vec_one = jnp.concatenate(
            [jnp.zeros((5, D), jnp.float32), jnp.ones((1, D), jnp.float32),
             jnp.zeros((1, D), jnp.float32), jnp.ones((1, D), jnp.float32),
             jnp.zeros((1, D), jnp.float32)], axis=0)
        return {
            "wqkvo": nrm((n_layers, 4, D, D)),
            "w1": nrm((n_layers, D, F)),
            "b1": jnp.zeros((n_layers, 1, F), jnp.float32),
            "w2": nrm((n_layers, F, D)),
            "vec": jnp.tile(vec_one[None], (n_layers, 1, 1)).astype(jnp.float32),
        }

    return {
        "tokenizer": tok,
        "encoder_t": encoder(N_LAYERS_T),
        "encoder_s": encoder(N_LAYERS_S),
        "rgs": {"w": nrm((D, seg_len)),
                "b": jnp.zeros((1, seg_len), jnp.float32)},
    }


if __name__ == "__main__":
    B, C, N, L = 2, 4, 8, 16
    key = jax.random.PRNGKey(0)
    kx, ks, km, kp = jax.random.split(key, 4)
    X = jax.random.normal(kx, (B, C, N, L), jnp.float32)
    S = jax.random.normal(ks, (B, C, N, N_BANDS), jnp.float32)
    mask = jax.random.uniform(km, (B, C, N)) < 0.5
    params = init_params(kp, L, N)

    fwd = jax.jit(brant_mae_forward)
    X_reconstr, loss = fwd(params, X, S, mask)
    jax.block_until_ready((X_reconstr, loss))

    assert X_reconstr.shape == (B, C, N, L)
    assert loss["total"].shape == () and loss["rgs"].shape == ()
    assert bool(jnp.isfinite(loss["total"]))
    print("KERNEL_OK")
</pallas_src>

<mosaic_0001>
module attributes {stable_mosaic.version = 11 : i64} {
  func.func @fused_kernel(%arg0: i32, %arg1: memref<1x32x16xf32, #tpu.memory_space<vmem>>, %arg2: memref<1x32x8xf32, #tpu.memory_space<vmem>>, %arg3: memref<1x32x1xf32, #tpu.memory_space<vmem>>, %arg4: memref<16x128xf32, #tpu.memory_space<vmem>>, %arg5: memref<8x128xf32, #tpu.memory_space<vmem>>, %arg6: memref<8x128xf32, #tpu.memory_space<vmem>>, %arg7: memref<3x128xf32, #tpu.memory_space<vmem>>, %arg8: memref<2x4x128x128xf32, #tpu.memory_space<vmem>>, %arg9: memref<2x128x256xf32, #tpu.memory_space<vmem>>, %arg10: memref<2x1x256xf32, #tpu.memory_space<vmem>>, %arg11: memref<2x256x128xf32, #tpu.memory_space<vmem>>, %arg12: memref<2x9x128xf32, #tpu.memory_space<vmem>>, %arg13: memref<1x4x128x128xf32, #tpu.memory_space<vmem>>, %arg14: memref<1x128x256xf32, #tpu.memory_space<vmem>>, %arg15: memref<1x1x256xf32, #tpu.memory_space<vmem>>, %arg16: memref<1x256x128xf32, #tpu.memory_space<vmem>>, %arg17: memref<1x9x128xf32, #tpu.memory_space<vmem>>, %arg18: memref<128x16xf32, #tpu.memory_space<vmem>>, %arg19: memref<1x16xf32, #tpu.memory_space<vmem>>, %arg20: memref<32x32xf32, #tpu.memory_space<vmem>>, %arg21: memref<32x32xf32, #tpu.memory_space<vmem>>, %arg22: memref<1x32x16xf32, #tpu.memory_space<vmem>>, %arg23: memref<1x1x32xf32, #tpu.memory_space<vmem>>) attributes {dimension_semantics = [#tpu.dimension_semantics<parallel>], iteration_bounds = array<i64: 2>, scalar_prefetch = 0 : i64, scratch_operands = 0 : i64, tpu.core_type = #tpu.core_type<tc>, window_params = [{transform_indices = @transform_0, window_bounds = array<i64: 1, 32, 16>}, {transform_indices = @transform_1, window_bounds = array<i64: 1, 32, 8>}, {transform_indices = @transform_2, window_bounds = array<i64: 1, 32, 1>}, {pipeline_mode = #tpu.pipeline_mode<synchronous>, transform_indices = @transform_3, window_bounds = array<i64: 16, 128>}, {pipeline_mode = #tpu.pipeline_mode<synchronous>, transform_indices = @transform_4, window_bounds = array<i64: 8, 128>}, {pipeline_mode = #tpu.pipeline_mode<synchronous>, transform_indices = @transform_5, window_bounds = array<i64: 8, 128>}, {pipeline_mode = #tpu.pipeline_mode<synchronous>, transform_indices = @transform_6, window_bounds = array<i64: 3, 128>}, {pipeline_mode = #tpu.pipeline_mode<synchronous>, transform_indices = @transform_7, window_bounds = array<i64: 2, 4, 128, 128>}, {pipeline_mode = #tpu.pipeline_mode<synchronous>, transform_indices = @transform_8, window_bounds = array<i64: 2, 128, 256>}, {pipeline_mode = #tpu.pipeline_mode<synchronous>, transform_indices = @transform_9, window_bounds = array<i64: 2, 1, 256>}, {pipeline_mode = #tpu.pipeline_mode<synchronous>, transform_indices = @transform_10, window_bounds = array<i64: 2, 256, 128>}, {pipeline_mode = #tpu.pipeline_mode<synchronous>, transform_indices = @transform_11, window_bounds = array<i64: 2, 9, 128>}, {pipeline_mode = #tpu.pipeline_mode<synchronous>, transform_indices = @transform_12, window_bounds = array<i64: 1, 4, 128, 128>}, {pipeline_mode = #tpu.pipeline_mode<synchronous>, transform_indices = @transform_13, window_bounds = array<i64: 1, 128, 256>}, {pipeline_mode = #tpu.pipeline_mode<synchronous>, transform_indices = @transform_14, window_bounds = array<i64: 1, 1, 256>}, {pipeline_mode = #tpu.pipeline_mode<synchronous>, transform_indices = @transform_15, window_bounds = array<i64: 1, 256, 128>}, {pipeline_mode = #tpu.pipeline_mode<synchronous>, transform_indices = @transform_16, window_bounds = array<i64: 1, 9, 128>}, {pipeline_mode = #tpu.pipeline_mode<synchronous>, transform_indices = @transform_17, window_bounds = array<i64: 128, 16>}, {pipeline_mode = #tpu.pipeline_mode<synchronous>, transform_indices = @transform_18, window_bounds = array<i64: 1, 16>}, {pipeline_mode = #tpu.pipeline_mode<synchronous>, transform_indices = @transform_19, window_bounds = array<i64: 32, 32>}, {pipeline_mode = #tpu.pipeline_mode<synchronous>, transform_indices = @transform_20, window_bounds = array<i64: 32, 32>}, {transform_indices = @transform_21, window_bounds = array<i64: 1, 32, 16>}, {transform_indices = @transform_22, window_bounds = array<i64: 1, 1, 32>}]} {
    %c0 = arith.constant 0 : index
    %c0_0 = arith.constant 0 : index
    %c0_1 = arith.constant 0 : index
    %0 = vector.load %arg1[%c0, %c0_0, %c0_1] : memref<1x32x16xf32, #tpu.memory_space<vmem>>, vector<1x32x16xf32>
    %1 = vector.shape_cast %0 : vector<1x32x16xf32> to vector<32x16xf32>
    %c0_2 = arith.constant 0 : index
    %c0_3 = arith.constant 0 : index
    %c0_4 = arith.constant 0 : index
    %2 = vector.load %arg2[%c0_2, %c0_3, %c0_4] : memref<1x32x8xf32, #tpu.memory_space<vmem>>, vector<1x32x8xf32>
    %3 = vector.shape_cast %2 : vector<1x32x8xf32> to vector<32x8xf32>
    %c0_5 = arith.constant 0 : index
    %c0_6 = arith.constant 0 : index
    %c0_7 = arith.constant 0 : index
    %4 = vector.load %arg3[%c0_5, %c0_6, %c0_7] : memref<1x32x1xf32, #tpu.memory_space<vmem>>, vector<1x32x1xf32>
    %5 = vector.shape_cast %4 : vector<1x32x1xf32> to vector<32x1xf32>
    %6 = tpu.iota {dimensions = array<i32: 2>} : vector<1x1x128xi32>
    %c0_i32 = arith.constant 0 : i32
    %7 = vector.broadcast %c0_i32 : i32 to vector<1x1x128xi32>
    %8 = arith.cmpi sge, %6, %7 : vector<1x1x128xi32>
    %c32_i32 = arith.constant 32 : i32
    %9 = vector.broadcast %c32_i32 : i32 to vector<1x1x128xi32>
    %10 = arith.cmpi slt, %6, %9 : vector<1x1x128xi32>
    %11 = arith.andi %8, %10 : vector<1x1x128xi1>
    %12 = arith.extui %11 : vector<1x1x128xi1> to vector<1x1x128xi32>
    %13 = arith.sitofp %12 : vector<1x1x128xi32> to vector<1x1x128xf32>
    %14 = arith.truncf %13 : vector<1x1x128xf32> to vector<1x1x128xbf16>
    %c32_i32_8 = arith.constant 32 : i32
    %15 = vector.broadcast %c32_i32_8 : i32 to vector<1x1x128xi32>
    %16 = arith.cmpi sge, %6, %15 : vector<1x1x128xi32>
    %c64_i32 = arith.constant 64 : i32
    %17 = vector.broadcast %c64_i32 : i32 to vector<1x1x128xi32>
    %18 = arith.cmpi slt, %6, %17 : vector<1x1x128xi32>
    %19 = arith.andi %16, %18 : vector<1x1x128xi1>
    %20 = arith.extui %19 : vector<1x1x128xi1> to vector<1x1x128xi32>
    %21 = arith.sitofp %20 : vector<1x1x128xi32> to vector<1x1x128xf32>
    %22 = arith.truncf %21 : vector<1x1x128xf32> to vector<1x1x128xbf16>
    %c64_i32_9 = arith.constant 64 : i32
    %23 = vector.broadcast %c64_i32_9 : i32 to vector<1x1x128xi32>
    %24 = arith.cmpi sge, %6, %23 : vector<1x1x128xi32>
    %c96_i32 = arith.constant 96 : i32
    %25 = vector.broadcast %c96_i32 : i32 to vector<1x1x128xi32>
    %26 = arith.cmpi slt, %6, %25 : vector<1x1x128xi32>
    %27 = arith.andi %24, %26 : vector<1x1x128xi1>
    %28 = arith.extui %27 : vector<1x1x128xi1> to vector<1x1x128xi32>
    %29 = arith.sitofp %28 : vector<1x1x128xi32> to vector<1x1x128xf32>
    %30 = arith.truncf %29 : vector<1x1x128xf32> to vector<1x1x128xbf16>
    %c96_i32_10 = arith.constant 96 : i32
    %31 = vector.broadcast %c96_i32_10 : i32 to vector<1x1x128xi32>
    %32 = arith.cmpi sge, %6, %31 : vector<1x1x128xi32>
    %c128_i32 = arith.constant 128 : i32
    %33 = vector.broadcast %c128_i32 : i32 to vector<1x1x128xi32>
    %34 = arith.cmpi slt, %6, %33 : vector<1x1x128xi32>
    %35 = arith.andi %32, %34 : vector<1x1x128xi1>
    %36 = arith.extui %35 : vector<1x1x128xi1> to vector<1x1x128xi32>
    %37 = arith.sitofp %36 : vector<1x1x128xi32> to vector<1x1x128xf32>
    %38 = arith.truncf %37 : vector<1x1x128xf32> to vector<1x1x128xbf16>
    %c0_11 = arith.constant 0 : index
    %c0_12 = arith.constant 0 : index
    %39 = vector.load %arg7[%c0_11, %c0_12] : memref<3x128xf32, #tpu.memory_space<vmem>>, vector<3x128xf32>
    %40 = vector.extract_strided_slice %39 {offsets = [0, 0], sizes = [1, 128], strides = [1, 1]} : vector<3x128xf32> to vector<1x128xf32>
    %41 = vector.extract_strided_slice %39 {offsets = [1, 0], sizes = [1, 128], strides = [1, 1]} : vector<3x128xf32> to vector<1x128xf32>
    %42 = vector.extract_strided_slice %39 {offsets = [2, 0], sizes = [1, 128], strides = [1, 1]} : vector<3x128xf32> to vector<1x128xf32>
    %c0_13 = arith.constant 0 : index
    %c0_14 = arith.constant 0 : index
    %43 = vector.load %arg4[%c0_13, %c0_14] : memref<16x128xf32, #tpu.memory_space<vmem>>, vector<16x128xf32>
    %44 = arith.truncf %1 : vector<32x16xf32> to vector<32x16xbf16>
    %45 = arith.truncf %43 : vector<16x128xf32> to vector<16x128xbf16>
    %cst = arith.constant dense<0.000000e+00> : vector<32x128xf32>
    %46 = tpu.matmul %44, %45, %cst {dimension_numbers = #tpu.dot_dimension_numbers<[1], [0], [0], [1], [0, 0, 1, 1], [], []>} : vector<32x16xbf16>, vector<16x128xbf16>, vector<32x128xf32> -> vector<32x128xf32>
    %47 = vector.broadcast %40 : vector<1x128xf32> to vector<32x128xf32>
    %48 = arith.addf %46, %47 : vector<32x128xf32>
    %c0_15 = arith.constant 0 : index
    %c0_16 = arith.constant 0 : index
    %49 = vector.load %arg5[%c0_15, %c0_16] : memref<8x128xf32, #tpu.memory_space<vmem>>, vector<8x128xf32>
    %50 = arith.truncf %3 : vector<32x8xf32> to vector<32x8xbf16>
    %51 = arith.truncf %49 : vector<8x128xf32> to vector<8x128xbf16>
    %cst_17 = arith.constant dense<0.000000e+00> : vector<32x128xf32>
    %52 = tpu.matmul %50, %51, %cst_17 {dimension_numbers = #tpu.dot_dimension_numbers<[1], [0], [0], [1], [0, 0, 1, 1], [], []>} : vector<32x8xbf16>, vector<8x128xbf16>, vector<32x128xf32> -> vector<32x128xf32>
    %53 = vector.broadcast %41 : vector<1x128xf32> to vector<32x128xf32>
    %54 = arith.addf %52, %53 : vector<32x128xf32>
    %cst_18 = arith.constant 5.000000e-01 : f32
    %55 = vector.broadcast %cst_18 : f32 to vector<32x1xf32>
    %56 = arith.cmpf ogt, %5, %55 : vector<32x1xf32>
    %57 = vector.shape_cast %56 : vector<32x1xi1> to vector<32x1xi1>
    %58 = vector.broadcast %57 : vector<32x1xi1> to vector<32x128xi1>
    %59 = vector.shape_cast %42 : vector<1x128xf32> to vector<1x128xf32>
    %60 = vector.broadcast %59 : vector<1x128xf32> to vector<32x128xf32>
    %61 = arith.select %58, %60, %48 : vector<32x128xi1>, vector<32x128xf32>
    %62 = arith.addf %61, %54 : vector<32x128xf32>
    %63 = vector.shape_cast %62 : vector<32x128xf32> to vector<4x8x128xf32>
    %c0_19 = arith.constant 0 : index
    %c0_20 = arith.constant 0 : index
    %64 = vector.load %arg6[%c0_19, %c0_20] : memref<8x128xf32, #tpu.memory_space<vmem>>, vector<8x128xf32>
    %65 = vector.shape_cast %64 : vector<8x128xf32> to vector<1x8x128xf32>
    %66 = vector.broadcast %65 : vector<1x8x128xf32> to vector<4x8x128xf32>
    %67 = arith.addf %63, %66 : vector<4x8x128xf32>
    %c0_21 = arith.constant 0 : index
    %c0_22 = arith.constant 0 : index
    %c0_23 = arith.constant 0 : index
    %c0_24 = arith.constant 0 : index
    %68 = vector.load %arg8[%c0_21, %c0_22, %c0_23, %c0_24] : memref<2x4x128x128xf32, #tpu.memory_space<vmem>>, vector<1x4x128x128xf32>
    %69 = vector.shape_cast %68 : vector<1x4x128x128xf32> to vector<4x128x128xf32>
    %c0_25 = arith.constant 0 : index
    %c0_26 = arith.constant 0 : index
    %c0_27 = arith.constant 0 : index
    %70 = vector.load %arg9[%c0_25, %c0_26, %c0_27] : memref<2x128x256xf32, #tpu.memory_space<vmem>>, vector<1x128x256xf32>
    %71 = vector.shape_cast %70 : vector<1x128x256xf32> to vector<128x256xf32>
    %c0_28 = arith.constant 0 : index
    %c0_29 = arith.constant 0 : index
    %c0_30 = arith.constant 0 : index
    %72 = vector.load %arg10[%c0_28, %c0_29, %c0_30] : memref<2x1x256xf32, #tpu.memory_space<vmem>>, vector<1x1x256xf32>
    %73 = vector.shape_cast %72 : vector<1x1x256xf32> to vector<1x256xf32>
    %c0_31 = arith.constant 0 : index
    %c0_32 = arith.constant 0 : index
    %c0_33 = arith.constant 0 : index
    %74 = vector.load %arg11[%c0_31, %c0_32, %c0_33] : memref<2x256x128xf32, #tpu.memory_space<vmem>>, vector<1x256x128xf32>
    %75 = vector.shape_cast %74 : vector<1x256x128xf32> to vector<256x128xf32>
    %c0_34 = arith.constant 0 : index
    %c0_35 = arith.constant 0 : index
    %c0_36 = arith.constant 0 : index
    %76 = vector.load %arg12[%c0_34, %c0_35, %c0_36] : memref<2x9x128xf32, #tpu.memory_space<vmem>>, vector<1x9x128xf32>
    %77 = vector.shape_cast %76 : vector<1x9x128xf32> to vector<9x128xf32>
    %78 = vector.extract_strided_slice %77 {offsets = [0, 0], sizes = [1, 128], strides = [1, 1]} : vector<9x128xf32> to vector<1x128xf32>
    %79 = vector.extract_strided_slice %77 {offsets = [1, 0], sizes = [1, 128], strides = [1, 1]} : vector<9x128xf32> to vector<1x128xf32>
    %80 = vector.extract_strided_slice %77 {offsets = [2, 0], sizes = [1, 128], strides = [1, 1]} : vector<9x128xf32> to vector<1x128xf32>
    %81 = vector.extract_strided_slice %77 {offsets = [3, 0], sizes = [1, 128], strides = [1, 1]} : vector<9x128xf32> to vector<1x128xf32>
    %82 = vector.extract_strided_slice %77 {offsets = [4, 0], sizes = [1, 128], strides = [1, 1]} : vector<9x128xf32> to vector<1x128xf32>
    %83 = vector.extract_strided_slice %77 {offsets = [5, 0], sizes = [1, 128], strides = [1, 1]} : vector<9x128xf32> to vector<1x128xf32>
    %84 = vector.extract_strided_slice %77 {offsets = [6, 0], sizes = [1, 128], strides = [1, 1]} : vector<9x128xf32> to vector<1x128xf32>
    %85 = vector.extract_strided_slice %77 {offsets = [7, 0], sizes = [1, 128], strides = [1, 1]} : vector<9x128xf32> to vector<1x128xf32>
    %86 = vector.extract_strided_slice %77 {offsets = [8, 0], sizes = [1, 128], strides = [1, 1]} : vector<9x128xf32> to vector<1x128xf32>
    %87 = vector.shape_cast %67 : vector<4x8x128xf32> to vector<32x128xf32>
    %88 = vector.extract_strided_slice %69 {offsets = [0, 0, 0], sizes = [1, 128, 128], strides = [1, 1, 1]} : vector<4x128x128xf32> to vector<1x128x128xf32>
    %89 = vector.shape_cast %88 : vector<1x128x128xf32> to vector<128x128xf32>
    %90 = arith.truncf %87 : vector<32x128xf32> to vector<32x128xbf16>
    %91 = arith.truncf %89 : vector<128x128xf32> to vector<128x128xbf16>
    %cst_37 = arith.constant dense<0.000000e+00> : vector<32x128xf32>
    %92 = tpu.matmul %90, %91, %cst_37 {dimension_numbers = #tpu.dot_dimension_numbers<[1], [0], [0], [1], [0, 0, 1, 1], [], []>} : vector<32x128xbf16>, vector<128x128xbf16>, vector<32x128xf32> -> vector<32x128xf32>
    %93 = vector.broadcast %78 : vector<1x128xf32> to vector<32x128xf32>
    %94 = arith.addf %92, %93 : vector<32x128xf32>
    %cst_38 = arith.constant 0.176776692 : f32
    %95 = vector.broadcast %cst_38 : f32 to vector<32x128xf32>
    %96 = arith.mulf %94, %95 : vector<32x128xf32>
    %97 = arith.truncf %96 : vector<32x128xf32> to vector<32x128xbf16>
    %98 = vector.extract_strided_slice %69 {offsets = [1, 0, 0], sizes = [1, 128, 128], strides = [1, 1, 1]} : vector<4x128x128xf32> to vector<1x128x128xf32>
    %99 = vector.shape_cast %98 : vector<1x128x128xf32> to vector<128x128xf32>
    %100 = arith.truncf %87 : vector<32x128xf32> to vector<32x128xbf16>
    %101 = arith.truncf %99 : vector<128x128xf32> to vector<128x128xbf16>
    %cst_39 = arith.constant dense<0.000000e+00> : vector<32x128xf32>
    %102 = tpu.matmul %100, %101, %cst_39 {dimension_numbers = #tpu.dot_dimension_numbers<[1], [0], [0], [1], [0, 0, 1, 1], [], []>} : vector<32x128xbf16>, vector<128x128xbf16>, vector<32x128xf32> -> vector<32x128xf32>
    %103 = vector.broadcast %79 : vector<1x128xf32> to vector<32x128xf32>
    %104 = arith.addf %102, %103 : vector<32x128xf32>
    %105 = arith.truncf %104 : vector<32x128xf32> to vector<32x128xbf16>
    %106 = vector.extract_strided_slice %69 {offsets = [2, 0, 0], sizes = [1, 128, 128], strides = [1, 1, 1]} : vector<4x128x128xf32> to vector<1x128x128xf32>
    %107 = vector.shape_cast %106 : vector<1x128x128xf32> to vector<128x128xf32>
    %108 = arith.truncf %87 : vector<32x128xf32> to vector<32x128xbf16>
    %109 = arith.truncf %107 : vector<128x128xf32> to vector<128x128xbf16>
    %cst_40 = arith.constant dense<0.000000e+00> : vector<32x128xf32>
    %110 = tpu.matmul %108, %109, %cst_40 {dimension_numbers = #tpu.dot_dimension_numbers<[1], [0], [0], [1], [0, 0, 1, 1], [], []>} : vector<32x128xbf16>, vector<128x128xbf16>, vector<32x128xf32> -> vector<32x128xf32>
    %111 = vector.broadcast %80 : vector<1x128xf32> to vector<32x128xf32>
    %112 = arith.addf %110, %111 : vector<32x128xf32>
    %113 = arith.truncf %112 : vector<32x128xf32> to vector<32x128xbf16>
    %114 = vector.shape_cast %97 : vector<32x128xbf16> to vector<4x8x128xbf16>
    %115 = vector.shape_cast %105 : vector<32x128xbf16> to vector<4x8x128xbf16>
    %116 = vector.shape_cast %113 : vector<32x128xbf16> to vector<4x8x128xbf16>
    %117 = vector.broadcast %14 : vector<1x1x128xbf16> to vector<4x8x128xbf16>
    %118 = arith.mulf %114, %117 : vector<4x8x128xbf16>
    %119 = vector.broadcast %22 : vector<1x1x128xbf16> to vector<4x8x128xbf16>
    %120 = arith.mulf %114, %119 : vector<4x8x128xbf16>
    %121 = vector.broadcast %30 : vector<1x1x128xbf16> to vector<4x8x128xbf16>
    %122 = arith.mulf %114, %121 : vector<4x8x128xbf16>
    %123 = vector.broadcast %38 : vector<1x1x128xbf16> to vector<4x8x128xbf16>
    %124 = arith.mulf %114, %123 : vector<4x8x128xbf16>
    %125 = tpu.concatenate %118, %120, %122, %124 in 0 : vector<4x8x128xbf16>, vector<4x8x128xbf16>, vector<4x8x128xbf16>, vector<4x8x128xbf16> -> vector<16x8x128xbf16>
    %126 = tpu.concatenate %115, %115, %115, %115 in 0 : vector<4x8x128xbf16>, vector<4x8x128xbf16>, vector<4x8x128xbf16>, vector<4x8x128xbf16> -> vector<16x8x128xbf16>
    %127 = vector.broadcast %14 : vector<1x1x128xbf16> to vector<4x8x128xbf16>
    %128 = arith.mulf %116, %127 : vector<4x8x128xbf16>
    %129 = vector.broadcast %22 : vector<1x1x128xbf16> to vector<4x8x128xbf16>
    %130 = arith.mulf %116, %129 : vector<4x8x128xbf16>
    %131 = vector.broadcast %30 : vector<1x1x128xbf16> to vector<4x8x128xbf16>
    %132 = arith.mulf %116, %131 : vector<4x8x128xbf16>
    %133 = vector.broadcast %38 : vector<1x1x128xbf16> to vector<4x8x128xbf16>
    %134 = arith.mulf %116, %133 : vector<4x8x128xbf16>
    %135 = tpu.concatenate %128, %130, %132, %134 in 0 : vector<4x8x128xbf16>, vector<4x8x128xbf16>, vector<4x8x128xbf16>, vector<4x8x128xbf16> -> vector<16x8x128xbf16>
    "tpu.trace_start"() <{level = 10 : i32, message = "bqd,bkd->bqk"}> : () -> ()
    %cst_41 = arith.constant dense<0.000000e+00> : vector<16x8x8xf32>
    %136 = tpu.matmul %125, %126, %cst_41 {dimension_numbers = #tpu.dot_dimension_numbers<[2], [2], [1], [1], [0, 0, 0, 1, 1, 1], [0], [0]>} : vector<16x8x128xbf16>, vector<16x8x128xbf16>, vector<16x8x8xf32> -> vector<16x8x8xf32>
    "tpu.trace_stop"() : () -> ()
    %cst_42 = arith.constant dense<0xFF800000> : vector<16x8xf32>
    %137 = vector.multi_reduction <maximumf>, %136, %cst_42 [2] : vector<16x8x8xf32> to vector<16x8xf32>
    %138 = vector.shape_cast %137 : vector<16x8xf32> to vector<16x8x1xf32>
    %139 = vector.broadcast %138 : vector<16x8x1xf32> to vector<16x8x8xf32>
    %140 = arith.subf %136, %139 : vector<16x8x8xf32>
    %141 = math.exp %140 : vector<16x8x8xf32>
    %cst_43 = arith.constant dense<0.000000e+00> : vector<16x8xf32>
    %142 = vector.multi_reduction <add>, %141, %cst_43 [2] : vector<16x8x8xf32> to vector<16x8xf32>
    %143 = vector.shape_cast %142 : vector<16x8xf32> to vector<16x8x1xf32>
    %144 = tpu.reciprocal %143 {approx = true} : vector<16x8x1xf32> -> vector<16x8x1xf32>
    %145 = vector.broadcast %144 : vector<16x8x1xf32> to vector<16x8x8xf32>
    %146 = arith.mulf %141, %145 : vector<16x8x8xf32>
    %147 = arith.truncf %146 : vector<16x8x8xf32> to vector<16x8x8xbf16>
    "tpu.trace_start"() <{level = 10 : i32, message = "bqk,bkd->bqd"}> : () -> ()
    %cst_44 = arith.constant dense<0.000000e+00> : vector<16x8x128xf32>
    %148 = tpu.matmul %147, %135, %cst_44 {dimension_numbers = #tpu.dot_dimension_numbers<[2], [1], [1], [2], [0, 0, 0, 1, 1, 2], [0], [0]>} : vector<16x8x8xbf16>, vector<16x8x128xbf16>, vector<16x8x128xf32> -> vector<16x8x128xf32>
    "tpu.trace_stop"() : () -> ()
    %149 = vector.shape_cast %148 : vector<16x8x128xf32> to vector<4x32x128xf32>
    %cst_45 = arith.constant dense<0.000000e+00> : vector<32x128xf32>
    %150 = vector.multi_reduction <add>, %149, %cst_45 [0] : vector<4x32x128xf32> to vector<32x128xf32>
    %151 = vector.extract_strided_slice %69 {offsets = [3, 0, 0], sizes = [1, 128, 128], strides = [1, 1, 1]} : vector<4x128x128xf32> to vector<1x128x128xf32>
    %152 = vector.shape_cast %151 : vector<1x128x128xf32> to vector<128x128xf32>
    %153 = arith.truncf %150 : vector<32x128xf32> to vector<32x128xbf16>
    %154 = arith.truncf %152 : vector<128x128xf32> to vector<128x128xbf16>
    %cst_46 = arith.constant dense<0.000000e+00> : vector<32x128xf32>
    %155 = tpu.matmul %153, %154, %cst_46 {dimension_numbers = #tpu.dot_dimension_numbers<[1], [0], [0], [1], [0, 0, 1, 1], [], []>} : vector<32x128xbf16>, vector<128x128xbf16>, vector<32x128xf32> -> vector<32x128xf32>
    %156 = vector.broadcast %81 : vector<1x128xf32> to vector<32x128xf32>
    %157 = arith.addf %155, %156 : vector<32x128xf32>
    %158 = arith.addf %87, %157 : vector<32x128xf32>
    %cst_47 = arith.constant dense<0.000000e+00> : vector<32xf32>
    %159 = vector.multi_reduction <add>, %158, %cst_47 [1] : vector<32x128xf32> to vector<32xf32>
    %160 = vector.shape_cast %159 : vector<32xf32> to vector<32x1xf32>
    %cst_48 = arith.constant 1.280000e+02 : f32
    %161 = vector.broadcast %cst_48 : f32 to vector<32x1xf32>
    %162 = arith.divf %160, %161 : vector<32x1xf32>
    %163 = vector.broadcast %162 : vector<32x1xf32> to vector<32x128xf32>
    %164 = arith.subf %158, %163 : vector<32x128xf32>
    %165 = arith.mulf %164, %164 : vector<32x128xf32>
    %cst_49 = arith.constant dense<0.000000e+00> : vector<32xf32>
    %166 = vector.multi_reduction <add>, %165, %cst_49 [1] : vector<32x128xf32> to vector<32xf32>
    %167 = vector.shape_cast %166 : vector<32xf32> to vector<32x1xf32>
    %cst_50 = arith.constant 1.280000e+02 : f32
    %168 = vector.broadcast %cst_50 : f32 to vector<32x1xf32>
    %169 = arith.divf %167, %168 : vector<32x1xf32>
    %170 = vector.broadcast %162 : vector<32x1xf32> to vector<32x128xf32>
    %171 = arith.subf %158, %170 : vector<32x128xf32>
    %cst_51 = arith.constant 9.99999974E-6 : f32
    %172 = vector.broadcast %cst_51 : f32 to vector<32x1xf32>
    %173 = arith.addf %169, %172 : vector<32x1xf32>
    %174 = math.rsqrt %173 : vector<32x1xf32>
    %175 = vector.broadcast %174 : vector<32x1xf32> to vector<32x128xf32>
    %176 = arith.mulf %171, %175 : vector<32x128xf32>
    %177 = vector.broadcast %83 : vector<1x128xf32> to vector<32x128xf32>
    %178 = arith.mulf %176, %177 : vector<32x128xf32>
    %179 = vector.broadcast %84 : vector<1x128xf32> to vector<32x128xf32>
    %180 = arith.addf %178, %179 : vector<32x128xf32>
    %181 = arith.truncf %180 : vector<32x128xf32> to vector<32x128xbf16>
    %182 = arith.truncf %71 : vector<128x256xf32> to vector<128x256xbf16>
    %cst_52 = arith.constant dense<0.000000e+00> : vector<32x256xf32>
    %183 = tpu.matmul %181, %182, %cst_52 {dimension_numbers = #tpu.dot_dimension_numbers<[1], [0], [0], [1], [0, 0, 1, 1], [], []>} : vector<32x128xbf16>, vector<128x256xbf16>, vector<32x256xf32> -> vector<32x256xf32>
    %184 = vector.broadcast %73 : vector<1x256xf32> to vector<32x256xf32>
    %185 = arith.addf %183, %184 : vector<32x256xf32>
    %186 = arith.mulf %185, %185 : vector<32x256xf32>
    %187 = arith.mulf %185, %186 : vector<32x256xf32>
    %cst_53 = arith.constant 4.471500e-02 : f32
    %188 = vector.broadcast %cst_53 : f32 to vector<32x256xf32>
    %189 = arith.mulf %188, %187 : vector<32x256xf32>
    %190 = arith.addf %185, %189 : vector<32x256xf32>
    %cst_54 = arith.constant 0.797884583 : f32
    %191 = vector.broadcast %cst_54 : f32 to vector<32x256xf32>
    %192 = arith.mulf %191, %190 : vector<32x256xf32>
    %193 = math.tanh %192 : vector<32x256xf32>
    %cst_55 = arith.constant 1.000000e+00 : f32
    %194 = vector.broadcast %cst_55 : f32 to vector<32x256xf32>
    %195 = arith.addf %194, %193 : vector<32x256xf32>
    %cst_56 = arith.constant 5.000000e-01 : f32
    %196 = vector.broadcast %cst_56 : f32 to vector<32x256xf32>
    %197 = arith.mulf %196, %195 : vector<32x256xf32>
    %198 = arith.mulf %185, %197 : vector<32x256xf32>
    %199 = arith.truncf %198 : vector<32x256xf32> to vector<32x256xbf16>
    %200 = arith.truncf %75 : vector<256x128xf32> to vector<256x128xbf16>
    %cst_57 = arith.constant dense<0.000000e+00> : vector<32x128xf32>
    %201 = tpu.matmul %199, %200, %cst_57 {dimension_numbers = #tpu.dot_dimension_numbers<[1], [0], [0], [1], [0, 0, 1, 1], [], []>} : vector<32x256xbf16>, vector<256x128xbf16>, vector<32x128xf32> -> vector<32x128xf32>
    %202 = vector.broadcast %82 : vector<1x128xf32> to vector<32x128xf32>
    %203 = arith.addf %201, %202 : vector<32x128xf32>
    %204 = arith.addf %180, %203 : vector<32x128xf32>
    %cst_58 = arith.constant dense<0.000000e+00> : vector<32xf32>
    %205 = vector.multi_reduction <add>, %204, %cst_58 [1] : vector<32x128xf32> to vector<32xf32>
    %206 = vector.shape_cast %205 : vector<32xf32> to vector<32x1xf32>
    %cst_59 = arith.constant 1.280000e+02 : f32
    %207 = vector.broadcast %cst_59 : f32 to vector<32x1xf32>
    %208 = arith.divf %206, %207 : vector<32x1xf32>
    %209 = vector.broadcast %208 : vector<32x1xf32> to vector<32x128xf32>
    %210 = arith.subf %204, %209 : vector<32x128xf32>
    %211 = arith.mulf %210, %210 : vector<32x128xf32>
    %cst_60 = arith.constant dense<0.000000e+00> : vector<32xf32>
    %212 = vector.multi_reduction <add>, %211, %cst_60 [1] : vector<32x128xf32> to vector<32xf32>
    %213 = vector.shape_cast %212 : vector<32xf32> to vector<32x1xf32>
    %cst_61 = arith.constant 1.280000e+02 : f32
    %214 = vector.broadcast %cst_61 : f32 to vector<32x1xf32>
    %215 = arith.divf %213, %214 : vector<32x1xf32>
    %216 = vector.broadcast %208 : vector<32x1xf32> to vector<32x128xf32>
    %217 = arith.subf %204, %216 : vector<32x128xf32>
    %cst_62 = arith.constant 9.99999974E-6 : f32
    %218 = vector.broadcast %cst_62 : f32 to vector<32x1xf32>
    %219 = arith.addf %215, %218 : vector<32x1xf32>
    %220 = math.rsqrt %219 : vector<32x1xf32>
    %221 = vector.broadcast %220 : vector<32x1xf32> to vector<32x128xf32>
    %222 = arith.mulf %217, %221 : vector<32x128xf32>
    %223 = vector.broadcast %85 : vector<1x128xf32> to vector<32x128xf32>
    %224 = arith.mulf %222, %223 : vector<32x128xf32>
    %225 = vector.broadcast %86 : vector<1x128xf32> to vector<32x128xf32>
    %226 = arith.addf %224, %225 : vector<32x128xf32>
    %227 = vector.shape_cast %226 : vector<32x128xf32> to vector<4x8x128xf32>
    %c1 = arith.constant 1 : index
    %c0_63 = arith.constant 0 : index
    %c0_64 = arith.constant 0 : index
    %c0_65 = arith.constant 0 : index
    %228 = vector.load %arg8[%c1, %c0_63, %c0_64, %c0_65] : memref<2x4x128x128xf32, #tpu.memory_space<vmem>>, vector<1x4x128x128xf32>
    %229 = vector.shape_cast %228 : vector<1x4x128x128xf32> to vector<4x128x128xf32>
    %c1_66 = arith.constant 1 : index
    %c0_67 = arith.constant 0 : index
    %c0_68 = arith.constant 0 : index
    %230 = vector.load %arg9[%c1_66, %c0_67, %c0_68] : memref<2x128x256xf32, #tpu.memory_space<vmem>>, vector<1x128x256xf32>
    %231 = vector.shape_cast %230 : vector<1x128x256xf32> to vector<128x256xf32>
    %c1_69 = arith.constant 1 : index
    %c0_70 = arith.constant 0 : index
    %c0_71 = arith.constant 0 : index
    %232 = vector.load %arg10[%c1_69, %c0_70, %c0_71] : memref<2x1x256xf32, #tpu.memory_space<vmem>>, vector<1x1x256xf32>
    %233 = vector.shape_cast %232 : vector<1x1x256xf32> to vector<1x256xf32>
    %c1_72 = arith.constant 1 : index
    %c0_73 = arith.constant 0 : index
    %c0_74 = arith.constant 0 : index
    %234 = vector.load %arg11[%c1_72, %c0_73, %c0_74] : memref<2x256x128xf32, #tpu.memory_space<vmem>>, vector<1x256x128xf32>
    %235 = vector.shape_cast %234 : vector<1x256x128xf32> to vector<256x128xf32>
    %c1_75 = arith.constant 1 : index
    %c0_76 = arith.constant 0 : index
    %c0_77 = arith.constant 0 : index
    %236 = vector.load %arg12[%c1_75, %c0_76, %c0_77] : memref<2x9x128xf32, #tpu.memory_space<vmem>>, vector<1x9x128xf32>
    %237 = vector.shape_cast %236 : vector<1x9x128xf32> to vector<9x128xf32>
    %238 = vector.extract_strided_slice %237 {offsets = [0, 0], sizes = [1, 128], strides = [1, 1]} : vector<9x128xf32> to vector<1x128xf32>
    %239 = vector.extract_strided_slice %237 {offsets = [1, 0], sizes = [1, 128], strides = [1, 1]} : vector<9x128xf32> to vector<1x128xf32>
    %240 = vector.extract_strided_slice %237 {offsets = [2, 0], sizes = [1, 128], strides = [1, 1]} : vector<9x128xf32> to vector<1x128xf32>
    %241 = vector.extract_strided_slice %237 {offsets = [3, 0], sizes = [1, 128], strides = [1, 1]} : vector<9x128xf32> to vector<1x128xf32>
    %242 = vector.extract_strided_slice %237 {offsets = [4, 0], sizes = [1, 128], strides = [1, 1]} : vector<9x128xf32> to vector<1x128xf32>
    %243 = vector.extract_strided_slice %237 {offsets = [5, 0], sizes = [1, 128], strides = [1, 1]} : vector<9x128xf32> to vector<1x128xf32>
    %244 = vector.extract_strided_slice %237 {offsets = [6, 0], sizes = [1, 128], strides = [1, 1]} : vector<9x128xf32> to vector<1x128xf32>
    %245 = vector.extract_strided_slice %237 {offsets = [7, 0], sizes = [1, 128], strides = [1, 1]} : vector<9x128xf32> to vector<1x128xf32>
    %246 = vector.extract_strided_slice %237 {offsets = [8, 0], sizes = [1, 128], strides = [1, 1]} : vector<9x128xf32> to vector<1x128xf32>
    %247 = vector.shape_cast %227 : vector<4x8x128xf32> to vector<32x128xf32>
    %248 = vector.extract_strided_slice %229 {offsets = [0, 0, 0], sizes = [1, 128, 128], strides = [1, 1, 1]} : vector<4x128x128xf32> to vector<1x128x128xf32>
    %249 = vector.shape_cast %248 : vector<1x128x128xf32> to vector<128x128xf32>
    %250 = arith.truncf %247 : vector<32x128xf32> to vector<32x128xbf16>
    %251 = arith.truncf %249 : vector<128x128xf32> to vector<128x128xbf16>
    %cst_78 = arith.constant dense<0.000000e+00> : vector<32x128xf32>
    %252 = tpu.matmul %250, %251, %cst_78 {dimension_numbers = #tpu.dot_dimension_numbers<[1], [0], [0], [1], [0, 0, 1, 1], [], []>} : vector<32x128xbf16>, vector<128x128xbf16>, vector<32x128xf32> -> vector<32x128xf32>
    %253 = vector.broadcast %238 : vector<1x128xf32> to vector<32x128xf32>
    %254 = arith.addf %252, %253 : vector<32x128xf32>
    %cst_79 = arith.constant 0.176776692 : f32
    %255 = vector.broadcast %cst_79 : f32 to vector<32x128xf32>
    %256 = arith.mulf %254, %255 : vector<32x128xf32>
    %257 = arith.truncf %256 : vector<32x128xf32> to vector<32x128xbf16>
    %258 = vector.extract_strided_slice %229 {offsets = [1, 0, 0], sizes = [1, 128, 128], strides = [1, 1, 1]} : vector<4x128x128xf32> to vector<1x128x128xf32>
    %259 = vector.shape_cast %258 : vector<1x128x128xf32> to vector<128x128xf32>
    %260 = arith.truncf %247 : vector<32x128xf32> to vector<32x128xbf16>
    %261 = arith.truncf %259 : vector<128x128xf32> to vector<128x128xbf16>
    %cst_80 = arith.constant dense<0.000000e+00> : vector<32x128xf32>
    %262 = tpu.matmul %260, %261, %cst_80 {dimension_numbers = #tpu.dot_dimension_numbers<[1], [0], [0], [1], [0, 0, 1, 1], [], []>} : vector<32x128xbf16>, vector<128x128xbf16>, vector<32x128xf32> -> vector<32x128xf32>
    %263 = vector.broadcast %239 : vector<1x128xf32> to vector<32x128xf32>
    %264 = arith.addf %262, %263 : vector<32x128xf32>
    %265 = arith.truncf %264 : vector<32x128xf32> to vector<32x128xbf16>
    %266 = vector.extract_strided_slice %229 {offsets = [2, 0, 0], sizes = [1, 128, 128], strides = [1, 1, 1]} : vector<4x128x128xf32> to vector<1x128x128xf32>
    %267 = vector.shape_cast %266 : vector<1x128x128xf32> to vector<128x128xf32>
    %268 = arith.truncf %247 : vector<32x128xf32> to vector<32x128xbf16>
    %269 = arith.truncf %267 : vector<128x128xf32> to vector<128x128xbf16>
    %cst_81 = arith.constant dense<0.000000e+00> : vector<32x128xf32>
    %270 = tpu.matmul %268, %269, %cst_81 {dimension_numbers = #tpu.dot_dimension_numbers<[1], [0], [0], [1], [0, 0, 1, 1], [], []>} : vector<32x128xbf16>, vector<128x128xbf16>, vector<32x128xf32> -> vector<32x128xf32>
    %271 = vector.broadcast %240 : vector<1x128xf32> to vector<32x128xf32>
    %272 = arith.addf %270, %271 : vector<32x128xf32>
    %273 = arith.truncf %272 : vector<32x128xf32> to vector<32x128xbf16>
    %274 = vector.shape_cast %257 : vector<32x128xbf16> to vector<4x8x128xbf16>
    %275 = vector.shape_cast %265 : vector<32x128xbf16> to vector<4x8x128xbf16>
    %276 = vector.shape_cast %273 : vector<32x128xbf16> to vector<4x8x128xbf16>
    %277 = vector.broadcast %14 : vector<1x1x128xbf16> to vector<4x8x128xbf16>
    %278 = arith.mulf %274, %277 : vector<4x8x128xbf16>
    %279 = vector.broadcast %22 : vector<1x1x128xbf16> to vector<4x8x128xbf16>
    %280 = arith.mulf %274, %279 : vector<4x8x128xbf16>
    %281 = vector.broadcast %30 : vector<1x1x128xbf16> to vector<4x8x128xbf16>
    %282 = arith.mulf %274, %281 : vector<4x8x128xbf16>
    %283 = vector.broadcast %38 : vector<1x1x128xbf16> to vector<4x8x128xbf16>
    %284 = arith.mulf %274, %283 : vector<4x8x128xbf16>
    %285 = tpu.concatenate %278, %280, %282, %284 in 0 : vector<4x8x128xbf16>, vector<4x8x128xbf16>, vector<4x8x128xbf16>, vector<4x8x128xbf16> -> vector<16x8x128xbf16>
    %286 = tpu.concatenate %275, %275, %275, %275 in 0 : vector<4x8x128xbf16>, vector<4x8x128xbf16>, vector<4x8x128xbf16>, vector<4x8x128xbf16> -> vector<16x8x128xbf16>
    %287 = vector.broadcast %14 : vector<1x1x128xbf16> to vector<4x8x128xbf16>
    %288 = arith.mulf %276, %287 : vector<4x8x128xbf16>
    %289 = vector.broadcast %22 : vector<1x1x128xbf16> to vector<4x8x128xbf16>
    %290 = arith.mulf %276, %289 : vector<4x8x128xbf16>
    %291 = vector.broadcast %30 : vector<1x1x128xbf16> to vector<4x8x128xbf16>
    %292 = arith.mulf %276, %291 : vector<4x8x128xbf16>
    %293 = vector.broadcast %38 : vector<1x1x128xbf16> to vector<4x8x128xbf16>
    %294 = arith.mulf %276, %293 : vector<4x8x128xbf16>
    %295 = tpu.concatenate %288, %290, %292, %294 in 0 : vector<4x8x128xbf16>, vector<4x8x128xbf16>, vector<4x8x128xbf16>, vector<4x8x128xbf16> -> vector<16x8x128xbf16>
    "tpu.trace_start"() <{level = 10 : i32, message = "bqd,bkd->bqk"}> : () -> ()
    %cst_82 = arith.constant dense<0.000000e+00> : vector<16x8x8xf32>
    %296 = tpu.matmul %285, %286, %cst_82 {dimension_numbers = #tpu.dot_dimension_numbers<[2], [2], [1], [1], [0, 0, 0, 1, 1, 1], [0], [0]>} : vector<16x8x128xbf16>, vector<16x8x128xbf16>, vector<16x8x8xf32> -> vector<16x8x8xf32>
    "tpu.trace_stop"() : () -> ()
    %cst_83 = arith.constant dense<0xFF800000> : vector<16x8xf32>
    %297 = vector.multi_reduction <maximumf>, %296, %cst_83 [2] : vector<16x8x8xf32> to vector<16x8xf32>
    %298 = vector.shape_cast %297 : vector<16x8xf32> to vector<16x8x1xf32>
    %299 = vector.broadcast %298 : vector<16x8x1xf32> to vector<16x8x8xf32>
    %300 = arith.subf %296, %299 : vector<16x8x8xf32>
    %301 = math.exp %300 : vector<16x8x8xf32>
    %cst_84 = arith.constant dense<0.000000e+00> : vector<16x8xf32>
    %302 = vector.multi_reduction <add>, %301, %cst_84 [2] : vector<16x8x8xf32> to vector<16x8xf32>
    %303 = vector.shape_cast %302 : vector<16x8xf32> to vector<16x8x1xf32>
    %304 = tpu.reciprocal %303 {approx = true} : vector<16x8x1xf32> -> vector<16x8x1xf32>
    %305 = vector.broadcast %304 : vector<16x8x1xf32> to vector<16x8x8xf32>
    %306 = arith.mulf %301, %305 : vector<16x8x8xf32>
    %307 = arith.truncf %306 : vector<16x8x8xf32> to vector<16x8x8xbf16>
    "tpu.trace_start"() <{level = 10 : i32, message = "bqk,bkd->bqd"}> : () -> ()
    %cst_85 = arith.constant dense<0.000000e+00> : vector<16x8x128xf32>
    %308 = tpu.matmul %307, %295, %cst_85 {dimension_numbers = #tpu.dot_dimension_numbers<[2], [1], [1], [2], [0, 0, 0, 1, 1, 2], [0], [0]>} : vector<16x8x8xbf16>, vector<16x8x128xbf16>, vector<16x8x128xf32> -> vector<16x8x128xf32>
    "tpu.trace_stop"() : () -> ()
    %309 = vector.shape_cast %308 : vector<16x8x128xf32> to vector<4x32x128xf32>
    %cst_86 = arith.constant dense<0.000000e+00> : vector<32x128xf32>
    %310 = vector.multi_reduction <add>, %309, %cst_86 [0] : vector<4x32x128xf32> to vector<32x128xf32>
    %311 = vector.extract_strided_slice %229 {offsets = [3, 0, 0], sizes = [1, 128, 128], strides = [1, 1, 1]} : vector<4x128x128xf32> to vector<1x128x128xf32>
    %312 = vector.shape_cast %311 : vector<1x128x128xf32> to vector<128x128xf32>
    %313 = arith.truncf %310 : vector<32x128xf32> to vector<32x128xbf16>
    %314 = arith.truncf %312 : vector<128x128xf32> to vector<128x128xbf16>
    %cst_87 = arith.constant dense<0.000000e+00> : vector<32x128xf32>
    %315 = tpu.matmul %313, %314, %cst_87 {dimension_numbers = #tpu.dot_dimension_numbers<[1], [0], [0], [1], [0, 0, 1, 1], [], []>} : vector<32x128xbf16>, vector<128x128xbf16>, vector<32x128xf32> -> vector<32x128xf32>
    %316 = vector.broadcast %241 : vector<1x128xf32> to vector<32x128xf32>
    %317 = arith.addf %315, %316 : vector<32x128xf32>
    %318 = arith.addf %247, %317 : vector<32x128xf32>
    %cst_88 = arith.constant dense<0.000000e+00> : vector<32xf32>
    %319 = vector.multi_reduction <add>, %318, %cst_88 [1] : vector<32x128xf32> to vector<32xf32>
    %320 = vector.shape_cast %319 : vector<32xf32> to vector<32x1xf32>
    %cst_89 = arith.constant 1.280000e+02 : f32
    %321 = vector.broadcast %cst_89 : f32 to vector<32x1xf32>
    %322 = arith.divf %320, %321 : vector<32x1xf32>
    %323 = vector.broadcast %322 : vector<32x1xf32> to vector<32x128xf32>
    %324 = arith.subf %318, %323 : vector<32x128xf32>
    %325 = arith.mulf %324, %324 : vector<32x128xf32>
    %cst_90 = arith.constant dense<0.000000e+00> : vector<32xf32>
    %326 = vector.multi_reduction <add>, %325, %cst_90 [1] : vector<32x128xf32> to vector<32xf32>
    %327 = vector.shape_cast %326 : vector<32xf32> to vector<32x1xf32>
    %cst_91 = arith.constant 1.280000e+02 : f32
    %328 = vector.broadcast %cst_91 : f32 to vector<32x1xf32>
    %329 = arith.divf %327, %328 : vector<32x1xf32>
    %330 = vector.broadcast %322 : vector<32x1xf32> to vector<32x128xf32>
    %331 = arith.subf %318, %330 : vector<32x128xf32>
    %cst_92 = arith.constant 9.99999974E-6 : f32
    %332 = vector.broadcast %cst_92 : f32 to vector<32x1xf32>
    %333 = arith.addf %329, %332 : vector<32x1xf32>
    %334 = math.rsqrt %333 : vector<32x1xf32>
    %335 = vector.broadcast %334 : vector<32x1xf32> to vector<32x128xf32>
    %336 = arith.mulf %331, %335 : vector<32x128xf32>
    %337 = vector.broadcast %243 : vector<1x128xf32> to vector<32x128xf32>
    %338 = arith.mulf %336, %337 : vector<32x128xf32>
    %339 = vector.broadcast %244 : vector<1x128xf32> to vector<32x128xf32>
    %340 = arith.addf %338, %339 : vector<32x128xf32>
    %341 = arith.truncf %340 : vector<32x128xf32> to vector<32x128xbf16>
    %342 = arith.truncf %231 : vector<128x256xf32> to vector<128x256xbf16>
    %cst_93 = arith.constant dense<0.000000e+00> : vector<32x256xf32>
    %343 = tpu.matmul %341, %342, %cst_93 {dimension_numbers = #tpu.dot_dimension_numbers<[1], [0], [0], [1], [0, 0, 1, 1], [], []>} : vector<32x128xbf16>, vector<128x256xbf16>, vector<32x256xf32> -> vector<32x256xf32>
    %344 = vector.broadcast %233 : vector<1x256xf32> to vector<32x256xf32>
    %345 = arith.addf %343, %344 : vector<32x256xf32>
    %346 = arith.mulf %345, %345 : vector<32x256xf32>
    %347 = arith.mulf %345, %346 : vector<32x256xf32>
    %cst_94 = arith.constant 4.471500e-02 : f32
    %348 = vector.broadcast %cst_94 : f32 to vector<32x256xf32>
    %349 = arith.mulf %348, %347 : vector<32x256xf32>
    %350 = arith.addf %345, %349 : vector<32x256xf32>
    %cst_95 = arith.constant 0.797884583 : f32
    %351 = vector.broadcast %cst_95 : f32 to vector<32x256xf32>
    %352 = arith.mulf %351, %350 : vector<32x256xf32>
    %353 = math.tanh %352 : vector<32x256xf32>
    %cst_96 = arith.constant 1.000000e+00 : f32
    %354 = vector.broadcast %cst_96 : f32 to vector<32x256xf32>
    %355 = arith.addf %354, %353 : vector<32x256xf32>
    %cst_97 = arith.constant 5.000000e-01 : f32
    %356 = vector.broadcast %cst_97 : f32 to vector<32x256xf32>
    %357 = arith.mulf %356, %355 : vector<32x256xf32>
    %358 = arith.mulf %345, %357 : vector<32x256xf32>
    %359 = arith.truncf %358 : vector<32x256xf32> to vector<32x256xbf16>
    %360 = arith.truncf %235 : vector<256x128xf32> to vector<256x128xbf16>
    %cst_98 = arith.constant dense<0.000000e+00> : vector<32x128xf32>
    %361 = tpu.matmul %359, %360, %cst_98 {dimension_numbers = #tpu.dot_dimension_numbers<[1], [0], [0], [1], [0, 0, 1, 1], [], []>} : vector<32x256xbf16>, vector<256x128xbf16>, vector<32x128xf32> -> vector<32x128xf32>
    %362 = vector.broadcast %242 : vector<1x128xf32> to vector<32x128xf32>
    %363 = arith.addf %361, %362 : vector<32x128xf32>
    %364 = arith.addf %340, %363 : vector<32x128xf32>
    %cst_99 = arith.constant dense<0.000000e+00> : vector<32xf32>
    %365 = vector.multi_reduction <add>, %364, %cst_99 [1] : vector<32x128xf32> to vector<32xf32>
    %366 = vector.shape_cast %365 : vector<32xf32> to vector<32x1xf32>
    %cst_100 = arith.constant 1.280000e+02 : f32
    %367 = vector.broadcast %cst_100 : f32 to vector<32x1xf32>
    %368 = arith.divf %366, %367 : vector<32x1xf32>
    %369 = vector.broadcast %368 : vector<32x1xf32> to vector<32x128xf32>
    %370 = arith.subf %364, %369 : vector<32x128xf32>
    %371 = arith.mulf %370, %370 : vector<32x128xf32>
    %cst_101 = arith.constant dense<0.000000e+00> : vector<32xf32>
    %372 = vector.multi_reduction <add>, %371, %cst_101 [1] : vector<32x128xf32> to vector<32xf32>
    %373 = vector.shape_cast %372 : vector<32xf32> to vector<32x1xf32>
    %cst_102 = arith.constant 1.280000e+02 : f32
    %374 = vector.broadcast %cst_102 : f32 to vector<32x1xf32>
    %375 = arith.divf %373, %374 : vector<32x1xf32>
    %376 = vector.broadcast %368 : vector<32x1xf32> to vector<32x128xf32>
    %377 = arith.subf %364, %376 : vector<32x128xf32>
    %cst_103 = arith.constant 9.99999974E-6 : f32
    %378 = vector.broadcast %cst_103 : f32 to vector<32x1xf32>
    %379 = arith.addf %375, %378 : vector<32x1xf32>
    %380 = math.rsqrt %379 : vector<32x1xf32>
    %381 = vector.broadcast %380 : vector<32x1xf32> to vector<32x128xf32>
    %382 = arith.mulf %377, %381 : vector<32x128xf32>
    %383 = vector.broadcast %245 : vector<1x128xf32> to vector<32x128xf32>
    %384 = arith.mulf %382, %383 : vector<32x128xf32>
    %385 = vector.broadcast %246 : vector<1x128xf32> to vector<32x128xf32>
    %386 = arith.addf %384, %385 : vector<32x128xf32>
    %387 = vector.shape_cast %386 : vector<32x128xf32> to vector<4x8x128xf32>
    %c0_104 = arith.constant 0 : index
    %c0_105 = arith.constant 0 : index
    %388 = vector.load %arg20[%c0_104, %c0_105] : memref<32x32xf32, #tpu.memory_space<vmem>>, vector<32x32xf32>
    %389 = vector.shape_cast %387 : vector<4x8x128xf32> to vector<32x128xf32>
    %cst_106 = arith.constant dense<0.000000e+00> : vector<32x128xf32>
    %390 = tpu.matmul %388, %389, %cst_106 {dimension_numbers = #tpu.dot_dimension_numbers<[1], [0], [0], [1], [0, 0, 1, 1], [], []>} : vector<32x32xf32>, vector<32x128xf32>, vector<32x128xf32> -> vector<32x128xf32>
    %391 = vector.shape_cast %390 : vector<32x128xf32> to vector<8x4x128xf32>
    %c0_107 = arith.constant 0 : index
    %c0_108 = arith.constant 0 : index
    %c0_109 = arith.constant 0 : index
    %c0_110 = arith.constant 0 : index
    %392 = vector.load %arg13[%c0_107, %c0_108, %c0_109, %c0_110] : memref<1x4x128x128xf32, #tpu.memory_space<vmem>>, vector<1x4x128x128xf32>
    %393 = vector.shape_cast %392 : vector<1x4x128x128xf32> to vector<4x128x128xf32>
    %c0_111 = arith.constant 0 : index
    %c0_112 = arith.constant 0 : index
    %c0_113 = arith.constant 0 : index
    %394 = vector.load %arg14[%c0_111, %c0_112, %c0_113] : memref<1x128x256xf32, #tpu.memory_space<vmem>>, vector<1x128x256xf32>
    %395 = vector.shape_cast %394 : vector<1x128x256xf32> to vector<128x256xf32>
    %c0_114 = arith.constant 0 : index
    %c0_115 = arith.constant 0 : index
    %c0_116 = arith.constant 0 : index
    %396 = vector.load %arg15[%c0_114, %c0_115, %c0_116] : memref<1x1x256xf32, #tpu.memory_space<vmem>>, vector<1x1x256xf32>
    %397 = vector.shape_cast %396 : vector<1x1x256xf32> to vector<1x256xf32>
    %c0_117 = arith.constant 0 : index
    %c0_118 = arith.constant 0 : index
    %c0_119 = arith.constant 0 : index
    %398 = vector.load %arg16[%c0_117, %c0_118, %c0_119] : memref<1x256x128xf32, #tpu.memory_space<vmem>>, vector<1x256x128xf32>
    %399 = vector.shape_cast %398 : vector<1x256x128xf32> to vector<256x128xf32>
    %c0_120 = arith.constant 0 : index
    %c0_121 = arith.constant 0 : index
    %c0_122 = arith.constant 0 : index
    %400 = vector.load %arg17[%c0_120, %c0_121, %c0_122] : memref<1x9x128xf32, #tpu.memory_space<vmem>>, vector<1x9x128xf32>
    %401 = vector.shape_cast %400 : vector<1x9x128xf32> to vector<9x128xf32>
    %402 = vector.extract_strided_slice %401 {offsets = [0, 0], sizes = [1, 128], strides = [1, 1]} : vector<9x128xf32> to vector<1x128xf32>
    %403 = vector.extract_strided_slice %401 {offsets = [1, 0], sizes = [1, 128], strides = [1, 1]} : vector<9x128xf32> to vector<1x128xf32>
    %404 = vector.extract_strided_slice %401 {offsets = [2, 0], sizes = [1, 128], strides = [1, 1]} : vector<9x128xf32> to vector<1x128xf32>
    %405 = vector.extract_strided_slice %401 {offsets = [3, 0], sizes = [1, 128], strides = [1, 1]} : vector<9x128xf32> to vector<1x128xf32>
    %406 = vector.extract_strided_slice %401 {offsets = [4, 0], sizes = [1, 128], strides = [1, 1]} : vector<9x128xf32> to vector<1x128xf32>
    %407 = vector.extract_strided_slice %401 {offsets = [5, 0], sizes = [1, 128], strides = [1, 1]} : vector<9x128xf32> to vector<1x128xf32>
    %408 = vector.extract_strided_slice %401 {offsets = [6, 0], sizes = [1, 128], strides = [1, 1]} : vector<9x128xf32> to vector<1x128xf32>
    %409 = vector.extract_strided_slice %401 {offsets = [7, 0], sizes = [1, 128], strides = [1, 1]} : vector<9x128xf32> to vector<1x128xf32>
    %410 = vector.extract_strided_slice %401 {offsets = [8, 0], sizes = [1, 128], strides = [1, 1]} : vector<9x128xf32> to vector<1x128xf32>
    %411 = vector.shape_cast %391 : vector<8x4x128xf32> to vector<32x128xf32>
    %412 = vector.extract_strided_slice %393 {offsets = [0, 0, 0], sizes = [1, 128, 128], strides = [1, 1, 1]} : vector<4x128x128xf32> to vector<1x128x128xf32>
    %413 = vector.shape_cast %412 : vector<1x128x128xf32> to vector<128x128xf32>
    %414 = arith.truncf %411 : vector<32x128xf32> to vector<32x128xbf16>
    %415 = arith.truncf %413 : vector<128x128xf32> to vector<128x128xbf16>
    %cst_123 = arith.constant dense<0.000000e+00> : vector<32x128xf32>
    %416 = tpu.matmul %414, %415, %cst_123 {dimension_numbers = #tpu.dot_dimension_numbers<[1], [0], [0], [1], [0, 0, 1, 1], [], []>} : vector<32x128xbf16>, vector<128x128xbf16>, vector<32x128xf32> -> vector<32x128xf32>
    %417 = vector.broadcast %402 : vector<1x128xf32> to vector<32x128xf32>
    %418 = arith.addf %416, %417 : vector<32x128xf32>
    %cst_124 = arith.constant 0.176776692 : f32
    %419 = vector.broadcast %cst_124 : f32 to vector<32x128xf32>
    %420 = arith.mulf %418, %419 : vector<32x128xf32>
    %421 = arith.truncf %420 : vector<32x128xf32> to vector<32x128xbf16>
    %422 = vector.extract_strided_slice %393 {offsets = [1, 0, 0], sizes = [1, 128, 128], strides = [1, 1, 1]} : vector<4x128x128xf32> to vector<1x128x128xf32>
    %423 = vector.shape_cast %422 : vector<1x128x128xf32> to vector<128x128xf32>
    %424 = arith.truncf %411 : vector<32x128xf32> to vector<32x128xbf16>
    %425 = arith.truncf %423 : vector<128x128xf32> to vector<128x128xbf16>
    %cst_125 = arith.constant dense<0.000000e+00> : vector<32x128xf32>
    %426 = tpu.matmul %424, %425, %cst_125 {dimension_numbers = #tpu.dot_dimension_numbers<[1], [0], [0], [1], [0, 0, 1, 1], [], []>} : vector<32x128xbf16>, vector<128x128xbf16>, vector<32x128xf32> -> vector<32x128xf32>
    %427 = vector.broadcast %403 : vector<1x128xf32> to vector<32x128xf32>
    %428 = arith.addf %426, %427 : vector<32x128xf32>
    %429 = arith.truncf %428 : vector<32x128xf32> to vector<32x128xbf16>
    %430 = vector.extract_strided_slice %393 {offsets = [2, 0, 0], sizes = [1, 128, 128], strides = [1, 1, 1]} : vector<4x128x128xf32> to vector<1x128x128xf32>
    %431 = vector.shape_cast %430 : vector<1x128x128xf32> to vector<128x128xf32>
    %432 = arith.truncf %411 : vector<32x128xf32> to vector<32x128xbf16>
    %433 = arith.truncf %431 : vector<128x128xf32> to vector<128x128xbf16>
    %cst_126 = arith.constant dense<0.000000e+00> : vector<32x128xf32>
    %434 = tpu.matmul %432, %433, %cst_126 {dimension_numbers = #tpu.dot_dimension_numbers<[1], [0], [0], [1], [0, 0, 1, 1], [], []>} : vector<32x128xbf16>, vector<128x128xbf16>, vector<32x128xf32> -> vector<32x128xf32>
    %435 = vector.broadcast %404 : vector<1x128xf32> to vector<32x128xf32>
    %436 = arith.addf %434, %435 : vector<32x128xf32>
    %437 = arith.truncf %436 : vector<32x128xf32> to vector<32x128xbf16>
    %438 = vector.shape_cast %421 : vector<32x128xbf16> to vector<8x4x128xbf16>
    %439 = vector.shape_cast %429 : vector<32x128xbf16> to vector<8x4x128xbf16>
    %440 = vector.shape_cast %437 : vector<32x128xbf16> to vector<8x4x128xbf16>
    %441 = vector.broadcast %14 : vector<1x1x128xbf16> to vector<8x4x128xbf16>
    %442 = arith.mulf %438, %441 : vector<8x4x128xbf16>
    %443 = vector.broadcast %22 : vector<1x1x128xbf16> to vector<8x4x128xbf16>
    %444 = arith.mulf %438, %443 : vector<8x4x128xbf16>
    %445 = vector.broadcast %30 : vector<1x1x128xbf16> to vector<8x4x128xbf16>
    %446 = arith.mulf %438, %445 : vector<8x4x128xbf16>
    %447 = vector.broadcast %38 : vector<1x1x128xbf16> to vector<8x4x128xbf16>
    %448 = arith.mulf %438, %447 : vector<8x4x128xbf16>
    %449 = tpu.concatenate %442, %444, %446, %448 in 0 : vector<8x4x128xbf16>, vector<8x4x128xbf16>, vector<8x4x128xbf16>, vector<8x4x128xbf16> -> vector<32x4x128xbf16>
    %450 = tpu.concatenate %439, %439, %439, %439 in 0 : vector<8x4x128xbf16>, vector<8x4x128xbf16>, vector<8x4x128xbf16>, vector<8x4x128xbf16> -> vector<32x4x128xbf16>
    %451 = vector.broadcast %14 : vector<1x1x128xbf16> to vector<8x4x128xbf16>
    %452 = arith.mulf %440, %451 : vector<8x4x128xbf16>
    %453 = vector.broadcast %22 : vector<1x1x128xbf16> to vector<8x4x128xbf16>
    %454 = arith.mulf %440, %453 : vector<8x4x128xbf16>
    %455 = vector.broadcast %30 : vector<1x1x128xbf16> to vector<8x4x128xbf16>
    %456 = arith.mulf %440, %455 : vector<8x4x128xbf16>
    %457 = vector.broadcast %38 : vector<1x1x128xbf16> to vector<8x4x128xbf16>
    %458 = arith.mulf %440, %457 : vector<8x4x128xbf16>
    %459 = tpu.concatenate %452, %454, %456, %458 in 0 : vector<8x4x128xbf16>, vector<8x4x128xbf16>, vector<8x4x128xbf16>, vector<8x4x128xbf16> -> vector<32x4x128xbf16>
    "tpu.trace_start"() <{level = 10 : i32, message = "bqd,bkd->bqk"}> : () -> ()
    %cst_127 = arith.constant dense<0.000000e+00> : vector<32x4x4xf32>
    %460 = tpu.matmul %449, %450, %cst_127 {dimension_numbers = #tpu.dot_dimension_numbers<[2], [2], [1], [1], [0, 0, 0, 1, 1, 1], [0], [0]>} : vector<32x4x128xbf16>, vector<32x4x128xbf16>, vector<32x4x4xf32> -> vector<32x4x4xf32>
    "tpu.trace_stop"() : () -> ()
    %cst_128 = arith.constant dense<0xFF800000> : vector<32x4xf32>
    %461 = vector.multi_reduction <maximumf>, %460, %cst_128 [2] : vector<32x4x4xf32> to vector<32x4xf32>
    %462 = vector.shape_cast %461 : vector<32x4xf32> to vector<32x4x1xf32>
    %463 = vector.broadcast %462 : vector<32x4x1xf32> to vector<32x4x4xf32>
    %464 = arith.subf %460, %463 : vector<32x4x4xf32>
    %465 = math.exp %464 : vector<32x4x4xf32>
    %cst_129 = arith.constant dense<0.000000e+00> : vector<32x4xf32>
    %466 = vector.multi_reduction <add>, %465, %cst_129 [2] : vector<32x4x4xf32> to vector<32x4xf32>
    %467 = vector.shape_cast %466 : vector<32x4xf32> to vector<32x4x1xf32>
    %468 = tpu.reciprocal %467 {approx = true} : vector<32x4x1xf32> -> vector<32x4x1xf32>
    %469 = vector.broadcast %468 : vector<32x4x1xf32> to vector<32x4x4xf32>
    %470 = arith.mulf %465, %469 : vector<32x4x4xf32>
    %471 = arith.truncf %470 : vector<32x4x4xf32> to vector<32x4x4xbf16>
    "tpu.trace_start"() <{level = 10 : i32, message = "bqk,bkd->bqd"}> : () -> ()
    %cst_130 = arith.constant dense<0.000000e+00> : vector<32x4x128xf32>
    %472 = tpu.matmul %471, %459, %cst_130 {dimension_numbers = #tpu.dot_dimension_numbers<[2], [1], [1], [2], [0, 0, 0, 1, 1, 2], [0], [0]>} : vector<32x4x4xbf16>, vector<32x4x128xbf16>, vector<32x4x128xf32> -> vector<32x4x128xf32>
    "tpu.trace_stop"() : () -> ()
    %473 = vector.shape_cast %472 : vector<32x4x128xf32> to vector<4x32x128xf32>
    %cst_131 = arith.constant dense<0.000000e+00> : vector<32x128xf32>
    %474 = vector.multi_reduction <add>, %473, %cst_131 [0] : vector<4x32x128xf32> to vector<32x128xf32>
    %475 = vector.extract_strided_slice %393 {offsets = [3, 0, 0], sizes = [1, 128, 128], strides = [1, 1, 1]} : vector<4x128x128xf32> to vector<1x128x128xf32>
    %476 = vector.shape_cast %475 : vector<1x128x128xf32> to vector<128x128xf32>
    %477 = arith.truncf %474 : vector<32x128xf32> to vector<32x128xbf16>
    %478 = arith.truncf %476 : vector<128x128xf32> to vector<128x128xbf16>
    %cst_132 = arith.constant dense<0.000000e+00> : vector<32x128xf32>
    %479 = tpu.matmul %477, %478, %cst_132 {dimension_numbers = #tpu.dot_dimension_numbers<[1], [0], [0], [1], [0, 0, 1, 1], [], []>} : vector<32x128xbf16>, vector<128x128xbf16>, vector<32x128xf32> -> vector<32x128xf32>
    %480 = vector.broadcast %405 : vector<1x128xf32> to vector<32x128xf32>
    %481 = arith.addf %479, %480 : vector<32x128xf32>
    %482 = arith.addf %411, %481 : vector<32x128xf32>
    %cst_133 = arith.constant dense<0.000000e+00> : vector<32xf32>
    %483 = vector.multi_reduction <add>, %482, %cst_133 [1] : vector<32x128xf32> to vector<32xf32>
    %484 = vector.shape_cast %483 : vector<32xf32> to vector<32x1xf32>
    %cst_134 = arith.constant 1.280000e+02 : f32
    %485 = vector.broadcast %cst_134 : f32 to vector<32x1xf32>
    %486 = arith.divf %484, %485 : vector<32x1xf32>
    %487 = vector.broadcast %486 : vector<32x1xf32> to vector<32x128xf32>
    %488 = arith.subf %482, %487 : vector<32x128xf32>
    %489 = arith.mulf %488, %488 : vector<32x128xf32>
    %cst_135 = arith.constant dense<0.000000e+00> : vector<32xf32>
    %490 = vector.multi_reduction <add>, %489, %cst_135 [1] : vector<32x128xf32> to vector<32xf32>
    %491 = vector.shape_cast %490 : vector<32xf32> to vector<32x1xf32>
    %cst_136 = arith.constant 1.280000e+02 : f32
    %492 = vector.broadcast %cst_136 : f32 to vector<32x1xf32>
    %493 = arith.divf %491, %492 : vector<32x1xf32>
    %494 = vector.broadcast %486 : vector<32x1xf32> to vector<32x128xf32>
    %495 = arith.subf %482, %494 : vector<32x128xf32>
    %cst_137 = arith.constant 9.99999974E-6 : f32
    %496 = vector.broadcast %cst_137 : f32 to vector<32x1xf32>
    %497 = arith.addf %493, %496 : vector<32x1xf32>
    %498 = math.rsqrt %497 : vector<32x1xf32>
    %499 = vector.broadcast %498 : vector<32x1xf32> to vector<32x128xf32>
    %500 = arith.mulf %495, %499 : vector<32x128xf32>
    %501 = vector.broadcast %407 : vector<1x128xf32> to vector<32x128xf32>
    %502 = arith.mulf %500, %501 : vector<32x128xf32>
    %503 = vector.broadcast %408 : vector<1x128xf32> to vector<32x128xf32>
    %504 = arith.addf %502, %503 : vector<32x128xf32>
    %505 = arith.truncf %504 : vector<32x128xf32> to vector<32x128xbf16>
    %506 = arith.truncf %395 : vector<128x256xf32> to vector<128x256xbf16>
    %cst_138 = arith.constant dense<0.000000e+00> : vector<32x256xf32>
    %507 = tpu.matmul %505, %506, %cst_138 {dimension_numbers = #tpu.dot_dimension_numbers<[1], [0], [0], [1], [0, 0, 1, 1], [], []>} : vector<32x128xbf16>, vector<128x256xbf16>, vector<32x256xf32> -> vector<32x256xf32>
    %508 = vector.broadcast %397 : vector<1x256xf32> to vector<32x256xf32>
    %509 = arith.addf %507, %508 : vector<32x256xf32>
    %510 = arith.mulf %509, %509 : vector<32x256xf32>
    %511 = arith.mulf %509, %510 : vector<32x256xf32>
    %cst_139 = arith.constant 4.471500e-02 : f32
    %512 = vector.broadcast %cst_139 : f32 to vector<32x256xf32>
    %513 = arith.mulf %512, %511 : vector<32x256xf32>
    %514 = arith.addf %509, %513 : vector<32x256xf32>
    %cst_140 = arith.constant 0.797884583 : f32
    %515 = vector.broadcast %cst_140 : f32 to vector<32x256xf32>
    %516 = arith.mulf %515, %514 : vector<32x256xf32>
    %517 = math.tanh %516 : vector<32x256xf32>
    %cst_141 = arith.constant 1.000000e+00 : f32
    %518 = vector.broadcast %cst_141 : f32 to vector<32x256xf32>
    %519 = arith.addf %518, %517 : vector<32x256xf32>
    %cst_142 = arith.constant 5.000000e-01 : f32
    %520 = vector.broadcast %cst_142 : f32 to vector<32x256xf32>
    %521 = arith.mulf %520, %519 : vector<32x256xf32>
    %522 = arith.mulf %509, %521 : vector<32x256xf32>
    %523 = arith.truncf %522 : vector<32x256xf32> to vector<32x256xbf16>
    %524 = arith.truncf %399 : vector<256x128xf32> to vector<256x128xbf16>
    %cst_143 = arith.constant dense<0.000000e+00> : vector<32x128xf32>
    %525 = tpu.matmul %523, %524, %cst_143 {dimension_numbers = #tpu.dot_dimension_numbers<[1], [0], [0], [1], [0, 0, 1, 1], [], []>} : vector<32x256xbf16>, vector<256x128xbf16>, vector<32x128xf32> -> vector<32x128xf32>
    %526 = vector.broadcast %406 : vector<1x128xf32> to vector<32x128xf32>
    %527 = arith.addf %525, %526 : vector<32x128xf32>
    %528 = arith.addf %504, %527 : vector<32x128xf32>
    %cst_144 = arith.constant dense<0.000000e+00> : vector<32xf32>
    %529 = vector.multi_reduction <add>, %528, %cst_144 [1] : vector<32x128xf32> to vector<32xf32>
    %530 = vector.shape_cast %529 : vector<32xf32> to vector<32x1xf32>
    %cst_145 = arith.constant 1.280000e+02 : f32
    %531 = vector.broadcast %cst_145 : f32 to vector<32x1xf32>
    %532 = arith.divf %530, %531 : vector<32x1xf32>
    %533 = vector.broadcast %532 : vector<32x1xf32> to vector<32x128xf32>
    %534 = arith.subf %528, %533 : vector<32x128xf32>
    %535 = arith.mulf %534, %534 : vector<32x128xf32>
    %cst_146 = arith.constant dense<0.000000e+00> : vector<32xf32>
    %536 = vector.multi_reduction <add>, %535, %cst_146 [1] : vector<32x128xf32> to vector<32xf32>
    %537 = vector.shape_cast %536 : vector<32xf32> to vector<32x1xf32>
    %cst_147 = arith.constant 1.280000e+02 : f32
    %538 = vector.broadcast %cst_147 : f32 to vector<32x1xf32>
    %539 = arith.divf %537, %538 : vector<32x1xf32>
    %540 = vector.broadcast %532 : vector<32x1xf32> to vector<32x128xf32>
    %541 = arith.subf %528, %540 : vector<32x128xf32>
    %cst_148 = arith.constant 9.99999974E-6 : f32
    %542 = vector.broadcast %cst_148 : f32 to vector<32x1xf32>
    %543 = arith.addf %539, %542 : vector<32x1xf32>
    %544 = math.rsqrt %543 : vector<32x1xf32>
    %545 = vector.broadcast %544 : vector<32x1xf32> to vector<32x128xf32>
    %546 = arith.mulf %541, %545 : vector<32x128xf32>
    %547 = vector.broadcast %409 : vector<1x128xf32> to vector<32x128xf32>
    %548 = arith.mulf %546, %547 : vector<32x128xf32>
    %549 = vector.broadcast %410 : vector<1x128xf32> to vector<32x128xf32>
    %550 = arith.addf %548, %549 : vector<32x128xf32>
    %551 = vector.shape_cast %550 : vector<32x128xf32> to vector<8x4x128xf32>
    %c0_149 = arith.constant 0 : index
    %c0_150 = arith.constant 0 : index
    %552 = vector.load %arg21[%c0_149, %c0_150] : memref<32x32xf32, #tpu.memory_space<vmem>>, vector<32x32xf32>
    %553 = vector.shape_cast %551 : vector<8x4x128xf32> to vector<32x128xf32>
    %cst_151 = arith.constant dense<0.000000e+00> : vector<32x128xf32>
    %554 = tpu.matmul %552, %553, %cst_151 {dimension_numbers = #tpu.dot_dimension_numbers<[1], [0], [0], [1], [0, 0, 1, 1], [], []>} : vector<32x32xf32>, vector<32x128xf32>, vector<32x128xf32> -> vector<32x128xf32>
    %c0_152 = arith.constant 0 : index
    %c0_153 = arith.constant 0 : index
    %555 = vector.load %arg18[%c0_152, %c0_153] : memref<128x16xf32, #tpu.memory_space<vmem>>, vector<128x16xf32>
    %556 = arith.truncf %554 : vector<32x128xf32> to vector<32x128xbf16>
    %557 = arith.truncf %555 : vector<128x16xf32> to vector<128x16xbf16>
    %cst_154 = arith.constant dense<0.000000e+00> : vector<32x16xf32>
    %558 = tpu.matmul %556, %557, %cst_154 {dimension_numbers = #tpu.dot_dimension_numbers<[1], [0], [0], [1], [0, 0, 1, 1], [], []>} : vector<32x128xbf16>, vector<128x16xbf16>, vector<32x16xf32> -> vector<32x16xf32>
    %c0_155 = arith.constant 0 : index
    %c0_156 = arith.constant 0 : index
    %559 = vector.load %arg19[%c0_155, %c0_156] : memref<1x16xf32, #tpu.memory_space<vmem>>, vector<1x16xf32>
    %560 = vector.broadcast %559 : vector<1x16xf32> to vector<32x16xf32>
    %561 = arith.addf %558, %560 : vector<32x16xf32>
    %562 = vector.shape_cast %561 : vector<32x16xf32> to vector<1x32x16xf32>
    %c0_157 = arith.constant 0 : index
    %c0_158 = arith.constant 0 : index
    %c0_159 = arith.constant 0 : index
    %563 = vector.load %arg22[%c0_157, %c0_158, %c0_159] : memref<1x32x16xf32, #tpu.memory_space<vmem>>, vector<1x32x16xf32>
    tpu.vector_store %arg22[%c0_157, %c0_158, %c0_159], %562 {strides = array<i32>} : memref<1x32x16xf32, #tpu.memory_space<vmem>>, vector<1x32x16xf32>,
    %564 = arith.subf %0, %562 : vector<1x32x16xf32>
    %565 = arith.mulf %564, %564 : vector<1x32x16xf32>
    %cst_160 = arith.constant dense<0.000000e+00> : vector<1x32xf32>
    %566 = vector.multi_reduction <add>, %565, %cst_160 [2] : vector<1x32x16xf32> to vector<1x32xf32>
    %cst_161 = arith.constant 1.600000e+01 : f32
    %567 = vector.broadcast %cst_161 : f32 to vector<1x32xf32>
    %568 = arith.divf %566, %567 : vector<1x32xf32>
    %569 = vector.shape_cast %568 : vector<1x32xf32> to vector<1x1x32xf32>
    %c0_162 = arith.constant 0 : index
    %c0_163 = arith.constant 0 : index
    %c0_164 = arith.constant 0 : index
    %570 = vector.load %arg23[%c0_162, %c0_163, %c0_164] : memref<1x1x32xf32, #tpu.memory_space<vmem>>, vector<1x1x32xf32>
    tpu.vector_store %arg23[%c0_162, %c0_163, %c0_164], %569 {strides = array<i32>} : memref<1x1x32xf32, #tpu.memory_space<vmem>>, vector<1x1x32xf32>,
    return
  }
  func.func @transform_0(%arg0: i32) -> (i32, i32, i32) {
    %c0_i32 = arith.constant 0 : i32
    %c0_i32_0 = arith.constant 0 : i32
    %c0_i32_1 = arith.constant 0 : i32
    return %arg0, %c0_i32, %c0_i32_0 : i32, i32, i32
  }
  func.func @transform_1(%arg0: i32) -> (i32, i32, i32) {
    %c0_i32 = arith.constant 0 : i32
    %c0_i32_0 = arith.constant 0 : i32
    %c0_i32_1 = arith.constant 0 : i32
    return %arg0, %c0_i32, %c0_i32_0 : i32, i32, i32
  }
  func.func @transform_2(%arg0: i32) -> (i32, i32, i32) {
    %c0_i32 = arith.constant 0 : i32
    %c0_i32_0 = arith.constant 0 : i32
    %c0_i32_1 = arith.constant 0 : i32
    return %arg0, %c0_i32, %c0_i32_0 : i32, i32, i32
  }
  func.func @transform_3(%arg0: i32) -> (i32, i32) {
    %c0_i32 = arith.constant 0 : i32
    %c0_i32_0 = arith.constant 0 : i32
    %c0_i32_1 = arith.constant 0 : i32
    return %c0_i32, %c0_i32_0 : i32, i32
  }
  func.func @transform_4(%arg0: i32) -> (i32, i32) {
    %c0_i32 = arith.constant 0 : i32
    %c0_i32_0 = arith.constant 0 : i32
    %c0_i32_1 = arith.constant 0 : i32
    return %c0_i32, %c0_i32_0 : i32, i32
  }
  func.func @transform_5(%arg0: i32) -> (i32, i32) {
    %c0_i32 = arith.constant 0 : i32
    %c0_i32_0 = arith.constant 0 : i32
    %c0_i32_1 = arith.constant 0 : i32
    return %c0_i32, %c0_i32_0 : i32, i32
  }
  func.func @transform_6(%arg0: i32) -> (i32, i32) {
    %c0_i32 = arith.constant 0 : i32
    %c0_i32_0 = arith.constant 0 : i32
    %c0_i32_1 = arith.constant 0 : i32
    return %c0_i32, %c0_i32_0 : i32, i32
  }
  func.func @transform_7(%arg0: i32) -> (i32, i32, i32, i32) {
    %c0_i32 = arith.constant 0 : i32
    %c0_i32_0 = arith.constant 0 : i32
    %c0_i32_1 = arith.constant 0 : i32
    %c0_i32_2 = arith.constant 0 : i32
    %c0_i32_3 = arith.constant 0 : i32
    return %c0_i32, %c0_i32_0, %c0_i32_1, %c0_i32_2 : i32, i32, i32, i32
  }
  func.func @transform_8(%arg0: i32) -> (i32, i32, i32) {
    %c0_i32 = arith.constant 0 : i32
    %c0_i32_0 = arith.constant 0 : i32
    %c0_i32_1 = arith.constant 0 : i32
    %c0_i32_2 = arith.constant 0 : i32
    return %c0_i32, %c0_i32_0, %c0_i32_1 : i32, i32, i32
  }
  func.func @transform_9(%arg0: i32) -> (i32, i32, i32) {
    %c0_i32 = arith.constant 0 : i32
    %c0_i32_0 = arith.constant 0 : i32
    %c0_i32_1 = arith.constant 0 : i32
    %c0_i32_2 = arith.constant 0 : i32
    return %c0_i32, %c0_i32_0, %c0_i32_1 : i32, i32, i32
  }
  func.func @transform_10(%arg0: i32) -> (i32, i32, i32) {
    %c0_i32 = arith.constant 0 : i32
    %c0_i32_0 = arith.constant 0 : i32
    %c0_i32_1 = arith.constant 0 : i32
    %c0_i32_2 = arith.constant 0 : i32
    return %c0_i32, %c0_i32_0, %c0_i32_1 : i32, i32, i32
  }
  func.func @transform_11(%arg0: i32) -> (i32, i32, i32) {
    %c0_i32 = arith.constant 0 : i32
    %c0_i32_0 = arith.constant 0 : i32
    %c0_i32_1 = arith.constant 0 : i32
    %c0_i32_2 = arith.constant 0 : i32
    return %c0_i32, %c0_i32_0, %c0_i32_1 : i32, i32, i32
  }
  func.func @transform_12(%arg0: i32) -> (i32, i32, i32, i32) {
    %c0_i32 = arith.constant 0 : i32
    %c0_i32_0 = arith.constant 0 : i32
    %c0_i32_1 = arith.constant 0 : i32
    %c0_i32_2 = arith.constant 0 : i32
    %c0_i32_3 = arith.constant 0 : i32
    return %c0_i32, %c0_i32_0, %c0_i32_1, %c0_i32_2 : i32, i32, i32, i32
  }
  func.func @transform_13(%arg0: i32) -> (i32, i32, i32) {
    %c0_i32 = arith.constant 0 : i32
    %c0_i32_0 = arith.constant 0 : i32
    %c0_i32_1 = arith.constant 0 : i32
    %c0_i32_2 = arith.constant 0 : i32
    return %c0_i32, %c0_i32_0, %c0_i32_1 : i32, i32, i32
  }
  func.func @transform_14(%arg0: i32) -> (i32, i32, i32) {
    %c0_i32 = arith.constant 0 : i32
    %c0_i32_0 = arith.constant 0 : i32
    %c0_i32_1 = arith.constant 0 : i32
    %c0_i32_2 = arith.constant 0 : i32
    return %c0_i32, %c0_i32_0, %c0_i32_1 : i32, i32, i32
  }
  func.func @transform_15(%arg0: i32) -> (i32, i32, i32) {
    %c0_i32 = arith.constant 0 : i32
    %c0_i32_0 = arith.constant 0 : i32
    %c0_i32_1 = arith.constant 0 : i32
    %c0_i32_2 = arith.constant 0 : i32
    return %c0_i32, %c0_i32_0, %c0_i32_1 : i32, i32, i32
  }
  func.func @transform_16(%arg0: i32) -> (i32, i32, i32) {
    %c0_i32 = arith.constant 0 : i32
    %c0_i32_0 = arith.constant 0 : i32
    %c0_i32_1 = arith.constant 0 : i32
    %c0_i32_2 = arith.constant 0 : i32
    return %c0_i32, %c0_i32_0, %c0_i32_1 : i32, i32, i32
  }
  func.func @transform_17(%arg0: i32) -> (i32, i32) {
    %c0_i32 = arith.constant 0 : i32
    %c0_i32_0 = arith.constant 0 : i32
    %c0_i32_1 = arith.constant 0 : i32
    return %c0_i32, %c0_i32_0 : i32, i32
  }
  func.func @transform_18(%arg0: i32) -> (i32, i32) {
    %c0_i32 = arith.constant 0 : i32
    %c0_i32_0 = arith.constant 0 : i32
    %c0_i32_1 = arith.constant 0 : i32
    return %c0_i32, %c0_i32_0 : i32, i32
  }
  func.func @transform_19(%arg0: i32) -> (i32, i32) {
    %c0_i32 = arith.constant 0 : i32
    %c0_i32_0 = arith.constant 0 : i32
    %c0_i32_1 = arith.constant 0 : i32
    return %c0_i32, %c0_i32_0 : i32, i32
  }
  func.func @transform_20(%arg0: i32) -> (i32, i32) {
    %c0_i32 = arith.constant 0 : i32
    %c0_i32_0 = arith.constant 0 : i32
    %c0_i32_1 = arith.constant 0 : i32
    return %c0_i32, %c0_i32_0 : i32, i32
  }
  func.func @transform_21(%arg0: i32) -> (i32, i32, i32) {
    %c0_i32 = arith.constant 0 : i32
    %c0_i32_0 = arith.constant 0 : i32
    %c0_i32_1 = arith.constant 0 : i32
    return %arg0, %c0_i32, %c0_i32_0 : i32, i32, i32
  }
  func.func @transform_22(%arg0: i32) -> (i32, i32, i32) {
    %c0_i32 = arith.constant 0 : i32
    %c0_i32_0 = arith.constant 0 : i32
    %c0_i32_1 = arith.constant 0 : i32
    return %arg0, %c0_i32, %c0_i32_0 : i32, i32, i32
  }
}

</mosaic_0001>

<bundles_post_ra>
// kernel: brant_mae_forward.1
= control target key start
LH: loop header
LB: loop body
LE: loop exit
PB: predicated region body
PF: predicated region fallthrough
CT: control target
= control target key end

     0   :  { %s17284_s0 = inlined_call_operand.hbm [shape: f32[2,32,16], index: 0, kind: input, shape index: {}]   ;;  %s17285_s1 = inlined_call_operand.hbm [shape: f32[2,32,8], index: 1, kind: input, shape index: {}]   ;;  %s17286_s2 = inlined_call_operand.hbm [shape: f32[2,32,1], index: 2, kind: input, shape index: {}]   ;;  %s17287_s3 = inlined_call_operand.hbm [shape: f32[16,128], index: 3, kind: input, shape index: {}]   ;;  %s17288_s4 = inlined_call_operand.hbm [shape: f32[8,128], index: 4, kind: input, shape index: {}]   ;;  %s17289_s5 = inlined_call_operand.hbm [shape: f32[8,128], index: 5, kind: input, shape index: {}]   ;;  %s17290_s6 = inlined_call_operand.hbm [shape: f32[3,128], index: 6, kind: input, shape index: {}]   ;;  %s17291_s7 = inlined_call_operand.hbm [shape: f32[2,4,128,128], index: 7, kind: input, shape index: {}]   ;;  %s17292_s8 = inlined_call_operand.hbm [shape: f32[2,128,256], index: 8, kind: input, shape index: {}]   ;;  %s17293_s9 = inlined_call_operand.hbm [shape: f32[2,1,256], index: 9, kind: input, shape index: {}]   ;;  %s17294_s10 = inlined_call_operand.hbm [shape: f32[2,256,128], index: 10, kind: input, shape index: {}]   ;;  %s17295_s11 = inlined_call_operand.hbm [shape: f32[2,9,128], index: 11, kind: input, shape index: {}]   ;;  %s17296_s12 = inlined_call_operand.hbm [shape: f32[1,4,128,128], index: 12, kind: input, shape index: {}]   ;;  %s17297_s13 = inlined_call_operand.hbm [shape: f32[1,128,256], index: 13, kind: input, shape index: {}]   ;;  %s17298_s14 = inlined_call_operand.hbm [shape: f32[1,1,256], index: 14, kind: input, shape index: {}]   ;;  %s17299_s15 = inlined_call_operand.hbm [shape: f32[1,256,128], index: 15, kind: input, shape index: {}]   ;;  %s17300_s16 = inlined_call_operand.hbm [shape: f32[1,9,128], index: 16, kind: input, shape index: {}]   ;;  %s17301_s17 = inlined_call_operand.hbm [shape: f32[128,16], index: 17, kind: input, shape index: {}]   ;;  %s17302_s18 = inlined_call_operand.hbm [shape: f32[1,16], index: 18, kind: input, shape index: {}]   ;;  %s17303_s19 = inlined_call_operand.hbm [shape: f32[32,32], index: 19, kind: input, shape index: {}]   ;;  %s17304_s20 = inlined_call_operand.hbm [shape: f32[32,32], index: 20, kind: input, shape index: {}]   ;;  %s17305_s21 = inlined_call_operand.hbm [shape: f32[2,32,16], index: 21, kind: output, shape index: {0}]   ;;  %s17306_s22 = inlined_call_operand.hbm [shape: f32[2,1,32], index: 22, kind: output, shape index: {1}]  }
   0x1   :  { %17372 = sst [smem:[#allocation81_spill]] %s17284_s0 }
   0x2   :  { %17373 = sst [smem:[#allocation82_spill]] %s17285_s1 }
   0x3   :  { %17374 = sst [smem:[#allocation83_spill]] %s17286_s2 }
   0x4   :  { %17375 = sst [smem:[#allocation84_spill]] %s17287_s3 }
   0x5   :  { %17376 = sst [smem:[#allocation85_spill]] %s17288_s4 }
   0x6   :  { %17377 = sst [smem:[#allocation86_spill]] %s17289_s5 }
   0x7   :  { %17378 = sst [smem:[#allocation87_spill]] %s17290_s6 }
   0x8   :  { %17379 = sst [smem:[#allocation88_spill]] %s17291_s7 }
   0x9   :  { %17380 = sst [smem:[#allocation89_spill]] %s17292_s8 }
   0xa   :  { %17381 = sst [smem:[#allocation90_spill]] %s17293_s9 }
   0xb   :  { %17382 = sst [smem:[#allocation91_spill]] %s17294_s10 }
   0xc   :  { %17383 = sst [smem:[#allocation92_spill]] %s17295_s11 }
   0xd   :  { %17384 = sst [smem:[#allocation93_spill]] %s17296_s12 }
   0xe   :  { %17385 = sst [smem:[#allocation94_spill]] %s17297_s13 }
   0xf   :  { %17386 = sst [smem:[#allocation95_spill]] %s17298_s14 }
  0x10   :  { %17387 = sst [smem:[#allocation96_spill]] %s17299_s15 }
  0x11   :  { %17388 = sst [smem:[#allocation97_spill]] %s17300_s16 }
  0x12   :  { %17389 = sst [smem:[#allocation98_spill]] %s17301_s17 }
  0x13   :  { %17390 = sst [smem:[#allocation99_spill]] %s17302_s18 }
  0x14   :  { %17391 = sst [smem:[#allocation100_spill]] %s17303_s19 }
  0x15   :  { %17392 = sst [smem:[#allocation101_spill]] %s17304_s20 }
  0x16   :  { %17393 = sst [smem:[#allocation102_spill]] %s17305_s21 }
  0x17   :  { %17394 = sst [smem:[#allocation103_spill]] %s17306_s22 }
  0x18   :  { %28 = vsyncpa [#allocation3], 0 }
  0x19   :  { %30 = vsyncpa [#allocation3 + $0x1], 0 }
  0x1a   :  { %31 = vsyncpa [#allocation6], 0 }
  0x1b   :  { %33 = vsyncpa [#allocation6 + $0x1], 0 }
  0x1c   :  { %34 = vsyncpa [#allocation9], 0 }
  0x1d   :  { %35 = vsyncpa [#allocation12], 0 }
  0x1e   :  { %36 = vsyncpa [#allocation15], 0 }
  0x1f   :  { %37 = vsyncpa [#allocation18], 0 }
  0x20   :  { %38 = vsyncpa [#allocation21], 0 }
  0x21   :  { %39 = vsyncpa [#allocation24], 0 }
  0x22   :  { %40 = vsyncpa [#allocation27], 0 }
  0x23   :  { %41 = vsyncpa [#allocation30], 0 }
  0x24   :  { %42 = vsyncpa [#allocation33], 0 }
  0x25   :  { %43 = vsyncpa [#allocation4], 0 }
  0x26   :  { %45 = vsyncpa [#allocation4 + $0x1], 0 }
  0x27   :  { %46 = vsyncpa [#allocation37], 0 }
  0x28   :  { %48 = vsyncpa [#allocation37 + $0x1], 0  ;;  %s14276_s3 = smov 0   ;;  %s14278_s28 = smov 0  }
  0x29   :  { %s14280_s29 = smov 0   ;;  %s14282_s30 = smov 0  }
  0x2a LB: > { %17395 = sst [smem:[#allocation51_spill]] %s14124_s30  ;;  %s14126_s4 = smov [#allocation8]   ;;  %s14124_s30 = sphi %s14282_s30, %s17519_s30   ;;  %s14120_s29 = sphi %s14280_s29, %s17523_s29   ;;  %s14116_s28 = sphi %s14278_s28, %s17522_s28   ;;  %s14112_s3 = sphi %s14276_s3, %s17521_s3  }
  0x2b   : > { %s579_s0 = sshll.u32 %s14126_s4, 4  ;;  %s14297_s23 = sadd.s32 4294967295, %s14124_s30   ;;  %s14302_s0 = int_to_ptr.vmem [resolvable:$true] %s579_s0 }
  0x2c   : > { %p10904_p0 = scmp.ge.s32.totalorder %s14124_s30, 1  ;;  %p17323_p1 = scmp.eq.s32.totalorder %s14297_s23, 0 }
  0x2d   : > { %p567_p2 = scmp.lt.s32.totalorder %s14124_s30, 3  ;;  %s14127_s5 = smov [#allocation11]  }
  0x2e   : > { %s604_s24 = sshll.u32 %s14127_s5, 4  ;;  %s14128_s25 = smov [#allocation14]   ;;  %s14317_s24 = int_to_ptr.vmem [resolvable:$true] %s604_s24 }
  0x2f   : > { %p14304_p3 = pnand %p10904_p0, %p567_p2  ;;  %s625_s26 = sshll.u32 %s14128_s25, 4  ;;  %s14319_s26 = int_to_ptr.vmem [resolvable:$true] %s625_s26 }
  0x30   : > { %s17399_s4 = sld [smem:[#allocation84_spill]] }
  0x31   : > { %s17396_s1 = scalar_select %p14304_p3, 1, 0 }
  0x32   : > { %p12859_p5 = pneg %p14304_p3 }
  0x33   : > { %17397 = sst [smem:[#allocation52_spill]] %s17396_s1 }
  0x34   : > { %p14313_p6 = pnand %p12859_p5, %p17323_p1 }
  0x36   : > { %s17398_s6 = scalar_select %p14313_p6, 1, 0 }
  0x37   : > { %s13392_s22 = scalar_lea.hbm %s17399_s4, 256  ;;  %p14329_p8 = pneg %p14313_p6 }
  0x38   : > { %p13393_p7 = scmp.ne.s32.totalorder %s17399_s4, %s13392_s22  ;;  %p13399_p11 = scmp.lt.u32.totalorder %s13392_s22, %s17399_s4 }
  0x39   : > { %s17400_s5 = scalar_select %p14329_p8, 1, 0 }
  0x3a   : > { %p13395_p9 = pnand %p14329_p8, %p13393_p7 }
  0x3c   : > { %p13396_p10 = pneg %p13395_p9 }
  0x3e   : > { %p13401_p12 = pnand %p13399_p11, %p13396_p10 }
  0x40   : > { %13404 = shalt.err (!%p13401_p12)
}
  0x41   : > { %s13405_s21 = scalar_lea.vmem %s14302_s0, 256  ;;  %p13413_p5 = scmp.lt.s32.totalorder %s14302_s0, %s14302_s0 }
  0x42   : > { %p13406_p13 = scmp.ne.s32.totalorder %s14302_s0, %s13405_s21  ;;  %p13414_p4 = scmp.lt.s32.totalorder %s13405_s21, %s13405_s21 }
  0x44   : > { %p13408_p0 = pnand %p13406_p13, %p14329_p8  ;;  %p13415_p7 = por %p13414_p4, %p13413_p5 }
  0x46   : > { %p13409_p2 = pneg %p13408_p0 }
  0x48   : > { %p13416_p9 = pnand %p13415_p7, %p13409_p2 }
  0x4a   : > { %13419 = shalt.err (!%p13416_p9)
}
  0x4b   : > { %s17325_s1 = smov 128   ;;  %s17327_s20 = smov 8  }
  0x4c   : > { %12862 = dma.hbm_to_vmem [thread:$0]  (!%p14313_p6), %s17399_s4, 256, %s14302_s0, [#allocation9], %s17325_s1, %s17325_s1, %s17327_s20  }
  0x4d   : > { %s17401_s18 = sld [smem:[#allocation86_spill]] }
  0x53   : > { %s13420_s21 = scalar_lea.hbm %s17401_s18, 128 }
  0x54   : > { %p13421_p4 = scmp.ne.s32.totalorder %s17401_s18, %s13420_s21  ;;  %p13427_p12 = scmp.lt.u32.totalorder %s13420_s21, %s17401_s18 }
  0x56   : > { %p13423_p10 = pnand %p13421_p4, %p14329_p8 }
  0x58   : > { %p13424_p11 = pneg %p13423_p10 }
  0x5a   : > { %p13429_p13 = pnand %p13427_p12, %p13424_p11 }
  0x5c   : > { %13432 = shalt.err (!%p13429_p13)
}
  0x5d   : > { %s13433_s0 = scalar_lea.vmem %s14317_s24, 128  ;;  %p13441_p7 = scmp.lt.s32.totalorder %s14317_s24, %s14317_s24 }
  0x5e   : > { %p13434_p0 = scmp.ne.s32.totalorder %s14317_s24, %s13433_s0  ;;  %p13442_p9 = scmp.lt.s32.totalorder %s13433_s0, %s13433_s0 }
  0x60   : > { %p13436_p2 = pnand %p13434_p0, %p14329_p8  ;;  %p13443_p4 = por %p13442_p9, %p13441_p7 }
  0x62   : > { %p13437_p5 = pneg %p13436_p2 }
  0x64   : > { %p13444_p10 = pnand %p13443_p4, %p13437_p5 }
  0x66   : > { %13447 = shalt.err (!%p13444_p10)
}
  0x67   : > { %12868 = dma.hbm_to_vmem [thread:$0]  (!%p14313_p6), %s17401_s18, 128, %s14317_s24, [#allocation12]  }
  0x68   : > { %s17402_s7 = sld [smem:[#allocation88_spill]] }
  0x6e   : > { %s13448_s22 = scalar_lea.hbm %s17402_s7, 16384 }
  0x6f   : > { %p13449_p11 = scmp.ne.s32.totalorder %s17402_s7, %s13448_s22  ;;  %p13455_p0 = scmp.lt.u32.totalorder %s13448_s22, %s17402_s7 }
  0x71   : > { %p13451_p12 = pnand %p13449_p11, %p14329_p8 }
  0x73   : > { %p13452_p13 = pneg %p13451_p12 }
  0x75   : > { %p13457_p2 = pnand %p13455_p0, %p13452_p13 }
  0x77   : > { %13460 = shalt.err (!%p13457_p2)
}
  0x78   : > { %s13461_s24 = scalar_lea.vmem %s14319_s26, 16384  ;;  %p13469_p4 = scmp.lt.s32.totalorder %s14319_s26, %s14319_s26 }
  0x79   : > { %p13462_p5 = scmp.ne.s32.totalorder %s14319_s26, %s13461_s24  ;;  %p13470_p10 = scmp.lt.s32.totalorder %s13461_s24, %s13461_s24 }
  0x7b   : > { %p13464_p7 = pnand %p13462_p5, %p14329_p8  ;;  %p13471_p11 = por %p13470_p10, %p13469_p4 }
  0x7d   : > { %p13465_p9 = pneg %p13464_p7 }
  0x7f   : > { %p13472_p12 = pnand %p13471_p11, %p13465_p9 }
  0x81   : > { %13475 = shalt.err (!%p13472_p12)
}
  0x82   : > { %12874 = dma.hbm_to_vmem [thread:$0]  (!%p14313_p6), %s17402_s7, 16384, %s14319_s26, [#allocation15], %s17325_s1, %s17325_s1, %s17327_s20  }
  0x83   : > { %s14131_s12 = smov [#allocation17]   ;;  %s17403_s9 = sld [smem:[#allocation90_spill]] }
  0x84   : > { %s651_s14 = sshll.u32 %s14131_s12, 4  ;;  %s652_s14 = int_to_ptr.vmem [resolvable:$true] %s651_s14 }
  0x89   : > { %s13476_s2 = scalar_lea.hbm %s17403_s9, 64 }
  0x8a   : > { %p13477_p13 = scmp.ne.s32.totalorder %s17403_s9, %s13476_s2  ;;  %p13483_p5 = scmp.lt.u32.totalorder %s13476_s2, %s17403_s9 }
  0x8c   : > { %p13479_p0 = pnand %p13477_p13, %p14329_p8 }
  0x8e   : > { %p13480_p2 = pneg %p13479_p0 }
  0x90   : > { %p13485_p7 = pnand %p13483_p5, %p13480_p2 }
  0x92   : > { %13488 = shalt.err (!%p13485_p7)
}
  0x93   : > { %s13489_s26 = scalar_lea.vmem %s652_s14, 64  ;;  %p13497_p11 = scmp.lt.s32.totalorder %s652_s14, %s652_s14 }
  0x94   : > { %p13490_p9 = scmp.ne.s32.totalorder %s652_s14, %s13489_s26  ;;  %p13498_p12 = scmp.lt.s32.totalorder %s13489_s26, %s13489_s26 }
  0x96   : > { %p13492_p4 = pnand %p13490_p9, %p14329_p8  ;;  %p13499_p1 = por %p13498_p12, %p13497_p11 }
  0x98   : > { %p13493_p10 = pneg %p13492_p4 }
  0x9a   : > { %p13500_p3 = pnand %p13499_p1, %p13493_p10 }
  0x9c   : > { %13503 = shalt.err (!%p13500_p3)
}
  0x9d   : > { %s14132_s0 = smov 32   ;;  %s14133_s10 = smov 2  }
  0x9e   : > { %12880 = dma.hbm_to_vmem [thread:$0]  (!%p14313_p6), %s17403_s9, 64, %s652_s14, [#allocation18], %s14132_s0, %s14132_s0, %s14133_s10  }
  0x9f   : > { %s14134_s22 = smov [#allocation20]   ;;  %s17404_s11 = sld [smem:[#allocation92_spill]] }
  0xa0   : > { %s677_s2 = sshll.u32 %s14134_s22, 4  ;;  %s678_s2 = int_to_ptr.vmem [resolvable:$true] %s677_s2 }
  0xa5   : > { %s13504_s21 = scalar_lea.hbm %s17404_s11, 512 }
  0xa6   : > { %p13505_p1 = scmp.ne.s32.totalorder %s17404_s11, %s13504_s21  ;;  %p13511_p0 = scmp.lt.u32.totalorder %s13504_s21, %s17404_s11 }
  0xa8   : > { %p13507_p3 = pnand %p13505_p1, %p14329_p8 }
  0xaa   : > { %p13508_p13 = pneg %p13507_p3 }
  0xac   : > { %p13513_p2 = pnand %p13511_p0, %p13508_p13 }
  0xae   : > { %13516 = shalt.err (!%p13513_p2)
}
  0xaf   : > { %s13517_s14 = scalar_lea.vmem %s678_s2, 512  ;;  %p13525_p4 = scmp.lt.s32.totalorder %s678_s2, %s678_s2 }
  0xb0   : > { %p13518_p5 = scmp.ne.s32.totalorder %s678_s2, %s13517_s14  ;;  %p13526_p10 = scmp.lt.s32.totalorder %s13517_s14, %s13517_s14 }
  0xb2   : > { %p13520_p7 = pnand %p13518_p5, %p14329_p8  ;;  %p13527_p11 = por %p13526_p10, %p13525_p4 }
  0xb4   : > { %p13521_p9 = pneg %p13520_p7 }
  0xb6   : > { %p13528_p12 = pnand %p13527_p11, %p13521_p9 }
  0xb8   : > { %13531 = shalt.err (!%p13528_p12)
}
  0xb9   : > { %s17405_s0 = smov 8   ;;  %s17406_s10 = smov 128  }
  0xba   : > { %12886 = dma.hbm_to_vmem [thread:$0]  (!%p14313_p6), %s17404_s11, 512, %s678_s2, [#allocation21], %s17406_s10, %s17406_s10, %s17405_s0  }
  0xbb   : > { %s14135_s12 = smov [#allocation23]   ;;  %s14136_s22 = smov [#allocation26]  }
  0xbc   : > { %s703_s16 = sshll.u32 %s14135_s12, 4  ;;  %s727_s27 = sshll.u32 %s14136_s22, 4  ;;  %s704_s16 = int_to_ptr.vmem [resolvable:$true] %s703_s16  ;;  %s728_s27 = int_to_ptr.vmem [resolvable:$true] %s727_s27 }
  0xbd   : > { %s17407_s13 = sld [smem:[#allocation94_spill]] }
  0xc3   : > { %s13532_s24 = scalar_lea.hbm %s17407_s13, 4096 }
  0xc4   : > { %p13533_p1 = scmp.ne.s32.totalorder %s17407_s13, %s13532_s24  ;;  %p13539_p0 = scmp.lt.u32.totalorder %s13532_s24, %s17407_s13 }
  0xc6   : > { %p13535_p3 = pnand %p13533_p1, %p14329_p8 }
  0xc8   : > { %p13536_p13 = pneg %p13535_p3 }
  0xca   : > { %p13541_p2 = pnand %p13539_p0, %p13536_p13 }
  0xcc   : > { %13544 = shalt.err (!%p13541_p2)
}
  0xcd   : > { %s13545_s2 = scalar_lea.vmem %s704_s16, 4096  ;;  %p13553_p4 = scmp.lt.s32.totalorder %s704_s16, %s704_s16 }
  0xce   : > { %p13546_p5 = scmp.ne.s32.totalorder %s704_s16, %s13545_s2  ;;  %p13554_p10 = scmp.lt.s32.totalorder %s13545_s2, %s13545_s2 }
  0xd0   : > { %p13548_p7 = pnand %p13546_p5, %p14329_p8  ;;  %p13555_p11 = por %p13554_p10, %p13553_p4 }
  0xd2   : > { %p13549_p9 = pneg %p13548_p7 }
  0xd4   : > { %p13556_p12 = pnand %p13555_p11, %p13549_p9 }
  0xd6   : > { %13559 = shalt.err (!%p13556_p12)
}
  0xd7   : > { %s17330_s20 = smov 256   ;;  %s17331_s12 = smov 16  }
  0xd8   : > { %12892 = dma.hbm_to_vmem [thread:$0]  (!%p14313_p6), %s17407_s13, 4096, %s704_s16, [#allocation24], %s17330_s20, %s17330_s20, %s17331_s12  }
  0xd9   : > { %s17408_s15 = sld [smem:[#allocation96_spill]] }
  0xdf   : > { %s13560_s24 = scalar_lea.hbm %s17408_s15, 4096 }
  0xe0   : > { %p13561_p1 = scmp.ne.s32.totalorder %s17408_s15, %s13560_s24  ;;  %p13567_p0 = scmp.lt.u32.totalorder %s13560_s24, %s17408_s15 }
  0xe2   : > { %p13563_p3 = pnand %p13561_p1, %p14329_p8 }
  0xe4   : > { %p13564_p13 = pneg %p13563_p3 }
  0xe6   : > { %p13569_p2 = pnand %p13567_p0, %p13564_p13 }
  0xe8   : > { %13572 = shalt.err (!%p13569_p2)
}
  0xe9   : > { %s13573_s4 = scalar_lea.vmem %s728_s27, 4096  ;;  %p13581_p4 = scmp.lt.s32.totalorder %s728_s27, %s728_s27 }
  0xea   : > { %p13574_p5 = scmp.ne.s32.totalorder %s728_s27, %s13573_s4  ;;  %p13582_p10 = scmp.lt.s32.totalorder %s13573_s4, %s13573_s4 }
  0xec   : > { %p13576_p7 = pnand %p13574_p5, %p14329_p8  ;;  %p13583_p11 = por %p13582_p10, %p13581_p4 }
  0xee   : > { %p13577_p9 = pneg %p13576_p7 }
  0xf0   : > { %p13584_p12 = pnand %p13583_p11, %p13577_p9 }
  0xf2   : > { %13587 = shalt.err (!%p13584_p12)
}
  0xf3   : > { %12898 = dma.hbm_to_vmem [thread:$0]  (!%p14313_p6), %s17408_s15, 4096, %s728_s27, [#allocation27], %s17406_s10, %s17406_s10, %s17405_s0  }
  0xf4   : > { %s14139_s25 = smov [#allocation29]   ;;  %s14140_s24 = smov [#allocation32]  }
  0xf5   : > { %s753_s21 = sshll.u32 %s14139_s25, 4  ;;  %s777_s26 = sshll.u32 %s14140_s24, 4  ;;  %s754_s21 = int_to_ptr.vmem [resolvable:$true] %s753_s21  ;;  %s778_s26 = int_to_ptr.vmem [resolvable:$true] %s777_s26 }
  0xf6   : > { %s17409_s17 = sld [smem:[#allocation98_spill]] }
  0xfc   : > { %s13588_s2 = scalar_lea.hbm %s17409_s17, 2048 }
  0xfd   : > { %p13589_p1 = scmp.ne.s32.totalorder %s17409_s17, %s13588_s2  ;;  %p13595_p0 = scmp.lt.u32.totalorder %s13588_s2, %s17409_s17 }
  0xff   : > { %p13591_p3 = pnand %p13589_p1, %p14329_p8 }
 0x101   : > { %p13592_p13 = pneg %p13591_p3 }
 0x103   : > { %p13597_p2 = pnand %p13595_p0, %p13592_p13 }
 0x105   : > { %13600 = shalt.err (!%p13597_p2)
}
 0x106   : > { %s13601_s27 = scalar_lea.vmem %s754_s21, 2048  ;;  %p13609_p4 = scmp.lt.s32.totalorder %s754_s21, %s754_s21 }
 0x107   : > { %p13602_p5 = scmp.ne.s32.totalorder %s754_s21, %s13601_s27  ;;  %p13610_p10 = scmp.lt.s32.totalorder %s13601_s27, %s13601_s27 }
 0x109   : > { %p13604_p7 = pnand %p13602_p5, %p14329_p8  ;;  %p13611_p11 = por %p13610_p10, %p13609_p4 }
 0x10b   : > { %p13605_p9 = pneg %p13604_p7 }
 0x10d   : > { %p13612_p12 = pnand %p13611_p11, %p13605_p9 }
 0x10f   : > { %13615 = shalt.err (!%p13612_p12)
}
 0x110   : > { %12904 = dma.hbm_to_vmem [thread:$0]  (!%p14313_p6), %s17409_s17, 2048, %s754_s21, [#allocation30], %s17406_s10, %s17406_s10, %s17405_s0  }
 0x111   : > { %s17410_s19 = sld [smem:[#allocation100_spill]] }
 0x117   : > { %s13616_s24 = scalar_lea.hbm %s17410_s19, 512 }
 0x118   : > { %p13617_p1 = scmp.ne.s32.totalorder %s17410_s19, %s13616_s24  ;;  %p13623_p0 = scmp.lt.u32.totalorder %s13616_s24, %s17410_s19 }
 0x11a   : > { %p13619_p3 = pnand %p13617_p1, %p14329_p8 }
 0x11c   : > { %p13620_p13 = pneg %p13619_p3 }
 0x11e   : > { %p13625_p2 = pnand %p13623_p0, %p13620_p13 }
 0x120   : > { %13628 = shalt.err (!%p13625_p2)
}
 0x121   : > { %s13629_s16 = scalar_lea.vmem %s778_s26, 512  ;;  %p13637_p4 = scmp.lt.s32.totalorder %s778_s26, %s778_s26 }
 0x122   : > { %p13630_p5 = scmp.ne.s32.totalorder %s778_s26, %s13629_s16  ;;  %p13638_p10 = scmp.lt.s32.totalorder %s13629_s16, %s13629_s16 }
 0x124   : > { %p13632_p7 = pnand %p13630_p5, %p14329_p8  ;;  %p13639_p11 = por %p13638_p10, %p13637_p4 }
 0x126   : > { %p13633_p9 = pneg %p13632_p7 }
 0x128   : > { %p13640_p12 = pnand %p13639_p11, %p13633_p9 }
 0x12a   : > { %13643 = shalt.err (!%p13640_p12)
}
 0x12b   : > { %12910 = dma.hbm_to_vmem [thread:$0]  (!%p14313_p6), %s17410_s19, 512, %s778_s26, [#allocation33], %s17406_s10, %s17406_s10, %s17405_s0  }
 0x12c   : > { %s10903_s20 = sadd.s32 4294967294, %s14124_s30   ;;  %s14527_s12 = sadd.s32 1, %s14124_s30  }
 0x12d   : > { %17411 = sst [smem:[#allocation53_spill]] %s14527_s12  ;;  %s61_s22 = sadd.s32 1, %s14120_s29 }
 0x12e   : > { %s58_s25 = ssub.s32 %s14124_s30, %s14527_s12  ;;  %p68_p1 = scmp.ne.s32.totalorder %s14120_s29, %s14116_s28 }
 0x12f   : > { %p59_p3 = scmp.eq.s32.totalorder %s58_s25, 0  ;;  %p69_p13 = scmp.eq.s32.totalorder %s14124_s30, 0 }
 0x130   : > { %p74_p0 = scmp.ne.s32.totalorder %s14116_s28, %s14112_s3  ;;  %p528_p2 = scmp.eq.s32.totalorder %s14297_s23, 1 }
 0x131   : > { %s14539_s24 = scalar_select %p59_p3, %s14120_s29, %s61_s22  }
 0x132   : > { %p70_p5 = por %p69_p13, %p68_p1  ;;  %p17413_p7 = scmp.eq.s32.totalorder %s14297_s23, 0 }
 0x133   : > { %17412 = sst [smem:[#allocation54_spill]] %s14539_s24  ;;  %p14547_p4 = por %p528_p2, %p68_p1 }
 0x134   : > { %p14543_p9 = por %p17413_p7, %p74_p0  ;;  %p534_p10 = scmp.eq.s32.totalorder %s10903_s20, 1 }
 0x135   : > { %s17415_s14 = scalar_select %p14547_p4, 1, 0 }
 0x136   : > { %s17414_s26 = scalar_select %p14543_p9, 1, 0 }
 0x137   : > { %p12949_p11 = scmp.lt.s32.totalorder %s14124_s30, 2  ;;  %s17332_s1 = sand.u32 1, %s14120_s29  }
 0x138   : > { %p14553_p12 = por %p534_p10, %p74_p0  ;;  %s14559_s4 = sshll.u32 %s17332_s1, 5 }
 0x139   : > { %s14562_s16 = sshll.u32 %s14124_s30, 9  ;;  %p14564_p3 = pnand %p12949_p11, %p70_p5 }
 0x13a   : > { %s17416_s2 = scalar_select %p14553_p12, 1, 0 }
 0x13b   : > { %s17417_s21 = scalar_select %p14564_p3, 1, 0 }
 0x13c   : > { %s825_s27 = sand.u32 1, %s14124_s30   ;;  %s17418_s25 = sld [smem:[#allocation82_spill]] }
 0x13d   : > { %s829_s1 = scalar_lea.vmem [#allocation5], %s14559_s4  ;;  %s14578_s11 = scalar_lea.sflag [#allocation6], %s825_s27 }
 0x13e   : > { %s836_s9 = sshll.u32 %s829_s1, 4  ;;  %p14584_p13 = pneg %p14564_p3  ;;  %s14576_s9 = int_to_ptr.vmem [resolvable:$true] %s836_s9 }
 0x140   : > { %s17419_s15 = scalar_select %p14584_p13, 1, 0 }
 0x142   : > { %s14573_s7 = scalar_lea.hbm %s17418_s25, %s14562_s16  ;;  %s13649_s17 = scalar_lea.hbm %s17418_s25, 1024 }
 0x143   : > { %s13644_s13 = scalar_lea.hbm %s14573_s7, 512  ;;  %p13650_p5 = scmp.lt.u32.totalorder %s14573_s7, %s17418_s25 }
 0x144   : > { %p13645_p1 = scmp.ne.s32.totalorder %s14573_s7, %s13644_s13  ;;  %p13651_p7 = scmp.lt.u32.totalorder %s13649_s17, %s13644_s13 }
 0x145   : > { %p13653_p11 = scmp.lt.u32.totalorder %s13644_s13, %s14573_s7 }
 0x146   : > { %p13647_p0 = pnand %p14584_p13, %p13645_p1  ;;  %p13652_p10 = por %p13651_p7, %p13650_p5 }
 0x148   : > { %p13648_p2 = pneg %p13647_p0  ;;  %p13654_p12 = por %p13653_p11, %p13652_p10 }
 0x14a   : > { %p13655_p4 = pnand %p13654_p12, %p13648_p2 }
 0x14c   : > { %13658 = shalt.err (!%p13655_p4)
}
 0x14d   : > { %s13659_s27 = scalar_lea.vmem %s14576_s9, 512  ;;  %s14141_s20 = smov [#allocation5]  }
 0x14e   : > { %p13660_p1 = scmp.ne.s32.totalorder %s14576_s9, %s13659_s27  ;;  %s13664_s22 = sshll.u32 %s14141_s20, 4  ;;  %s13665_s22 = int_to_ptr.vmem [resolvable:$false] %s13664_s22 }
 0x14f   : > { %s13666_s18 = scalar_lea.vmem %s13665_s22, 1024  ;;  %p13667_p6 = scmp.lt.s32.totalorder %s14576_s9, %s13665_s22 }
 0x150   : > { %p13662_p0 = pnand %p13660_p1, %p14584_p13  ;;  %p13668_p8 = scmp.lt.s32.totalorder %s13666_s18, %s13659_s27 }
 0x152   : > { %p13663_p9 = pneg %p13662_p0  ;;  %p13669_p5 = por %p13668_p8, %p13667_p6 }
 0x154   : > { %p13670_p7 = pnand %p13669_p5, %p13663_p9 }
 0x156   : > { %13673 = shalt.err (!%p13670_p7)
}
 0x157   : > { %12920 = dma.hbm_to_vmem [thread:$0]  (!%p14564_p3), %s14573_s7, 512, %s14576_s9, %s14578_s11, %s17406_s10, %s17406_s10, %s17405_s0  }
 0x158   : > { %s14142_s13 = smov [#allocation10]   ;;  %s14143_s1 = smov [#allocation13]  }
 0x159   : > { %s593_s17 = sshll.u32 %s14142_s13, 4  ;;  %s615_s20 = sshll.u32 %s14143_s1, 4  ;;  %s594_s17 = int_to_ptr.vmem [resolvable:$true] %s593_s17  ;;  %s616_s20 = int_to_ptr.vmem [resolvable:$true] %s615_s20 }
 0x15a   : > { %s17420_s18 = sld [smem:[#allocation85_spill]]  ;;  %p17421_p8 = scmp.ne.s32.totalorder %s17400_s5, 0 }
 0x160   : > { %s13674_s19 = scalar_lea.hbm %s17420_s18, 128 }
 0x161   : > { %p13675_p6 = scmp.ne.s32.totalorder %s17420_s18, %s13674_s19  ;;  %p13681_p12 = scmp.lt.u32.totalorder %s13674_s19, %s17420_s18 }
 0x163   : > { %p13677_p9 = pnand %p13675_p6, %p17421_p8 }
 0x165   : > { %p13678_p4 = pneg %p13677_p9 }
 0x167   : > { %p13683_p2 = pnand %p13681_p12, %p13678_p4 }
 0x169   : > { %13686 = shalt.err (!%p13683_p2)
}
 0x16a   : > { %s13687_s7 = scalar_lea.vmem %s594_s17, 128  ;;  %p13695_p0 = scmp.lt.s32.totalorder %s594_s17, %s594_s17 }
 0x16b   : > { %p13688_p10 = scmp.ne.s32.totalorder %s594_s17, %s13687_s7  ;;  %p13696_p5 = scmp.lt.s32.totalorder %s13687_s7, %s13687_s7 }
 0x16d   : > { %p13690_p11 = pnand %p13688_p10, %p17421_p8  ;;  %p13697_p7 = por %p13696_p5, %p13695_p0 }
 0x16f   : > { %p13691_p1 = pneg %p13690_p11 }
 0x171   : > { %p13698_p3 = pnand %p13697_p7, %p13691_p1 }
 0x173   : > { %13701 = shalt.err (!%p13698_p3)
}
 0x174   : > { %p17422_p6 = scmp.ne.s32.totalorder %s17398_s6, 0  ;;  %s17423_s12 = sld [smem:[#allocation87_spill]] }
 0x176   : > { %12865 = dma.hbm_to_vmem [thread:$0]  (!%p17422_p6), %s17420_s18, 128, %s594_s17, [#allocation9]  }
 0x17a   : > { %s13702_s25 = scalar_lea.hbm %s17423_s12, 64 }
 0x17b   : > { %p13703_p9 = scmp.ne.s32.totalorder %s17423_s12, %s13702_s25  ;;  %p13709_p3 = scmp.lt.u32.totalorder %s13702_s25, %s17423_s12 }
 0x17d   : > { %p13705_p4 = pnand %p13703_p9, %p17421_p8 }
 0x17f   : > { %p13706_p12 = pneg %p13705_p4 }
 0x181   : > { %p13711_p2 = pnand %p13709_p3, %p13706_p12 }
 0x183   : > { %13714 = shalt.err (!%p13711_p2)
}
 0x184   : > { %s13715_s7 = scalar_lea.vmem %s616_s20, 64  ;;  %p13723_p0 = scmp.lt.s32.totalorder %s616_s20, %s616_s20 }
 0x185   : > { %p13716_p10 = scmp.ne.s32.totalorder %s616_s20, %s13715_s7  ;;  %p13724_p5 = scmp.lt.s32.totalorder %s13715_s7, %s13715_s7 }
 0x187   : > { %p13718_p11 = pnand %p13716_p10, %p17421_p8  ;;  %p13725_p7 = por %p13724_p5, %p13723_p0 }
 0x189   : > { %p13719_p1 = pneg %p13718_p11 }
 0x18b   : > { %p13726_p13 = pnand %p13725_p7, %p13719_p1 }
 0x18d   : > { %13729 = shalt.err (!%p13726_p13)
}
 0x18e   : > { %12871 = dma.hbm_to_vmem [thread:$0]  (!%p17422_p6), %s17423_s12, 64, %s616_s20, [#allocation12]  }
 0x18f   : > { %s14144_s24 = smov [#allocation16]   ;;  %s14145_s30 = smov [#allocation19]  }
 0x190   : > { %s638_s19 = sshll.u32 %s14144_s24, 4  ;;  %s664_s25 = sshll.u32 %s14145_s30, 4  ;;  %s639_s19 = int_to_ptr.vmem [resolvable:$true] %s638_s19  ;;  %s665_s25 = int_to_ptr.vmem [resolvable:$true] %s664_s25 }
 0x191   : > { %s17424_s8 = sld [smem:[#allocation89_spill]] }
 0x197   : > { %s13730_s22 = scalar_lea.hbm %s17424_s8, 8192 }
 0x198   : > { %p13731_p13 = scmp.ne.s32.totalorder %s17424_s8, %s13730_s22  ;;  %p13737_p12 = scmp.lt.u32.totalorder %s13730_s22, %s17424_s8 }
 0x19a   : > { %p13733_p9 = pnand %p13731_p13, %p17421_p8 }
 0x19c   : > { %p13734_p4 = pneg %p13733_p9 }
 0x19e   : > { %p13739_p3 = pnand %p13737_p12, %p13734_p4 }
 0x1a0   : > { %13742 = shalt.err (!%p13739_p3)
}
 0x1a1   : > { %s13743_s20 = scalar_lea.vmem %s639_s19, 8192  ;;  %p13751_p1 = scmp.lt.s32.totalorder %s639_s19, %s639_s19 }
 0x1a2   : > { %p13744_p2 = scmp.ne.s32.totalorder %s639_s19, %s13743_s20  ;;  %p13752_p0 = scmp.lt.s32.totalorder %s13743_s20, %s13743_s20 }
 0x1a4   : > { %p13746_p10 = pnand %p13744_p2, %p17421_p8  ;;  %p13753_p5 = por %p13752_p0, %p13751_p1 }
 0x1a6   : > { %p13747_p11 = pneg %p13746_p10 }
 0x1a8   : > { %p13754_p7 = pnand %p13753_p5, %p13747_p11 }
 0x1aa   : > { %13757 = shalt.err (!%p13754_p7)
}
 0x1ab   : > { %s17425_s9 = smov 16   ;;  %s17426_s24 = smov 256  }
 0x1ac   : > { %12877 = dma.hbm_to_vmem [thread:$0]  (!%p17422_p6), %s17424_s8, 8192, %s639_s19, [#allocation15], %s17426_s24, %s17426_s24, %s17425_s9  }
 0x1ad   : > { %s17427_s22 = sld [smem:[#allocation91_spill]] }
 0x1b3   : > { %s13758_s27 = scalar_lea.hbm %s17427_s22, 8192 }
 0x1b4   : > { %p13759_p13 = scmp.ne.s32.totalorder %s17427_s22, %s13758_s27  ;;  %p13765_p12 = scmp.lt.u32.totalorder %s13758_s27, %s17427_s22 }
 0x1b6   : > { %p13761_p9 = pnand %p13759_p13, %p17421_p8 }
 0x1b8   : > { %p13762_p4 = pneg %p13761_p9 }
 0x1ba   : > { %p13767_p3 = pnand %p13765_p12, %p13762_p4 }
 0x1bc   : > { %13770 = shalt.err (!%p13767_p3)
}
 0x1bd   : > { %s13771_s18 = scalar_lea.vmem %s665_s25, 8192  ;;  %p13779_p1 = scmp.lt.s32.totalorder %s665_s25, %s665_s25 }
 0x1be   : > { %p13772_p2 = scmp.ne.s32.totalorder %s665_s25, %s13771_s18  ;;  %p13780_p0 = scmp.lt.s32.totalorder %s13771_s18, %s13771_s18 }
 0x1c0   : > { %p13774_p10 = pnand %p13772_p2, %p17421_p8  ;;  %p13781_p5 = por %p13780_p0, %p13779_p1 }
 0x1c2   : > { %p13775_p11 = pneg %p13774_p10 }
 0x1c4   : > { %p13782_p7 = pnand %p13781_p5, %p13775_p11 }
 0x1c6   : > { %13785 = shalt.err (!%p13782_p7)
}
 0x1c7   : > { %12883 = dma.hbm_to_vmem [thread:$0]  (!%p17422_p6), %s17427_s22, 8192, %s665_s25, [#allocation18], %s17406_s10, %s17406_s10, %s17405_s0  }
 0x1c8   : > { %s14146_s9 = smov [#allocation22]   ;;  %s14147_s30 = smov [#allocation25]  }
 0x1c9   : > { %s690_s24 = sshll.u32 %s14146_s9, 4  ;;  %s717_s13 = sshll.u32 %s14147_s30, 4  ;;  %s691_s24 = int_to_ptr.vmem [resolvable:$true] %s690_s24  ;;  %s718_s13 = int_to_ptr.vmem [resolvable:$true] %s717_s13 }
 0x1ca   : > { %s17428_s7 = sld [smem:[#allocation93_spill]] }
 0x1d0   : > { %s13786_s17 = scalar_lea.hbm %s17428_s7, 8192 }
 0x1d1   : > { %p13787_p13 = scmp.ne.s32.totalorder %s17428_s7, %s13786_s17  ;;  %p13793_p12 = scmp.lt.u32.totalorder %s13786_s17, %s17428_s7 }
 0x1d3   : > { %p13789_p9 = pnand %p13787_p13, %p17421_p8 }
 0x1d5   : > { %p13790_p4 = pneg %p13789_p9 }
 0x1d7   : > { %p13795_p3 = pnand %p13793_p12, %p13790_p4 }
 0x1d9   : > { %13798 = shalt.err (!%p13795_p3)
}
 0x1da   : > { %s13799_s25 = scalar_lea.vmem %s691_s24, 8192  ;;  %p13807_p1 = scmp.lt.s32.totalorder %s691_s24, %s691_s24 }
 0x1db   : > { %p13800_p2 = scmp.ne.s32.totalorder %s691_s24, %s13799_s25  ;;  %p13808_p0 = scmp.lt.s32.totalorder %s13799_s25, %s13799_s25 }
 0x1dd   : > { %p13802_p10 = pnand %p13800_p2, %p17421_p8  ;;  %p13809_p5 = por %p13808_p0, %p13807_p1 }
 0x1df   : > { %p13803_p11 = pneg %p13802_p10 }
 0x1e1   : > { %p13810_p7 = pnand %p13809_p5, %p13803_p11 }
 0x1e3   : > { %13813 = shalt.err (!%p13810_p7)
}
 0x1e4   : > { %12889 = dma.hbm_to_vmem [thread:$0]  (!%p17422_p6), %s17428_s7, 8192, %s691_s24, [#allocation21], %s17406_s10, %s17406_s10, %s17405_s0  }
 0x1e5   : > { %s17429_s1 = sld [smem:[#allocation95_spill]] }
 0x1eb   : > { %s13814_s27 = scalar_lea.hbm %s17429_s1, 32 }
 0x1ec   : > { %p13815_p13 = scmp.ne.s32.totalorder %s17429_s1, %s13814_s27  ;;  %p13821_p12 = scmp.lt.u32.totalorder %s13814_s27, %s17429_s1 }
 0x1ee   : > { %p13817_p9 = pnand %p13815_p13, %p17421_p8 }
 0x1f0   : > { %p13818_p4 = pneg %p13817_p9 }
 0x1f2   : > { %p13823_p3 = pnand %p13821_p12, %p13818_p4 }
 0x1f4   : > { %13826 = shalt.err (!%p13823_p3)
}
 0x1f5   : > { %s13827_s25 = scalar_lea.vmem %s718_s13, 32  ;;  %p13835_p1 = scmp.lt.s32.totalorder %s718_s13, %s718_s13 }
 0x1f6   : > { %p13828_p2 = scmp.ne.s32.totalorder %s718_s13, %s13827_s25  ;;  %p13836_p0 = scmp.lt.s32.totalorder %s13827_s25, %s13827_s25 }
 0x1f8   : > { %p13830_p10 = pnand %p13828_p2, %p17421_p8  ;;  %p13837_p5 = por %p13836_p0, %p13835_p1 }
 0x1fa   : > { %p13831_p11 = pneg %p13830_p10 }
 0x1fc   : > { %p13838_p7 = pnand %p13837_p5, %p13831_p11 }
 0x1fe   : > { %13841 = shalt.err (!%p13838_p7)
}
 0x1ff   : > { %12895 = dma.hbm_to_vmem [thread:$0]  (!%p17422_p6), %s17429_s1, 32, %s718_s13, [#allocation24]  }
 0x200   : > { %s14148_s19 = smov [#allocation28]   ;;  %s14149_s30 = smov [#allocation31]  }
 0x201   : > { %s740_s9 = sshll.u32 %s14148_s19, 4  ;;  %s767_s27 = sshll.u32 %s14149_s30, 4  ;;  %s741_s9 = int_to_ptr.vmem [resolvable:$true] %s740_s9  ;;  %s768_s27 = int_to_ptr.vmem [resolvable:$true] %s767_s27 }
 0x202   : > { %s17430_s18 = sld [smem:[#allocation97_spill]] }
 0x208   : > { %s13842_s12 = scalar_lea.hbm %s17430_s18, 256 }
 0x209   : > { %p13843_p13 = scmp.ne.s32.totalorder %s17430_s18, %s13842_s12  ;;  %p13849_p12 = scmp.lt.u32.totalorder %s13842_s12, %s17430_s18 }
 0x20b   : > { %p13845_p9 = pnand %p13843_p13, %p17421_p8 }
 0x20d   : > { %p13846_p4 = pneg %p13845_p9 }
 0x20f   : > { %p13851_p3 = pnand %p13849_p12, %p13846_p4 }
 0x211   : > { %13854 = shalt.err (!%p13851_p3)
}
 0x212   : > { %s13855_s13 = scalar_lea.vmem %s741_s9, 256  ;;  %p13863_p1 = scmp.lt.s32.totalorder %s741_s9, %s741_s9 }
 0x213   : > { %p13856_p2 = scmp.ne.s32.totalorder %s741_s9, %s13855_s13  ;;  %p13864_p0 = scmp.lt.s32.totalorder %s13855_s13, %s13855_s13 }
 0x215   : > { %p13858_p10 = pnand %p13856_p2, %p17421_p8  ;;  %p13865_p5 = por %p13864_p0, %p13863_p1 }
 0x217   : > { %p13859_p11 = pneg %p13858_p10 }
 0x219   : > { %p13866_p7 = pnand %p13865_p5, %p13859_p11 }
 0x21b   : > { %13869 = shalt.err (!%p13866_p7)
}
 0x21c   : > { %12901 = dma.hbm_to_vmem [thread:$0]  (!%p17422_p6), %s17430_s18, 256, %s741_s9, [#allocation27], %s17406_s10, %s17406_s10, %s17405_s0  }
 0x21d   : > { %s17431_s30 = sld [smem:[#allocation99_spill]] }
 0x223   : > { %s17432_s17 = smov %s17431_s30  ;;  %s13870_s20 = scalar_lea.hbm %s17431_s30, 16 }
 0x224   : > { %p13871_p13 = scmp.ne.s32.totalorder %s17432_s17, %s13870_s20  ;;  %p13877_p12 = scmp.lt.u32.totalorder %s13870_s20, %s17432_s17 }
 0x226   : > { %p13873_p9 = pnand %p13871_p13, %p17421_p8 }
 0x228   : > { %p13874_p4 = pneg %p13873_p9 }
 0x22a   : > { %p13879_p3 = pnand %p13877_p12, %p13874_p4 }
 0x22c   : > { %13882 = shalt.err (!%p13879_p3)
}
 0x22d   : > { %s13883_s22 = scalar_lea.vmem %s768_s27, 16  ;;  %s13890_s9 = scalar_lea.vmem %s768_s27, 32 }
 0x22e   : > { %p13884_p2 = scmp.ne.s32.totalorder %s768_s27, %s13883_s22  ;;  %p13891_p1 = scmp.lt.s32.totalorder %s768_s27, %s768_s27 }
 0x22f   : > { %p13892_p0 = scmp.lt.s32.totalorder %s13890_s9, %s13883_s22 }
 0x230   : > { %p13886_p10 = pnand %p13884_p2, %p17421_p8 }
 0x231   : > { %p13893_p5 = por %p13892_p0, %p13891_p1 }
 0x232   : > { %p13887_p11 = pneg %p13886_p10 }
 0x234   : > { %p13894_p7 = pnand %p13893_p5, %p13887_p11 }
 0x236   : > { %13897 = shalt.err (!%p13894_p7)
}
 0x237   : > { %12907 = dma.hbm_to_vmem [thread:$0]  (!%p17422_p6), %s17432_s17, 16, %s768_s27, [#allocation30]  }
 0x238   : > { %s14150_s19 = smov [#allocation34]   ;;  %s17433_s25 = sld [smem:[#allocation101_spill]] }
 0x239   : > { %s790_s30 = sshll.u32 %s14150_s19, 4  ;;  %s791_s30 = int_to_ptr.vmem [resolvable:$true] %s790_s30 }
 0x23e   : > { %s13898_s24 = scalar_lea.hbm %s17433_s25, 512 }
 0x23f   : > { %p13899_p13 = scmp.ne.s32.totalorder %s17433_s25, %s13898_s24  ;;  %p13905_p12 = scmp.lt.u32.totalorder %s13898_s24, %s17433_s25 }
 0x241   : > { %p13901_p9 = pnand %p13899_p13, %p17421_p8 }
 0x243   : > { %p13902_p4 = pneg %p13901_p9 }
 0x245   : > { %p13907_p3 = pnand %p13905_p12, %p13902_p4 }
 0x247   : > { %13910 = shalt.err (!%p13907_p3)
}
 0x248   : > { %s13911_s27 = scalar_lea.vmem %s791_s30, 512  ;;  %p13919_p1 = scmp.lt.s32.totalorder %s791_s30, %s791_s30 }
 0x249   : > { %p13912_p2 = scmp.ne.s32.totalorder %s791_s30, %s13911_s27  ;;  %p13920_p0 = scmp.lt.s32.totalorder %s13911_s27, %s13911_s27 }
 0x24b   : > { %p13914_p10 = pnand %p13912_p2, %p17421_p8  ;;  %p13921_p5 = por %p13920_p0, %p13919_p1 }
 0x24d   : > { %p13915_p11 = pneg %p13914_p10 }
 0x24f   : > { %p13922_p7 = pnand %p13921_p5, %p13915_p11 }
 0x251   : > { %13925 = shalt.err (!%p13922_p7)
}
 0x252   : > { %12913 = dma.hbm_to_vmem [thread:$0]  (!%p17422_p6), %s17433_s25, 512, %s791_s30, [#allocation33], %s17406_s10, %s17406_s10, %s17405_s0  }
 0x253   : > { %s17434_s19 = sld [smem:[#allocation81_spill]]  ;;  %s808_s6 = scalar_lea.vmem [#allocation2], %s14559_s4 }
 0x254   : > { %s815_s12 = sshll.u32 %s808_s6, 4  ;;  %s17435_s24 = sand.u32 1, %s14120_s29   ;;  %s14795_s12 = int_to_ptr.vmem [resolvable:$true] %s815_s12 }
 0x255   : > { %s14799_s13 = scalar_lea.sflag [#allocation3], %s17435_s24  ;;  %p17436_p13 = scmp.ne.s32.totalorder %s17419_s15, 0 }
 0x259   : > { %s14792_s20 = scalar_lea.hbm %s17434_s19, %s14562_s16  ;;  %s13931_s27 = scalar_lea.hbm %s17434_s19, 1024 }
 0x25a   : > { %s13926_s22 = scalar_lea.hbm %s14792_s20, 512  ;;  %p13932_p4 = scmp.lt.u32.totalorder %s14792_s20, %s17434_s19 }
 0x25b   : > { %p13927_p8 = scmp.ne.s32.totalorder %s14792_s20, %s13926_s22  ;;  %p13933_p12 = scmp.lt.u32.totalorder %s13931_s27, %s13926_s22 }
 0x25c   : > { %p13935_p2 = scmp.lt.u32.totalorder %s13926_s22, %s14792_s20 }
 0x25d   : > { %p13929_p6 = pnand %p13927_p8, %p17436_p13  ;;  %p13934_p3 = por %p13933_p12, %p13932_p4 }
 0x25f   : > { %p13930_p9 = pneg %p13929_p6  ;;  %p13936_p10 = por %p13935_p2, %p13934_p3 }
 0x261   : > { %p13937_p11 = pnand %p13936_p10, %p13930_p9 }
 0x263   : > { %13940 = shalt.err (!%p13937_p11)
}
 0x264   : > { %s13941_s5 = scalar_lea.vmem %s14795_s12, 512  ;;  %s14151_s8 = smov [#allocation2]  }
 0x265   : > { %p13942_p1 = scmp.ne.s32.totalorder %s14795_s12, %s13941_s5  ;;  %s13946_s6 = sshll.u32 %s14151_s8, 4  ;;  %s13947_s6 = int_to_ptr.vmem [resolvable:$false] %s13946_s6 }
 0x266   : > { %s13948_s24 = scalar_lea.vmem %s13947_s6, 1024  ;;  %p13949_p7 = scmp.lt.s32.totalorder %s14795_s12, %s13947_s6 }
 0x267   : > { %p13944_p0 = pnand %p13942_p1, %p17436_p13  ;;  %p13950_p8 = scmp.lt.s32.totalorder %s13948_s24, %s13941_s5 }
 0x269   : > { %p13945_p5 = pneg %p13944_p0  ;;  %p13951_p6 = por %p13950_p8, %p13949_p7 }
 0x26b   : > { %p13952_p4 = pnand %p13951_p6, %p13945_p5 }
 0x26d   : > { %13955 = shalt.err (!%p13952_p4)
}
 0x26e   : > { %p17437_p9 = scmp.ne.s32.totalorder %s17417_s21, 0  ;;  %s17438_s9 = sld [smem:[#allocation83_spill]] }
 0x26f   : > { %s850_s1 = scalar_lea.vmem [#allocation7], %s14559_s4 }
 0x270   : > { %12917 = dma.hbm_to_vmem [thread:$0]  (!%p17437_p9), %s14792_s20, 512, %s14795_s12, %s14799_s13, %s17406_s10, %s17406_s10, %s17405_s0  }
 0x271   : > { %s857_s7 = sshll.u32 %s850_s1, 4  ;;  %s14833_s7 = int_to_ptr.vmem [resolvable:$true] %s857_s7 }
 0x274   : > { %s14830_s27 = scalar_lea.hbm %s17438_s9, %s14562_s16  ;;  %s13961_s12 = scalar_lea.hbm %s17438_s9, 1024 }
 0x275   : > { %s13956_s5 = scalar_lea.hbm %s14830_s27, 512  ;;  %p13962_p10 = scmp.lt.u32.totalorder %s14830_s27, %s17438_s9 }
 0x276   : > { %p13957_p12 = scmp.ne.s32.totalorder %s14830_s27, %s13956_s5  ;;  %p13963_p11 = scmp.lt.u32.totalorder %s13961_s12, %s13956_s5 }
 0x277   : > { %p13965_p0 = scmp.lt.u32.totalorder %s13956_s5, %s14830_s27 }
 0x278   : > { %p13959_p3 = pnand %p13957_p12, %p17436_p13  ;;  %p13964_p1 = por %p13963_p11, %p13962_p10 }
 0x27a   : > { %p13960_p2 = pneg %p13959_p3  ;;  %p13966_p5 = por %p13965_p0, %p13964_p1 }
 0x27c   : > { %p13967_p7 = pnand %p13966_p5, %p13960_p2 }
 0x27e   : > { %13970 = shalt.err (!%p13967_p7)
}
 0x27f   : > { %s13971_s4 = scalar_lea.vmem %s14833_s7, 512  ;;  %s14152_s6 = smov [#allocation7]  }
 0x280   : > { %p13972_p8 = scmp.ne.s32.totalorder %s14833_s7, %s13971_s4  ;;  %s13976_s24 = sshll.u32 %s14152_s6, 4  ;;  %s13977_s24 = int_to_ptr.vmem [resolvable:$false] %s13976_s24 }
 0x281   : > { %s13978_s22 = scalar_lea.vmem %s13977_s24, 1024  ;;  %p13979_p12 = scmp.lt.s32.totalorder %s14833_s7, %s13977_s24 }
 0x282   : > { %p13974_p6 = pnand %p13972_p8, %p17436_p13  ;;  %p13980_p3 = scmp.lt.s32.totalorder %s13978_s22, %s13971_s4 }
 0x284   : > { %p13975_p4 = pneg %p13974_p6  ;;  %p13981_p10 = por %p13980_p3, %p13979_p12 }
 0x286   : > { %p13982_p11 = pnand %p13981_p10, %p13975_p4 }
 0x288   : > { %13985 = shalt.err (!%p13982_p11)
}
 0x289   : > { %12923 = dma.hbm_to_vmem [thread:$0]  (!%p17437_p9), %s14830_s27, 512, %s14833_s7, %s14578_s11, %s17406_s10, %s17406_s10, %s17405_s0  }
 0x28a   : > { %s17439_s15 = sld [smem:[#allocation52_spill]] }
 0x290   : > { %p17440_p13 = scmp.ne.s32.totalorder %s17439_s15, 0 }
 0x292   : > { %869 = sbr.rel (%p17440_p13) target bundleno = 8960 (0x2300), region = 104 }
 0x299   : > { %s14863_s30 = sand.u32 1, %s14116_s28   ;;  %p17441_p2 = scmp.ne.s32.totalorder %s17414_s26, 0 }
 0x29a   : > { %s14866_s1 = sshll.u32 %s14863_s30, 5  ;;  %s872_s21 = scalar_lea.sflag [#allocation3], %s14863_s30 }
 0x29b   : > { %s14870_s5 = scalar_lea.vmem [#allocation2], %s14866_s1 }
 0x29c   : > { %14059 = dma.done.wait (%p17441_p2), %s872_s21, 512  }
 0x29d   : > { %14061 = vsyncadd (%p17441_p2), %s872_s21, 4294966784  ;;  %s880_s11 = sand.u32 1, %s14297_s23   ;;  %s14878_s10 = scalar_lea.vmem [#allocation5], %s14866_s1 }
 0x29e   : > { %s881_s0 = scalar_lea.sflag [#allocation6], %s880_s11 }
 0x29f   : > { %14063 = dma.done.wait (%p17441_p2), %s881_s0, 1024  }
 0x2a0   : > { %14065 = vsyncadd (%p17441_p2), %s881_s0, 4294966272  ;;  %s14885_s27 = scalar_lea.vmem [#allocation7], %s14866_s1  ;;  %p17442_p9 = scmp.eq.s32.totalorder %s14297_s23, 0 }
 0x2a2   : > { %14067 = dma.done.wait (%p17442_p9), [#allocation9], 384   ;;  %p17443_p1 = pmov %p17442_p9 }
 0x2a4   : > { %14069 = vsyncadd (%p17443_p1), [#allocation9], 4294966912  ;;  %p17444_p0 = pmov %p17443_p1 }
 0x2a6   : > { %14071 = dma.done.wait (%p17444_p0), [#allocation12], 192   ;;  %p17445_p5 = pmov %p17444_p0 }
 0x2a7   : > { %p17446_p7 = pmov %p17444_p0 }
 0x2a8   : > { %14073 = vsyncadd (%p17445_p5), [#allocation12], 4294967104 }
 0x2a9   : > { %14075 = dma.done.wait (%p17446_p7), [#allocation15], 24576   ;;  %p17447_p8 = pmov %p17444_p0 }
 0x2aa   : > { %p17448_p6 = pmov %p17444_p0 }
 0x2ab   : > { %14077 = vsyncadd (%p17447_p8), [#allocation15], 4294942720 }
 0x2ac   : > { %14079 = dma.done.wait (%p17448_p6), [#allocation18], 8256   ;;  %p17449_p4 = pmov %p17444_p0 }
 0x2ad   : > { %p17450_p12 = pmov %p17444_p0 }
 0x2ae   : > { %14081 = vsyncadd (%p17449_p4), [#allocation18], 4294959040 }
 0x2af   : > { %14083 = dma.done.wait (%p17450_p12), [#allocation21], 8704   ;;  %p17451_p3 = pmov %p17444_p0 }
 0x2b0   : > { %p17452_p10 = pmov %p17444_p0 }
 0x2b1   : > { %14085 = vsyncadd (%p17451_p3), [#allocation21], 4294958592 }
 0x2b2   : > { %14087 = dma.done.wait (%p17452_p10), [#allocation24], 4128   ;;  %p17453_p11 = pmov %p17444_p0 }
 0x2b3   : > { %p17454_p13 = pmov %p17444_p0 }
 0x2b4   : > { %14089 = vsyncadd (%p17453_p11), [#allocation24], 4294963168 }
 0x2b5   : > { %14091 = dma.done.wait (%p17454_p13), [#allocation27], 4352   ;;  %p17455_p2 = pmov %p17444_p0 }
 0x2b6   : > { %p17456_p9 = pmov %p17444_p0 }
 0x2b7   : > { %14093 = vsyncadd (%p17455_p2), [#allocation27], 4294962944 }
 0x2b8   : > { %14095 = dma.done.wait (%p17456_p9), [#allocation30], 2064   ;;  %p17457_p1 = pmov %p17444_p0 }
 0x2ba   : > { %14097 = vsyncadd (%p17457_p1), [#allocation30], 4294965232 }
 0x2bb   : > { %14099 = dma.done.wait (%p17444_p0), [#allocation33], 1024   ;;  %p17458_p5 = pmov %p17444_p0 }
 0x2bc   : > { %v17353_v0 = vmov 0   ;;  %v1080_v1 = vld [vmem:[#allocation8] sm:$0xff]  ;;  %v1081_v2 = vld [vmem:[#allocation8 + $0x8] sm:$0xff]  ;;  %v1145_v3 = vld [vmem:[#allocation10] sm:$0xff]  ;;  %vm1160_vm0 = vcmask 1043456   ;;  %vm1089_vm1 = vcmask 130048  }
 0x2bd   : > { %14101 = vsyncadd (%p17458_p5), [#allocation33], 4294966272  ;;  %13031 = vset.pattern.permute.xlu0 %v17353_v0  ;;  %13032 = vset.pattern.permute.xlu1 %v17353_v0  ;;  %v1084_v4 = vpack.c.bf16 %v1081_v2, %v1080_v1  ;;  %v1148_v5 = vpack.c.bf16 %v1145_v3, %v1145_v3  ;;  %v1041_v6 = vld [vmem:[%s14870_s5] sm:$0xff]  ;;  %v1042_v7 = vld [vmem:[%s14870_s5 + $0x8] sm:$0xff]  ;;  %vm1153_vm2 = vcmask 64512   ;;  %vm14155_vm11 = vmmov 0  }
 0x2be   : > { %v1045_v8 = vld [vmem:[%s14878_s10] sm:$0xff]  ;;  %v1082_v9 = vpack.c.bf16 %v1042_v7, %v1041_v6  ;;  %v1046_v10 = vld [vmem:[%s14878_s10 + $0x8] sm:$0xff]  ;;  %v1043_v11 = vld [vmem:[%s14870_s5 + $0x10] sm:$0xff]  ;;  %s17176_s26 = scalar_lea.vmem [#allocation35], %s14866_s1  ;;  %s11103_s8 = sshll.u32 %s14297_s23, 9 }
 0x2bf   : > { %v1044_v12 = vld [vmem:[%s14870_s5 + $0x18] sm:$0xff]  ;;  %11596 = vmatprep.subr.bf16.mxu0 %v1084_v4  ;;  %12776 = vmatprep.subr.msk.bf16.mxu1 %vm1160_vm0, %v1148_v5  ;;  %v1162_v13 = vsel %vm1160_vm0, %v1148_v5, 0  ;;  %v1146_v14 = vpack.c.bf16 %v1046_v10, %v1045_v8  ;;  %v1047_v16 = vld [vmem:[%s14878_s10 + $0x10] sm:$0xff]  ;;  %v1049_v18 = vld [vmem:[%s14885_s27] sm:$0xff]  ;;  %s10575_s7 = sshll.u32 %s17176_s26, 4  ;;  %s17511_s13 = sld [smem:[#allocation102_spill]]  ;;  %s17195_s7 = int_to_ptr.vmem [resolvable:$true] %s10575_s7 }
 0x2c0   : > { %v1083_v15 = vpack.c.bf16 %v1044_v12, %v1043_v11  ;;  %v1048_v17 = vld [vmem:[%s14878_s10 + $0x18] sm:$0xff]  ;;  %11597 = vmatpush3.bf16.msra.mxu0 %v1084_v4  ;;  %11603 = vmatpush3.bf16.msra.mxu1 %v1162_v13  ;;  %vm1213_vm3 = vcmp.gt.f32.partialorder %v1049_v18, 0.5  ;;  %v1051_v20 = vld [vmem:[%s14885_s27 + $0x10] sm:$0xff]  ;;  %v1050_v21 = vld [vmem:[%s14885_s27 + $0x8] sm:$0xff]  ;;  %s10558_s4 = scalar_lea.sflag [#allocation4], %s14863_s30  ;;  %s13986_s6 = scalar_lea.vmem %s17195_s7, 512 }
 0x2c1   : > { %v1147_v19 = vpack.c.bf16 %v1048_v17, %v1047_v16  ;;  %v1052_v22 = vld [vmem:[%s14885_s27 + $0x18] sm:$0xff]  ;;  %11598 = vmatprep.mubr.msk.bf16.mxu0 %vm1089_vm1, %v1082_v9  ;;  %11604 = vmatprep.mubr.msk.bf16.mxu1 %vm1153_vm2, %v1146_v14  ;;  %v1217_v23 = vsel %vm1213_vm3, 1, %v17353_v0  ;;  %vm1215_vm4 = vcmp.gt.f32.partialorder %v1051_v20, 0.5  ;;  %vm1214_vm5 = vcmp.gt.f32.partialorder %v1050_v21, 0.5  ;;  %v1254_v24 = vld [vmem:[#allocation14] sm:$0xff]  ;;  %v1255_v25 = vld [vmem:[#allocation14 + $0x8] sm:$0xff]  ;;  %p13987_p7 = scmp.ne.s32.totalorder %s17195_s7, %s13986_s6 }
 0x2c2   : > { %1222 = vperm.xlu0 %13031, %v1217_v23   ;;  %v1219_v26 = vsel %vm1215_vm4, 1, %v17353_v0  ;;  %vm1216_vm6 = vcmp.gt.f32.partialorder %v1052_v22, 0.5  ;;  %v1387_v27 = vpack.c.bf16 %v1255_v25, %v1254_v24  ;;  %v1270_v28 = vld [vmem:[#allocation14 + $0x80] sm:$0xff]  ;;  %v1271_v29 = vld [vmem:[#allocation14 + $0x88] sm:$0xff]  ;;  %v1256_v30 = vld [vmem:[#allocation14 + $0x10] sm:$0xff]  ;;  %v1218_v31 = vsel %vm1214_vm5, 1, %v17353_v0 }
 0x2c3   : > { %11599 = vmatmul.mubr.msk.bf16.vlgmr.msra.gmra.mrb[0].mxu0 %vm1089_vm1, %v1083_v15  ;;  %11605 = vmatmul.mubr.msk.bf16.vlgmr.msra.gmra.mrb[0].mxu1 %vm1153_vm2, %v1147_v19  ;;  %v1454_v32 = vpack.c.bf16 %v1271_v29, %v1270_v28  ;;  %v1257_v33 = vld [vmem:[#allocation14 + $0x18] sm:$0xff]  ;;  %v1272_v34 = vld [vmem:[#allocation14 + $0x90] sm:$0xff]  ;;  %v1258_v38 = vld [vmem:[#allocation14 + $0x20] sm:$0xff]  ;;  %v1220_v41 = vsel %vm1216_vm6, 1, %v17353_v0  ;;  %v17363_v15 = vmov 0.0   ;;  %v1053_v16 = vlaneseq  ;;  %p17512_p8 = scmp.ne.s32.totalorder %s17415_s14, 0 }
 0x2c4   : > { %v1273_v35 = vld [vmem:[#allocation14 + $0x98] sm:$0xff]  ;;  %1228 = vperm.xlu1 %13032, %v1219_v26   ;;  %11608 = vmatprep.subr.bf16.mxu0 %v1387_v27  ;;  %v1388_v36 = vpack.c.bf16 %v1257_v33, %v1256_v30  ;;  %v1259_v39 = vld [vmem:[#allocation14 + $0x28] sm:$0xff]  ;;  %v1274_v40 = vld [vmem:[#allocation14 + $0xa0] sm:$0xff]  ;;  %s14157_s24 = smov [#allocation35]  }
 0x2c5   : > { %v1455_v37 = vpack.c.bf16 %v1273_v35, %v1272_v34  ;;  %11609 = vmatpush3.bf16.msra.mxu0 %v1387_v27  ;;  %11628 = vmatprep.subr.bf16.mxu1 %v1454_v32  ;;  %v1275_v42 = vld [vmem:[#allocation14 + $0xa8] sm:$0xff]  ;;  %v1389_v43 = vpack.c.bf16 %v1259_v39, %v1258_v38  ;;  %v1260_v45 = vld [vmem:[#allocation14 + $0x30] sm:$0xff]  ;;  %v1261_v46 = vld [vmem:[#allocation14 + $0x38] sm:$0xff]  ;;  %v14950_v17 = vshrl.u32 %v1053_v16, 7  ;;  %s17201_s16 = scalar_lea.hbm %s17511_s13, %s11103_s8  ;;  %p13988_p6 = pnand %p13987_p7, %p17512_p8 }
 0x2c6   : > { %1225 = vperm.xlu0 %13031, %v1218_v31   ;;  %11629 = vmatpush3.bf16.msra.mxu1 %v1454_v32  ;;  %v1456_v44 = vpack.c.bf16 %v1275_v42, %v1274_v40  ;;  %v1276_v47 = vld [vmem:[#allocation14 + $0xb0] sm:$0xff]  ;;  %v1277_v48 = vld [vmem:[#allocation14 + $0xb8] sm:$0xff]  ;;  %v1390_v49 = vpack.c.bf16 %v1261_v46, %v1260_v45  ;;  %v1262_v51 = vld [vmem:[#allocation14 + $0x40] sm:$0xff]  ;;  %s13990_s22 = sshll.u32 %s14157_s24, 4  ;;  %s13991_s22 = int_to_ptr.vmem [resolvable:$false] %s13990_s22 }
 0x2c7   : > { %11610 = vmatprep.subr.bf16.mxu0 %v1388_v36  ;;  %11630 = vmatprep.subr.bf16.mxu1 %v1455_v37  ;;  %v1457_v50 = vpack.c.bf16 %v1277_v48, %v1276_v47  ;;  %v1263_v52 = vld [vmem:[#allocation14 + $0x48] sm:$0xff]  ;;  %v1278_v53 = vld [vmem:[#allocation14 + $0xc0] sm:$0xff]  ;;  %v1264_v57 = vld [vmem:[#allocation14 + $0x50] sm:$0xff]  ;;  %17459 = vst [vmem:[#allocation55_spill] sm:$0xff] %v14950_v17  ;;  %v14953_v20 = vsub.s32 0, %v14950_v17  ;;  %v14956_v21 = vsub.s32 1, %v14950_v17  ;;  %p13989_p4 = pneg %p13988_p6  ;;  %p13993_p12 = scmp.lt.s32.totalorder %s17195_s7, %s13991_s22 }
 0x2c8   : > { %1231 = vperm.xlu1 %13032, %v1220_v41   ;;  %v1279_v54 = vld [vmem:[#allocation14 + $0xc8] sm:$0xff]  ;;  %v1391_v55 = vpack.c.bf16 %v1263_v52, %v1262_v51  ;;  %v1265_v58 = vld [vmem:[#allocation14 + $0x58] sm:$0xff]  ;;  %v1280_v60 = vld [vmem:[#allocation14 + $0xd0] sm:$0xff]  ;;  %v14959_v23 = vsub.s32 2, %v14950_v17  ;;  %s13992_s15 = scalar_lea.vmem %s13991_s22, 1024 }
 0x2c9   : > { %11611 = vmatpush3.bf16.msra.mxu0 %v1388_v36  ;;  %v1458_v56 = vpack.c.bf16 %v1279_v54, %v1278_v53  ;;  %v1392_v59 = vpack.c.bf16 %v1265_v58, %v1264_v57  ;;  %v1281_v61 = vld [vmem:[#allocation14 + $0xd8] sm:$0xff]  ;;  %v1266_v63 = vld [vmem:[#allocation14 + $0x60] sm:$0xff]  ;;  %v1267_v1 = vld [vmem:[#allocation14 + $0x68] sm:$0xff]  ;;  %17460 = vst [vmem:[#allocation56_spill] sm:$0xff] %v14953_v20  ;;  %p13994_p3 = scmp.lt.s32.totalorder %s13992_s15, %s13986_s6 }
 0x2ca   : > { %11631 = vmatpush3.bf16.msra.mxu1 %v1455_v37  ;;  %11612 = vmatprep.subr.bf16.mxu0 %v1389_v43  ;;  %v1459_v62 = vpack.c.bf16 %v1281_v61, %v1280_v60  ;;  %v1393_v2 = vpack.c.bf16 %v1267_v1, %v1266_v63  ;;  %v1282_v3 = vld [vmem:[#allocation14 + $0xe0] sm:$0xff]  ;;  %v1283_v4 = vld [vmem:[#allocation14 + $0xe8] sm:$0xff]  ;;  %v1268_v6 = vld [vmem:[#allocation14 + $0x70] sm:$0xff]  ;;  %17461 = vst [vmem:[#allocation57_spill] sm:$0xff] %v14956_v21 }
 0x2cb   : > { %11632 = vmatprep.subr.bf16.mxu1 %v1456_v44  ;;  %v1460_v5 = vpack.c.bf16 %v1283_v4, %v1282_v3  ;;  %v1269_v7 = vld [vmem:[#allocation14 + $0x78] sm:$0xff]  ;;  %v1284_v9 = vld [vmem:[#allocation14 + $0xf0] sm:$0xff]  ;;  %v1286_v12 = vld [vmem:[#allocation14 + $0x100] sm:$0xff]  ;;  %p13995_p10 = por %p13994_p3, %p13993_p12 }
 0x2cc   : > { %v1394_v8 = vpack.c.bf16 %v1269_v7, %v1268_v6  ;;  %v1285_v10 = vld [vmem:[#allocation14 + $0xf8] sm:$0xff]  ;;  %v1287_v13 = vld [vmem:[#allocation14 + $0x108] sm:$0xff]  ;;  %v1288_v57 = vld [vmem:[#allocation14 + $0x110] sm:$0xff] }
 0x2cd   : > { %11613 = vmatpush3.bf16.msra.mxu0 %v1389_v43  ;;  %v1461_v11 = vpack.c.bf16 %v1285_v10, %v1284_v9  ;;  %v1517_v14 = vpack.c.bf16 %v1287_v13, %v1286_v12  ;;  %v1079_v22 = vld [vmem:[#allocation13] sm:$0x7]  ;;  %v1290_v63 = vld [vmem:[#allocation14 + $0x120] sm:$0xff]  ;;  %v1291_v1 = vld [vmem:[#allocation14 + $0x128] sm:$0xff]  ;;  %p13996_p11 = pnand %p13995_p10, %p13989_p4 }
 0x2ce   : > { %11633 = vmatpush3.bf16.msra.mxu1 %v1456_v44  ;;  %11614 = vmatprep.subr.bf16.mxu0 %v1390_v49  ;;  %v1088_v24 = vrot.slane %v1079_v22, %v14953_v20  ;;  %v1152_v25 = vrot.slane %v1079_v22, %v14956_v21  ;;  %v1240_v27 = vrot.slane %v1079_v22, %v14959_v23  ;;  %v1289_v58 = vld [vmem:[#allocation14 + $0x118] sm:$0xff]  ;;  %v1292_v3 = vld [vmem:[#allocation14 + $0x130] sm:$0xff]  ;;  %v1294_v6 = vld [vmem:[#allocation14 + $0x140] sm:$0xff] }
 0x2cf   : > { %11634 = vmatprep.subr.bf16.mxu1 %v1457_v50  ;;  %v1293_v4 = vld [vmem:[#allocation14 + $0x138] sm:$0xff]  ;;  %v1295_v7 = vld [vmem:[#allocation14 + $0x148] sm:$0xff]  ;;  %v1296_v9 = vld [vmem:[#allocation14 + $0x150] sm:$0xff] }
 0x2d0   : > { %v1297_v10 = vld [vmem:[#allocation14 + $0x158] sm:$0xff]  ;;  %v1298_v12 = vld [vmem:[#allocation14 + $0x160] sm:$0xff]  ;;  %v1299_v13 = vld [vmem:[#allocation14 + $0x168] sm:$0xff] }
 0x2d1   : > { %11615 = vmatpush3.bf16.msra.mxu0 %v1390_v49 }
 0x2d2   : > { %11635 = vmatpush3.bf16.msra.mxu1 %v1457_v50  ;;  %11616 = vmatprep.subr.bf16.mxu0 %v1391_v55  ;;  %v1249_v50 = vld [vmem:[#allocation11] sm:$0xff] }
 0x2d3   : > { %11636 = vmatprep.subr.bf16.mxu1 %v1458_v56 }
 0x2d5   : > { %11617 = vmatpush3.bf16.msra.mxu0 %v1391_v55 }
 0x2d6   : > { %11637 = vmatpush3.bf16.msra.mxu1 %v1458_v56  ;;  %11618 = vmatprep.subr.bf16.mxu0 %v1392_v59 }
 0x2d7   : > { %11638 = vmatprep.subr.bf16.mxu1 %v1459_v62 }
 0x2d9   : > { %11619 = vmatpush3.bf16.msra.mxu0 %v1392_v59 }
 0x2da   : > { %11639 = vmatpush3.bf16.msra.mxu1 %v1459_v62  ;;  %11620 = vmatprep.subr.bf16.mxu0 %v1393_v2  ;;  %v1518_v62 = vpack.c.bf16 %v1289_v58, %v1288_v57 }
 0x2db   : > { %11640 = vmatprep.subr.bf16.mxu1 %v1460_v5 }
 0x2dd   : > { %11621 = vmatpush3.bf16.msra.mxu0 %v1393_v2  ;;  %v1519_v2 = vpack.c.bf16 %v1291_v1, %v1290_v63 }
 0x2de   : > { %11641 = vmatpush3.bf16.msra.mxu1 %v1460_v5  ;;  %11622 = vmatprep.subr.bf16.mxu0 %v1394_v8  ;;  %v1520_v5 = vpack.c.bf16 %v1293_v4, %v1292_v3 }
 0x2df   : > { %11642 = vmatprep.subr.bf16.mxu1 %v1461_v11 }
 0x2e1   : > { %11623 = vmatpush3.bf16.msra.mxu0 %v1394_v8  ;;  %v1521_v8 = vpack.c.bf16 %v1295_v7, %v1294_v6 }
 0x2e2   : > { %11643 = vmatpush3.bf16.msra.mxu1 %v1461_v11  ;;  %11648 = vmatprep.subr.bf16.mxu0 %v1517_v14  ;;  %v1522_v11 = vpack.c.bf16 %v1297_v10, %v1296_v9 }
 0x2e3   : > { %11668 = vmatprep.subr.bf16.mxu1 %v17363_v15 }
 0x341   : > { %v1223_v18 = vpop.permute.xlu0 %1222 }
 0x342   : > { %vm1233_vm8 = vcmp.eq.s32.totalorder %v1223_v18, 1  ;;  %v1300_v18 = vld [vmem:[#allocation14 + $0x170] sm:$0xff] }
 0x343   : > { %v1229_v19 = vpop.permute.xlu1 %1228 }
 0x344   : > { %vm1235_vm7 = vcmp.eq.s32.totalorder %v1229_v19, 1  ;;  %v1301_v19 = vld [vmem:[#allocation14 + $0x178] sm:$0xff] }
 0x345   : > { %v1226_v26 = vpop.permute.xlu0 %1225  ;;  %v1524_v22 = vpack.c.bf16 %v1301_v19, %v1300_v18 }
 0x346   : > { %vm1234_vm10 = vcmp.eq.s32.totalorder %v1226_v26, 1 }
 0x347   : > { %v1232_v28 = vpop.permute.xlu1 %1231 }
 0x348   : > { %vm1236_vm9 = vcmp.eq.s32.totalorder %v1232_v28, 1 }
 0x396   : > { %v11600_v29 = vpop.f32.mrb[0].mxu0  ;;  %v11606_v30 = vpop.f32.mrb[0].mxu1 }
 0x397   : > { %v1139_v31 = vadd.f32 %v11600_v29, %v1088_v24  ;;  %v1207_v32 = vadd.f32 %v11606_v30, %v1152_v25  ;;  %v1130_v33 = vpop.f32.mrb[1].mxu0  ;;  %v1198_v34 = vpop.f32.mrb[1].mxu1 }
 0x398   : > { %v1131_v35 = vadd.f32 %v1130_v33, %v1088_v24  ;;  %v1199_v36 = vadd.f32 %v1198_v34, %v1152_v25  ;;  %v11601_v37 = vpop.f32.mrb[2].mxu0  ;;  %v11607_v38 = vpop.f32.mrb[2].mxu1 }
 0x399   : > { %v1243_v39 = vsel %vm1235_vm7, %v1240_v27, %v1139_v31  ;;  %v1142_v40 = vadd.f32 %v11601_v37, %v1088_v24  ;;  %v1210_v41 = vadd.f32 %v11607_v38, %v1152_v25  ;;  %v1133_v42 = vpop.f32.mrb[3].mxu0  ;;  %v1201_v43 = vpop.f32.mrb[3].mxu1  ;;  %vm7960_vm7 = vcmask 27648  }
 0x39a   : > { %v1247_v44 = vadd.f32 %v1243_v39, %v1207_v32  ;;  %v1241_v45 = vsel %vm1233_vm8, %v1240_v27, %v1131_v35  ;;  %v1134_v46 = vadd.f32 %v1133_v42, %v1088_v24  ;;  %v1202_v47 = vadd.f32 %v1201_v43, %v1152_v25  ;;  %v14984_v25 = vld [vmem:[#allocation20] sm:$0xff] }
 0x39b   : > { %v1245_v48 = vadd.f32 %v1241_v45, %v1199_v36  ;;  %v1244_v49 = vsel %vm1236_vm9, %v1240_v27, %v1142_v40  ;;  %v14982_v24 = vand.u32 127, %v1053_v16  ;;  %v1398_v26 = vrot.slane %v14984_v25, %v14953_v20 }
 0x39c   : > { %v1248_v51 = vadd.f32 %v1244_v49, %v1210_v41  ;;  %v1242_v52 = vsel %vm1234_vm10, %v1240_v27, %v1134_v46  ;;  %v14970_v59 = vadd.f32 %v1249_v50, %v1247_v44  ;;  %v1465_v27 = vrot.slane %v14984_v25, %v14956_v21 }
 0x39d   : > { %v1246_v53 = vadd.f32 %v1242_v52, %v1202_v47  ;;  %v14966_v55 = vadd.f32 %v1249_v50, %v1245_v48  ;;  %17462 = vst [vmem:[#allocation58_spill] sm:$0xff] %v14982_v24  ;;  %vm1061_vm12 = vcmp.ge.s32.totalorder %v14982_v24, 32  ;;  %vm1062_vm13 = vcmp.lt.s32.totalorder %v14982_v24, 64 }
 0x39e   : > { %v14964_v54 = vadd.f32 %v1249_v50, %v1248_v51  ;;  %vm1056_vm14 = vcmp.lt.s32.totalorder %v14982_v24, 32  ;;  %vm1063_vm15 = vmand %vm1061_vm12, %vm1062_vm13  ;;  %vm1067_vm3 = vcmp.ge.s32.totalorder %v14982_v24, 64  ;;  %vm1068_vm4 = vcmp.lt.s32.totalorder %v14982_v24, 96 }
 0x39f   : > { %v14968_v56 = vadd.f32 %v1249_v50, %v1246_v53  ;;  %v10956_v35 = vsel %vm1056_vm14, 1.0, %v17363_v15  ;;  %v10957_v36 = vsel %vm1063_vm15, 1.0, %v17363_v15  ;;  %vm1069_vm5 = vmand %vm1067_vm3, %vm1068_vm4  ;;  %v1528_v7 = vrot.slane %v14984_v25, %v14959_v23 }
 0x3a0   : > { %v1386_v61 = vpack.c.bf16 %v14964_v54, %v14970_v59  ;;  %v14997_v41 = vpack.c.bf16 %v10956_v35, %v10956_v35  ;;  %v14999_v42 = vpack.c.bf16 %v10957_v36, %v10957_v36  ;;  %vm1073_vm6 = vcmp.ge.s32.totalorder %v14982_v24, 96 }
 0x3a1   : > { %v1385_v60 = vpack.c.bf16 %v14968_v56, %v14966_v55  ;;  %vm8345_vm8 = vcmask 31744  }
 0x3a3   : > { %11624 = vmatprep.mubr.bf16.mxu0 %v1385_v60  ;;  %11644 = vmatprep.mubr.bf16.mxu1 %v1385_v60 }
 0x3a4   : > { %11625 = vmatmul.mubr.bf16.vlgmr.msra.gmra.mrb[4].mxu0 %v1386_v61  ;;  %11645 = vmatmul.mubr.bf16.vlgmr.msra.gmra.mrb[4].mxu1 %v1386_v61 }
 0x3a5   : > { %11649 = vmatpush3.bf16.msra.mxu0 %v1517_v14  ;;  %11664 = vmatprep.mubr.bf16.mxu0 %v1385_v60  ;;  %v1523_v14 = vpack.c.bf16 %v1299_v13, %v1298_v12 }
 0x3a6   : > { %11650 = vmatprep.subr.bf16.mxu0 %v1518_v62  ;;  %11670 = vmatprep.mubr.msk.bf16.mxu1 %vm14155_vm11, %v17363_v15 }
 0x3a9   : > { %11651 = vmatpush3.bf16.msra.mxu0 %v1518_v62  ;;  %v10958_v62 = vsel %vm1069_vm5, 1.0, %v17363_v15 }
 0x3aa   : > { %11652 = vmatprep.subr.bf16.mxu0 %v1519_v2  ;;  %v15036_v63 = vpack.c.bf16 %v10958_v62, %v10958_v62 }
 0x3ad   : > { %11653 = vmatpush3.bf16.msra.mxu0 %v1519_v2 }
 0x3ae   : > { %11654 = vmatprep.subr.bf16.mxu0 %v1520_v5 }
 0x3b1   : > { %11655 = vmatpush3.bf16.msra.mxu0 %v1520_v5 }
 0x3b2   : > { %11656 = vmatprep.subr.bf16.mxu0 %v1521_v8 }
 0x3b5   : > { %11657 = vmatpush3.bf16.msra.mxu0 %v1521_v8 }
 0x3b6   : > { %11658 = vmatprep.subr.bf16.mxu0 %v1522_v11 }
 0x3b9   : > { %11659 = vmatpush3.bf16.msra.mxu0 %v1522_v11 }
 0x3ba   : > { %11660 = vmatprep.subr.bf16.mxu0 %v1523_v14 }
 0x3bd   : > { %11661 = vmatpush3.bf16.msra.mxu0 %v1523_v14 }
 0x3be   : > { %11662 = vmatprep.subr.bf16.mxu0 %v1524_v22 }
 0x3c1   : > { %11663 = vmatpush3.bf16.msra.mxu0 %v1524_v22  ;;  %v10959_v22 = vsel %vm1073_vm6, 1.0, %v17363_v15 }
 0x3c2   : > { %11692 = vmatprep.subr.bf16.mxu0 %v17363_v15  ;;  %v15074_v25 = vpack.c.bf16 %v10959_v22, %v10959_v22 }
 0x3c4   : > { %11665 = vmatmul.mubr.bf16.vlgmr.msra.gmra.mrb[8].mxu0 %v1386_v61 }
 0x3c5   : > { %11694 = vmatprep.mubr.msk.bf16.mxu0 %vm14155_vm11, %v17363_v15 }
 0x477   : > { %v11626_v28 = vpop.f32.mrb[4].mxu0  ;;  %v11646_v29 = vpop.f32.mrb[4].mxu1 }
 0x478   : > { %v1433_v30 = vpop.f32.mrb[5].mxu0  ;;  %v1500_v16 = vpop.f32.mrb[5].mxu1  ;;  %v1442_v43 = vadd.f32 %v11626_v28, %v1398_v26  ;;  %v1509_v46 = vadd.f32 %v11646_v29, %v1465_v27 }
 0x479   : > { %v1434_v31 = vadd.f32 %v1433_v30, %v1398_v26  ;;  %v1501_v32 = vadd.f32 %v1500_v16, %v1465_v27  ;;  %v11627_v33 = vpop.f32.mrb[6].mxu0  ;;  %v11647_v34 = vpop.f32.mrb[6].mxu1 }
 0x47a   : > { %v1436_v37 = vpop.f32.mrb[7].mxu0  ;;  %v1503_v38 = vpop.f32.mrb[7].mxu1  ;;  %v1450_v48 = vmul.f32 0.17677669, %v1442_v43  ;;  %v15011_v52 = vpack.c.bf16 %v1509_v46, %v1509_v46  ;;  %v1445_v1 = vadd.f32 %v11627_v33, %v1398_v26  ;;  %v1512_v2 = vadd.f32 %v11647_v34, %v1465_v27 }
 0x47b   : > { %v1448_v39 = vmul.f32 0.17677669, %v1434_v31  ;;  %v14995_v40 = vpack.c.bf16 %v1501_v32, %v1501_v32  ;;  %v1437_v45 = vadd.f32 %v1436_v37, %v1398_v26  ;;  %v1504_v47 = vadd.f32 %v1503_v38, %v1465_v27 }
 0x47c   : > { %v15019_v57 = vpack.c.bf16 %v1450_v48, %v1450_v48  ;;  %v1451_v3 = vmul.f32 0.17677669, %v1445_v1  ;;  %v15048_v6 = vpack.c.bf16 %v1512_v2, %v1512_v2 }
 0x47d   : > { %11669 = vmatpush3.bf16.xpose.msra.mxu1 %v14995_v40  ;;  %11693 = vmatpush3.bf16.xpose.msra.mxu0 %v14995_v40  ;;  %v15003_v44 = vpack.c.bf16 %v1448_v39, %v1448_v39  ;;  %v1449_v49 = vmul.f32 0.17677669, %v1437_v45  ;;  %v15013_v53 = vpack.c.bf16 %v1504_v47, %v1504_v47 }
 0x47e   : > { %11674 = vmatprep.subr.bf16.mxu1 %v17363_v15  ;;  %11704 = vmatprep.subr.bf16.mxu0 %v17363_v15  ;;  %v1628_v61 = vmul.bf16 %v15019_v57, %v14999_v42  ;;  %v1624_v4 = vmul.bf16 %v15019_v57, %v14997_v41  ;;  %v15054_v8 = vpack.c.bf16 %v1451_v3, %v1451_v3 }
 0x47f   : > { %v1622_v50 = vmul.bf16 %v15003_v44, %v14997_v41  ;;  %v1626_v51 = vmul.bf16 %v15003_v44, %v14999_v42  ;;  %v15021_v58 = vpack.c.bf16 %v1449_v49, %v1449_v49  ;;  %v1630_v5 = vmul.bf16 %v15003_v44, %v15036_v63 }
 0x480   : > { %v1625_v18 = vmul.bf16 %v15054_v8, %v14997_v41  ;;  %v1632_v19 = vmul.bf16 %v15019_v57, %v15036_v63  ;;  %v1634_v28 = vmul.bf16 %v15003_v44, %v15074_v25  ;;  %v1629_v16 = vmul.bf16 %v15054_v8, %v14999_v42 }
 0x481   : > { %v1623_v60 = vmul.bf16 %v15021_v58, %v14997_v41  ;;  %v1627_v27 = vmul.bf16 %v15021_v58, %v14999_v42  ;;  %v1636_v31 = vmul.bf16 %v15019_v57, %v15074_v25  ;;  %v1631_v33 = vmul.bf16 %v15021_v58, %v15036_v63 }
 0x482   : > { %v1633_v34 = vmul.bf16 %v15054_v8, %v15036_v63  ;;  %v1635_v36 = vmul.bf16 %v15021_v58, %v15074_v25  ;;  %v1637_v39 = vmul.bf16 %v15054_v8, %v15074_v25 }
 0x484   : > { %11671 = vmatmul.mubr.bf16.vlgmr.msra.gmra.mrb[8].mxu1 %v1622_v50  ;;  %11695 = vmatmul.mubr.bf16.vlgmr.msra.gmra.mrb[12].mxu0 %v1626_v51 }
 0x485   : > { %11675 = vmatpush3.bf16.xpose.msra.mxu1 %v15013_v53  ;;  %11705 = vmatpush3.bf16.xpose.msra.mxu0 %v15011_v52 }
 0x486   : > { %11676 = vmatprep.mubr.msk.bf16.mxu1 %vm14155_vm11, %v17363_v15  ;;  %11706 = vmatprep.mubr.msk.bf16.mxu0 %vm14155_vm11, %v17363_v15 }
 0x487   : > { %11680 = vmatprep.subr.bf16.mxu1 %v17363_v15  ;;  %11716 = vmatprep.subr.bf16.mxu0 %v17363_v15 }
 0x48c   : > { %11677 = vmatmul.mubr.bf16.vlgmr.msra.gmra.mrb[12].mxu1 %v1623_v60  ;;  %11707 = vmatmul.mubr.bf16.vlgmr.msra.gmra.mrb[16].mxu0 %v1628_v61 }
 0x48d   : > { %11681 = vmatpush3.bf16.xpose.msra.mxu1 %v15011_v52  ;;  %11717 = vmatpush3.bf16.xpose.msra.mxu0 %v14995_v40 }
 0x48e   : > { %11682 = vmatprep.mubr.msk.bf16.mxu1 %vm14155_vm11, %v17363_v15  ;;  %11718 = vmatprep.mubr.msk.bf16.mxu0 %vm14155_vm11, %v17363_v15 }
 0x48f   : > { %11686 = vmatprep.subr.bf16.mxu1 %v17363_v15  ;;  %11728 = vmatprep.subr.bf16.mxu0 %v17363_v15 }
 0x494   : > { %11683 = vmatmul.mubr.bf16.vlgmr.msra.gmra.mrb[16].mxu1 %v1624_v4  ;;  %11719 = vmatmul.mubr.bf16.vlgmr.msra.gmra.mrb[20].mxu0 %v1630_v5 }
 0x495   : > { %11687 = vmatpush3.bf16.xpose.msra.mxu1 %v15048_v6  ;;  %11729 = vmatpush3.bf16.xpose.msra.mxu0 %v15011_v52 }
 0x496   : > { %11688 = vmatprep.mubr.msk.bf16.mxu1 %vm14155_vm11, %v17363_v15  ;;  %11730 = vmatprep.mubr.msk.bf16.mxu0 %vm14155_vm11, %v17363_v15 }
 0x497   : > { %v11666_v9 = vpop.f32.mrb[8].mxu0  ;;  %11698 = vmatprep.subr.bf16.mxu1 %v17363_v15  ;;  %11740 = vmatprep.subr.bf16.mxu0 %v17363_v15 }
 0x498   : > { %v15063_v10 = vadd.f32 %v11666_v9, %v1528_v7  ;;  %v1563_v11 = vpop.f32.mrb[9].mxu0 }
 0x499   : > { %v11667_v12 = vpop.f32.mrb[10].mxu0  ;;  %v1564_v26 = vadd.f32 %v1563_v11, %v1528_v7 }
 0x49a   : > { %v15065_v13 = vadd.f32 %v11667_v12, %v1528_v7  ;;  %v1566_v14 = vpop.f32.mrb[11].mxu0 }
 0x49b   : > { %v15086_v29 = vpack.c.bf16 %v1564_v26, %v1564_v26  ;;  %v1567_v35 = vadd.f32 %v1566_v14, %v1528_v7 }
 0x49c   : > { %11689 = vmatmul.mubr.bf16.vlgmr.msra.gmra.mrb[20].mxu1 %v1625_v18  ;;  %11731 = vmatmul.mubr.bf16.vlgmr.msra.gmra.mrb[24].mxu0 %v1632_v19 }
 0x49d   : > { %11699 = vmatpush3.bf16.xpose.msra.mxu1 %v15013_v53  ;;  %11741 = vmatpush3.bf16.xpose.msra.mxu0 %v14995_v40  ;;  %v1638_v30 = vmul.bf16 %v15086_v29, %v14997_v41  ;;  %v15124_v37 = vpack.c.bf16 %v1567_v35, %v1567_v35 }
 0x49e   : > { %11700 = vmatprep.mubr.msk.bf16.mxu1 %vm14155_vm11, %v17363_v15  ;;  %11742 = vmatprep.mubr.msk.bf16.mxu0 %vm14155_vm11, %v17363_v15 }
 0x49f   : > { %11710 = vmatprep.subr.bf16.mxu1 %v17363_v15  ;;  %11752 = vmatprep.subr.bf16.mxu0 %v17363_v15  ;;  %v2490_v32 = vsel %vm1160_vm0, %v1638_v30, 0  ;;  %v1639_v38 = vmul.bf16 %v15124_v37, %v14997_v41 }
 0x4a1   : > { %v2536_v40 = vsel %vm1160_vm0, %v1639_v38, 0 }
 0x4a4   : > { %11701 = vmatmul.mubr.bf16.vlgmr.msra.gmra.mrb[24].mxu1 %v1627_v27  ;;  %11743 = vmatmul.mubr.bf16.vlgmr.msra.gmra.mrb[28].mxu0 %v1634_v28 }
 0x4a5   : > { %11711 = vmatpush3.bf16.xpose.msra.mxu1 %v15048_v6  ;;  %11753 = vmatpush3.bf16.xpose.msra.mxu0 %v15011_v52 }
 0x4a6   : > { %11712 = vmatprep.mubr.msk.bf16.mxu1 %vm14155_vm11, %v17363_v15  ;;  %11754 = vmatprep.mubr.msk.bf16.mxu0 %vm14155_vm11, %v17363_v15 }
 0x4a7   : > { %11722 = vmatprep.subr.bf16.mxu1 %v17363_v15  ;;  %11764 = vmatprep.subr.bf16.mxu0 %v17363_v15 }
 0x4ac   : > { %11713 = vmatmul.mubr.bf16.vlgmr.msra.gmra.mrb[28].mxu1 %v1629_v16  ;;  %11755 = vmatmul.mubr.bf16.vlgmr.msra.gmra.mrb[32].mxu0 %v1636_v31 }
 0x4ad   : > { %11723 = vmatpush3.bf16.xpose.msra.mxu1 %v15013_v53  ;;  %11765 = vmatpush3.bf16.msra.mxu0 %v2490_v32 }
 0x4ae   : > { %11724 = vmatprep.mubr.msk.bf16.mxu1 %vm14155_vm11, %v17363_v15  ;;  %11734 = vmatprep.subr.bf16.mxu1 %v17363_v15 }
 0x4af   : > { %11766 = vmatprep.mubr.msk.bf16.mxu0 %vm14155_vm11, %v17363_v15  ;;  %11776 = vmatprep.subr.bf16.mxu0 %v17363_v15 }
 0x4b4   : > { %11725 = vmatmul.mubr.bf16.vlgmr.msra.gmra.mrb[32].mxu1 %v1631_v33 }
 0x4b5   : > { %11735 = vmatpush3.bf16.xpose.msra.mxu1 %v15048_v6  ;;  %11736 = vmatprep.mubr.msk.bf16.mxu1 %vm14155_vm11, %v17363_v15 }
 0x4b6   : > { %11746 = vmatprep.subr.bf16.mxu1 %v17363_v15 }
 0x4bc   : > { %11737 = vmatmul.mubr.bf16.vlgmr.msra.gmra.mrb[36].mxu1 %v1633_v34 }
 0x4bd   : > { %11747 = vmatpush3.bf16.xpose.msra.mxu1 %v15013_v53  ;;  %11748 = vmatprep.mubr.msk.bf16.mxu1 %vm14155_vm11, %v17363_v15 }
 0x4be   : > { %11758 = vmatprep.subr.bf16.mxu1 %v17363_v15 }
 0x4c4   : > { %11749 = vmatmul.mubr.bf16.vlgmr.msra.gmra.mrb[40].mxu1 %v1635_v36 }
 0x4c5   : > { %11759 = vmatpush3.bf16.xpose.msra.mxu1 %v15048_v6  ;;  %11760 = vmatprep.mubr.msk.bf16.mxu1 %vm14155_vm11, %v17363_v15 }
 0x4c6   : > { %11770 = vmatprep.subr.bf16.mxu1 %v17363_v15 }
 0x4cc   : > { %11761 = vmatmul.mubr.bf16.vlgmr.msra.gmra.mrb[44].mxu1 %v1637_v39 }
 0x4cd   : > { %11771 = vmatpush3.bf16.msra.mxu1 %v2536_v40  ;;  %11772 = vmatprep.mubr.msk.bf16.mxu1 %vm14155_vm11, %v17363_v15 }
 0x4ce   : > { %11782 = vmatprep.subr.bf16.mxu1 %v17363_v15 }
 0x557   : > { %v15138_v43 = vpop.f32.mrb[8].mxu1  ;;  %v15140_v44 = vpop.f32.mrb[12].mxu0 }
 0x558   : > { %v11672_v45 = vpop.f32.mrb[9].mxu1  ;;  %v11696_v46 = vpop.f32.mrb[13].mxu0  ;;  %v2294_v47 = vsel %vm1153_vm2, %v15138_v43, -inf  ;;  %v2306_v3 = vsel %vm1153_vm2, %v15140_v44, -inf }
 0x559   : > { %v1851_v48 = vpop.f32.mrb[14].mxu0  ;;  %2295 = vmax.xlane.f32.xlu0 %v2294_v47  ;;  %v1691_v49 = vpop.f32.mrb[10].mxu1 }
 0x55a   : > { %v11673_v50 = vpop.f32.mrb[11].mxu1  ;;  %v11697_v51 = vpop.f32.mrb[15].mxu0 }
 0x55f   : > { %v15144_v52 = vpop.f32.mrb[12].mxu1  ;;  %v15146_v53 = vpop.f32.mrb[16].mxu0 }
 0x560   : > { %v11678_v57 = vpop.f32.mrb[13].mxu1  ;;  %v11708_v58 = vpop.f32.mrb[17].mxu0  ;;  %v2297_v60 = vsel %vm1153_vm2, %v15144_v52, -inf  ;;  %v2312_v8 = vsel %vm1153_vm2, %v15146_v53, -inf }
 0x561   : > { %v1931_v61 = vpop.f32.mrb[18].mxu0  ;;  %2298 = vmax.xlane.f32.xlu1 %v2297_v60  ;;  %v1731_v62 = vpop.f32.mrb[14].mxu1 }
 0x562   : > { %v11679_v1 = vpop.f32.mrb[15].mxu1  ;;  %v11709_v2 = vpop.f32.mrb[19].mxu0 }
 0x565   : > { %2307 = vmax.xlane.f32.xlu1 %v2306_v3 }
 0x567   : > { %v15152_v4 = vpop.f32.mrb[16].mxu1  ;;  %v15154_v5 = vpop.f32.mrb[20].mxu0 }
 0x568   : > { %v11684_v6 = vpop.f32.mrb[17].mxu1  ;;  %v11720_v7 = vpop.f32.mrb[21].mxu0  ;;  %v2300_v9 = vsel %vm1153_vm2, %v15152_v4, -inf  ;;  %v2318_v19 = vsel %vm1153_vm2, %v15154_v5, -inf }
 0x569   : > { %v2011_v11 = vpop.f32.mrb[22].mxu0  ;;  %2313 = vmax.xlane.f32.xlu1 %v2312_v8  ;;  %2301 = vmax.xlane.f32.xlu0 %v2300_v9  ;;  %v1771_v12 = vpop.f32.mrb[18].mxu1 }
 0x56a   : > { %v11685_v14 = vpop.f32.mrb[19].mxu1  ;;  %v11721_v18 = vpop.f32.mrb[23].mxu0 }
 0x56d   : > { %2319 = vmax.xlane.f32.xlu1 %v2318_v19 }
 0x56f   : > { %v15162_v22 = vpop.f32.mrb[20].mxu1  ;;  %v15164_v26 = vpop.f32.mrb[24].mxu0 }
 0x570   : > { %v11690_v27 = vpop.f32.mrb[21].mxu1  ;;  %v11732_v28 = vpop.f32.mrb[25].mxu0  ;;  %v2324_v30 = vsel %vm1153_vm2, %v15164_v26, -inf  ;;  %v2303_v16 = vsel %vm1153_vm2, %v15162_v22, -inf }
 0x571   : > { %v2091_v31 = vpop.f32.mrb[26].mxu0  ;;  %2325 = vmax.xlane.f32.xlu1 %v2324_v30  ;;  %2304 = vmax.xlane.f32.xlu0 %v2303_v16  ;;  %v1811_v32 = vpop.f32.mrb[22].mxu1 }
 0x572   : > { %v11691_v33 = vpop.f32.mrb[23].mxu1  ;;  %v11733_v34 = vpop.f32.mrb[27].mxu0 }
 0x577   : > { %v15170_v35 = vpop.f32.mrb[24].mxu1  ;;  %v15172_v36 = vpop.f32.mrb[28].mxu0 }
 0x578   : > { %v11702_v38 = vpop.f32.mrb[25].mxu1  ;;  %v11744_v39 = vpop.f32.mrb[29].mxu0  ;;  %v2330_v40 = vsel %vm1153_vm2, %v15172_v36, -inf  ;;  %v2309_v45 = vsel %vm1153_vm2, %v15170_v35, -inf }
 0x579   : > { %v2171_v46 = vpop.f32.mrb[30].mxu0  ;;  %2331 = vmax.xlane.f32.xlu1 %v2330_v40  ;;  %2310 = vmax.xlane.f32.xlu0 %v2309_v45  ;;  %v1891_v47 = vpop.f32.mrb[26].mxu1 }
 0x57a   : > { %v11703_v48 = vpop.f32.mrb[27].mxu1  ;;  %v11745_v49 = vpop.f32.mrb[31].mxu0 }
 0x57f   : > { %v15178_v50 = vpop.f32.mrb[28].mxu1  ;;  %v15180_v51 = vpop.f32.mrb[32].mxu0 }
 0x580   : > { %v11714_v57 = vpop.f32.mrb[29].mxu1  ;;  %v11756_v58 = vpop.f32.mrb[33].mxu0  ;;  %v2336_v60 = vsel %vm1153_vm2, %v15180_v51, -inf  ;;  %v2315_v61 = vsel %vm1153_vm2, %v15178_v50, -inf }
 0x581   : > { %v2251_v62 = vpop.f32.mrb[34].mxu0  ;;  %2337 = vmax.xlane.f32.xlu1 %v2336_v60  ;;  %2316 = vmax.xlane.f32.xlu0 %v2315_v61  ;;  %v1971_v1 = vpop.f32.mrb[30].mxu1 }
 0x582   : > { %v11715_v2 = vpop.f32.mrb[31].mxu1  ;;  %v11757_v3 = vpop.f32.mrb[35].mxu0 }
 0x587   : > { %v15186_v6 = vpop.f32.mrb[32].mxu1 }
 0x588   : > { %v11726_v7 = vpop.f32.mrb[33].mxu1  ;;  %v2321_v8 = vsel %vm1153_vm2, %v15186_v6, -inf }
 0x589   : > { %2322 = vmax.xlane.f32.xlu0 %v2321_v8  ;;  %v2051_v9 = vpop.f32.mrb[34].mxu1 }
 0x58a   : > { %v11727_v11 = vpop.f32.mrb[35].mxu1 }
 0x58f   : > { %v15190_v12 = vpop.f32.mrb[36].mxu1 }
 0x590   : > { %v11738_v14 = vpop.f32.mrb[37].mxu1  ;;  %v2327_v18 = vsel %vm1153_vm2, %v15190_v12, -inf }
 0x591   : > { %2328 = vmax.xlane.f32.xlu0 %v2327_v18  ;;  %v2131_v19 = vpop.f32.mrb[38].mxu1 }
 0x592   : > { %v11739_v27 = vpop.f32.mrb[39].mxu1 }
 0x597   : > { %v15194_v28 = vpop.f32.mrb[40].mxu1 }
 0x598   : > { %v11750_v30 = vpop.f32.mrb[41].mxu1  ;;  %v2333_v16 = vsel %vm1153_vm2, %v15194_v28, -inf }
 0x599   : > { %2334 = vmax.xlane.f32.xlu0 %v2333_v16  ;;  %v2211_v31 = vpop.f32.mrb[42].mxu1 }
 0x59a   : > { %v11751_v32 = vpop.f32.mrb[43].mxu1 }
 0x59f   : > { %v15198_v33 = vpop.f32.mrb[44].mxu1 }
 0x5a0   : > { %v11762_v34 = vpop.f32.mrb[45].mxu1  ;;  %v2339_v38 = vsel %vm1153_vm2, %v15198_v33, -inf }
 0x5a1   : > { %2340 = vmax.xlane.f32.xlu0 %v2339_v38  ;;  %v2291_v39 = vpop.f32.mrb[46].mxu1 }
 0x5a2   : > { %v11763_v40 = vpop.f32.mrb[47].mxu1 }
 0x5e6   : > { %v2296_v45 = vpop.xlane.xlu0 %2295 }
 0x5e7   : > { %v2342_v46 = vsub.f32 %v15138_v43, %v2296_v45 }
 0x5e9   : > { %v2358_v47 = vmul.f32 1.442695, %v2342_v46 }
 0x5eb   : > { %13033 = vpow2.f32 %v2358_v47 }
 0x5ee   : > { %v2299_v48 = vpop.xlane.xlu1 %2298 }
 0x5ef   : > { %v2343_v49 = vsub.f32 %v15144_v52, %v2299_v48 }
 0x5f1   : > { %v2360_v57 = vmul.f32 1.442695, %v2343_v49 }
 0x5f2   : > { %v2308_v58 = vpop.xlane.xlu1 %2307 }
 0x5f3   : > { %13035 = vpow2.f32 %v2360_v57  ;;  %v2346_v61 = vsub.f32 %v15140_v44, %v2308_v58 }
 0x5f5   : > { %v15204_v60 = vpop.eup %13033  ;;  %v2366_v7 = vmul.f32 1.442695, %v2346_v61 }
 0x5f6   : > { %v2314_v62 = vpop.xlane.xlu1 %2313  ;;  %v2302_v1 = vpop.xlane.xlu0 %2301  ;;  %v2390_v2 = vsel %vm1153_vm2, %v15204_v60, 0.0 }
 0x5f7   : > { %v2344_v3 = vsub.f32 %v15152_v4, %v2302_v1  ;;  %2391 = vadd.xlane.f32.xlu1 %v2390_v2  ;;  %v2348_v8 = vsub.f32 %v15146_v53, %v2314_v62 }
 0x5f9   : > { %v2362_v43 = vmul.f32 1.442695, %v2344_v3  ;;  %v2370_v11 = vmul.f32 1.442695, %v2348_v8 }
 0x5fa   : > { %v2320_v52 = vpop.xlane.xlu1 %2319 }
 0x5fb   : > { %13037 = vpow2.f32 %v2362_v43  ;;  %v2350_v44 = vsub.f32 %v15154_v5, %v2320_v52 }
 0x5fc   : > { %13039 = vpow2.f32 %v2366_v7 }
 0x5fd   : > { %v15211_v9 = vpop.eup %13035  ;;  %13041 = vpow2.f32 %v2370_v11  ;;  %v2374_v30 = vmul.f32 1.442695, %v2350_v44 }
 0x5fe   : > { %v2305_v14 = vpop.xlane.xlu0 %2304  ;;  %v2393_v18 = vsel %vm1153_vm2, %v15211_v9, 0.0  ;;  %v2326_v19 = vpop.xlane.xlu1 %2325 }
 0x5ff   : > { %v2345_v4 = vsub.f32 %v15162_v22, %v2305_v14  ;;  %2394 = vadd.xlane.f32.xlu0 %v2393_v18  ;;  %v2352_v53 = vsub.f32 %v15164_v26, %v2326_v19 }
 0x601   : > { %v2364_v27 = vmul.f32 1.442695, %v2345_v4  ;;  %v2378_v31 = vmul.f32 1.442695, %v2352_v53 }
 0x603   : > { %13043 = vpow2.f32 %v2364_v27 }
 0x604   : > { %13045 = vpow2.f32 %v2374_v30 }
 0x605   : > { %v15218_v16 = vpop.eup %13037  ;;  %13047 = vpow2.f32 %v2378_v31 }
 0x606   : > { %v2332_v32 = vpop.xlane.xlu1 %2331  ;;  %v2311_v5 = vpop.xlane.xlu0 %2310  ;;  %v2396_v22 = vsel %vm1153_vm2, %v15218_v16, 0.0 }
 0x607   : > { %v2354_v34 = vsub.f32 %v15172_v36, %v2332_v32  ;;  %v2347_v38 = vsub.f32 %v15170_v35, %v2311_v5  ;;  %v15224_v39 = vpop.eup %13039  ;;  %2397 = vadd.xlane.f32.xlu1 %v2396_v22 }
 0x608   : > { %v2402_v45 = vsel %vm1153_vm2, %v15224_v39, 0.0  ;;  %v15228_v46 = vpop.eup %13041 }
 0x609   : > { %v2368_v40 = vmul.f32 1.442695, %v2347_v38  ;;  %v2382_v26 = vmul.f32 1.442695, %v2354_v34  ;;  %v2408_v57 = vsel %vm1153_vm2, %v15228_v46, 0.0 }
 0x60b   : > { %13049 = vpow2.f32 %v2368_v40  ;;  %2403 = vadd.xlane.f32.xlu1 %v2402_v45 }
 0x60c   : > { %13051 = vpow2.f32 %v2382_v26 }
 0x60d   : > { %v15230_v47 = vpop.eup %13043 }
 0x60e   : > { %v2338_v35 = vpop.xlane.xlu1 %2337  ;;  %v2317_v36 = vpop.xlane.xlu0 %2316  ;;  %v2399_v58 = vsel %vm1153_vm2, %v15230_v47, 0.0 }
 0x60f   : > { %v2356_v48 = vsub.f32 %v15180_v51, %v2338_v35  ;;  %v2349_v49 = vsub.f32 %v15178_v50, %v2317_v36  ;;  %v15238_v61 = vpop.eup %13045  ;;  %2409 = vadd.xlane.f32.xlu1 %v2408_v57  ;;  %2400 = vadd.xlane.f32.xlu0 %v2399_v58 }
 0x610   : > { %v2414_v2 = vsel %vm1153_vm2, %v15238_v61, 0.0  ;;  %v15242_v3 = vpop.eup %13047 }
 0x611   : > { %v2386_v62 = vmul.f32 1.442695, %v2356_v48  ;;  %v2372_v1 = vmul.f32 1.442695, %v2349_v49  ;;  %v2420_v7 = vsel %vm1153_vm2, %v15242_v3, 0.0 }
 0x613   : > { %13053 = vpow2.f32 %v2386_v62  ;;  %2415 = vadd.xlane.f32.xlu1 %v2414_v2  ;;  %v15291_v2 = vpack.c.bf16 %v15065_v13, %v15065_v13 }
 0x614   : > { %13055 = vpow2.f32 %v2372_v1 }
 0x615   : > { %v15244_v50 = vpop.eup %13049 }
 0x616   : > { %v2323_v51 = vpop.xlane.xlu0 %2322  ;;  %v2405_v8 = vsel %vm1153_vm2, %v15244_v50, 0.0  ;;  %v15251_v52 = vpop.eup %13051 }
 0x617   : > { %v2351_v43 = vsub.f32 %v15186_v6, %v2323_v51  ;;  %2421 = vadd.xlane.f32.xlu1 %v2420_v7  ;;  %2406 = vadd.xlane.f32.xlu0 %v2405_v8  ;;  %v2426_v44 = vsel %vm1153_vm2, %v15251_v52, 0.0  ;;  %v1641_v7 = vmul.bf16 %v15291_v2, %v14997_v41 }
 0x619   : > { %v2376_v11 = vmul.f32 1.442695, %v2351_v43 }
 0x61b   : > { %13057 = vpow2.f32 %v2376_v11  ;;  %2427 = vadd.xlane.f32.xlu1 %v2426_v44  ;;  %v2628_v11 = vsel %vm1160_vm0, %v1641_v7, 0 }
 0x61d   : > { %v15255_v14 = vpop.eup %13053 }
 0x61e   : > { %v15257_v18 = vpop.eup %13055  ;;  %v2329_v6 = vpop.xlane.xlu0 %2328  ;;  %v2432_v19 = vsel %vm1153_vm2, %v15255_v14, 0.0 }
 0x61f   : > { %v2353_v4 = vsub.f32 %v15190_v12, %v2329_v6  ;;  %v2411_v27 = vsel %vm1153_vm2, %v15257_v18, 0.0  ;;  %2433 = vadd.xlane.f32.xlu1 %v2432_v19 }
 0x620   : > { %2412 = vadd.xlane.f32.xlu0 %v2411_v27 }
 0x621   : > { %v2380_v30 = vmul.f32 1.442695, %v2353_v4  ;;  %v1642_v4 = vmul.bf16 %v15086_v29, %v14999_v42 }
 0x623   : > { %13059 = vpow2.f32 %v2380_v30 }
 0x625   : > { %v15264_v53 = vpop.eup %13057 }
 0x626   : > { %v2335_v31 = vpop.xlane.xlu0 %2334  ;;  %v2417_v32 = vsel %vm1153_vm2, %v15264_v53, 0.0 }
 0x627   : > { %v2355_v5 = vsub.f32 %v15194_v28, %v2335_v31  ;;  %2418 = vadd.xlane.f32.xlu0 %v2417_v32  ;;  %v2674_v31 = vsel %vm1160_vm0, %v1642_v4, 0 }
 0x629   : > { %v2384_v34 = vmul.f32 1.442695, %v2355_v5 }
 0x62b   : > { %13061 = vpow2.f32 %v2384_v34 }
 0x62d   : > { %v15269_v38 = vpop.eup %13059 }
 0x62e   : > { %v2341_v12 = vpop.xlane.xlu0 %2340  ;;  %v2423_v22 = vsel %vm1153_vm2, %v15269_v38, 0.0 }
 0x62f   : > { %v2357_v40 = vsub.f32 %v15198_v33, %v2341_v12  ;;  %2424 = vadd.xlane.f32.xlu0 %v2423_v22  ;;  %v15284_v33 = vpack.c.bf16 %v15063_v10, %v15063_v10 }
 0x631   : > { %v2388_v26 = vmul.f32 1.442695, %v2357_v40  ;;  %v1640_v62 = vmul.bf16 %v15284_v33, %v14997_v41  ;;  %v1644_v12 = vmul.bf16 %v15284_v33, %v14999_v42  ;;  %v1643_v40 = vmul.bf16 %v15124_v37, %v14999_v42 }
 0x633   : > { %13063 = vpow2.f32 %v2388_v26  ;;  %v2582_v51 = vsel %vm1160_vm0, %v1640_v62, 0  ;;  %v1646_v62 = vmul.bf16 %v15086_v29, %v15036_v63 }
 0x635   : > { %v15274_v45 = vpop.eup %13061  ;;  %v2858_v7 = vsel %vm1160_vm0, %v1646_v62, 0 }
 0x636   : > { %v2429_v35 = vsel %vm1153_vm2, %v15274_v45, 0.0 }
 0x637   : > { %2430 = vadd.xlane.f32.xlu0 %v2429_v35 }
 0x63d   : > { %v15278_v28 = vpop.eup %13063 }
 0x63e   : > { %v2435_v36 = vsel %vm1153_vm2, %v15278_v28, 0.0 }
 0x63f   : > { %2436 = vadd.xlane.f32.xlu0 %v2435_v36 }
 0x684   : > { %v2392_v48 = vpop.xlane.xlu1 %2391 }
 0x685   : > { %13065 = vrcp.f32 %v2392_v48  ;;  %v2766_v48 = vsel %vm1160_vm0, %v1644_v12, 0 }
 0x68c   : > { %v2395_v49 = vpop.xlane.xlu0 %2394 }
 0x68d   : > { %13067 = vrcp.f32 %v2395_v49 }
 0x68f   : > { %v13066_v57 = vpop.eup %13065 }
 0x690   : > { %v2454_v58 = vmul.f32 %v13066_v57, %v15204_v60 }
 0x692   : > { %v2470_v1 = vpack.c.bf16 %v2454_v58, %v2454_v58 }
 0x694   : > { %11767 = vmatmul.mubr.msk.bf16.vlgmr.msra.gmra.mrb[36].mxu0 %vm1153_vm2, %v2470_v1  ;;  %v2398_v10 = vpop.xlane.xlu1 %2397 }
 0x695   : > { %11777 = vmatpush3.bf16.msra.mxu0 %v2582_v51  ;;  %11778 = vmatprep.mubr.msk.bf16.mxu0 %vm14155_vm11, %v17363_v15  ;;  %13069 = vrcp.f32 %v2398_v10  ;;  %v1645_v51 = vmul.bf16 %v15291_v2, %v14999_v42 }
 0x696   : > { %11788 = vmatprep.subr.bf16.mxu0 %v17363_v15 }
 0x697   : > { %v13068_v60 = vpop.eup %13067 }
 0x698   : > { %v2455_v43 = vmul.f32 %v13068_v60, %v15211_v9  ;;  %v2404_v13 = vpop.xlane.xlu1 %2403 }
 0x699   : > { %13071 = vrcp.f32 %v2404_v13  ;;  %v2812_v13 = vsel %vm1160_vm0, %v1645_v51, 0 }
 0x69a   : > { %v2471_v8 = vpack.c.bf16 %v2455_v43, %v2455_v43 }
 0x69c   : > { %11773 = vmatmul.mubr.msk.bf16.vlgmr.msra.gmra.mrb[48].mxu1 %vm1153_vm2, %v2471_v8  ;;  %v2401_v44 = vpop.xlane.xlu0 %2400  ;;  %v2410_v6 = vpop.xlane.xlu1 %2409 }
 0x69d   : > { %11783 = vmatpush3.bf16.msra.mxu1 %v2628_v11  ;;  %11784 = vmatprep.mubr.msk.bf16.mxu1 %vm14155_vm11, %v17363_v15  ;;  %13073 = vrcp.f32 %v2401_v44  ;;  %v1648_v44 = vmul.bf16 %v15284_v33, %v15036_v63 }
 0x69e   : > { %11794 = vmatprep.subr.bf16.mxu1 %v17363_v15  ;;  %13075 = vrcp.f32 %v2410_v6 }
 0x69f   : > { %v13070_v9 = vpop.eup %13069 }
 0x6a0   : > { %v2456_v19 = vmul.f32 %v13070_v9, %v15218_v16  ;;  %v2416_v5 = vpop.xlane.xlu1 %2415  ;;  %v1647_v9 = vmul.bf16 %v15124_v37, %v15036_v63 }
 0x6a2   : > { %v2472_v27 = vpack.c.bf16 %v2456_v19, %v2456_v19 }
 0x6a3   : > { %v13072_v30 = vpop.eup %13071 }
 0x6a4   : > { %11779 = vmatmul.mubr.msk.bf16.vlgmr.msra.gmra.mrb[40].mxu0 %vm1153_vm2, %v2472_v27  ;;  %v2407_v32 = vpop.xlane.xlu0 %2406  ;;  %v2458_v16 = vmul.f32 %v13072_v30, %v15224_v39  ;;  %v2720_v39 = vsel %vm1160_vm0, %v1643_v40, 0  ;;  %v2422_v57 = vpop.xlane.xlu1 %2421  ;;  %v2950_v30 = vsel %vm1160_vm0, %v1648_v44, 0  ;;  %v1307_v44 = vld [vmem:[#allocation14 + $0x1a8] sm:$0xff] }
 0x6a5   : > { %11789 = vmatpush3.bf16.msra.mxu0 %v2674_v31  ;;  %11790 = vmatprep.mubr.msk.bf16.mxu0 %vm14155_vm11, %v17363_v15  ;;  %13077 = vrcp.f32 %v2407_v32  ;;  %v2904_v31 = vsel %vm1160_vm0, %v1647_v9, 0 }
 0x6a6   : > { %11800 = vmatprep.subr.bf16.mxu0 %v17363_v15  ;;  %13079 = vrcp.f32 %v2416_v5  ;;  %v2474_v26 = vpack.c.bf16 %v2458_v16, %v2458_v16 }
 0x6a7   : > { %v13074_v34 = vpop.eup %13073 }
 0x6a8   : > { %v2457_v22 = vmul.f32 %v13074_v34, %v15230_v47  ;;  %v13076_v35 = vpop.eup %13075  ;;  %v2428_v8 = vpop.xlane.xlu1 %2427  ;;  %v1650_v34 = vmul.bf16 %v15086_v29, %v15074_v25 }
 0x6a9   : > { %v2460_v47 = vmul.f32 %v13076_v35, %v15228_v46 }
 0x6aa   : > { %v2473_v36 = vpack.c.bf16 %v2457_v22, %v2457_v22  ;;  %v1649_v22 = vmul.bf16 %v15291_v2, %v15036_v63  ;;  %v3042_v35 = vsel %vm1160_vm0, %v1650_v34, 0  ;;  %v1316_v34 = vld [vmem:[#allocation14 + $0x1f0] sm:$0xff] }
 0x6ab   : > { %v2476_v10 = vpack.c.bf16 %v2460_v47, %v2460_v47  ;;  %v1302_v47 = vld [vmem:[#allocation14 + $0x180] sm:$0xff] }
 0x6ac   : > { %11791 = vmatmul.mubr.msk.bf16.vlgmr.msra.gmra.mrb[36].mxu0 %vm1153_vm2, %v2474_v26  ;;  %11785 = vmatmul.mubr.msk.bf16.vlgmr.msra.gmra.mrb[52].mxu1 %vm1153_vm2, %v2473_v36  ;;  %v2434_v5 = vpop.xlane.xlu1 %2433 }
 0x6ad   : > { %v2413_v49 = vpop.xlane.xlu0 %2412  ;;  %11801 = vmatpush3.bf16.msra.mxu0 %v2766_v48  ;;  %11795 = vmatpush3.bf16.msra.mxu1 %v2720_v39 }
 0x6ae   : > { %13081 = vrcp.f32 %v2413_v49  ;;  %11796 = vmatprep.mubr.msk.bf16.mxu1 %vm14155_vm11, %v17363_v15  ;;  %11802 = vmatprep.mubr.msk.bf16.mxu0 %vm14155_vm11, %v17363_v15  ;;  %v1652_v49 = vmul.bf16 %v15284_v33, %v15074_v25 }
 0x6af   : > { %11806 = vmatprep.subr.bf16.mxu1 %v17363_v15  ;;  %v13078_v58 = vpop.eup %13077  ;;  %11812 = vmatprep.subr.bf16.mxu0 %v17363_v15  ;;  %13083 = vrcp.f32 %v2422_v57  ;;  %v1651_v57 = vmul.bf16 %v15124_v37, %v15074_v25 }
 0x6b0   : > { %v2459_v1 = vmul.f32 %v13078_v58, %v15244_v50  ;;  %v13080_v60 = vpop.eup %13079  ;;  %v1303_v58 = vld [vmem:[#allocation14 + $0x188] sm:$0xff]  ;;  %v3134_v51 = vsel %vm1160_vm0, %v1652_v49, 0 }
 0x6b1   : > { %v2462_v50 = vmul.f32 %v13080_v60, %v15238_v61 }
 0x6b2   : > { %v2475_v46 = vpack.c.bf16 %v2459_v1, %v2459_v1 }
 0x6b3   : > { %v2478_v19 = vpack.c.bf16 %v2462_v50, %v2462_v50 }
 0x6b4   : > { %v2419_v43 = vpop.xlane.xlu0 %2418  ;;  %11803 = vmatmul.mubr.msk.bf16.vlgmr.msra.gmra.mrb[40].mxu0 %vm1153_vm2, %v2476_v10  ;;  %11797 = vmatmul.mubr.msk.bf16.vlgmr.msra.gmra.mrb[48].mxu1 %vm1153_vm2, %v2475_v46  ;;  %v3088_v10 = vsel %vm1160_vm0, %v1651_v57, 0  ;;  %v1304_v46 = vld [vmem:[#allocation14 + $0x190] sm:$0xff] }
 0x6b5   : > { %13085 = vrcp.f32 %v2419_v43  ;;  %11813 = vmatpush3.bf16.msra.mxu0 %v2858_v7  ;;  %11807 = vmatpush3.bf16.msra.mxu1 %v2812_v13  ;;  %v1305_v43 = vld [vmem:[#allocation14 + $0x198] sm:$0xff]  ;;  %v1653_v13 = vmul.bf16 %v15291_v2, %v15074_v25  ;;  %v1308_v2 = vld [vmem:[#allocation14 + $0x1b0] sm:$0xff] }
 0x6b6   : > { %11808 = vmatprep.mubr.msk.bf16.mxu1 %vm14155_vm11, %v17363_v15  ;;  %11814 = vmatprep.mubr.msk.bf16.mxu0 %vm14155_vm11, %v17363_v15  ;;  %13087 = vrcp.f32 %v2428_v8  ;;  %v3237_v50 = vpack.c.bf16 %v1305_v43, %v1304_v46 }
 0x6b7   : > { %11818 = vmatprep.subr.bf16.mxu1 %v17363_v15  ;;  %11824 = vmatprep.subr.bf16.mxu0 %v17363_v15 }
 0x6b8   : > { %v13082_v11 = vpop.eup %13081 }
 0x6b9   : > { %v2461_v6 = vmul.f32 %v13082_v11, %v15257_v18  ;;  %v13084_v4 = vpop.eup %13083  ;;  %v1306_v11 = vld [vmem:[#allocation14 + $0x1a0] sm:$0xff] }
 0x6ba   : > { %v2464_v18 = vmul.f32 %v13084_v4, %v15242_v3 }
 0x6bb   : > { %v2477_v61 = vpack.c.bf16 %v2461_v6, %v2461_v6 }
 0x6bc   : > { %v2425_v27 = vpop.xlane.xlu0 %2424  ;;  %11815 = vmatmul.mubr.msk.bf16.vlgmr.msra.gmra.mrb[36].mxu0 %vm1153_vm2, %v2478_v19  ;;  %v2480_v40 = vpack.c.bf16 %v2464_v18, %v2464_v18  ;;  %v1309_v19 = vld [vmem:[#allocation14 + $0x1b8] sm:$0xff]  ;;  %v1314_v18 = vld [vmem:[#allocation14 + $0x1e0] sm:$0xff] }
 0x6bd   : > { %13089 = vrcp.f32 %v2425_v27  ;;  %11809 = vmatmul.mubr.msk.bf16.vlgmr.msra.gmra.mrb[52].mxu1 %vm1153_vm2, %v2477_v61  ;;  %11825 = vmatpush3.bf16.msra.mxu0 %v2950_v30  ;;  %v3239_v61 = vpack.c.bf16 %v1309_v19, %v1308_v2  ;;  %v1310_v27 = vld [vmem:[#allocation14 + $0x1c0] sm:$0xff]  ;;  %v1311_v30 = vld [vmem:[#allocation14 + $0x1c8] sm:$0xff]  ;;  %v1321_v19 = vld [vmem:[#allocation16 + $0x18] sm:$0xff] }
 0x6be   : > { %11819 = vmatpush3.bf16.msra.mxu1 %v2904_v31  ;;  %11820 = vmatprep.mubr.msk.bf16.mxu1 %vm14155_vm11, %v17363_v15  ;;  %13091 = vrcp.f32 %v2434_v5  ;;  %v1312_v31 = vld [vmem:[#allocation14 + $0x1d0] sm:$0xff]  ;;  %v1313_v5 = vld [vmem:[#allocation14 + $0x1d8] sm:$0xff]  ;;  %v1319_v2 = vld [vmem:[#allocation16 + $0x8] sm:$0xff] }
 0x6bf   : > { %v13086_v32 = vpop.eup %13085  ;;  %11826 = vmatprep.mubr.msk.bf16.mxu0 %vm14155_vm11, %v17363_v15  ;;  %11830 = vmatprep.subr.bf16.mxu1 %v17363_v15 }
 0x6c0   : > { %v2463_v16 = vmul.f32 %v13086_v32, %v15264_v53  ;;  %11836 = vmatprep.subr.bf16.mxu0 %v17363_v15  ;;  %v13088_v26 = vpop.eup %13087  ;;  %v2996_v53 = vsel %vm1160_vm0, %v1649_v22, 0  ;;  %v3240_v32 = vpack.c.bf16 %v1311_v30, %v1310_v27  ;;  %v1317_v22 = vld [vmem:[#allocation14 + $0x1f8] sm:$0xff]  ;;  %v1320_v27 = vld [vmem:[#allocation16 + $0x10] sm:$0xff]  ;;  %v1323_v30 = vld [vmem:[#allocation16 + $0x28] sm:$0xff] }
 0x6c1   : > { %v2466_v29 = vmul.f32 %v13088_v26, %v15251_v52 }
 0x6c2   : > { %v2479_v12 = vpack.c.bf16 %v2463_v16, %v2463_v16  ;;  %v1315_v16 = vld [vmem:[#allocation14 + $0x1e8] sm:$0xff] }
 0x6c3   : > { %v2482_v62 = vpack.c.bf16 %v2466_v29, %v2466_v29 }
 0x6c4   : > { %v2431_v3 = vpop.xlane.xlu0 %2430  ;;  %11827 = vmatmul.mubr.msk.bf16.vlgmr.msra.gmra.mrb[40].mxu0 %vm1153_vm2, %v2480_v40  ;;  %v3243_v40 = vpack.c.bf16 %v1317_v22, %v1316_v34 }
 0x6c5   : > { %13093 = vrcp.f32 %v2431_v3  ;;  %11821 = vmatmul.mubr.msk.bf16.vlgmr.msra.gmra.mrb[48].mxu1 %vm1153_vm2, %v2479_v12  ;;  %11837 = vmatpush3.bf16.msra.mxu0 %v3042_v35  ;;  %v3242_v12 = vpack.c.bf16 %v1315_v16, %v1314_v18 }
 0x6c6   : > { %11831 = vmatpush3.bf16.msra.mxu1 %v2996_v53  ;;  %11832 = vmatprep.mubr.msk.bf16.mxu1 %vm14155_vm11, %v17363_v15 }
 0x6c7   : > { %v13090_v36 = vpop.eup %13089  ;;  %11838 = vmatprep.mubr.msk.bf16.mxu0 %vm14155_vm11, %v17363_v15  ;;  %11842 = vmatprep.subr.bf16.mxu1 %v17363_v15 }
 0x6c8   : > { %v2465_v48 = vmul.f32 %v13090_v36, %v15269_v38  ;;  %11848 = vmatprep.subr.bf16.mxu0 %v17363_v15  ;;  %v13092_v52 = vpop.eup %13091  ;;  %v3236_v38 = vpack.c.bf16 %v1303_v58, %v1302_v47 }
 0x6c9   : > { %v2468_v37 = vmul.f32 %v13092_v52, %v15255_v14  ;;  %v3180_v14 = vsel %vm1160_vm0, %v1653_v13, 0 }
 0x6ca   : > { %v2481_v39 = vpack.c.bf16 %v2465_v48, %v2465_v48 }
 0x6cb   : > { %v2484_v8 = vpack.c.bf16 %v2468_v37, %v2468_v37  ;;  %v15408_v37 = vld [vmem:[#allocation20] sm:$0xff] }
 0x6cc   : > { %v2437_v1 = vpop.xlane.xlu0 %2436  ;;  %11839 = vmatmul.mubr.msk.bf16.vlgmr.msra.gmra.mrb[36].mxu0 %vm1153_vm2, %v2482_v62 }
 0x6cd   : > { %13095 = vrcp.f32 %v2437_v1  ;;  %11833 = vmatmul.mubr.msk.bf16.vlgmr.msra.gmra.mrb[52].mxu1 %vm1153_vm2, %v2481_v39  ;;  %11849 = vmatpush3.bf16.msra.mxu0 %v3134_v51 }
 0x6ce   : > { %11843 = vmatpush3.bf16.msra.mxu1 %v3088_v10  ;;  %11844 = vmatprep.mubr.msk.bf16.mxu1 %vm14155_vm11, %v17363_v15 }
 0x6cf   : > { %v13094_v33 = vpop.eup %13093  ;;  %11850 = vmatprep.mubr.msk.bf16.mxu0 %vm14155_vm11, %v17363_v15  ;;  %11854 = vmatprep.subr.bf16.mxu1 %v17363_v15 }
 0x6d0   : > { %v2467_v60 = vmul.f32 %v13094_v33, %v15274_v45  ;;  %11860 = vmatprep.subr.bf16.mxu0 %v3236_v38  ;;  %v3238_v45 = vpack.c.bf16 %v1307_v44, %v1306_v11  ;;  %v15406_v33 = vsub.s32 3, %v14950_v17 }
 0x6d2   : > { %v2483_v7 = vpack.c.bf16 %v2467_v60, %v2467_v60  ;;  %17463 = vst [vmem:[#allocation59_spill] sm:$0xff] %v15406_v33  ;;  %v3247_v60 = vrot.slane %v15408_v37, %v15406_v33 }
 0x6d4   : > { %11851 = vmatmul.mubr.msk.bf16.vlgmr.msra.gmra.mrb[40].mxu0 %vm1153_vm2, %v2484_v8 }
 0x6d5   : > { %11845 = vmatmul.mubr.msk.bf16.vlgmr.msra.gmra.mrb[48].mxu1 %vm1153_vm2, %v2483_v7  ;;  %11861 = vmatpush3.bf16.msra.mxu0 %v3236_v38 }
 0x6d6   : > { %11855 = vmatpush3.bf16.msra.mxu1 %v3180_v14  ;;  %11856 = vmatprep.mubr.msk.bf16.mxu1 %vm14155_vm11, %v17363_v15 }
 0x6d7   : > { %v13096_v6 = vpop.eup %13095  ;;  %11862 = vmatprep.subr.bf16.mxu0 %v3237_v50 }
 0x6d8   : > { %v2469_v9 = vmul.f32 %v13096_v6, %v15278_v28  ;;  %v3241_v28 = vpack.c.bf16 %v1313_v5, %v1312_v31  ;;  %v1325_v31 = vld [vmem:[#allocation16 + $0x38] sm:$0xff]  ;;  %v1322_v5 = vld [vmem:[#allocation16 + $0x20] sm:$0xff] }
 0x6d9   : > { %11863 = vmatpush3.bf16.msra.mxu0 %v3237_v50 }
 0x6da   : > { %v2485_v4 = vpack.c.bf16 %v2469_v9, %v2469_v9  ;;  %11864 = vmatprep.subr.bf16.mxu0 %v3238_v45 }
 0x6dd   : > { %11857 = vmatmul.mubr.msk.bf16.vlgmr.msra.gmra.mrb[52].mxu1 %vm1153_vm2, %v2485_v4  ;;  %11865 = vmatpush3.bf16.msra.mxu0 %v3238_v45  ;;  %v1318_v4 = vld [vmem:[#allocation16] sm:$0xff] }
 0x6de   : > { %11866 = vmatprep.subr.bf16.mxu0 %v3239_v61  ;;  %3423 = vmatprep.mubr.bf16.mxu1 %v17353_v0 }
 0x6e1   : > { %11867 = vmatpush3.bf16.msra.mxu0 %v3239_v61  ;;  %v3365_v61 = vpack.c.bf16 %v1321_v19, %v1319_v2  ;;  %v1343_v2 = vld [vmem:[#allocation16 + $0xc8] sm:$0xff]  ;;  %v1345_v19 = vld [vmem:[#allocation16 + $0xd8] sm:$0xff] }
 0x6e2   : > { %11868 = vmatprep.subr.bf16.mxu0 %v3240_v32 }
 0x6e3   : > { %3391 = vmatprep.subr.bf16.mxu1 %v3365_v61  ;;  %v3377_v61 = vpack.c.bf16 %v1345_v19, %v1343_v2  ;;  %v1352_v2 = vld [vmem:[#allocation19 + $0x8] sm:$0xff] }
 0x6e5   : > { %11869 = vmatpush3.bf16.msra.mxu0 %v3240_v32  ;;  %v3364_v32 = vpack.c.bf16 %v1320_v27, %v1318_v4  ;;  %v1342_v27 = vld [vmem:[#allocation16 + $0xc0] sm:$0xff] }
 0x6e6   : > { %11870 = vmatprep.subr.bf16.mxu0 %v3241_v28 }
 0x6e7   : > { %3392 = vmatpush1.bf16.msra.mxu1 %v3364_v32  ;;  %v1349_v32 = vld [vmem:[#allocation16 + $0xf8] sm:$0xff] }
 0x6e9   : > { %11871 = vmatpush3.bf16.msra.mxu0 %v3241_v28  ;;  %v1324_v28 = vld [vmem:[#allocation16 + $0x30] sm:$0xff] }
 0x6ea   : > { %11872 = vmatprep.subr.bf16.mxu0 %v3242_v12 }
 0x6ed   : > { %11873 = vmatpush3.bf16.msra.mxu0 %v3242_v12 }
 0x6ee   : > { %11874 = vmatprep.subr.bf16.mxu0 %v3243_v40 }
 0x6f1   : > { %11875 = vmatpush3.bf16.msra.mxu0 %v3243_v40 }
 0x79f   : > { %v3078_v26 = vpop.f32.mrb[36].mxu0 }
 0x7a0   : > { %v11840_v3 = vpop.f32.mrb[37].mxu0 }
 0x7a1   : > { %v3081_v35 = vpop.f32.mrb[38].mxu0 }
 0x7a2   : > { %v11841_v53 = vpop.f32.mrb[39].mxu0 }
 0x7a7   : > { %v3170_v36 = vpop.f32.mrb[40].mxu0 }
 0x7a8   : > { %v3124_v29 = vpop.f32.mrb[48].mxu1  ;;  %v11852_v48 = vpop.f32.mrb[41].mxu0 }
 0x7a9   : > { %v3234_v49 = vpack.c.bf16 %v3124_v29, %v3078_v26  ;;  %v11846_v39 = vpop.f32.mrb[49].mxu1  ;;  %v3173_v57 = vpop.f32.mrb[42].mxu0 }
 0x7aa   : > { %v3127_v47 = vpop.f32.mrb[50].mxu1  ;;  %v11853_v58 = vpop.f32.mrb[43].mxu0  ;;  %v1327_v39 = vld [vmem:[#allocation16 + $0x48] sm:$0xff]  ;;  %v1329_v57 = vld [vmem:[#allocation16 + $0x58] sm:$0xff] }
 0x7ab   : > { %v11847_v62 = vpop.f32.mrb[51].mxu1  ;;  %11876 = vmatprep.mubr.bf16.mxu0 %v3234_v49  ;;  %v3369_v47 = vpack.c.bf16 %v1329_v57, %v1327_v39  ;;  %v1326_v58 = vld [vmem:[#allocation16 + $0x40] sm:$0xff]  ;;  %v15433_v57 = vsub.s32 5, %v14950_v17 }
 0x7ac   : > { %v1328_v62 = vld [vmem:[#allocation16 + $0x50] sm:$0xff] }
 0x7ad   : > { %17464 = vst [vmem:[#allocation60_spill] sm:$0xff] %v15433_v57 }
 0x7b0   : > { %v3216_v52 = vpop.f32.mrb[52].mxu1 }
 0x7b1   : > { %v3235_v1 = vpack.c.bf16 %v3216_v52, %v3170_v36  ;;  %v11858_v51 = vpop.f32.mrb[53].mxu1  ;;  %v3368_v52 = vpack.c.bf16 %v1328_v62, %v1326_v58  ;;  %v15438_v58 = vsub.s32 6, %v14950_v17 }
 0x7b2   : > { %v3219_v38 = vpop.f32.mrb[54].mxu1  ;;  %v1333_v51 = vld [vmem:[#allocation16 + $0x78] sm:$0xff] }
 0x7b3   : > { %v11859_v10 = vpop.f32.mrb[55].mxu1  ;;  %11877 = vmatmul.mubr.bf16.vlgmr.msra.gmra.mrb[44].mxu0 %v3235_v1  ;;  %v1331_v1 = vld [vmem:[#allocation16 + $0x68] sm:$0xff]  ;;  %17465 = vst [vmem:[#allocation61_spill] sm:$0xff] %v15438_v58 }
 0x7b4   : > { %v3371_v38 = vpack.c.bf16 %v1333_v51, %v1331_v1  ;;  %v1330_v10 = vld [vmem:[#allocation16 + $0x60] sm:$0xff] }
 0x886   : > { %v11878_v46 = vpop.f32.mrb[44].mxu0 }
 0x887   : > { %v3282_v43 = vpop.f32.mrb[45].mxu0  ;;  %v3291_v50 = vadd.f32 %v11878_v46, %v3247_v60 }
 0x888   : > { %v3283_v7 = vadd.f32 %v3282_v43, %v3247_v60  ;;  %v11879_v13 = vpop.f32.mrb[46].mxu0  ;;  %v1335_v43 = vld [vmem:[#allocation16 + $0x88] sm:$0xff] }
 0x889   : > { %v3285_v8 = vpop.f32.mrb[47].mxu0  ;;  %v3294_v14 = vadd.f32 %v11879_v13, %v3247_v60  ;;  %v3299_v45 = vadd.f32 %v3291_v50, %v14970_v59  ;;  %v1334_v13 = vld [vmem:[#allocation16 + $0x80] sm:$0xff]  ;;  %v1336_v50 = vld [vmem:[#allocation16 + $0x90] sm:$0xff] }
 0x88a   : > { %v3286_v11 = vadd.f32 %v3285_v8, %v3247_v60  ;;  %v3297_v44 = vadd.f32 %v3283_v7, %v14966_v55  ;;  %v3367_v55 = vpack.c.bf16 %v1325_v31, %v1323_v30  ;;  %v1332_v60 = vld [vmem:[#allocation16 + $0x70] sm:$0xff]  ;;  %v1337_v7 = vld [vmem:[#allocation16 + $0x98] sm:$0xff]  ;;  %v1347_v31 = vld [vmem:[#allocation16 + $0xe8] sm:$0xff] }
 0x88b   : > { %v3300_v9 = vadd.f32 %v3294_v14, %v14964_v54  ;;  %v3370_v46 = vpack.c.bf16 %v1332_v60, %v1330_v10  ;;  %v3373_v8 = vpack.c.bf16 %v1337_v7, %v1335_v43  ;;  %v3372_v14 = vpack.c.bf16 %v1336_v50, %v1334_v13  ;;  %v1344_v30 = vld [vmem:[#allocation16 + $0xd0] sm:$0xff] }
 0x88c   : > { %3301 = vadd.xlane.f32.xlu1 %v3297_v44  ;;  %v3298_v6 = vadd.f32 %v3286_v11, %v14968_v56  ;;  %v3366_v56 = vpack.c.bf16 %v1324_v28, %v1322_v5  ;;  %3393 = vmatprep.subr.bf16.mxu1 %v3367_v55  ;;  %v1339_v11 = vld [vmem:[#allocation16 + $0xa8] sm:$0xff]  ;;  %v3376_v55 = vpack.c.bf16 %v1344_v30, %v1342_v27  ;;  %v1346_v28 = vld [vmem:[#allocation16 + $0xe0] sm:$0xff]  ;;  %v1353_v30 = vld [vmem:[#allocation19 + $0x10] sm:$0xff] }
 0x88d   : > { %v3379_v5 = vpack.c.bf16 %v1349_v32, %v1347_v31  ;;  %v3357_v10 = vrot.slane %v15408_v37, %v15438_v58  ;;  %v1354_v31 = vld [vmem:[#allocation19 + $0x18] sm:$0xff] }
 0x88e   : > { %3303 = vadd.xlane.f32.xlu0 %v3298_v6  ;;  %3394 = vmatpush1.bf16.msra.mxu1 %v3366_v56  ;;  %v1348_v56 = vld [vmem:[#allocation16 + $0xf0] sm:$0xff]  ;;  %v3521_v32 = vpack.c.bf16 %v1354_v31, %v1353_v30 }
 0x88f   : > { %3395 = vmatprep.subr.bf16.mxu1 %v3369_v47  ;;  %v3349_v47 = vrot.slane %v15408_v37, %v15433_v57 }
 0x890   : > { %3305 = vadd.xlane.f32.xlu1 %v3299_v45 }
 0x892   : > { %3307 = vadd.xlane.f32.xlu0 %v3300_v9  ;;  %3396 = vmatpush1.bf16.msra.mxu1 %v3368_v52 }
 0x893   : > { %3397 = vmatprep.subr.bf16.mxu1 %v3371_v38 }
 0x896   : > { %3398 = vmatpush1.bf16.msra.mxu1 %v3370_v46 }
 0x897   : > { %3399 = vmatprep.subr.bf16.mxu1 %v3373_v8 }
 0x89a   : > { %3400 = vmatpush1.bf16.msra.mxu1 %v3372_v14 }
 0x919   : > { %v3302_v59 = vpop.xlane.xlu1 %3301 }
 0x91a   : > { %v3310_v18 = vmul.f32 0.0078125, %v3302_v59  ;;  %v3378_v59 = vpack.c.bf16 %v1348_v56, %v1346_v28  ;;  %v1355_v56 = vld [vmem:[#allocation19 + $0x20] sm:$0xff] }
 0x91b   : > { %v3304_v54 = vpop.xlane.xlu0 %3303 }
 0x91c   : > { %v3311_v16 = vmul.f32 0.0078125, %v3304_v54  ;;  %v15416_v34 = vsub.f32 %v3297_v44, %v3310_v18  ;;  %v1341_v44 = vld [vmem:[#allocation16 + $0xb8] sm:$0xff] }
 0x91d   : > { %v3306_v12 = vpop.xlane.xlu1 %3305 }
 0x91e   : > { %v3312_v22 = vmul.f32 0.0078125, %v3306_v12  ;;  %v3318_v40 = vmul.f32 %v15416_v34, %v15416_v34  ;;  %v15420_v26 = vsub.f32 %v3298_v6, %v3311_v16  ;;  %v3375_v6 = vpack.c.bf16 %v1341_v44, %v1339_v11 }
 0x91f   : > { %v3308_v3 = vpop.xlane.xlu0 %3307 }
 0x920   : > { %v3313_v35 = vmul.f32 0.0078125, %v3308_v3  ;;  %3322 = vadd.xlane.f32.xlu1 %v3318_v40  ;;  %v3319_v53 = vmul.f32 %v15420_v26, %v15420_v26  ;;  %v15424_v36 = vsub.f32 %v3299_v45, %v3312_v22  ;;  %v1338_v45 = vld [vmem:[#allocation16 + $0xa0] sm:$0xff]  ;;  %3401 = vmatprep.subr.bf16.mxu1 %v3375_v6 }
 0x922   : > { %3324 = vadd.xlane.f32.xlu0 %v3319_v53  ;;  %v3320_v29 = vmul.f32 %v15424_v36, %v15424_v36  ;;  %v15428_v48 = vsub.f32 %v3300_v9, %v3313_v35  ;;  %v1340_v9 = vld [vmem:[#allocation16 + $0xb0] sm:$0xff] }
 0x923   : > { %v3374_v4 = vpack.c.bf16 %v1340_v9, %v1338_v45  ;;  %v1367_v45 = vld [vmem:[#allocation19 + $0x80] sm:$0xff] }
 0x924   : > { %3326 = vadd.xlane.f32.xlu1 %v3320_v29  ;;  %v3321_v49 = vmul.f32 %v15428_v48, %v15428_v48 }
 0x925   : > { %3402 = vmatpush1.bf16.msra.mxu1 %v3374_v4  ;;  %v1369_v4 = vld [vmem:[#allocation19 + $0x90] sm:$0xff] }
 0x926   : > { %3328 = vadd.xlane.f32.xlu0 %v3321_v49  ;;  %3403 = vmatprep.subr.bf16.mxu1 %v3377_v61  ;;  %v1370_v61 = vld [vmem:[#allocation19 + $0x98] sm:$0xff] }
 0x927   : > { %v3529_v27 = vpack.c.bf16 %v1370_v61, %v1369_v4 }
 0x929   : > { %3404 = vmatpush1.bf16.msra.mxu1 %v3376_v55  ;;  %v1371_v55 = vld [vmem:[#allocation19 + $0xa0] sm:$0xff] }
 0x92a   : > { %3405 = vmatprep.subr.bf16.mxu1 %v3379_v5  ;;  %v1372_v5 = vld [vmem:[#allocation19 + $0xa8] sm:$0xff] }
 0x92b   : > { %v3530_v28 = vpack.c.bf16 %v1372_v5, %v1371_v55 }
 0x92d   : > { %3406 = vmatpush1.bf16.msra.mxu1 %v3378_v59  ;;  %v1356_v59 = vld [vmem:[#allocation19 + $0x28] sm:$0xff] }
 0x9ad   : > { %v3323_v18 = vpop.xlane.xlu1 %3322 }
 0x9ae   : > { %v3330_v54 = vmul.f32 0.0078125, %v3323_v18  ;;  %v3522_v18 = vpack.c.bf16 %v1356_v59, %v1355_v56 }
 0x9af   : > { %v3325_v16 = vpop.xlane.xlu0 %3324 }
 0x9b0   : > { %v3334_v12 = vadd.f32 1e-05, %v3330_v54  ;;  %v3331_v22 = vmul.f32 0.0078125, %v3325_v16  ;;  %v1373_v54 = vld [vmem:[#allocation19 + $0xb0] sm:$0xff]  ;;  %v1374_v16 = vld [vmem:[#allocation19 + $0xb8] sm:$0xff] }
 0x9b1   : > { %v3327_v40 = vpop.xlane.xlu1 %3326 }
 0x9b2   : > { %13097 = vrsqrt.f32 %v3334_v12  ;;  %v3335_v3 = vadd.f32 1e-05, %v3331_v22  ;;  %v3332_v35 = vmul.f32 0.0078125, %v3327_v40  ;;  %v3531_v12 = vpack.c.bf16 %v1374_v16, %v1373_v54  ;;  %v1357_v22 = vld [vmem:[#allocation19 + $0x30] sm:$0xff]  ;;  %v1358_v40 = vld [vmem:[#allocation19 + $0x38] sm:$0xff] }
 0x9b3   : > { %v3329_v53 = vpop.xlane.xlu0 %3328 }
 0x9b4   : > { %13099 = vrsqrt.f32 %v3335_v3  ;;  %v3336_v29 = vadd.f32 1e-05, %v3332_v35  ;;  %v3333_v49 = vmul.f32 0.0078125, %v3329_v53  ;;  %v3523_v3 = vpack.c.bf16 %v1358_v40, %v1357_v22  ;;  %v1375_v35 = vld [vmem:[#allocation19 + $0xc0] sm:$0xff]  ;;  %v1376_v53 = vld [vmem:[#allocation19 + $0xc8] sm:$0xff] }
 0x9b6   : > { %13101 = vrsqrt.f32 %v3336_v29  ;;  %v3337_v39 = vadd.f32 1e-05, %v3333_v49  ;;  %v3532_v29 = vpack.c.bf16 %v1376_v53, %v1375_v35  ;;  %v1359_v49 = vld [vmem:[#allocation19 + $0x40] sm:$0xff] }
 0x9b8   : > { %13103 = vrsqrt.f32 %v3337_v39  ;;  %v1360_v39 = vld [vmem:[#allocation19 + $0x48] sm:$0xff] }
 0x9bc   : > { %v13098_v62 = vpop.eup %13097 }
 0x9bd   : > { %v3342_v52 = vmul.f32 %v13098_v62, %v15416_v34  ;;  %v1377_v62 = vld [vmem:[#allocation19 + $0xd0] sm:$0xff] }
 0x9be   : > { %v13100_v1 = vpop.eup %13099 }
 0x9bf   : > { %v3343_v51 = vmul.f32 %v13100_v1, %v15420_v26  ;;  %v3350_v38 = vmul.f32 %v3349_v47, %v3342_v52  ;;  %v1378_v52 = vld [vmem:[#allocation19 + $0xd8] sm:$0xff] }
 0x9c0   : > { %v13102_v60 = vpop.eup %13101  ;;  %v3533_v1 = vpack.c.bf16 %v1378_v52, %v1377_v62 }
 0x9c1   : > { %v3351_v46 = vmul.f32 %v3349_v47, %v3343_v51  ;;  %v15444_v7 = vadd.f32 %v3357_v10, %v3350_v38  ;;  %v3344_v8 = vmul.f32 %v13102_v60, %v15424_v36  ;;  %v1368_v36 = vld [vmem:[#allocation19 + $0x88] sm:$0xff]  ;;  %v1361_v51 = vld [vmem:[#allocation19 + $0x50] sm:$0xff]  ;;  %v1362_v38 = vld [vmem:[#allocation19 + $0x58] sm:$0xff] }
 0x9c2   : > { %v13104_v43 = vpop.eup %13103  ;;  %v3528_v9 = vpack.c.bf16 %v1368_v36, %v1367_v45  ;;  %v1379_v60 = vld [vmem:[#allocation19 + $0xe0] sm:$0xff]  ;;  %v1365_v45 = vld [vmem:[#allocation19 + $0x70] sm:$0xff]  ;;  %v1366_v36 = vld [vmem:[#allocation19 + $0x78] sm:$0xff] }
 0x9c3   : > { %v15446_v13 = vadd.f32 %v3357_v10, %v3351_v46  ;;  %v3345_v50 = vmul.f32 %v13104_v43, %v15428_v48  ;;  %v3352_v26 = vmul.f32 %v3349_v47, %v3344_v8  ;;  %v1351_v48 = vld [vmem:[#allocation19] sm:$0xff]  ;;  %v1380_v46 = vld [vmem:[#allocation19 + $0xe8] sm:$0xff] }
 0x9c4   : > { %v3520_v19 = vpack.c.bf16 %v1352_v2, %v1351_v48  ;;  %11214 = vmatprep.subr.bf16.mxu0 %v3528_v9  ;;  %v1363_v43 = vld [vmem:[#allocation19 + $0x60] sm:$0xff]  ;;  %v3534_v8 = vpack.c.bf16 %v1380_v46, %v1379_v60  ;;  %v3527_v9 = vpack.c.bf16 %v1366_v36, %v1365_v45  ;;  %v1350_v48 = vld [vmem:[#allocation17] sm:$0x3] }
 0x9c5   : > { %v3362_v34 = vpack.c.bf16 %v15446_v13, %v15444_v7  ;;  %v3353_v11 = vmul.f32 %v3349_v47, %v3345_v50  ;;  %v15455_v14 = vadd.f32 %v3357_v10, %v3352_v26  ;;  %v3524_v47 = vpack.c.bf16 %v1360_v39, %v1359_v49  ;;  %v1364_v50 = vld [vmem:[#allocation19 + $0x68] sm:$0xff] }
 0x9c6   : > { %11215 = vmatpush3.bf16.msra.mxu0 %v3520_v19  ;;  %v3526_v26 = vpack.c.bf16 %v1364_v50, %v1363_v43  ;;  %v3384_v2 = vrot.slane %v1350_v48, %v14953_v20  ;;  %v3388_v19 = vrot.slane %v1350_v48, %v14956_v21 }
 0x9c7   : > { %3424 = vmatmul.mubr.bf16.vlgmr.msra.gmra.mrb[56].mxu1 %v3362_v34  ;;  %v15453_v44 = vadd.f32 %v3357_v10, %v3353_v11  ;;  %11216 = vmatprep.subr.bf16.mxu0 %v3529_v27  ;;  %v3525_v10 = vpack.c.bf16 %v1362_v38, %v1361_v51  ;;  %v1381_v34 = vld [vmem:[#allocation19 + $0xf0] sm:$0xff]  ;;  %v1382_v11 = vld [vmem:[#allocation19 + $0xf8] sm:$0xff] }
 0x9c8   : > { %3433 = vmatprep.mubr.bf16.mxu1 %v17353_v0 }
 0x9c9   : > { %v3363_v6 = vpack.c.bf16 %v15453_v44, %v15455_v14 }
 0x9ca   : > { %11217 = vmatpush3.bf16.msra.mxu0 %v3521_v32 }
 0x9cb   : > { %11218 = vmatprep.subr.bf16.mxu0 %v3530_v28 }
 0x9ce   : > { %11219 = vmatpush3.bf16.msra.mxu0 %v3522_v18 }
 0x9cf   : > { %3434 = vmatmul.mubr.bf16.gmra.mrb[60].mxu1 %v3363_v6  ;;  %11220 = vmatprep.subr.bf16.mxu0 %v3531_v12  ;;  %v3535_v6 = vpack.c.bf16 %v1382_v11, %v1381_v34 }
 0x9d2   : > { %11221 = vmatpush3.bf16.msra.mxu0 %v3523_v3 }
 0x9d3   : > { %11222 = vmatprep.subr.bf16.mxu0 %v3532_v29 }
 0x9d6   : > { %11223 = vmatpush3.bf16.msra.mxu0 %v3524_v47 }
 0x9d7   : > { %11224 = vmatprep.subr.bf16.mxu0 %v3533_v1 }
 0x9da   : > { %11225 = vmatpush3.bf16.msra.mxu0 %v3525_v10 }
 0x9db   : > { %11226 = vmatprep.subr.bf16.mxu0 %v3534_v8 }
 0x9de   : > { %11227 = vmatpush3.bf16.msra.mxu0 %v3526_v26 }
 0x9df   : > { %11228 = vmatprep.subr.bf16.mxu0 %v3535_v6 }
 0x9e2   : > { %11229 = vmatpush3.bf16.msra.mxu0 %v3527_v9 }
 0xa9a   : > { %v3425_v4 = vpop.f32.mrb[56].mxu1 }
 0xa9b   : > { %v15461_v61 = vadd.f32 %v3425_v4, %v3384_v2  ;;  %v3427_v27 = vpop.f32.mrb[57].mxu1 }
 0xa9c   : > { %v15463_v30 = vadd.f32 %v3427_v27, %v3388_v19  ;;  %v3429_v31 = vpop.f32.mrb[58].mxu1 }
 0xa9d   : > { %v3444_v32 = vmul.f32 %v15461_v61, %v15461_v61  ;;  %v15467_v55 = vadd.f32 %v3429_v31, %v3384_v2  ;;  %v3431_v5 = vpop.f32.mrb[59].mxu1 }
 0xa9e   : > { %v3445_v28 = vmul.f32 %v15463_v30, %v15463_v30  ;;  %v15471_v56 = vadd.f32 %v3431_v5, %v3388_v19 }
 0xa9f   : > { %v3452_v59 = vmul.f32 %v3444_v32, %v15461_v61  ;;  %v3446_v18 = vmul.f32 %v15467_v55, %v15467_v55 }
 0xaa0   : > { %v3453_v54 = vmul.f32 %v3445_v28, %v15463_v30  ;;  %v3447_v16 = vmul.f32 %v15471_v56, %v15471_v56 }
 0xaa1   : > { %v3460_v12 = vmul.f32 0.044715, %v3452_v59  ;;  %v3454_v22 = vmul.f32 %v3446_v18, %v15467_v55 }
 0xaa2   : > { %v3461_v40 = vmul.f32 0.044715, %v3453_v54  ;;  %v3455_v3 = vmul.f32 %v3447_v16, %v15471_v56  ;;  %v3435_v35 = vpop.f32.mrb[60].mxu1 }
 0xaa3   : > { %v3468_v53 = vadd.f32 %v3460_v12, %v15461_v61  ;;  %v3462_v29 = vmul.f32 0.044715, %v3454_v22  ;;  %v15482_v49 = vadd.f32 %v3435_v35, %v3384_v2  ;;  %v3437_v39 = vpop.f32.mrb[61].mxu1 }
 0xaa4   : > { %v3469_v47 = vadd.f32 %v3461_v40, %v15463_v30  ;;  %v3463_v62 = vmul.f32 0.044715, %v3455_v3  ;;  %v15485_v52 = vadd.f32 %v3437_v39, %v3388_v19  ;;  %v3439_v1 = vpop.f32.mrb[62].mxu1 }
 0xaa5   : > { %v3476_v51 = vmul.f32 0.7978846, %v3468_v53  ;;  %v3470_v38 = vadd.f32 %v3462_v29, %v15467_v55  ;;  %v3448_v10 = vmul.f32 %v15482_v49, %v15482_v49  ;;  %v15490_v60 = vadd.f32 %v3439_v1, %v3384_v2  ;;  %v3441_v46 = vpop.f32.mrb[63].mxu1 }
 0xaa6   : > { %v3477_v43 = vmul.f32 0.7978846, %v3469_v47  ;;  %v3471_v8 = vadd.f32 %v3463_v62, %v15471_v56  ;;  %v3449_v50 = vmul.f32 %v15485_v52, %v15485_v52  ;;  %v15495_v34 = vadd.f32 %v3441_v46, %v3388_v19 }
 0xaa7   : > { %13105 = vtanh.f32 %v3476_v51  ;;  %v3478_v11 = vmul.f32 0.7978846, %v3470_v38  ;;  %v3456_v26 = vmul.f32 %v3448_v10, %v15482_v49  ;;  %v3450_v6 = vmul.f32 %v15490_v60, %v15490_v60 }
 0xaa8   : > { %13107 = vtanh.f32 %v3477_v43  ;;  %v3479_v45 = vmul.f32 0.7978846, %v3471_v8  ;;  %v3457_v36 = vmul.f32 %v3449_v50, %v15485_v52  ;;  %v3451_v9 = vmul.f32 %v15495_v34, %v15495_v34 }
 0xaa9   : > { %13109 = vtanh.f32 %v3478_v11  ;;  %v3464_v48 = vmul.f32 0.044715, %v3456_v26  ;;  %v3458_v2 = vmul.f32 %v3450_v6, %v15490_v60 }
 0xaaa   : > { %13111 = vtanh.f32 %v3479_v45  ;;  %v3465_v19 = vmul.f32 0.044715, %v3457_v36  ;;  %v3459_v4 = vmul.f32 %v3451_v9, %v15495_v34 }
 0xaab   : > { %v3472_v27 = vadd.f32 %v3464_v48, %v15482_v49  ;;  %v3466_v31 = vmul.f32 0.044715, %v3458_v2 }
 0xaac   : > { %v3473_v32 = vadd.f32 %v3465_v19, %v15485_v52  ;;  %v3467_v5 = vmul.f32 0.044715, %v3459_v4 }
 0xaad   : > { %v3480_v28 = vmul.f32 0.7978846, %v3472_v27  ;;  %v3474_v59 = vadd.f32 %v3466_v31, %v15490_v60 }
 0xaae   : > { %v3481_v18 = vmul.f32 0.7978846, %v3473_v32  ;;  %v3475_v54 = vadd.f32 %v3467_v5, %v15495_v34 }
 0xaaf   : > { %13113 = vtanh.f32 %v3480_v28  ;;  %v3482_v16 = vmul.f32 0.7978846, %v3474_v59  ;;  %v15518_v59 = vsub.s32 4, %v14950_v17 }
 0xab0   : > { %13115 = vtanh.f32 %v3481_v18  ;;  %v3483_v12 = vmul.f32 0.7978846, %v3475_v54 }
 0xab1   : > { %v13106_v22 = vpop.eup %13105  ;;  %13117 = vtanh.f32 %v3482_v16  ;;  %17466 = vst [vmem:[#allocation62_spill] sm:$0xff] %v15518_v59  ;;  %v3539_v54 = vrot.slane %v15408_v37, %v15518_v59 }
 0xab2   : > { %v13108_v40 = vpop.eup %13107  ;;  %v3492_v3 = vadd.f32 1.0, %v13106_v22  ;;  %13119 = vtanh.f32 %v3483_v12 }
 0xab3   : > { %v13110_v35 = vpop.eup %13109  ;;  %v3493_v53 = vadd.f32 1.0, %v13108_v40 }
 0xab4   : > { %v13112_v29 = vpop.eup %13111  ;;  %v3500_v39 = vmul.f32 0.5, %v3492_v3  ;;  %v3494_v47 = vadd.f32 1.0, %v13110_v35 }
 0xab5   : > { %v3495_v62 = vadd.f32 1.0, %v13112_v29  ;;  %v3501_v1 = vmul.f32 0.5, %v3493_v53 }
 0xab6   : > { %v3502_v51 = vmul.f32 0.5, %v3494_v47  ;;  %v3508_v10 = vmul.f32 %v3500_v39, %v15461_v61 }
 0xab7   : > { %v3503_v38 = vmul.f32 0.5, %v3495_v62  ;;  %v3509_v8 = vmul.f32 %v3501_v1, %v15463_v30 }
 0xab8   : > { %v3510_v46 = vmul.f32 %v3502_v51, %v15467_v55 }
 0xab9   : > { %v13114_v43 = vpop.eup %13113  ;;  %v3511_v50 = vmul.f32 %v3503_v38, %v15471_v56 }
 0xaba   : > { %v13116_v11 = vpop.eup %13115  ;;  %v3516_v26 = vpack.c.bf16 %v3510_v46, %v3508_v10  ;;  %v3496_v6 = vadd.f32 1.0, %v13114_v43 }
 0xabb   : > { %v13118_v45 = vpop.eup %13117  ;;  %v3517_v36 = vpack.c.bf16 %v3511_v50, %v3509_v8  ;;  %v3497_v9 = vadd.f32 1.0, %v13116_v11 }
 0xabc   : > { %v13120_v48 = vpop.eup %13119  ;;  %v3498_v2 = vadd.f32 1.0, %v13118_v45  ;;  %v3504_v19 = vmul.f32 0.5, %v3496_v6 }
 0xabd   : > { %3572 = vmatprep.mubr.bf16.mxu0 %v3517_v36  ;;  %v3499_v4 = vadd.f32 1.0, %v13120_v48  ;;  %v3505_v27 = vmul.f32 0.5, %v3497_v9 }
 0xabe   : > { %3573 = vmatmul.mubr.bf16.vlgmr.msra.gmra.mrb[48].mxu0 %v3516_v26  ;;  %v3506_v61 = vmul.f32 0.5, %v3498_v2  ;;  %v3512_v31 = vmul.f32 %v3504_v19, %v15482_v49  ;;  %v3654_v19 = vld [vmem:[#allocation14 + $0x200] sm:$0xff] }
 0xabf   : > { %v3507_v55 = vmul.f32 0.5, %v3499_v4  ;;  %v3513_v56 = vmul.f32 %v3505_v27, %v15485_v52  ;;  %v3655_v4 = vld [vmem:[#allocation14 + $0x208] sm:$0xff] }
 0xac0   : > { %v3514_v30 = vmul.f32 %v3506_v61, %v15490_v60  ;;  %v3791_v27 = vpack.c.bf16 %v3655_v4, %v3654_v19  ;;  %v3670_v61 = vld [vmem:[#allocation14 + $0x280] sm:$0xff]  ;;  %v3684_v4 = vld [vmem:[#allocation14 + $0x2f0] sm:$0xff] }
 0xac1   : > { %v3515_v32 = vmul.f32 %v3507_v55, %v15495_v34  ;;  %v3671_v55 = vld [vmem:[#allocation14 + $0x288] sm:$0xff] }
 0xac2   : > { %v3518_v5 = vpack.c.bf16 %v3514_v30, %v3512_v31  ;;  %v3858_v31 = vpack.c.bf16 %v3671_v55, %v3670_v61  ;;  %11880 = vmatprep.subr.bf16.mxu1 %v3791_v27  ;;  %v3656_v30 = vld [vmem:[#allocation14 + $0x210] sm:$0xff]  ;;  %v3686_v61 = vld [vmem:[#allocation14 + $0x300] sm:$0xff] }
 0xac3   : > { %v3519_v28 = vpack.c.bf16 %v3515_v32, %v3513_v56  ;;  %v3657_v56 = vld [vmem:[#allocation14 + $0x218] sm:$0xff]  ;;  %v3672_v32 = vld [vmem:[#allocation14 + $0x290] sm:$0xff]  ;;  %11881 = vmatpush3.bf16.msra.mxu1 %v3791_v27 }
 0xac4   : > { %11900 = vmatprep.subr.bf16.mxu0 %v3858_v31  ;;  %v3685_v27 = vld [vmem:[#allocation14 + $0x2f8] sm:$0xff] }
 0xac5   : > { %3580 = vmatprep.mubr.bf16.mxu0 %v3519_v28  ;;  %v3673_v28 = vld [vmem:[#allocation14 + $0x298] sm:$0xff]  ;;  %11901 = vmatpush3.bf16.msra.mxu0 %v3858_v31  ;;  %v3865_v55 = vpack.c.bf16 %v3685_v27, %v3684_v4  ;;  %v3687_v31 = vld [vmem:[#allocation14 + $0x308] sm:$0xff] }
 0xac6   : > { %3581 = vmatmul.mubr.bf16.gmra.mrb[52].mxu0 %v3518_v5  ;;  %v3792_v5 = vpack.c.bf16 %v3657_v56, %v3656_v30  ;;  %v3921_v30 = vpack.c.bf16 %v3687_v31, %v3686_v61  ;;  %v3695_v4 = vld [vmem:[#allocation14 + $0x348] sm:$0xff]  ;;  %v3696_v61 = vld [vmem:[#allocation14 + $0x350] sm:$0xff] }
 0xac8   : > { %11882 = vmatprep.subr.bf16.mxu1 %v3792_v5 }
 0xac9   : > { %11883 = vmatpush3.bf16.msra.mxu1 %v3792_v5 }
 0xb91   : > { %v11230_v18 = vpop.f32.mrb[48].mxu0 }
 0xb92   : > { %v11231_v16 = vpop.f32.mrb[49].mxu0 }
 0xb93   : > { %v11232_v12 = vadd.f32 %v11231_v16, %v11230_v18  ;;  %v11233_v49 = vpop.f32.mrb[50].mxu0  ;;  %v3859_v18 = vpack.c.bf16 %v3673_v28, %v3672_v32  ;;  %v3659_v16 = vld [vmem:[#allocation14 + $0x228] sm:$0xff] }
 0xb94   : > { %v11234_v22 = vpop.f32.mrb[51].mxu0 }
 0xb95   : > { %v3575_v60 = vadd.f32 %v11232_v12, %v3539_v54  ;;  %v11235_v40 = vadd.f32 %v11234_v22, %v11233_v49  ;;  %11902 = vmatprep.subr.bf16.mxu0 %v3859_v18  ;;  %v3674_v49 = vld [vmem:[#allocation14 + $0x2a0] sm:$0xff]  ;;  %v3675_v22 = vld [vmem:[#allocation14 + $0x2a8] sm:$0xff] }
 0xb96   : > { %11903 = vmatpush3.bf16.msra.mxu0 %v3859_v18 }
 0xb97   : > { %v3578_v52 = vadd.f32 %v11235_v40, %v3539_v54  ;;  %v3589_v34 = vadd.f32 %v3575_v60, %v15444_v7  ;;  %v3860_v60 = vpack.c.bf16 %v3675_v22, %v3674_v49  ;;  %v3660_v40 = vld [vmem:[#allocation14 + $0x230] sm:$0xff]  ;;  %v15544_v49 = vsub.s32 7, %v14950_v17 }
 0xb99   : > { %v11236_v3 = vpop.f32.mrb[52].mxu0  ;;  %3593 = vadd.xlane.f32.xlu1 %v3589_v34  ;;  %v3590_v35 = vadd.f32 %v3578_v52, %v15446_v13  ;;  %11904 = vmatprep.subr.bf16.mxu0 %v3860_v60  ;;  %v3661_v52 = vld [vmem:[#allocation14 + $0x238] sm:$0xff]  ;;  %17467 = vst [vmem:[#allocation63_spill] sm:$0xff] %v15544_v49 }
 0xb9a   : > { %v11237_v53 = vpop.f32.mrb[53].mxu0  ;;  %11905 = vmatpush3.bf16.msra.mxu0 %v3860_v60 }
 0xb9b   : > { %v11238_v29 = vadd.f32 %v11237_v53, %v11236_v3  ;;  %v11239_v39 = vpop.f32.mrb[54].mxu0  ;;  %3595 = vadd.xlane.f32.xlu0 %v3590_v35  ;;  %v3676_v3 = vld [vmem:[#allocation14 + $0x2b0] sm:$0xff] }
 0xb9c   : > { %v11240_v47 = vpop.f32.mrb[55].mxu0 }
 0xb9d   : > { %v3583_v62 = vadd.f32 %v11238_v29, %v3539_v54  ;;  %v11241_v1 = vadd.f32 %v11240_v47, %v11239_v39  ;;  %v3662_v29 = vld [vmem:[#allocation14 + $0x240] sm:$0xff]  ;;  %v3663_v39 = vld [vmem:[#allocation14 + $0x248] sm:$0xff] }
 0xb9e   : > { %v3795_v47 = vpack.c.bf16 %v3663_v39, %v3662_v29 }
 0xb9f   : > { %v3586_v51 = vadd.f32 %v11241_v1, %v3539_v54  ;;  %v3591_v38 = vadd.f32 %v3583_v62, %v15455_v14  ;;  %v3658_v54 = vld [vmem:[#allocation14 + $0x220] sm:$0xff]  ;;  %v3679_v1 = vld [vmem:[#allocation14 + $0x2c8] sm:$0xff] }
 0xba0   : > { %v3793_v12 = vpack.c.bf16 %v3659_v16, %v3658_v54  ;;  %v3678_v62 = vld [vmem:[#allocation14 + $0x2c0] sm:$0xff] }
 0xba1   : > { %3597 = vadd.xlane.f32.xlu1 %v3591_v38  ;;  %v3592_v10 = vadd.f32 %v3586_v51, %v15453_v44  ;;  %v3862_v51 = vpack.c.bf16 %v3679_v1, %v3678_v62 }
 0xba2   : > { %11884 = vmatprep.subr.bf16.mxu1 %v3793_v12 }
 0xba3   : > { %3599 = vadd.xlane.f32.xlu0 %v3592_v10  ;;  %11885 = vmatpush3.bf16.msra.mxu1 %v3793_v12 }
 0xc26   : > { %v3594_v46 = vpop.xlane.xlu1 %3593 }
 0xc27   : > { %v3601_v7 = vmul.f32 0.0078125, %v3594_v46 }
 0xc28   : > { %v3596_v43 = vpop.xlane.xlu0 %3595 }
 0xc29   : > { %v3602_v8 = vmul.f32 0.0078125, %v3596_v43  ;;  %v15526_v50 = vsub.f32 %v3589_v34, %v3601_v7  ;;  %v3794_v34 = vpack.c.bf16 %v3661_v52, %v3660_v40  ;;  %v3680_v7 = vld [vmem:[#allocation14 + $0x2d0] sm:$0xff]  ;;  %v3681_v43 = vld [vmem:[#allocation14 + $0x2d8] sm:$0xff] }
 0xc2b   : > { %v3609_v13 = vmul.f32 %v15526_v50, %v15526_v50  ;;  %v15530_v11 = vsub.f32 %v3590_v35, %v3602_v8  ;;  %v3677_v35 = vld [vmem:[#allocation14 + $0x2b8] sm:$0xff]  ;;  %11886 = vmatprep.subr.bf16.mxu1 %v3794_v34  ;;  %v3863_v8 = vpack.c.bf16 %v3681_v43, %v3680_v7  ;;  %v3688_v43 = vld [vmem:[#allocation14 + $0x310] sm:$0xff] }
 0xc2c   : > { %v3861_v53 = vpack.c.bf16 %v3677_v35, %v3676_v3  ;;  %11887 = vmatpush3.bf16.msra.mxu1 %v3794_v34  ;;  %v3640_v34 = vrot.slane %v15408_v37, %v15544_v49 }
 0xc2d   : > { %3613 = vadd.xlane.f32.xlu1 %v3609_v13  ;;  %v3610_v26 = vmul.f32 %v15530_v11, %v15530_v11  ;;  %11888 = vmatprep.subr.bf16.mxu1 %v3795_v47  ;;  %v3666_v13 = vld [vmem:[#allocation14 + $0x260] sm:$0xff] }
 0xc2e   : > { %v3598_v14 = vpop.xlane.xlu1 %3597  ;;  %11906 = vmatprep.subr.bf16.mxu0 %v3861_v53 }
 0xc2f   : > { %v3603_v6 = vmul.f32 0.0078125, %v3598_v14  ;;  %3615 = vadd.xlane.f32.xlu0 %v3610_v26  ;;  %11907 = vmatpush3.bf16.msra.mxu0 %v3861_v53  ;;  %v3667_v26 = vld [vmem:[#allocation14 + $0x268] sm:$0xff]  ;;  %v3682_v14 = vld [vmem:[#allocation14 + $0x2e0] sm:$0xff] }
 0xc30   : > { %v3600_v44 = vpop.xlane.xlu0 %3599  ;;  %11889 = vmatpush3.bf16.msra.mxu1 %v3795_v47  ;;  %11908 = vmatprep.subr.bf16.mxu0 %v3862_v51  ;;  %v10992_v47 = vld [vmem:[#allocation20 + $0x8] ss:$0 sm:$0xff] }
 0xc31   : > { %v3604_v45 = vmul.f32 0.0078125, %v3600_v44  ;;  %v15534_v36 = vsub.f32 %v3591_v38, %v3603_v6  ;;  %v3664_v38 = vld [vmem:[#allocation14 + $0x250] sm:$0xff]  ;;  %v3797_v6 = vpack.c.bf16 %v3667_v26, %v3666_v13  ;;  %v3683_v44 = vld [vmem:[#allocation14 + $0x2e8] sm:$0xff] }
 0xc33   : > { %v3611_v9 = vmul.f32 %v15534_v36, %v15534_v36  ;;  %v15538_v48 = vsub.f32 %v3592_v10, %v3604_v45  ;;  %v3665_v10 = vld [vmem:[#allocation14 + $0x258] sm:$0xff]  ;;  %11909 = vmatpush3.bf16.msra.mxu0 %v3862_v51  ;;  %v3668_v45 = vld [vmem:[#allocation14 + $0x270] sm:$0xff] }
 0xc34   : > { %v3796_v46 = vpack.c.bf16 %v3665_v10, %v3664_v38  ;;  %11910 = vmatprep.subr.bf16.mxu0 %v3863_v8 }
 0xc35   : > { %3617 = vadd.xlane.f32.xlu1 %v3611_v9  ;;  %v3612_v2 = vmul.f32 %v15538_v48, %v15538_v48  ;;  %v3669_v9 = vld [vmem:[#allocation14 + $0x278] sm:$0xff] }
 0xc36   : > { %11890 = vmatprep.subr.bf16.mxu1 %v3796_v46  ;;  %v3798_v19 = vpack.c.bf16 %v3669_v9, %v3668_v45  ;;  %v3692_v45 = vld [vmem:[#allocation14 + $0x330] sm:$0xff]  ;;  %v3693_v9 = vld [vmem:[#allocation14 + $0x338] sm:$0xff] }
 0xc37   : > { %3619 = vadd.xlane.f32.xlu0 %v3612_v2  ;;  %11891 = vmatpush3.bf16.msra.mxu1 %v3796_v46  ;;  %v3864_v2 = vpack.c.bf16 %v3683_v44, %v3682_v14  ;;  %v3691_v44 = vld [vmem:[#allocation14 + $0x328] sm:$0xff] }
 0xc38   : > { %11911 = vmatpush3.bf16.msra.mxu0 %v3863_v8  ;;  %11892 = vmatprep.subr.bf16.mxu1 %v3797_v6  ;;  %v3689_v8 = vld [vmem:[#allocation14 + $0x318] sm:$0xff] }
 0xc39   : > { %11912 = vmatprep.subr.bf16.mxu0 %v3864_v2 }
 0xc3b   : > { %11893 = vmatpush3.bf16.msra.mxu1 %v3797_v6  ;;  %v3690_v6 = vld [vmem:[#allocation14 + $0x320] sm:$0xff] }
 0xc3c   : > { %11913 = vmatpush3.bf16.msra.mxu0 %v3864_v2  ;;  %11894 = vmatprep.subr.bf16.mxu1 %v3798_v19  ;;  %v3924_v2 = vpack.c.bf16 %v3693_v9, %v3692_v45 }
 0xc3d   : > { %11914 = vmatprep.subr.bf16.mxu0 %v3865_v55 }
 0xc3f   : > { %11895 = vmatpush3.bf16.msra.mxu1 %v3798_v19  ;;  %v3694_v19 = vld [vmem:[#allocation14 + $0x340] sm:$0xff] }
 0xc40   : > { %11915 = vmatpush3.bf16.msra.mxu0 %v3865_v55  ;;  %11920 = vmatprep.subr.bf16.mxu1 %v3921_v30  ;;  %v3925_v27 = vpack.c.bf16 %v3695_v4, %v3694_v19  ;;  %v3697_v55 = vld [vmem:[#allocation14 + $0x358] sm:$0xff] }
 0xc41   : > { %11940 = vmatprep.subr.bf16.mxu0 %v17363_v15  ;;  %v3926_v31 = vpack.c.bf16 %v3697_v55, %v3696_v61 }
 0xcba   : > { %v3614_v56 = vpop.xlane.xlu1 %3613 }
 0xcbb   : > { %v3621_v32 = vmul.f32 0.0078125, %v3614_v56  ;;  %v3699_v56 = vld [vmem:[#allocation14 + $0x368] sm:$0xff] }
 0xcbc   : > { %v3616_v5 = vpop.xlane.xlu0 %3615 }
 0xcbd   : > { %v3625_v28 = vadd.f32 1e-05, %v3621_v32  ;;  %v3622_v18 = vmul.f32 0.0078125, %v3616_v5  ;;  %v3700_v5 = vld [vmem:[#allocation14 + $0x370] sm:$0xff] }
 0xcbf   : > { %13121 = vrsqrt.f32 %v3625_v28  ;;  %v3626_v54 = vadd.f32 1e-05, %v3622_v18  ;;  %v3701_v28 = vld [vmem:[#allocation14 + $0x378] sm:$0xff] }
 0xcc0   : > { %v3928_v18 = vpack.c.bf16 %v3701_v28, %v3700_v5 }
 0xcc1   : > { %13123 = vrsqrt.f32 %v3626_v54  ;;  %v3787_v54 = vld [vmem:[#allocation20 + $0x10] sm:$0xff] }
 0xcc2   : > { %v3618_v16 = vpop.xlane.xlu1 %3617  ;;  %v3932_v55 = vrot.slane %v3787_v54, %v14959_v23 }
 0xcc3   : > { %v3623_v12 = vmul.f32 0.0078125, %v3618_v16  ;;  %v3802_v16 = vrot.slane %v3787_v54, %v14953_v20 }
 0xcc4   : > { %v3620_v22 = vpop.xlane.xlu0 %3619 }
 0xcc5   : > { %v3627_v60 = vadd.f32 1e-05, %v3623_v12  ;;  %v3624_v40 = vmul.f32 0.0078125, %v3620_v22  ;;  %v3869_v12 = vrot.slane %v3787_v54, %v14956_v21 }
 0xcc7   : > { %13125 = vrsqrt.f32 %v3627_v60  ;;  %v3628_v52 = vadd.f32 1e-05, %v3624_v40 }
 0xcc9   : > { %v13122_v3 = vpop.eup %13121  ;;  %13127 = vrsqrt.f32 %v3628_v52 }
 0xcca   : > { %v3633_v35 = vmul.f32 %v13122_v3, %v15526_v50 }
 0xccb   : > { %v13124_v53 = vpop.eup %13123 }
 0xccc   : > { %v3634_v29 = vmul.f32 %v13124_v53, %v15530_v11  ;;  %v3641_v39 = vmul.f32 %v3640_v34, %v3633_v35 }
 0xcce   : > { %v3642_v62 = vmul.f32 %v3640_v34, %v3634_v29  ;;  %v15550_v1 = vadd.f32 %v10992_v47, %v3641_v39 }
 0xcd0   : > { %v15552_v51 = vadd.f32 %v10992_v47, %v3642_v62 }
 0xcd1   : > { %v13126_v38 = vpop.eup %13125 }
 0xcd2   : > { %v3635_v10 = vmul.f32 %v13126_v38, %v15534_v36  ;;  %v3789_v37 = vpack.c.bf16 %v15552_v51, %v15550_v1  ;;  %v3922_v36 = vpack.c.bf16 %v3689_v8, %v3688_v43 }
 0xcd3   : > { %v13128_v46 = vpop.eup %13127 }
 0xcd4   : > { %v3643_v7 = vmul.f32 %v3640_v34, %v3635_v10  ;;  %v3636_v50 = vmul.f32 %v13128_v46, %v15538_v48  ;;  %11896 = vmatprep.mubr.bf16.mxu1 %v3789_v37  ;;  %11916 = vmatprep.mubr.bf16.mxu0 %v3789_v37  ;;  %v3923_v48 = vpack.c.bf16 %v3691_v44, %v3690_v6 }
 0xcd6   : > { %v3644_v11 = vmul.f32 %v3640_v34, %v3636_v50  ;;  %v15558_v13 = vadd.f32 %v10992_v47, %v3643_v7 }
 0xcd8   : > { %v15560_v26 = vadd.f32 %v10992_v47, %v3644_v11 }
 0xcda   : > { %v3790_v14 = vpack.c.bf16 %v15560_v26, %v15558_v13 }
 0xcdc   : > { %11897 = vmatmul.mubr.bf16.vlgmr.msra.gmra.mrb[64].mxu1 %v3790_v14  ;;  %11917 = vmatmul.mubr.bf16.vlgmr.msra.gmra.mrb[56].mxu0 %v3790_v14 }
 0xcdd   : > { %11921 = vmatpush3.bf16.msra.mxu1 %v3921_v30  ;;  %11936 = vmatprep.mubr.bf16.mxu1 %v3789_v37  ;;  %v3698_v30 = vld [vmem:[#allocation14 + $0x360] sm:$0xff] }
 0xcde   : > { %11922 = vmatprep.subr.bf16.mxu1 %v3922_v36  ;;  %11942 = vmatprep.mubr.msk.bf16.mxu0 %vm14155_vm11, %v17363_v15  ;;  %v3927_v32 = vpack.c.bf16 %v3699_v56, %v3698_v30 }
 0xce1   : > { %11923 = vmatpush3.bf16.msra.mxu1 %v3922_v36 }
 0xce2   : > { %11924 = vmatprep.subr.bf16.mxu1 %v3923_v48 }
 0xce5   : > { %11925 = vmatpush3.bf16.msra.mxu1 %v3923_v48 }
 0xce6   : > { %11926 = vmatprep.subr.bf16.mxu1 %v3924_v2 }
 0xce9   : > { %11927 = vmatpush3.bf16.msra.mxu1 %v3924_v2 }
 0xcea   : > { %11928 = vmatprep.subr.bf16.mxu1 %v3925_v27 }
 0xced   : > { %11929 = vmatpush3.bf16.msra.mxu1 %v3925_v27 }
 0xcee   : > { %11930 = vmatprep.subr.bf16.mxu1 %v3926_v31 }
 0xcf1   : > { %11931 = vmatpush3.bf16.msra.mxu1 %v3926_v31 }
 0xcf2   : > { %11932 = vmatprep.subr.bf16.mxu1 %v3927_v32 }
 0xcf5   : > { %11933 = vmatpush3.bf16.msra.mxu1 %v3927_v32 }
 0xcf6   : > { %11934 = vmatprep.subr.bf16.mxu1 %v3928_v18 }
 0xcf9   : > { %11935 = vmatpush3.bf16.msra.mxu1 %v3928_v18 }
 0xcfa   : > { %11946 = vmatprep.subr.bf16.mxu1 %v17363_v15 }
 0xcfc   : > { %11937 = vmatmul.mubr.bf16.vlgmr.msra.gmra.mrb[68].mxu1 %v3790_v14 }
 0xcfd   : > { %11948 = vmatprep.mubr.msk.bf16.mxu1 %vm14155_vm11, %v17363_v15 }
 0xdaf   : > { %v11898_v22 = vpop.f32.mrb[64].mxu1  ;;  %v11918_v60 = vpop.f32.mrb[56].mxu0 }
 0xdb0   : > { %v3837_v40 = vpop.f32.mrb[65].mxu1  ;;  %v3904_v52 = vpop.f32.mrb[57].mxu0  ;;  %v3846_v7 = vadd.f32 %v11898_v22, %v3802_v16  ;;  %v3913_v11 = vadd.f32 %v11918_v60, %v3869_v12 }
 0xdb1   : > { %v3838_v34 = vadd.f32 %v3837_v40, %v3802_v16  ;;  %v3905_v3 = vadd.f32 %v3904_v52, %v3869_v12  ;;  %v11899_v35 = vpop.f32.mrb[66].mxu1  ;;  %v11919_v53 = vpop.f32.mrb[58].mxu0 }
 0xdb2   : > { %v3840_v29 = vpop.f32.mrb[67].mxu1  ;;  %v3907_v39 = vpop.f32.mrb[59].mxu0  ;;  %v3849_v43 = vadd.f32 %v11899_v35, %v3802_v16  ;;  %v3916_v14 = vadd.f32 %v11919_v53, %v3869_v12  ;;  %v3854_v36 = vmul.f32 0.17677669, %v3846_v7  ;;  %v15585_v44 = vpack.c.bf16 %v3913_v11, %v3913_v11 }
 0xdb3   : > { %v3852_v47 = vmul.f32 0.17677669, %v3838_v34  ;;  %v15571_v62 = vpack.c.bf16 %v3905_v3, %v3905_v3  ;;  %v3841_v38 = vadd.f32 %v3840_v29, %v3802_v16  ;;  %v3908_v10 = vadd.f32 %v3907_v39, %v3869_v12 }
 0xdb4   : > { %v3855_v48 = vmul.f32 0.17677669, %v3849_v43  ;;  %v15589_v9 = vpack.c.bf16 %v3916_v14, %v3916_v14  ;;  %v15594_v2 = vpack.c.bf16 %v3854_v36, %v3854_v36 }
 0xdb5   : > { %v3853_v37 = vmul.f32 0.17677669, %v3841_v38  ;;  %v15573_v46 = vpack.c.bf16 %v3908_v10, %v3908_v10  ;;  %11941 = vmatpush3.bf16.xpose.msra.mxu0 %v15571_v62  ;;  %v15576_v50 = vpack.c.bf16 %v3852_v47, %v3852_v47 }
 0xdb6   : > { %11952 = vmatprep.subr.bf16.mxu0 %v17363_v15  ;;  %v15600_v19 = vpack.c.bf16 %v3855_v48, %v3855_v48  ;;  %v4028_v4 = vmul.bf16 %v15594_v2, %v14997_v41  ;;  %v4032_v54 = vmul.bf16 %v15594_v2, %v14999_v42  ;;  %v4036_v60 = vmul.bf16 %v15594_v2, %v15036_v63 }
 0xdb7   : > { %11947 = vmatpush3.bf16.xpose.msra.mxu1 %v15573_v46  ;;  %v15580_v8 = vpack.c.bf16 %v3853_v37, %v3853_v37  ;;  %v4026_v6 = vmul.bf16 %v15576_v50, %v14997_v41  ;;  %v4030_v61 = vmul.bf16 %v15576_v50, %v14999_v42  ;;  %v4034_v12 = vmul.bf16 %v15576_v50, %v15036_v63 }
 0xdb8   : > { %11958 = vmatprep.subr.bf16.mxu1 %v17363_v15  ;;  %v4029_v27 = vmul.bf16 %v15600_v19, %v14997_v41  ;;  %v4033_v16 = vmul.bf16 %v15600_v19, %v14999_v42  ;;  %v4037_v40 = vmul.bf16 %v15600_v19, %v15036_v63  ;;  %v4038_v3 = vmul.bf16 %v15576_v50, %v15074_v25 }
 0xdb9   : > { %v4027_v45 = vmul.bf16 %v15580_v8, %v14997_v41  ;;  %v4031_v31 = vmul.bf16 %v15580_v8, %v14999_v42  ;;  %v4035_v22 = vmul.bf16 %v15580_v8, %v15036_v63  ;;  %v4039_v53 = vmul.bf16 %v15580_v8, %v15074_v25 }
 0xdba   : > { %v4040_v47 = vmul.bf16 %v15594_v2, %v15074_v25  ;;  %v4041_v10 = vmul.bf16 %v15600_v19, %v15074_v25 }
 0xdbc   : > { %11943 = vmatmul.mubr.bf16.vlgmr.msra.gmra.mrb[60].mxu0 %v4026_v6 }
 0xdbd   : > { %11953 = vmatpush3.bf16.xpose.msra.mxu0 %v15585_v44  ;;  %11954 = vmatprep.mubr.msk.bf16.mxu0 %vm14155_vm11, %v17363_v15 }
 0xdbe   : > { %11949 = vmatmul.mubr.bf16.vlgmr.msra.gmra.mrb[72].mxu1 %v4027_v45  ;;  %11964 = vmatprep.subr.bf16.mxu0 %v17363_v15 }
 0xdbf   : > { %11959 = vmatpush3.bf16.xpose.msra.mxu1 %v15589_v9  ;;  %11960 = vmatprep.mubr.msk.bf16.mxu1 %vm14155_vm11, %v17363_v15 }
 0xdc0   : > { %11970 = vmatprep.subr.bf16.mxu1 %v17363_v15 }
 0xdc4   : > { %11955 = vmatmul.mubr.bf16.vlgmr.msra.gmra.mrb[64].mxu0 %v4028_v4 }
 0xdc5   : > { %11965 = vmatpush3.bf16.xpose.msra.mxu0 %v15571_v62  ;;  %11966 = vmatprep.mubr.msk.bf16.mxu0 %vm14155_vm11, %v17363_v15 }
 0xdc6   : > { %11961 = vmatmul.mubr.bf16.vlgmr.msra.gmra.mrb[76].mxu1 %v4029_v27  ;;  %11976 = vmatprep.subr.bf16.mxu0 %v17363_v15 }
 0xdc7   : > { %11971 = vmatpush3.bf16.xpose.msra.mxu1 %v15573_v46  ;;  %11972 = vmatprep.mubr.msk.bf16.mxu1 %vm14155_vm11, %v17363_v15 }
 0xdc8   : > { %11982 = vmatprep.subr.bf16.mxu1 %v17363_v15 }
 0xdcc   : > { %11967 = vmatmul.mubr.bf16.vlgmr.msra.gmra.mrb[68].mxu0 %v4030_v61 }
 0xdcd   : > { %11977 = vmatpush3.bf16.xpose.msra.mxu0 %v15585_v44  ;;  %11978 = vmatprep.mubr.msk.bf16.mxu0 %vm14155_vm11, %v17363_v15 }
 0xdce   : > { %11973 = vmatmul.mubr.bf16.vlgmr.msra.gmra.mrb[80].mxu1 %v4031_v31  ;;  %11988 = vmatprep.subr.bf16.mxu0 %v17363_v15 }
 0xdcf   : > { %v11938_v30 = vpop.f32.mrb[68].mxu1  ;;  %11983 = vmatpush3.bf16.xpose.msra.mxu1 %v15589_v9  ;;  %11984 = vmatprep.mubr.msk.bf16.mxu1 %vm14155_vm11, %v17363_v15 }
 0xdd0   : > { %v15627_v56 = vadd.f32 %v11938_v30, %v3932_v55  ;;  %v3967_v32 = vpop.f32.mrb[69].mxu1  ;;  %11994 = vmatprep.subr.bf16.mxu1 %v17363_v15 }
 0xdd1   : > { %v11939_v5 = vpop.f32.mrb[70].mxu1  ;;  %v3968_v52 = vadd.f32 %v3967_v32, %v3932_v55 }
 0xdd2   : > { %v15630_v28 = vadd.f32 %v11939_v5, %v3932_v55  ;;  %v3970_v18 = vpop.f32.mrb[71].mxu1 }
 0xdd3   : > { %v3971_v34 = vadd.f32 %v3970_v18, %v3932_v55  ;;  %v15670_v35 = vpack.c.bf16 %v3968_v52, %v3968_v52 }
 0xdd4   : > { %11979 = vmatmul.mubr.bf16.vlgmr.msra.gmra.mrb[72].mxu0 %v4032_v54 }
 0xdd5   : > { %11989 = vmatpush3.bf16.xpose.msra.mxu0 %v15571_v62  ;;  %11990 = vmatprep.mubr.msk.bf16.mxu0 %vm14155_vm11, %v17363_v15  ;;  %v15677_v29 = vpack.c.bf16 %v3971_v34, %v3971_v34  ;;  %v4042_v39 = vmul.bf16 %v15670_v35, %v14997_v41 }
 0xdd6   : > { %11985 = vmatmul.mubr.bf16.vlgmr.msra.gmra.mrb[84].mxu1 %v4033_v16  ;;  %12000 = vmatprep.subr.bf16.mxu0 %v17363_v15 }
 0xdd7   : > { %11995 = vmatpush3.bf16.xpose.msra.mxu1 %v15573_v46  ;;  %11996 = vmatprep.mubr.msk.bf16.mxu1 %vm14155_vm11, %v17363_v15  ;;  %v4894_v38 = vsel %vm1160_vm0, %v4042_v39, 0 }
 0xdd8   : > { %12006 = vmatprep.subr.bf16.mxu1 %v17363_v15 }
 0xddc   : > { %11991 = vmatmul.mubr.bf16.vlgmr.msra.gmra.mrb[76].mxu0 %v4034_v12 }
 0xddd   : > { %12001 = vmatpush3.bf16.xpose.msra.mxu0 %v15585_v44  ;;  %12002 = vmatprep.mubr.msk.bf16.mxu0 %vm14155_vm11, %v17363_v15 }
 0xdde   : > { %11997 = vmatmul.mubr.bf16.vlgmr.msra.gmra.mrb[88].mxu1 %v4035_v22  ;;  %12012 = vmatprep.subr.bf16.mxu0 %v17363_v15 }
 0xddf   : > { %12007 = vmatpush3.bf16.xpose.msra.mxu1 %v15589_v9  ;;  %12008 = vmatprep.mubr.msk.bf16.mxu1 %vm14155_vm11, %v17363_v15 }
 0xde0   : > { %12018 = vmatprep.subr.bf16.mxu1 %v17363_v15 }
 0xde4   : > { %12003 = vmatmul.mubr.bf16.vlgmr.msra.gmra.mrb[80].mxu0 %v4036_v60 }
 0xde5   : > { %12013 = vmatpush3.bf16.xpose.msra.mxu0 %v15571_v62  ;;  %12014 = vmatprep.mubr.msk.bf16.mxu0 %vm14155_vm11, %v17363_v15  ;;  %v4043_v62 = vmul.bf16 %v15677_v29, %v14997_v41 }
 0xde6   : > { %12009 = vmatmul.mubr.bf16.vlgmr.msra.gmra.mrb[92].mxu1 %v4037_v40  ;;  %12024 = vmatprep.subr.bf16.mxu0 %v17363_v15 }
 0xde7   : > { %12019 = vmatpush3.bf16.xpose.msra.mxu1 %v15573_v46  ;;  %12020 = vmatprep.mubr.msk.bf16.mxu1 %vm14155_vm11, %v17363_v15  ;;  %v4940_v37 = vsel %vm1160_vm0, %v4043_v62, 0 }
 0xde8   : > { %12030 = vmatprep.subr.bf16.mxu1 %v17363_v15 }
 0xdec   : > { %12015 = vmatmul.mubr.bf16.vlgmr.msra.gmra.mrb[84].mxu0 %v4038_v3 }
 0xded   : > { %12025 = vmatpush3.bf16.xpose.msra.mxu0 %v15585_v44  ;;  %12026 = vmatprep.mubr.msk.bf16.mxu0 %vm14155_vm11, %v17363_v15 }
 0xdee   : > { %12021 = vmatmul.mubr.bf16.vlgmr.msra.gmra.mrb[96].mxu1 %v4039_v53  ;;  %12036 = vmatprep.subr.bf16.mxu0 %v17363_v15 }
 0xdef   : > { %12031 = vmatpush3.bf16.xpose.msra.mxu1 %v15589_v9  ;;  %12032 = vmatprep.mubr.msk.bf16.mxu1 %vm14155_vm11, %v17363_v15 }
 0xdf0   : > { %12042 = vmatprep.subr.bf16.mxu1 %v17363_v15 }
 0xdf4   : > { %12027 = vmatmul.mubr.bf16.vlgmr.msra.gmra.mrb[88].mxu0 %v4040_v47 }
 0xdf5   : > { %12037 = vmatpush3.bf16.msra.mxu0 %v4894_v38  ;;  %12038 = vmatprep.mubr.msk.bf16.mxu0 %vm14155_vm11, %v17363_v15 }
 0xdf6   : > { %12033 = vmatmul.mubr.bf16.vlgmr.msra.gmra.mrb[100].mxu1 %v4041_v10  ;;  %12048 = vmatprep.subr.bf16.mxu0 %v17363_v15 }
 0xdf7   : > { %12043 = vmatpush3.bf16.msra.mxu1 %v4940_v37  ;;  %12044 = vmatprep.mubr.msk.bf16.mxu1 %vm14155_vm11, %v17363_v15 }
 0xdf8   : > { %12054 = vmatprep.subr.bf16.mxu1 %v17363_v15 }
 0xe8f   : > { %v15700_v46 = vpop.f32.mrb[60].mxu0 }
 0xe90   : > { %v11944_v7 = vpop.f32.mrb[61].mxu0  ;;  %v4698_v50 = vsel %vm1153_vm2, %v15700_v46, -inf }
 0xe91   : > { %v15704_v11 = vpop.f32.mrb[72].mxu1  ;;  %4699 = vmax.xlane.f32.xlu1 %v4698_v50  ;;  %v4095_v43 = vpop.f32.mrb[62].mxu0 }
 0xe92   : > { %v11945_v8 = vpop.f32.mrb[63].mxu0  ;;  %v11950_v14 = vpop.f32.mrb[73].mxu1  ;;  %v4701_v36 = vsel %vm1153_vm2, %v15704_v11, -inf }
 0xe93   : > { %4702 = vmax.xlane.f32.xlu0 %v4701_v36  ;;  %v4135_v6 = vpop.f32.mrb[74].mxu1 }
 0xe94   : > { %v11951_v44 = vpop.f32.mrb[75].mxu1 }
 0xe97   : > { %v15708_v48 = vpop.f32.mrb[64].mxu0 }
 0xe98   : > { %v11956_v45 = vpop.f32.mrb[65].mxu0  ;;  %v4704_v9 = vsel %vm1153_vm2, %v15708_v48, -inf }
 0xe99   : > { %v15712_v2 = vpop.f32.mrb[76].mxu1  ;;  %4705 = vmax.xlane.f32.xlu1 %v4704_v9  ;;  %v4175_v19 = vpop.f32.mrb[66].mxu0 }
 0xe9a   : > { %v11957_v4 = vpop.f32.mrb[67].mxu0  ;;  %v11962_v27 = vpop.f32.mrb[77].mxu1  ;;  %v4707_v61 = vsel %vm1153_vm2, %v15712_v2, -inf }
 0xe9b   : > { %4708 = vmax.xlane.f32.xlu0 %v4707_v61  ;;  %v4215_v55 = vpop.f32.mrb[78].mxu1 }
 0xe9c   : > { %v11963_v31 = vpop.f32.mrb[79].mxu1 }
 0xe9f   : > { %v15716_v30 = vpop.f32.mrb[68].mxu0 }
 0xea0   : > { %v11968_v32 = vpop.f32.mrb[69].mxu0  ;;  %v4710_v5 = vsel %vm1153_vm2, %v15716_v30, -inf }
 0xea1   : > { %v15720_v18 = vpop.f32.mrb[80].mxu1  ;;  %4711 = vmax.xlane.f32.xlu1 %v4710_v5  ;;  %v4255_v54 = vpop.f32.mrb[70].mxu0 }
 0xea2   : > { %v11969_v16 = vpop.f32.mrb[71].mxu0  ;;  %v11974_v12 = vpop.f32.mrb[81].mxu1  ;;  %v4713_v22 = vsel %vm1153_vm2, %v15720_v18, -inf }
 0xea3   : > { %4714 = vmax.xlane.f32.xlu0 %v4713_v22  ;;  %v4295_v60 = vpop.f32.mrb[82].mxu1 }
 0xea4   : > { %v11975_v40 = vpop.f32.mrb[83].mxu1 }
 0xea7   : > { %v15724_v52 = vpop.f32.mrb[72].mxu0 }
 0xea8   : > { %v11980_v34 = vpop.f32.mrb[73].mxu0  ;;  %v4716_v3 = vsel %vm1153_vm2, %v15724_v52, -inf }
 0xea9   : > { %v15728_v53 = vpop.f32.mrb[84].mxu1  ;;  %4717 = vmax.xlane.f32.xlu1 %v4716_v3  ;;  %v4335_v39 = vpop.f32.mrb[74].mxu0 }
 0xeaa   : > { %v11981_v47 = vpop.f32.mrb[75].mxu0  ;;  %v11986_v62 = vpop.f32.mrb[85].mxu1  ;;  %v4719_v38 = vsel %vm1153_vm2, %v15728_v53, -inf }
 0xeab   : > { %4720 = vmax.xlane.f32.xlu0 %v4719_v38  ;;  %v4375_v10 = vpop.f32.mrb[86].mxu1 }
 0xeac   : > { %v11987_v37 = vpop.f32.mrb[87].mxu1 }
 0xeaf   : > { %v15732_v7 = vpop.f32.mrb[76].mxu0 }
 0xeb0   : > { %v11992_v50 = vpop.f32.mrb[77].mxu0  ;;  %v4722_v43 = vsel %vm1153_vm2, %v15732_v7, -inf }
 0xeb1   : > { %v15736_v8 = vpop.f32.mrb[88].mxu1  ;;  %4723 = vmax.xlane.f32.xlu1 %v4722_v43  ;;  %v4415_v14 = vpop.f32.mrb[78].mxu0 }
 0xeb2   : > { %v11993_v36 = vpop.f32.mrb[79].mxu0  ;;  %v11998_v6 = vpop.f32.mrb[89].mxu1  ;;  %v4725_v44 = vsel %vm1153_vm2, %v15736_v8, -inf }
 0xeb3   : > { %4726 = vmax.xlane.f32.xlu0 %v4725_v44  ;;  %v4455_v45 = vpop.f32.mrb[90].mxu1 }
 0xeb4   : > { %v11999_v9 = vpop.f32.mrb[91].mxu1 }
 0xeb7   : > { %v15740_v19 = vpop.f32.mrb[80].mxu0 }
 0xeb8   : > { %v12004_v4 = vpop.f32.mrb[81].mxu0  ;;  %v4728_v27 = vsel %vm1153_vm2, %v15740_v19, -inf }
 0xeb9   : > { %v15744_v61 = vpop.f32.mrb[92].mxu1  ;;  %4729 = vmax.xlane.f32.xlu1 %v4728_v27  ;;  %v4495_v55 = vpop.f32.mrb[82].mxu0 }
 0xeba   : > { %v12005_v31 = vpop.f32.mrb[83].mxu0  ;;  %v12010_v32 = vpop.f32.mrb[93].mxu1  ;;  %v4731_v5 = vsel %vm1153_vm2, %v15744_v61, -inf }
 0xebb   : > { %4732 = vmax.xlane.f32.xlu0 %v4731_v5  ;;  %v4535_v54 = vpop.f32.mrb[94].mxu1 }
 0xebc   : > { %v12011_v16 = vpop.f32.mrb[95].mxu1 }
 0xebf   : > { %v15748_v12 = vpop.f32.mrb[84].mxu0 }
 0xec0   : > { %v12016_v22 = vpop.f32.mrb[85].mxu0  ;;  %v4734_v60 = vsel %vm1153_vm2, %v15748_v12, -inf }
 0xec1   : > { %v15752_v40 = vpop.f32.mrb[96].mxu1  ;;  %4735 = vmax.xlane.f32.xlu1 %v4734_v60  ;;  %v4575_v34 = vpop.f32.mrb[86].mxu0 }
 0xec2   : > { %v12017_v3 = vpop.f32.mrb[87].mxu0  ;;  %v12022_v39 = vpop.f32.mrb[97].mxu1  ;;  %v4737_v47 = vsel %vm1153_vm2, %v15752_v40, -inf }
 0xec3   : > { %4738 = vmax.xlane.f32.xlu0 %v4737_v47  ;;  %v4615_v62 = vpop.f32.mrb[98].mxu1 }
 0xec4   : > { %v12023_v38 = vpop.f32.mrb[99].mxu1 }
 0xec7   : > { %v15756_v10 = vpop.f32.mrb[88].mxu0 }
 0xec8   : > { %v12028_v37 = vpop.f32.mrb[89].mxu0  ;;  %v4740_v50 = vsel %vm1153_vm2, %v15756_v10, -inf }
 0xec9   : > { %v15760_v43 = vpop.f32.mrb[100].mxu1  ;;  %4741 = vmax.xlane.f32.xlu1 %v4740_v50  ;;  %v4655_v14 = vpop.f32.mrb[90].mxu0 }
 0xeca   : > { %v12029_v36 = vpop.f32.mrb[91].mxu0  ;;  %v12034_v6 = vpop.f32.mrb[101].mxu1  ;;  %v4743_v44 = vsel %vm1153_vm2, %v15760_v43, -inf }
 0xecb   : > { %4744 = vmax.xlane.f32.xlu0 %v4743_v44  ;;  %v4695_v45 = vpop.f32.mrb[102].mxu1 }
 0xecc   : > { %v12035_v9 = vpop.f32.mrb[103].mxu1 }
 0xf1e   : > { %v4700_v4 = vpop.xlane.xlu1 %4699 }
 0xf1f   : > { %v4746_v27 = vsub.f32 %v15700_v46, %v4700_v4 }
 0xf20   : > { %v4703_v55 = vpop.xlane.xlu0 %4702 }
 0xf21   : > { %v4762_v31 = vmul.f32 1.442695, %v4746_v27  ;;  %v4747_v32 = vsub.f32 %v15704_v11, %v4703_v55 }
 0xf23   : > { %13129 = vpow2.f32 %v4762_v31  ;;  %v4764_v5 = vmul.f32 1.442695, %v4747_v32 }
 0xf25   : > { %13131 = vpow2.f32 %v4764_v5 }
 0xf26   : > { %v4706_v54 = vpop.xlane.xlu1 %4705 }
 0xf27   : > { %v4748_v16 = vsub.f32 %v15708_v48, %v4706_v54 }
 0xf28   : > { %v4709_v22 = vpop.xlane.xlu0 %4708 }
 0xf29   : > { %v4766_v60 = vmul.f32 1.442695, %v4748_v16  ;;  %v4749_v34 = vsub.f32 %v15712_v2, %v4709_v22 }
 0xf2b   : > { %13133 = vpow2.f32 %v4766_v60  ;;  %v4768_v3 = vmul.f32 1.442695, %v4749_v34 }
 0xf2d   : > { %v15768_v39 = vpop.eup %13129  ;;  %13135 = vpow2.f32 %v4768_v3 }
 0xf2e   : > { %v4712_v46 = vpop.xlane.xlu1 %4711  ;;  %v4794_v47 = vsel %vm1153_vm2, %v15768_v39, 0.0 }
 0xf2f   : > { %v15772_v11 = vpop.eup %13131  ;;  %v4750_v62 = vsub.f32 %v15716_v30, %v4712_v46  ;;  %4795 = vadd.xlane.f32.xlu1 %v4794_v47 }
 0xf30   : > { %v4715_v38 = vpop.xlane.xlu0 %4714  ;;  %v4797_v48 = vsel %vm1153_vm2, %v15772_v11, 0.0 }
 0xf31   : > { %v4770_v37 = vmul.f32 1.442695, %v4750_v62  ;;  %v4751_v2 = vsub.f32 %v15720_v18, %v4715_v38  ;;  %4798 = vadd.xlane.f32.xlu0 %v4797_v48 }
 0xf33   : > { %13137 = vpow2.f32 %v4770_v37  ;;  %v4772_v50 = vmul.f32 1.442695, %v4751_v2 }
 0xf35   : > { %v15778_v14 = vpop.eup %13133  ;;  %13139 = vpow2.f32 %v4772_v50 }
 0xf36   : > { %v4718_v36 = vpop.xlane.xlu1 %4717  ;;  %v4800_v6 = vsel %vm1153_vm2, %v15778_v14, 0.0 }
 0xf37   : > { %v15782_v44 = vpop.eup %13135  ;;  %v4752_v30 = vsub.f32 %v15724_v52, %v4718_v36  ;;  %4801 = vadd.xlane.f32.xlu1 %v4800_v6 }
 0xf38   : > { %v4721_v45 = vpop.xlane.xlu0 %4720  ;;  %v4803_v9 = vsel %vm1153_vm2, %v15782_v44, 0.0 }
 0xf39   : > { %v4774_v18 = vmul.f32 1.442695, %v4752_v30  ;;  %v4753_v4 = vsub.f32 %v15728_v53, %v4721_v45  ;;  %4804 = vadd.xlane.f32.xlu0 %v4803_v9 }
 0xf3b   : > { %13141 = vpow2.f32 %v4774_v18  ;;  %v4776_v27 = vmul.f32 1.442695, %v4753_v4 }
 0xf3d   : > { %v15788_v55 = vpop.eup %13137  ;;  %13143 = vpow2.f32 %v4776_v27 }
 0xf3e   : > { %v4724_v31 = vpop.xlane.xlu1 %4723  ;;  %v4806_v32 = vsel %vm1153_vm2, %v15788_v55, 0.0 }
 0xf3f   : > { %v15792_v5 = vpop.eup %13139  ;;  %v4754_v52 = vsub.f32 %v15732_v7, %v4724_v31  ;;  %4807 = vadd.xlane.f32.xlu1 %v4806_v32 }
 0xf40   : > { %v4727_v54 = vpop.xlane.xlu0 %4726  ;;  %v4809_v16 = vsel %vm1153_vm2, %v15792_v5, 0.0 }
 0xf41   : > { %v4778_v53 = vmul.f32 1.442695, %v4754_v52  ;;  %v4755_v22 = vsub.f32 %v15736_v8, %v4727_v54  ;;  %4810 = vadd.xlane.f32.xlu0 %v4809_v16 }
 0xf43   : > { %13145 = vpow2.f32 %v4778_v53  ;;  %v4780_v60 = vmul.f32 1.442695, %v4755_v22 }
 0xf45   : > { %v15798_v34 = vpop.eup %13141  ;;  %13147 = vpow2.f32 %v4780_v60 }
 0xf46   : > { %v4730_v3 = vpop.xlane.xlu1 %4729  ;;  %v4812_v46 = vsel %vm1153_vm2, %v15798_v34, 0.0 }
 0xf47   : > { %v15802_v47 = vpop.eup %13143  ;;  %v4756_v7 = vsub.f32 %v15740_v19, %v4730_v3  ;;  %4813 = vadd.xlane.f32.xlu1 %v4812_v46 }
 0xf48   : > { %v4733_v62 = vpop.xlane.xlu0 %4732  ;;  %v4815_v38 = vsel %vm1153_vm2, %v15802_v47, 0.0 }
 0xf49   : > { %v4782_v8 = vmul.f32 1.442695, %v4756_v7  ;;  %v4757_v48 = vsub.f32 %v15744_v61, %v4733_v62  ;;  %4816 = vadd.xlane.f32.xlu0 %v4815_v38 }
 0xf4b   : > { %13149 = vpow2.f32 %v4782_v8  ;;  %v4784_v37 = vmul.f32 1.442695, %v4757_v48  ;;  %v15846_v48 = vpack.c.bf16 %v15627_v56, %v15627_v56 }
 0xf4d   : > { %v15808_v2 = vpop.eup %13145  ;;  %13151 = vpow2.f32 %v4784_v37 }
 0xf4e   : > { %v4736_v50 = vpop.xlane.xlu1 %4735  ;;  %v4818_v36 = vsel %vm1153_vm2, %v15808_v2, 0.0 }
 0xf4f   : > { %v15812_v6 = vpop.eup %13147  ;;  %v4758_v19 = vsub.f32 %v15748_v12, %v4736_v50  ;;  %4819 = vadd.xlane.f32.xlu1 %v4818_v36  ;;  %v15850_v50 = vpack.c.bf16 %v15630_v28, %v15630_v28 }
 0xf50   : > { %v4739_v30 = vpop.xlane.xlu0 %4738  ;;  %v4821_v45 = vsel %vm1153_vm2, %v15812_v6, 0.0 }
 0xf51   : > { %v4786_v61 = vmul.f32 1.442695, %v4758_v19  ;;  %v4759_v9 = vsub.f32 %v15752_v40, %v4739_v30  ;;  %4822 = vadd.xlane.f32.xlu0 %v4821_v45  ;;  %v4044_v45 = vmul.bf16 %v15846_v48, %v14997_v41  ;;  %v4045_v56 = vmul.bf16 %v15850_v50, %v14997_v41 }
 0xf53   : > { %13153 = vpow2.f32 %v4786_v61  ;;  %v4788_v18 = vmul.f32 1.442695, %v4759_v9  ;;  %v4986_v28 = vsel %vm1160_vm0, %v4044_v45, 0  ;;  %v4049_v45 = vmul.bf16 %v15850_v50, %v14999_v42 }
 0xf55   : > { %v15818_v4 = vpop.eup %13149  ;;  %13155 = vpow2.f32 %v4788_v18 }
 0xf56   : > { %v4742_v27 = vpop.xlane.xlu1 %4741  ;;  %v4824_v31 = vsel %vm1153_vm2, %v15818_v4, 0.0 }
 0xf57   : > { %v15822_v32 = vpop.eup %13151  ;;  %v4760_v12 = vsub.f32 %v15756_v10, %v4742_v27  ;;  %4825 = vadd.xlane.f32.xlu1 %v4824_v31 }
 0xf58   : > { %v4745_v52 = vpop.xlane.xlu0 %4744  ;;  %v4827_v54 = vsel %vm1153_vm2, %v15822_v32, 0.0 }
 0xf59   : > { %v4790_v40 = vmul.f32 1.442695, %v4760_v12  ;;  %v4761_v16 = vsub.f32 %v15760_v43, %v4745_v52  ;;  %4828 = vadd.xlane.f32.xlu0 %v4827_v54  ;;  %v4046_v54 = vmul.bf16 %v15670_v35, %v14999_v42 }
 0xf5b   : > { %13157 = vpow2.f32 %v4790_v40  ;;  %v4792_v53 = vmul.f32 1.442695, %v4761_v16 }
 0xf5d   : > { %v15828_v22 = vpop.eup %13153  ;;  %13159 = vpow2.f32 %v4792_v53 }
 0xf5e   : > { %v4830_v60 = vsel %vm1153_vm2, %v15828_v22, 0.0 }
 0xf5f   : > { %v15832_v3 = vpop.eup %13155  ;;  %4831 = vadd.xlane.f32.xlu1 %v4830_v60  ;;  %v4047_v60 = vmul.bf16 %v15677_v29, %v14999_v42 }
 0xf60   : > { %v4833_v10 = vsel %vm1153_vm2, %v15832_v3, 0.0 }
 0xf61   : > { %4834 = vadd.xlane.f32.xlu0 %v4833_v10  ;;  %v5078_v10 = vsel %vm1160_vm0, %v4046_v54, 0 }
 0xf65   : > { %v15836_v46 = vpop.eup %13157 }
 0xf66   : > { %v4836_v43 = vsel %vm1153_vm2, %v15836_v46, 0.0 }
 0xf67   : > { %v15840_v7 = vpop.eup %13159  ;;  %4837 = vadd.xlane.f32.xlu1 %v4836_v43 }
 0xf68   : > { %v4839_v62 = vsel %vm1153_vm2, %v15840_v7, 0.0 }
 0xf69   : > { %4840 = vadd.xlane.f32.xlu0 %v4839_v62 }
 0xfbc   : > { %v4796_v38 = vpop.xlane.xlu1 %4795 }
 0xfbd   : > { %13161 = vrcp.f32 %v4796_v38 }
 0xfbe   : > { %v4799_v8 = vpop.xlane.xlu0 %4798 }
 0xfbf   : > { %13163 = vrcp.f32 %v4799_v8 }
 0xfc4   : > { %v4802_v37 = vpop.xlane.xlu1 %4801 }
 0xfc5   : > { %13165 = vrcp.f32 %v4802_v37  ;;  %v4048_v37 = vmul.bf16 %v15846_v48, %v14999_v42 }
 0xfc6   : > { %v4805_v36 = vpop.xlane.xlu0 %4804 }
 0xfc7   : > { %v13162_v19 = vpop.eup %13161  ;;  %13167 = vrcp.f32 %v4805_v36 }
 0xfc8   : > { %v4858_v30 = vmul.f32 %v13162_v19, %v15768_v39  ;;  %v5032_v39 = vsel %vm1160_vm0, %v4045_v56, 0 }
 0xfc9   : > { %v13164_v61 = vpop.eup %13163 }
 0xfca   : > { %v4874_v9 = vpack.c.bf16 %v4858_v30, %v4858_v30  ;;  %v4859_v18 = vmul.f32 %v13164_v61, %v15772_v11  ;;  %v5170_v61 = vsel %vm1160_vm0, %v4048_v37, 0 }
 0xfcc   : > { %12039 = vmatmul.mubr.msk.bf16.vlgmr.msra.gmra.mrb[92].mxu0 %vm1153_vm2, %v4874_v9  ;;  %v4808_v27 = vpop.xlane.xlu1 %4807  ;;  %v4875_v31 = vpack.c.bf16 %v4859_v18, %v4859_v18 }
 0xfcd   : > { %12049 = vmatpush3.bf16.msra.mxu0 %v4986_v28  ;;  %13169 = vrcp.f32 %v4808_v27  ;;  %12050 = vmatprep.mubr.msk.bf16.mxu0 %vm14155_vm11, %v17363_v15  ;;  %v4050_v27 = vmul.bf16 %v15670_v35, %v15036_v63 }
 0xfce   : > { %12045 = vmatmul.mubr.msk.bf16.vlgmr.msra.gmra.mrb[104].mxu1 %vm1153_vm2, %v4875_v31  ;;  %v4811_v12 = vpop.xlane.xlu0 %4810  ;;  %12060 = vmatprep.subr.bf16.mxu0 %v17363_v15 }
 0xfcf   : > { %v13166_v11 = vpop.eup %13165  ;;  %12055 = vmatpush3.bf16.msra.mxu1 %v5032_v39  ;;  %13171 = vrcp.f32 %v4811_v12  ;;  %12056 = vmatprep.mubr.msk.bf16.mxu1 %vm14155_vm11, %v17363_v15 }
 0xfd0   : > { %v4860_v52 = vmul.f32 %v13166_v11, %v15778_v14  ;;  %12066 = vmatprep.subr.bf16.mxu1 %v17363_v15  ;;  %v5124_v14 = vsel %vm1160_vm0, %v4047_v60, 0  ;;  %v4051_v11 = vmul.bf16 %v15677_v29, %v15036_v63  ;;  %v4052_v60 = vmul.bf16 %v15846_v48, %v15036_v63 }
 0xfd1   : > { %v13168_v40 = vpop.eup %13167 }
 0xfd2   : > { %v4876_v16 = vpack.c.bf16 %v4860_v52, %v4860_v52  ;;  %v4861_v53 = vmul.f32 %v13168_v40, %v15782_v44  ;;  %v5262_v52 = vsel %vm1160_vm0, %v4050_v27, 0  ;;  %v4056_v27 = vmul.bf16 %v15846_v48, %v15074_v25 }
 0xfd4   : > { %12051 = vmatmul.mubr.msk.bf16.vlgmr.msra.gmra.mrb[96].mxu0 %vm1153_vm2, %v4876_v16  ;;  %v4814_v43 = vpop.xlane.xlu1 %4813  ;;  %v4877_v62 = vpack.c.bf16 %v4861_v53, %v4861_v53 }
 0xfd5   : > { %12061 = vmatpush3.bf16.msra.mxu0 %v5078_v10  ;;  %13173 = vrcp.f32 %v4814_v43  ;;  %12062 = vmatprep.mubr.msk.bf16.mxu0 %vm14155_vm11, %v17363_v15 }
 0xfd6   : > { %12057 = vmatmul.mubr.msk.bf16.vlgmr.msra.gmra.mrb[108].mxu1 %vm1153_vm2, %v4877_v62  ;;  %v4817_v38 = vpop.xlane.xlu0 %4816  ;;  %12072 = vmatprep.subr.bf16.mxu0 %v17363_v15 }
 0xfd7   : > { %v13170_v44 = vpop.eup %13169  ;;  %12067 = vmatpush3.bf16.msra.mxu1 %v5124_v14  ;;  %13175 = vrcp.f32 %v4817_v38  ;;  %12068 = vmatprep.mubr.msk.bf16.mxu1 %vm14155_vm11, %v17363_v15  ;;  %v4053_v14 = vmul.bf16 %v15850_v50, %v15036_v63  ;;  %v5354_v38 = vsel %vm1160_vm0, %v4052_v60, 0 }
 0xfd8   : > { %v4862_v8 = vmul.f32 %v13170_v44, %v15788_v55  ;;  %12078 = vmatprep.subr.bf16.mxu1 %v17363_v15  ;;  %v5216_v55 = vsel %vm1160_vm0, %v4049_v45, 0 }
 0xfd9   : > { %v13172_v36 = vpop.eup %13171 }
 0xfda   : > { %v4878_v19 = vpack.c.bf16 %v4862_v8, %v4862_v8  ;;  %v4863_v30 = vmul.f32 %v13172_v36, %v15792_v5 }
 0xfdc   : > { %12063 = vmatmul.mubr.msk.bf16.vlgmr.msra.gmra.mrb[92].mxu0 %vm1153_vm2, %v4878_v19  ;;  %v4820_v9 = vpop.xlane.xlu1 %4819  ;;  %v4879_v18 = vpack.c.bf16 %v4863_v30, %v4863_v30  ;;  %v4054_v19 = vmul.bf16 %v15670_v35, %v15074_v25 }
 0xfdd   : > { %12073 = vmatpush3.bf16.msra.mxu0 %v5170_v61  ;;  %13177 = vrcp.f32 %v4820_v9  ;;  %12074 = vmatprep.mubr.msk.bf16.mxu0 %vm14155_vm11, %v17363_v15  ;;  %v4055_v9 = vmul.bf16 %v15677_v29, %v15074_v25  ;;  %v3702_v29 = vld [vmem:[#allocation14 + $0x380] sm:$0xff] }
 0xfde   : > { %12069 = vmatmul.mubr.msk.bf16.vlgmr.msra.gmra.mrb[104].mxu1 %vm1153_vm2, %v4879_v18  ;;  %v4823_v56 = vpop.xlane.xlu0 %4822  ;;  %12084 = vmatprep.subr.bf16.mxu0 %v17363_v15  ;;  %v5446_v18 = vsel %vm1160_vm0, %v4054_v19, 0  ;;  %v3714_v19 = vld [vmem:[#allocation14 + $0x3e0] sm:$0xff] }
 0xfdf   : > { %v13174_v5 = vpop.eup %13173  ;;  %12079 = vmatpush3.bf16.msra.mxu1 %v5216_v55  ;;  %13179 = vrcp.f32 %v4823_v56  ;;  %12080 = vmatprep.mubr.msk.bf16.mxu1 %vm14155_vm11, %v17363_v15  ;;  %v5492_v35 = vsel %vm1160_vm0, %v4055_v9, 0  ;;  %v3717_v9 = vld [vmem:[#allocation14 + $0x3f8] sm:$0xff] }
 0xfe0   : > { %v4864_v28 = vmul.f32 %v13174_v5, %v15798_v34  ;;  %12090 = vmatprep.subr.bf16.mxu1 %v17363_v15  ;;  %v5308_v34 = vsel %vm1160_vm0, %v4051_v11, 0  ;;  %v3703_v5 = vld [vmem:[#allocation14 + $0x388] sm:$0xff]  ;;  %v4057_v11 = vmul.bf16 %v15850_v50, %v15074_v25  ;;  %v3705_v50 = vld [vmem:[#allocation14 + $0x398] sm:$0xff] }
 0xfe1   : > { %v13176_v31 = vpop.eup %13175 }
 0xfe2   : > { %v4880_v39 = vpack.c.bf16 %v4864_v28, %v4864_v28  ;;  %v4865_v12 = vmul.f32 %v13176_v31, %v15802_v47 }
 0xfe4   : > { %12075 = vmatmul.mubr.msk.bf16.vlgmr.msra.gmra.mrb[96].mxu0 %vm1153_vm2, %v4880_v39  ;;  %v4826_v54 = vpop.xlane.xlu1 %4825  ;;  %v4881_v40 = vpack.c.bf16 %v4865_v12, %v4865_v12 }
 0xfe5   : > { %12085 = vmatpush3.bf16.msra.mxu0 %v5262_v52  ;;  %13181 = vrcp.f32 %v4826_v54  ;;  %12086 = vmatprep.mubr.msk.bf16.mxu0 %vm14155_vm11, %v17363_v15  ;;  %v5640_v52 = vpack.c.bf16 %v3703_v5, %v3702_v29  ;;  %v5538_v54 = vsel %vm1160_vm0, %v4056_v27, 0 }
 0xfe6   : > { %12081 = vmatmul.mubr.msk.bf16.vlgmr.msra.gmra.mrb[108].mxu1 %vm1153_vm2, %v4881_v40  ;;  %v4829_v16 = vpop.xlane.xlu0 %4828  ;;  %12096 = vmatprep.subr.bf16.mxu0 %v17363_v15 }
 0xfe7   : > { %v13178_v47 = vpop.eup %13177  ;;  %12091 = vmatpush3.bf16.msra.mxu1 %v5308_v34  ;;  %13183 = vrcp.f32 %v4829_v16  ;;  %12092 = vmatprep.mubr.msk.bf16.mxu1 %vm14155_vm11, %v17363_v15 }
 0xfe8   : > { %v4866_v53 = vmul.f32 %v13178_v47, %v15808_v2  ;;  %12102 = vmatprep.subr.bf16.mxu1 %v17363_v15  ;;  %v5400_v2 = vsel %vm1160_vm0, %v4053_v14, 0 }
 0xfe9   : > { %v13180_v10 = vpop.eup %13179 }
 0xfea   : > { %v4882_v43 = vpack.c.bf16 %v4866_v53, %v4866_v53  ;;  %v4867_v62 = vmul.f32 %v13180_v10, %v15812_v6  ;;  %v3706_v10 = vld [vmem:[#allocation14 + $0x3a0] sm:$0xff] }
 0xfec   : > { %12087 = vmatmul.mubr.msk.bf16.vlgmr.msra.gmra.mrb[92].mxu0 %vm1153_vm2, %v4882_v43  ;;  %v4832_v44 = vpop.xlane.xlu1 %4831  ;;  %v4883_v8 = vpack.c.bf16 %v4867_v62, %v4867_v62  ;;  %v3707_v43 = vld [vmem:[#allocation14 + $0x3a8] sm:$0xff] }
 0xfed   : > { %12097 = vmatpush3.bf16.msra.mxu0 %v5354_v38  ;;  %13185 = vrcp.f32 %v4832_v44  ;;  %12098 = vmatprep.mubr.msk.bf16.mxu0 %vm14155_vm11, %v17363_v15  ;;  %v5642_v14 = vpack.c.bf16 %v3707_v43, %v3706_v10  ;;  %v3708_v38 = vld [vmem:[#allocation14 + $0x3b0] sm:$0xff]  ;;  %v3709_v44 = vld [vmem:[#allocation14 + $0x3b8] sm:$0xff] }
 0xfee   : > { %12093 = vmatmul.mubr.msk.bf16.vlgmr.msra.gmra.mrb[104].mxu1 %vm1153_vm2, %v4883_v8  ;;  %v4835_v37 = vpop.xlane.xlu0 %4834  ;;  %12108 = vmatprep.subr.bf16.mxu0 %v17363_v15  ;;  %v3710_v8 = vld [vmem:[#allocation14 + $0x3c0] sm:$0xff] }
 0xfef   : > { %v13182_v6 = vpop.eup %13181  ;;  %12103 = vmatpush3.bf16.msra.mxu1 %v5400_v2  ;;  %13187 = vrcp.f32 %v4835_v37  ;;  %12104 = vmatprep.mubr.msk.bf16.mxu1 %vm14155_vm11, %v17363_v15  ;;  %v3712_v37 = vld [vmem:[#allocation14 + $0x3d0] sm:$0xff] }
 0xff0   : > { %v4868_v36 = vmul.f32 %v13182_v6, %v15818_v4  ;;  %12114 = vmatprep.subr.bf16.mxu1 %v17363_v15  ;;  %v3713_v6 = vld [vmem:[#allocation14 + $0x3d8] sm:$0xff] }
 0xff1   : > { %v13184_v30 = vpop.eup %13183 }
 0xff2   : > { %v4884_v45 = vpack.c.bf16 %v4868_v36, %v4868_v36  ;;  %v4869_v61 = vmul.f32 %v13184_v30, %v15822_v32  ;;  %v5645_v36 = vpack.c.bf16 %v3713_v6, %v3712_v37  ;;  %v3715_v30 = vld [vmem:[#allocation14 + $0x3e8] sm:$0xff]  ;;  %v3721_v6 = vld [vmem:[#allocation16 + $0x110] sm:$0xff] }
 0xff4   : > { %12099 = vmatmul.mubr.msk.bf16.vlgmr.msra.gmra.mrb[96].mxu0 %vm1153_vm2, %v4884_v45  ;;  %v4838_v55 = vpop.xlane.xlu1 %4837  ;;  %v4885_v56 = vpack.c.bf16 %v4869_v61, %v4869_v61  ;;  %v5646_v45 = vpack.c.bf16 %v3715_v30, %v3714_v19  ;;  %v3716_v61 = vld [vmem:[#allocation14 + $0x3f0] sm:$0xff]  ;;  %v3726_v19 = vld [vmem:[#allocation16 + $0x138] sm:$0xff] }
 0xff5   : > { %12109 = vmatpush3.bf16.msra.mxu0 %v5446_v18  ;;  %13189 = vrcp.f32 %v4838_v55  ;;  %12110 = vmatprep.mubr.msk.bf16.mxu0 %vm14155_vm11, %v17363_v15  ;;  %v5647_v18 = vpack.c.bf16 %v3717_v9, %v3716_v61  ;;  %v3725_v61 = vld [vmem:[#allocation16 + $0x130] sm:$0xff] }
 0xff6   : > { %12105 = vmatmul.mubr.msk.bf16.vlgmr.msra.gmra.mrb[108].mxu1 %vm1153_vm2, %v4885_v56  ;;  %v4841_v4 = vpop.xlane.xlu0 %4840  ;;  %12120 = vmatprep.subr.bf16.mxu0 %v17363_v15 }
 0xff7   : > { %v13186_v32 = vpop.eup %13185  ;;  %12115 = vmatpush3.bf16.msra.mxu1 %v5492_v35  ;;  %13191 = vrcp.f32 %v4841_v4  ;;  %12116 = vmatprep.mubr.msk.bf16.mxu1 %vm14155_vm11, %v17363_v15 }
 0xff8   : > { %v4870_v28 = vmul.f32 %v13186_v32, %v15828_v22  ;;  %12126 = vmatprep.subr.bf16.mxu1 %v17363_v15  ;;  %v5584_v22 = vsel %vm1160_vm0, %v4057_v11, 0  ;;  %vm6060_vm0 = vcmask 261120  }
 0xff9   : > { %v13188_v31 = vpop.eup %13187 }
 0xffa   : > { %v4886_v39 = vpack.c.bf16 %v4870_v28, %v4870_v28  ;;  %v4871_v12 = vmul.f32 %v13188_v31, %v15832_v3  ;;  %v3704_v3 = vld [vmem:[#allocation14 + $0x390] sm:$0xff] }
 0xffb   : > { %v5641_v60 = vpack.c.bf16 %v3705_v50, %v3704_v3  ;;  %v15967_v3 = vld [vmem:[#allocation20 + $0x10] sm:$0xff] }
 0xffc   : > { %12111 = vmatmul.mubr.msk.bf16.vlgmr.msra.gmra.mrb[92].mxu0 %vm1153_vm2, %v4886_v39  ;;  %v4887_v40 = vpack.c.bf16 %v4871_v12, %v4871_v12  ;;  %v5651_v50 = vrot.slane %v15967_v3, %v15406_v33 }
 0xffd   : > { %12121 = vmatpush3.bf16.msra.mxu0 %v5538_v54  ;;  %12122 = vmatprep.mubr.msk.bf16.mxu0 %vm14155_vm11, %v17363_v15 }
 0xffe   : > { %12117 = vmatmul.mubr.msk.bf16.vlgmr.msra.gmra.mrb[104].mxu1 %vm1153_vm2, %v4887_v40  ;;  %12132 = vmatprep.subr.bf16.mxu0 %v5640_v52 }
 0xfff   : > { %v13190_v48 = vpop.eup %13189  ;;  %12127 = vmatpush3.bf16.msra.mxu1 %v5584_v22  ;;  %12128 = vmatprep.mubr.msk.bf16.mxu1 %vm14155_vm11, %v17363_v15 }
0x1000   : > { %v4872_v34 = vmul.f32 %v13190_v48, %v15836_v46  ;;  %v5643_v46 = vpack.c.bf16 %v3709_v44, %v3708_v38 }
0x1001   : > { %v13192_v16 = vpop.eup %13191 }
0x1002   : > { %v4888_v47 = vpack.c.bf16 %v4872_v34, %v4872_v34  ;;  %v4873_v53 = vmul.f32 %v13192_v16, %v15840_v7  ;;  %v3711_v7 = vld [vmem:[#allocation14 + $0x3c8] sm:$0xff] }
0x1003   : > { %v5644_v2 = vpack.c.bf16 %v3711_v7, %v3710_v8  ;;  %v3720_v8 = vld [vmem:[#allocation16 + $0x108] sm:$0xff]  ;;  %v3722_v7 = vld [vmem:[#allocation16 + $0x118] sm:$0xff] }
0x1004   : > { %12123 = vmatmul.mubr.msk.bf16.vlgmr.msra.gmra.mrb[96].mxu0 %vm1153_vm2, %v4888_v47  ;;  %v4889_v62 = vpack.c.bf16 %v4873_v53, %v4873_v53  ;;  %v5768_v37 = vpack.c.bf16 %v3722_v7, %v3720_v8  ;;  %v3742_v8 = vld [vmem:[#allocation16 + $0x1b8] sm:$0xff]  ;;  %v3739_v7 = vld [vmem:[#allocation16 + $0x1a0] sm:$0xff] }
0x1005   : > { %12133 = vmatpush3.bf16.msra.mxu0 %v5640_v52 }
0x1006   : > { %12129 = vmatmul.mubr.msk.bf16.vlgmr.msra.gmra.mrb[108].mxu1 %vm1153_vm2, %v4889_v62  ;;  %12134 = vmatprep.subr.bf16.mxu0 %v5641_v60  ;;  %vm8349_vm2 = vcmask 1041408  }
0x1007   : > { %5826 = vmatprep.mubr.bf16.mxu1 %v17353_v0  ;;  %5794 = vmatprep.subr.bf16.mxu1 %v5768_v37  ;;  %v3741_v37 = vld [vmem:[#allocation16 + $0x1b0] sm:$0xff] }
0x1009   : > { %12135 = vmatpush3.bf16.msra.mxu0 %v5641_v60 }
0x100a   : > { %12136 = vmatprep.subr.bf16.mxu0 %v5642_v14 }
0x100d   : > { %12137 = vmatpush3.bf16.msra.mxu0 %v5642_v14 }
0x100e   : > { %12138 = vmatprep.subr.bf16.mxu0 %v5643_v46 }
0x1011   : > { %12139 = vmatpush3.bf16.msra.mxu0 %v5643_v46 }
0x1012   : > { %12140 = vmatprep.subr.bf16.mxu0 %v5644_v2 }
0x1015   : > { %12141 = vmatpush3.bf16.msra.mxu0 %v5644_v2  ;;  %v3719_v2 = vld [vmem:[#allocation16 + $0x100] sm:$0xff] }
0x1016   : > { %12142 = vmatprep.subr.bf16.mxu0 %v5645_v36  ;;  %v5767_v30 = vpack.c.bf16 %v3721_v6, %v3719_v2  ;;  %v3744_v6 = vld [vmem:[#allocation16 + $0x1c8] sm:$0xff] }
0x1018   : > { %5795 = vmatpush1.bf16.msra.mxu1 %v5767_v30 }
0x1019   : > { %12143 = vmatpush3.bf16.msra.mxu0 %v5645_v36  ;;  %v3724_v36 = vld [vmem:[#allocation16 + $0x128] sm:$0xff] }
0x101a   : > { %12144 = vmatprep.subr.bf16.mxu0 %v5646_v45 }
0x101d   : > { %12145 = vmatpush3.bf16.msra.mxu0 %v5646_v45  ;;  %v3723_v45 = vld [vmem:[#allocation16 + $0x120] sm:$0xff] }
0x101e   : > { %12146 = vmatprep.subr.bf16.mxu0 %v5647_v18 }
0x1021   : > { %12147 = vmatpush3.bf16.msra.mxu0 %v5647_v18 }
0x10cf   : > { %v5482_v55 = vpop.f32.mrb[92].mxu0 }
0x10d0   : > { %v12112_v56 = vpop.f32.mrb[93].mxu0 }
0x10d1   : > { %v5485_v35 = vpop.f32.mrb[94].mxu0  ;;  %v5528_v4 = vpop.f32.mrb[104].mxu1 }
0x10d2   : > { %v5638_v32 = vpack.c.bf16 %v5528_v4, %v5482_v55  ;;  %v12113_v29 = vpop.f32.mrb[95].mxu0  ;;  %v12118_v5 = vpop.f32.mrb[105].mxu1 }
0x10d3   : > { %v5531_v28 = vpop.f32.mrb[106].mxu1 }
0x10d4   : > { %v12119_v27 = vpop.f32.mrb[107].mxu1  ;;  %12148 = vmatprep.mubr.bf16.mxu0 %v5638_v32 }
0x10d7   : > { %v5574_v31 = vpop.f32.mrb[96].mxu0 }
0x10d8   : > { %v12124_v39 = vpop.f32.mrb[97].mxu0 }
0x10d9   : > { %v5577_v12 = vpop.f32.mrb[98].mxu0  ;;  %v5620_v11 = vpop.f32.mrb[108].mxu1 }
0x10da   : > { %v5639_v52 = vpack.c.bf16 %v5620_v11, %v5574_v31  ;;  %v12125_v54 = vpop.f32.mrb[99].mxu0  ;;  %v12130_v40 = vpop.f32.mrb[109].mxu1  ;;  %v3728_v11 = vld [vmem:[#allocation16 + $0x148] sm:$0xff] }
0x10db   : > { %v5623_v22 = vpop.f32.mrb[110].mxu1  ;;  %v3727_v40 = vld [vmem:[#allocation16 + $0x140] sm:$0xff] }
0x10dc   : > { %v12131_v48 = vpop.f32.mrb[111].mxu1  ;;  %12149 = vmatmul.mubr.bf16.vlgmr.msra.gmra.mrb[100].mxu0 %v5639_v52  ;;  %v3730_v52 = vld [vmem:[#allocation16 + $0x158] sm:$0xff]  ;;  %v3729_v22 = vld [vmem:[#allocation16 + $0x150] sm:$0xff] }
0x10dd   : > { %v5772_v54 = vpack.c.bf16 %v3730_v52, %v3728_v11  ;;  %v5771_v48 = vpack.c.bf16 %v3729_v22, %v3727_v40 }
0x11af   : > { %v12150_v34 = vpop.f32.mrb[100].mxu0 }
0x11b0   : > { %v5686_v16 = vpop.f32.mrb[101].mxu0  ;;  %v5695_v10 = vadd.f32 %v12150_v34, %v5651_v50  ;;  %v3734_v34 = vld [vmem:[#allocation16 + $0x178] sm:$0xff] }
0x11b1   : > { %v5687_v47 = vadd.f32 %v5686_v16, %v5651_v50  ;;  %v12151_v53 = vpop.f32.mrb[102].mxu0 }
0x11b2   : > { %v5689_v60 = vpop.f32.mrb[103].mxu0  ;;  %v5698_v14 = vadd.f32 %v12151_v53, %v5651_v50  ;;  %v5703_v44 = vadd.f32 %v5695_v10, %v15558_v13  ;;  %v3733_v53 = vld [vmem:[#allocation16 + $0x170] sm:$0xff]  ;;  %v3736_v10 = vld [vmem:[#allocation16 + $0x188] sm:$0xff] }
0x11b3   : > { %v5690_v43 = vadd.f32 %v5689_v60, %v5651_v50  ;;  %v5701_v62 = vadd.f32 %v5687_v47, %v15550_v1  ;;  %v5770_v1 = vpack.c.bf16 %v3726_v19, %v3724_v36  ;;  %v3732_v50 = vld [vmem:[#allocation16 + $0x168] sm:$0xff]  ;;  %v3731_v47 = vld [vmem:[#allocation16 + $0x160] sm:$0xff]  ;;  %v3746_v36 = vld [vmem:[#allocation16 + $0x1d8] sm:$0xff]  ;;  %v5777_v19 = vpack.c.bf16 %v3741_v37, %v3739_v7 }
0x11b4   : > { %v5704_v46 = vadd.f32 %v5698_v14, %v15560_v26  ;;  %v5774_v16 = vpack.c.bf16 %v3734_v34, %v3732_v50  ;;  %v5773_v60 = vpack.c.bf16 %v3733_v53, %v3731_v47  ;;  %v3735_v14 = vld [vmem:[#allocation16 + $0x180] sm:$0xff]  ;;  %v5780_v30 = vpack.c.bf16 %v3746_v36, %v3744_v6 }
0x11b5   : > { %5705 = vadd.xlane.f32.xlu1 %v5701_v62  ;;  %v5702_v38 = vadd.f32 %v5690_v43, %v15552_v51  ;;  %v5769_v51 = vpack.c.bf16 %v3725_v61, %v3723_v45  ;;  %5796 = vmatprep.subr.bf16.mxu1 %v5770_v1  ;;  %v3738_v43 = vld [vmem:[#allocation16 + $0x198] sm:$0xff]  ;;  %v3743_v1 = vld [vmem:[#allocation16 + $0x1c0] sm:$0xff]  ;;  %v3745_v45 = vld [vmem:[#allocation16 + $0x1d0] sm:$0xff] }
0x11b6   : > { %v3748_v61 = vld [vmem:[#allocation16 + $0x1e8] sm:$0xff] }
0x11b7   : > { %5707 = vadd.xlane.f32.xlu0 %v5702_v38  ;;  %5797 = vmatpush1.bf16.msra.mxu1 %v5769_v51  ;;  %v3750_v51 = vld [vmem:[#allocation16 + $0x1f8] sm:$0xff]  ;;  %v3770_v6 = vld [vmem:[#allocation19 + $0x180] sm:$0xff] }
0x11b8   : > { %5798 = vmatprep.subr.bf16.mxu1 %v5772_v54 }
0x11b9   : > { %5709 = vadd.xlane.f32.xlu1 %v5703_v44 }
0x11bb   : > { %5711 = vadd.xlane.f32.xlu0 %v5704_v46  ;;  %5799 = vmatpush1.bf16.msra.mxu1 %v5771_v48  ;;  %v5752_v48 = vrot.slane %v15967_v3, %v15433_v57 }
0x11bc   : > { %5800 = vmatprep.subr.bf16.mxu1 %v5774_v16 }
0x11bf   : > { %5801 = vmatpush1.bf16.msra.mxu1 %v5773_v60  ;;  %v5760_v60 = vrot.slane %v15967_v3, %v15438_v58 }
0x1242   : > { %v5706_v13 = vpop.xlane.xlu1 %5705 }
0x1243   : > { %v5713_v9 = vmul.f32 0.0078125, %v5706_v13  ;;  %v5779_v13 = vpack.c.bf16 %v3745_v45, %v3743_v1  ;;  %v3772_v1 = vld [vmem:[#allocation19 + $0x190] sm:$0xff]  ;;  %v3773_v45 = vld [vmem:[#allocation19 + $0x198] sm:$0xff] }
0x1244   : > { %v5708_v26 = vpop.xlane.xlu0 %5707 }
0x1245   : > { %v5714_v18 = vmul.f32 0.0078125, %v5708_v26  ;;  %v15975_v55 = vsub.f32 %v5701_v62, %v5713_v9  ;;  %v5776_v62 = vpack.c.bf16 %v3738_v43, %v3736_v10  ;;  %v5782_v9 = vpack.c.bf16 %v3750_v51, %v3748_v61  ;;  %v3747_v26 = vld [vmem:[#allocation16 + $0x1e0] sm:$0xff]  ;;  %v3756_v51 = vld [vmem:[#allocation19 + $0x110] sm:$0xff] }
0x1246   : > { %v5710_v56 = vpop.xlane.xlu1 %5709  ;;  %v5932_v61 = vpack.c.bf16 %v3773_v45, %v3772_v1 }
0x1247   : > { %v5715_v35 = vmul.f32 0.0078125, %v5710_v56  ;;  %v5721_v4 = vmul.f32 %v15975_v55, %v15975_v55  ;;  %v15979_v32 = vsub.f32 %v5702_v38, %v5714_v18  ;;  %v3737_v38 = vld [vmem:[#allocation16 + $0x190] sm:$0xff]  ;;  %5802 = vmatprep.subr.bf16.mxu1 %v5776_v62 }
0x1248   : > { %v5712_v29 = vpop.xlane.xlu0 %5711  ;;  %v3749_v18 = vld [vmem:[#allocation16 + $0x1f0] sm:$0xff] }
0x1249   : > { %v15981_v5 = vsub.f32 %v5703_v44, %v5715_v35  ;;  %v5716_v28 = vmul.f32 0.0078125, %v5712_v29  ;;  %5725 = vadd.xlane.f32.xlu1 %v5721_v4  ;;  %v5722_v27 = vmul.f32 %v15979_v32, %v15979_v32  ;;  %v5775_v44 = vpack.c.bf16 %v3737_v38, %v3735_v14 }
0x124a   : > { %v5781_v56 = vpack.c.bf16 %v3749_v18, %v3747_v26  ;;  %v3774_v26 = vld [vmem:[#allocation19 + $0x1a0] sm:$0xff]  ;;  %v3775_v18 = vld [vmem:[#allocation19 + $0x1a8] sm:$0xff] }
0x124b   : > { %v15985_v31 = vsub.f32 %v5704_v46, %v5716_v28  ;;  %5727 = vadd.xlane.f32.xlu0 %v5722_v27  ;;  %v5723_v39 = vmul.f32 %v15981_v5, %v15981_v5  ;;  %v3740_v46 = vld [vmem:[#allocation16 + $0x1a8] sm:$0xff]  ;;  %5803 = vmatpush1.bf16.msra.mxu1 %v5775_v44 }
0x124c   : > { %v5778_v2 = vpack.c.bf16 %v3742_v8, %v3740_v46 }
0x124d   : > { %5729 = vadd.xlane.f32.xlu1 %v5723_v39  ;;  %v5724_v12 = vmul.f32 %v15985_v31, %v15985_v31 }
0x124e   : > { %5804 = vmatprep.subr.bf16.mxu1 %v5778_v2 }
0x124f   : > { %5731 = vadd.xlane.f32.xlu0 %v5724_v12  ;;  %5805 = vmatpush1.bf16.msra.mxu1 %v5777_v19  ;;  %v3755_v19 = vld [vmem:[#allocation19 + $0x108] sm:$0xff] }
0x1250   : > { %5806 = vmatprep.subr.bf16.mxu1 %v5780_v30 }
0x1253   : > { %5807 = vmatpush1.bf16.msra.mxu1 %v5779_v13  ;;  %v3757_v13 = vld [vmem:[#allocation19 + $0x118] sm:$0xff] }
0x1254   : > { %5808 = vmatprep.subr.bf16.mxu1 %v5782_v9  ;;  %v5924_v9 = vpack.c.bf16 %v3757_v13, %v3756_v51 }
0x1257   : > { %5809 = vmatpush1.bf16.msra.mxu1 %v5781_v56  ;;  %v5933_v56 = vpack.c.bf16 %v3775_v18, %v3774_v26 }
0x12d6   : > { %v5726_v35 = vpop.xlane.xlu1 %5725 }
0x12d7   : > { %v5733_v4 = vmul.f32 0.0078125, %v5726_v35  ;;  %v3758_v35 = vld [vmem:[#allocation19 + $0x120] sm:$0xff] }
0x12d8   : > { %v5728_v29 = vpop.xlane.xlu0 %5727 }
0x12d9   : > { %v5737_v28 = vadd.f32 1e-05, %v5733_v4  ;;  %v5734_v27 = vmul.f32 0.0078125, %v5728_v29  ;;  %v3759_v4 = vld [vmem:[#allocation19 + $0x128] sm:$0xff] }
0x12da   : > { %v5730_v39 = vpop.xlane.xlu1 %5729  ;;  %v5925_v29 = vpack.c.bf16 %v3759_v4, %v3758_v35 }
0x12db   : > { %13193 = vrsqrt.f32 %v5737_v28  ;;  %v5738_v12 = vadd.f32 1e-05, %v5734_v27  ;;  %v5735_v11 = vmul.f32 0.0078125, %v5730_v39  ;;  %v3776_v28 = vld [vmem:[#allocation19 + $0x1b0] sm:$0xff]  ;;  %v3777_v27 = vld [vmem:[#allocation19 + $0x1b8] sm:$0xff] }
0x12dc   : > { %v5732_v52 = vpop.xlane.xlu0 %5731  ;;  %v5934_v39 = vpack.c.bf16 %v3777_v27, %v3776_v28 }
0x12dd   : > { %13195 = vrsqrt.f32 %v5738_v12  ;;  %v5739_v54 = vadd.f32 1e-05, %v5735_v11  ;;  %v5736_v40 = vmul.f32 0.0078125, %v5732_v52  ;;  %v3760_v12 = vld [vmem:[#allocation19 + $0x130] sm:$0xff]  ;;  %v3761_v11 = vld [vmem:[#allocation19 + $0x138] sm:$0xff] }
0x12de   : > { %v5926_v52 = vpack.c.bf16 %v3761_v11, %v3760_v12 }
0x12df   : > { %13197 = vrsqrt.f32 %v5739_v54  ;;  %v5740_v22 = vadd.f32 1e-05, %v5736_v40  ;;  %v3778_v54 = vld [vmem:[#allocation19 + $0x1c0] sm:$0xff]  ;;  %v3779_v40 = vld [vmem:[#allocation19 + $0x1c8] sm:$0xff] }
0x12e1   : > { %13199 = vrsqrt.f32 %v5740_v22  ;;  %v5935_v22 = vpack.c.bf16 %v3779_v40, %v3778_v54 }
0x12e5   : > { %v13194_v50 = vpop.eup %13193 }
0x12e6   : > { %v5745_v34 = vmul.f32 %v13194_v50, %v15975_v55  ;;  %v3763_v50 = vld [vmem:[#allocation19 + $0x148] sm:$0xff] }
0x12e7   : > { %v13196_v16 = vpop.eup %13195 }
0x12e8   : > { %v5746_v47 = vmul.f32 %v13196_v16, %v15979_v32  ;;  %v5753_v53 = vmul.f32 %v5752_v48, %v5745_v34  ;;  %v3780_v16 = vld [vmem:[#allocation19 + $0x1d0] sm:$0xff] }
0x12e9   : > { %v13198_v10 = vpop.eup %13197 }
0x12ea   : > { %v5754_v43 = vmul.f32 %v5752_v48, %v5746_v47  ;;  %v15997_v14 = vadd.f32 %v5760_v60, %v5753_v53  ;;  %v5747_v44 = vmul.f32 %v13198_v10, %v15981_v5  ;;  %v3771_v5 = vld [vmem:[#allocation19 + $0x188] sm:$0xff]  ;;  %v3781_v47 = vld [vmem:[#allocation19 + $0x1d8] sm:$0xff] }
0x12eb   : > { %v13200_v62 = vpop.eup %13199  ;;  %v5931_v36 = vpack.c.bf16 %v3771_v5, %v3770_v6  ;;  %v5936_v53 = vpack.c.bf16 %v3781_v47, %v3780_v16  ;;  %v3765_v10 = vld [vmem:[#allocation19 + $0x158] sm:$0xff] }
0x12ec   : > { %v15999_v38 = vadd.f32 %v5760_v60, %v5754_v43  ;;  %v5748_v46 = vmul.f32 %v13200_v62, %v15985_v31  ;;  %v5755_v32 = vmul.f32 %v5752_v48, %v5747_v44  ;;  %v3754_v31 = vld [vmem:[#allocation19 + $0x100] sm:$0xff]  ;;  %v3783_v44 = vld [vmem:[#allocation19 + $0x1e8] sm:$0xff] }
0x12ed   : > { %v5923_v30 = vpack.c.bf16 %v3755_v19, %v3754_v31  ;;  %11346 = vmatprep.subr.bf16.mxu0 %v5931_v36  ;;  %v3782_v43 = vld [vmem:[#allocation19 + $0x1e0] sm:$0xff]  ;;  %v3768_v36 = vld [vmem:[#allocation19 + $0x170] sm:$0xff]  ;;  %v3769_v31 = vld [vmem:[#allocation19 + $0x178] sm:$0xff] }
0x12ee   : > { %v5765_v55 = vpack.c.bf16 %v15999_v38, %v15997_v14  ;;  %v5756_v8 = vmul.f32 %v5752_v48, %v5748_v46  ;;  %v16008_v2 = vadd.f32 %v5760_v60, %v5755_v32  ;;  %v3762_v48 = vld [vmem:[#allocation19 + $0x140] sm:$0xff]  ;;  %v3784_v32 = vld [vmem:[#allocation19 + $0x1f0] sm:$0xff]  ;;  %v5930_v19 = vpack.c.bf16 %v3769_v31, %v3768_v36 }
0x12ef   : > { %11347 = vmatpush3.bf16.msra.mxu0 %v5923_v30  ;;  %v5927_v34 = vpack.c.bf16 %v3763_v50, %v3762_v48  ;;  %v3766_v46 = vld [vmem:[#allocation19 + $0x160] sm:$0xff]  ;;  %v3752_v30 = vld [vmem:[#allocation17 + $0x2] sm:$0x3] }
0x12f0   : > { %5827 = vmatmul.mubr.bf16.vlgmr.msra.gmra.mrb[112].mxu1 %v5765_v55  ;;  %v16006_v7 = vadd.f32 %v5760_v60, %v5756_v8  ;;  %11348 = vmatprep.subr.bf16.mxu0 %v5932_v61  ;;  %v3764_v60 = vld [vmem:[#allocation19 + $0x150] sm:$0xff]  ;;  %v3767_v55 = vld [vmem:[#allocation19 + $0x168] sm:$0xff]  ;;  %v5937_v8 = vpack.c.bf16 %v3783_v44, %v3782_v43  ;;  %v5787_v1 = vrot.slane %v3752_v30, %v14953_v20 }
0x12f1   : > { %5836 = vmatprep.mubr.bf16.mxu1 %v17353_v0  ;;  %v5928_v62 = vpack.c.bf16 %v3765_v10, %v3764_v60  ;;  %v5929_v6 = vpack.c.bf16 %v3767_v55, %v3766_v46  ;;  %v5791_v45 = vrot.slane %v3752_v30, %v14956_v21 }
0x12f2   : > { %v5766_v37 = vpack.c.bf16 %v16006_v7, %v16008_v2 }
0x12f3   : > { %11349 = vmatpush3.bf16.msra.mxu0 %v5924_v9 }
0x12f4   : > { %11350 = vmatprep.subr.bf16.mxu0 %v5933_v56 }
0x12f7   : > { %11351 = vmatpush3.bf16.msra.mxu0 %v5925_v29 }
0x12f8   : > { %5837 = vmatmul.mubr.bf16.gmra.mrb[116].mxu1 %v5766_v37  ;;  %11352 = vmatprep.subr.bf16.mxu0 %v5934_v39  ;;  %v3785_v37 = vld [vmem:[#allocation19 + $0x1f8] sm:$0xff] }
0x12f9   : > { %v5938_v5 = vpack.c.bf16 %v3785_v37, %v3784_v32 }
0x12fb   : > { %11353 = vmatpush3.bf16.msra.mxu0 %v5926_v52 }
0x12fc   : > { %11354 = vmatprep.subr.bf16.mxu0 %v5935_v22 }
0x12ff   : > { %11355 = vmatpush3.bf16.msra.mxu0 %v5927_v34 }
0x1300   : > { %11356 = vmatprep.subr.bf16.mxu0 %v5936_v53 }
0x1303   : > { %11357 = vmatpush3.bf16.msra.mxu0 %v5928_v62 }
0x1304   : > { %11358 = vmatprep.subr.bf16.mxu0 %v5937_v8 }
0x1307   : > { %11359 = vmatpush3.bf16.msra.mxu0 %v5929_v6 }
0x1308   : > { %11360 = vmatprep.subr.bf16.mxu0 %v5938_v5 }
0x130b   : > { %11361 = vmatpush3.bf16.msra.mxu0 %v5930_v19 }
0x13c3   : > { %v5828_v61 = vpop.f32.mrb[112].mxu1 }
0x13c4   : > { %v16014_v51 = vadd.f32 %v5828_v61, %v5787_v1  ;;  %v5830_v13 = vpop.f32.mrb[113].mxu1 }
0x13c5   : > { %v16016_v9 = vadd.f32 %v5830_v13, %v5791_v45  ;;  %v5832_v26 = vpop.f32.mrb[114].mxu1 }
0x13c6   : > { %v5847_v18 = vmul.f32 %v16014_v51, %v16014_v51  ;;  %v16020_v56 = vadd.f32 %v5832_v26, %v5787_v1  ;;  %v5834_v35 = vpop.f32.mrb[115].mxu1 }
0x13c7   : > { %v5848_v4 = vmul.f32 %v16016_v9, %v16016_v9  ;;  %v16024_v29 = vadd.f32 %v5834_v35, %v5791_v45 }
0x13c8   : > { %v5855_v28 = vmul.f32 %v5847_v18, %v16014_v51  ;;  %v5849_v27 = vmul.f32 %v16020_v56, %v16020_v56 }
0x13c9   : > { %v5856_v39 = vmul.f32 %v5848_v4, %v16016_v9  ;;  %v5850_v12 = vmul.f32 %v16024_v29, %v16024_v29 }
0x13ca   : > { %v5863_v11 = vmul.f32 0.044715, %v5855_v28  ;;  %v5857_v52 = vmul.f32 %v5849_v27, %v16020_v56 }
0x13cb   : > { %v5864_v54 = vmul.f32 0.044715, %v5856_v39  ;;  %v5858_v40 = vmul.f32 %v5850_v12, %v16024_v29  ;;  %v5838_v22 = vpop.f32.mrb[116].mxu1 }
0x13cc   : > { %v5871_v48 = vadd.f32 %v5863_v11, %v16014_v51  ;;  %v5865_v50 = vmul.f32 0.044715, %v5857_v52  ;;  %v16035_v34 = vadd.f32 %v5838_v22, %v5787_v1  ;;  %v5840_v16 = vpop.f32.mrb[117].mxu1 }
0x13cd   : > { %v5872_v47 = vadd.f32 %v5864_v54, %v16016_v9  ;;  %v5866_v53 = vmul.f32 0.044715, %v5858_v40  ;;  %v16038_v60 = vadd.f32 %v5840_v16, %v5791_v45  ;;  %v5842_v10 = vpop.f32.mrb[118].mxu1 }
0x13ce   : > { %v5879_v43 = vmul.f32 0.7978846, %v5871_v48  ;;  %v5873_v62 = vadd.f32 %v5865_v50, %v16020_v56  ;;  %v5851_v44 = vmul.f32 %v16035_v34, %v16035_v34  ;;  %v16043_v46 = vadd.f32 %v5842_v10, %v5787_v1  ;;  %v5844_v55 = vpop.f32.mrb[119].mxu1 }
0x13cf   : > { %v5880_v8 = vmul.f32 0.7978846, %v5872_v47  ;;  %v5874_v32 = vadd.f32 %v5866_v53, %v16024_v29  ;;  %v5852_v37 = vmul.f32 %v16038_v60, %v16038_v60  ;;  %v16048_v6 = vadd.f32 %v5844_v55, %v5791_v45 }
0x13d0   : > { %13201 = vtanh.f32 %v5879_v43  ;;  %v5881_v5 = vmul.f32 0.7978846, %v5873_v62  ;;  %v5859_v36 = vmul.f32 %v5851_v44, %v16035_v34  ;;  %v5853_v31 = vmul.f32 %v16043_v46, %v16043_v46 }
0x13d1   : > { %13203 = vtanh.f32 %v5880_v8  ;;  %v5882_v19 = vmul.f32 0.7978846, %v5874_v32  ;;  %v5860_v30 = vmul.f32 %v5852_v37, %v16038_v60  ;;  %v5854_v1 = vmul.f32 %v16048_v6, %v16048_v6 }
0x13d2   : > { %13205 = vtanh.f32 %v5881_v5  ;;  %v5867_v61 = vmul.f32 0.044715, %v5859_v36  ;;  %v5861_v13 = vmul.f32 %v5853_v31, %v16043_v46 }
0x13d3   : > { %13207 = vtanh.f32 %v5882_v19  ;;  %v5868_v45 = vmul.f32 0.044715, %v5860_v30  ;;  %v5862_v26 = vmul.f32 %v5854_v1, %v16048_v6 }
0x13d4   : > { %v5875_v18 = vadd.f32 %v5867_v61, %v16035_v34  ;;  %v5869_v35 = vmul.f32 0.044715, %v5861_v13 }
0x13d5   : > { %v5876_v4 = vadd.f32 %v5868_v45, %v16038_v60  ;;  %v5870_v28 = vmul.f32 0.044715, %v5862_v26 }
0x13d6   : > { %v5883_v27 = vmul.f32 0.7978846, %v5875_v18  ;;  %v5877_v39 = vadd.f32 %v5869_v35, %v16043_v46 }
0x13d7   : > { %v5884_v12 = vmul.f32 0.7978846, %v5876_v4  ;;  %v5878_v11 = vadd.f32 %v5870_v28, %v16048_v6 }
0x13d8   : > { %13209 = vtanh.f32 %v5883_v27  ;;  %v5885_v52 = vmul.f32 0.7978846, %v5877_v39 }
0x13d9   : > { %13211 = vtanh.f32 %v5884_v12  ;;  %v5886_v54 = vmul.f32 0.7978846, %v5878_v11 }
0x13da   : > { %v13202_v40 = vpop.eup %13201  ;;  %13213 = vtanh.f32 %v5885_v52  ;;  %v5942_v52 = vrot.slane %v15967_v3, %v15518_v59 }
0x13db   : > { %v13204_v22 = vpop.eup %13203  ;;  %v5895_v48 = vadd.f32 1.0, %v13202_v40  ;;  %13215 = vtanh.f32 %v5886_v54 }
0x13dc   : > { %v13206_v50 = vpop.eup %13205  ;;  %v5896_v16 = vadd.f32 1.0, %v13204_v22 }
0x13dd   : > { %v13208_v47 = vpop.eup %13207  ;;  %v5903_v53 = vmul.f32 0.5, %v5895_v48  ;;  %v5897_v10 = vadd.f32 1.0, %v13206_v50 }
0x13de   : > { %v5898_v43 = vadd.f32 1.0, %v13208_v47  ;;  %v5904_v62 = vmul.f32 0.5, %v5896_v16 }
0x13df   : > { %v5905_v44 = vmul.f32 0.5, %v5897_v10  ;;  %v5911_v8 = vmul.f32 %v5903_v53, %v16014_v51 }
0x13e0   : > { %v5906_v55 = vmul.f32 0.5, %v5898_v43  ;;  %v5912_v5 = vmul.f32 %v5904_v62, %v16016_v9 }
0x13e1   : > { %v5913_v32 = vmul.f32 %v5905_v44, %v16020_v56 }
0x13e2   : > { %v13210_v37 = vpop.eup %13209  ;;  %v5914_v36 = vmul.f32 %v5906_v55, %v16024_v29 }
0x13e3   : > { %v13212_v31 = vpop.eup %13211  ;;  %v5919_v19 = vpack.c.bf16 %v5913_v32, %v5911_v8  ;;  %v5899_v30 = vadd.f32 1.0, %v13210_v37 }
0x13e4   : > { %v13214_v1 = vpop.eup %13213  ;;  %v5920_v61 = vpack.c.bf16 %v5914_v36, %v5912_v5  ;;  %v5900_v13 = vadd.f32 1.0, %v13212_v31 }
0x13e5   : > { %v13216_v45 = vpop.eup %13215  ;;  %v5901_v26 = vadd.f32 1.0, %v13214_v1  ;;  %v5907_v18 = vmul.f32 0.5, %v5899_v30 }
0x13e6   : > { %5975 = vmatprep.mubr.bf16.mxu0 %v5920_v61  ;;  %v5902_v35 = vadd.f32 1.0, %v13216_v45  ;;  %v5908_v4 = vmul.f32 0.5, %v5900_v13 }
0x13e7   : > { %5976 = vmatmul.mubr.bf16.vlgmr.msra.gmra.mrb[104].mxu0 %v5919_v19  ;;  %v5909_v51 = vmul.f32 0.5, %v5901_v26  ;;  %v5915_v28 = vmul.f32 %v5907_v18, %v16035_v34 }
0x13e8   : > { %v5910_v56 = vmul.f32 0.5, %v5902_v35  ;;  %v5916_v29 = vmul.f32 %v5908_v4, %v16038_v60  ;;  %v6056_v35 = vld [vmem:[#allocation32] sm:$0xff]  ;;  %v6174_v4 = vld [vmem:[#allocation22 + $0x80] sm:$0xff] }
0x13e9   : > { %v5917_v9 = vmul.f32 %v5909_v51, %v16043_v46  ;;  %12160 = vmatprep.mubr.msk.f32.mxu1 %vm6060_vm0, %v6056_v35  ;;  %v6175_v51 = vld [vmem:[#allocation22 + $0x88] sm:$0xff] }
0x13ea   : > { %v5918_v27 = vmul.f32 %v5910_v56, %v16048_v6  ;;  %v6358_v56 = vpack.c.bf16 %v6175_v51, %v6174_v4 }
0x13eb   : > { %v5921_v39 = vpack.c.bf16 %v5917_v9, %v5915_v28  ;;  %v6176_v28 = vld [vmem:[#allocation22 + $0x90] sm:$0xff]  ;;  %v6177_v9 = vld [vmem:[#allocation22 + $0x98] sm:$0xff] }
0x13ec   : > { %v5922_v12 = vpack.c.bf16 %v5918_v27, %v5916_v29  ;;  %v6359_v29 = vpack.c.bf16 %v6177_v9, %v6176_v28  ;;  %12186 = vmatprep.subr.bf16.mxu0 %v6358_v56  ;;  %v6178_v27 = vld [vmem:[#allocation22 + $0xa0] sm:$0xff]  ;;  %v6159_v28 = vld [vmem:[#allocation22 + $0x8] sm:$0xff] }
0x13ed   : > { %12187 = vmatpush3.bf16.msra.mxu0 %v6358_v56 }
0x13ee   : > { %5983 = vmatprep.mubr.bf16.mxu0 %v5922_v12  ;;  %12188 = vmatprep.subr.bf16.mxu0 %v6359_v29 }
0x13ef   : > { %5984 = vmatmul.mubr.bf16.gmra.mrb[108].mxu0 %v5921_v39  ;;  %v6179_v39 = vld [vmem:[#allocation22 + $0xa8] sm:$0xff] }
0x13f0   : > { %v6360_v12 = vpack.c.bf16 %v6179_v39, %v6178_v27  ;;  %v6160_v39 = vld [vmem:[#allocation22 + $0x10] sm:$0xff] }
0x13f1   : > { %12189 = vmatpush3.bf16.msra.mxu0 %v6359_v29 }
0x13f2   : > { %12190 = vmatprep.subr.bf16.mxu0 %v6360_v12 }
0x13f5   : > { %12191 = vmatpush3.bf16.msra.mxu0 %v6360_v12  ;;  %v6161_v12 = vld [vmem:[#allocation22 + $0x18] sm:$0xff] }
0x14ba   : > { %v11362_v11 = vpop.f32.mrb[104].mxu0 }
0x14bb   : > { %v11363_v54 = vpop.f32.mrb[105].mxu0 }
0x14bc   : > { %v11364_v40 = vadd.f32 %v11363_v54, %v11362_v11  ;;  %v11365_v22 = vpop.f32.mrb[106].mxu0  ;;  %v6180_v11 = vld [vmem:[#allocation22 + $0xb0] sm:$0xff] }
0x14bd   : > { %v11366_v48 = vpop.f32.mrb[107].mxu0 }
0x14be   : > { %v5978_v50 = vadd.f32 %v11364_v40, %v5942_v52  ;;  %v11367_v34 = vadd.f32 %v11366_v48, %v11365_v22  ;;  %v6182_v40 = vld [vmem:[#allocation22 + $0xc0] sm:$0xff]  ;;  %v6183_v22 = vld [vmem:[#allocation22 + $0xc8] sm:$0xff] }
0x14bf   : > { %v6362_v48 = vpack.c.bf16 %v6183_v22, %v6182_v40  ;;  %v6163_v40 = vld [vmem:[#allocation22 + $0x28] sm:$0xff] }
0x14c0   : > { %v5981_v16 = vadd.f32 %v11367_v34, %v5942_v52  ;;  %v5992_v46 = vadd.f32 %v5978_v50, %v15997_v14  ;;  %v6184_v50 = vld [vmem:[#allocation22 + $0xd0] sm:$0xff]  ;;  %v6185_v34 = vld [vmem:[#allocation22 + $0xd8] sm:$0xff] }
0x14c2   : > { %5996 = vadd.xlane.f32.xlu1 %v5992_v46  ;;  %v11368_v60 = vpop.f32.mrb[108].mxu0  ;;  %v5993_v6 = vadd.f32 %v5981_v16, %v15999_v38  ;;  %v6363_v16 = vpack.c.bf16 %v6185_v34, %v6184_v50  ;;  %v6165_v50 = vld [vmem:[#allocation22 + $0x38] sm:$0xff] }
0x14c3   : > { %v11369_v47 = vpop.f32.mrb[109].mxu0 }
0x14c4   : > { %v11370_v53 = vadd.f32 %v11369_v47, %v11368_v60  ;;  %5998 = vadd.xlane.f32.xlu0 %v5993_v6  ;;  %v11371_v10 = vpop.f32.mrb[110].mxu0 }
0x14c5   : > { %v11372_v43 = vpop.f32.mrb[111].mxu0 }
0x14c6   : > { %v5986_v62 = vadd.f32 %v11370_v53, %v5942_v52  ;;  %v11373_v44 = vadd.f32 %v11372_v43, %v11371_v10 }
0x14c8   : > { %v5989_v55 = vadd.f32 %v11373_v44, %v5942_v52  ;;  %v5994_v8 = vadd.f32 %v5986_v62, %v16008_v2  ;;  %v6181_v52 = vld [vmem:[#allocation22 + $0xb8] sm:$0xff] }
0x14c9   : > { %v6361_v54 = vpack.c.bf16 %v6181_v52, %v6180_v11  ;;  %v6057_v11 = vld [vmem:[#allocation32 + $0x8] sm:$0xff]  ;;  %v6058_v52 = vld [vmem:[#allocation32 + $0x10] sm:$0xff] }
0x14ca   : > { %6000 = vadd.xlane.f32.xlu1 %v5994_v8  ;;  %v5995_v32 = vadd.f32 %v5989_v55, %v16006_v7 }
0x14cb   : > { %12192 = vmatprep.subr.bf16.mxu0 %v6361_v54 }
0x14cc   : > { %6002 = vadd.xlane.f32.xlu0 %v5995_v32  ;;  %12193 = vmatpush3.bf16.msra.mxu0 %v6361_v54  ;;  %v6162_v54 = vld [vmem:[#allocation22 + $0x20] sm:$0xff] }
0x14cd   : > { %12194 = vmatprep.subr.bf16.mxu0 %v6362_v48  ;;  %v6293_v22 = vpack.c.bf16 %v6163_v40, %v6162_v54  ;;  %v6202_v40 = vld [vmem:[#allocation22 + $0x160] sm:$0xff] }
0x14d0   : > { %12195 = vmatpush3.bf16.msra.mxu0 %v6362_v48  ;;  %v6164_v48 = vld [vmem:[#allocation22 + $0x30] sm:$0xff] }
0x14d1   : > { %12196 = vmatprep.subr.bf16.mxu0 %v6363_v16  ;;  %v6294_v34 = vpack.c.bf16 %v6165_v50, %v6164_v48  ;;  %v6204_v48 = vld [vmem:[#allocation22 + $0x170] sm:$0xff]  ;;  %v6205_v50 = vld [vmem:[#allocation22 + $0x178] sm:$0xff] }
0x14d4   : > { %12197 = vmatpush3.bf16.msra.mxu0 %v6363_v16  ;;  %v6166_v16 = vld [vmem:[#allocation22 + $0x40] sm:$0xff] }
0x154f   : > { %v5997_v37 = vpop.xlane.xlu1 %5996 }
0x1550   : > { %v6004_v14 = vmul.f32 0.0078125, %v5997_v37  ;;  %v6043_v37 = vrot.slane %v15967_v3, %v15544_v49 }
0x1551   : > { %v5999_v5 = vpop.xlane.xlu0 %5998 }
0x1552   : > { %v16076_v36 = vsub.f32 %v5992_v46, %v6004_v14  ;;  %v6005_v38 = vmul.f32 0.0078125, %v5999_v5 }
0x1554   : > { %v16078_v31 = vsub.f32 %v5993_v6, %v6005_v38  ;;  %v6012_v19 = vmul.f32 %v16076_v36, %v16076_v36 }
0x1556   : > { %6016 = vadd.xlane.f32.xlu1 %v6012_v19  ;;  %v6013_v30 = vmul.f32 %v16078_v31, %v16078_v31 }
0x1557   : > { %v6001_v2 = vpop.xlane.xlu1 %6000 }
0x1558   : > { %v6006_v1 = vmul.f32 0.0078125, %v6001_v2  ;;  %6018 = vadd.xlane.f32.xlu0 %v6013_v30  ;;  %v11021_v2 = vld [vmem:[#allocation20 + $0x18] ss:$0 sm:$0xff] }
0x1559   : > { %v6003_v7 = vpop.xlane.xlu0 %6002 }
0x155a   : > { %v16084_v61 = vsub.f32 %v5994_v8, %v6006_v1  ;;  %v6007_v13 = vmul.f32 0.0078125, %v6003_v7 }
0x155c   : > { %v16086_v45 = vsub.f32 %v5995_v32, %v6007_v13  ;;  %v6014_v26 = vmul.f32 %v16084_v61, %v16084_v61 }
0x155e   : > { %6020 = vadd.xlane.f32.xlu1 %v6014_v26  ;;  %v6015_v18 = vmul.f32 %v16086_v45, %v16086_v45 }
0x1560   : > { %6022 = vadd.xlane.f32.xlu0 %v6015_v18 }
0x15e3   : > { %v6017_v46 = vpop.xlane.xlu1 %6016 }
0x15e4   : > { %v6024_v60 = vmul.f32 0.0078125, %v6017_v46  ;;  %v6167_v46 = vld [vmem:[#allocation22 + $0x48] sm:$0xff] }
0x15e5   : > { %v6019_v6 = vpop.xlane.xlu0 %6018 }
0x15e6   : > { %v6028_v47 = vadd.f32 1e-05, %v6024_v60  ;;  %v6025_v53 = vmul.f32 0.0078125, %v6019_v6  ;;  %v6295_v60 = vpack.c.bf16 %v6167_v46, %v6166_v16  ;;  %v6168_v6 = vld [vmem:[#allocation22 + $0x50] sm:$0xff]  ;;  %v16120_v16 = vld [vmem:[#allocation28] sm:$0xff] }
0x15e7   : > { %v14156_v46 = vmov 1983009808  }
0x15e8   : > { %13217 = vrsqrt.f32 %v6028_v47  ;;  %v6029_v10 = vadd.f32 1e-05, %v6025_v53  ;;  %v6169_v47 = vld [vmem:[#allocation22 + $0x58] sm:$0xff] }
0x15e9   : > { %v6296_v53 = vpack.c.bf16 %v6169_v47, %v6168_v6  ;;  %v6302_v6 = vrot.slane %v16120_v16, %v14953_v20  ;;  %v6369_v47 = vrot.slane %v16120_v16, %v14956_v21 }
0x15ea   : > { %13219 = vrsqrt.f32 %v6029_v10  ;;  %v6170_v10 = vld [vmem:[#allocation22 + $0x60] sm:$0xff] }
0x15eb   : > { %v6021_v43 = vpop.xlane.xlu1 %6020 }
0x15ec   : > { %v6026_v62 = vmul.f32 0.0078125, %v6021_v43  ;;  %v6171_v43 = vld [vmem:[#allocation22 + $0x68] sm:$0xff] }
0x15ed   : > { %v6023_v44 = vpop.xlane.xlu0 %6022 }
0x15ee   : > { %v6030_v55 = vadd.f32 1e-05, %v6026_v62  ;;  %v6027_v8 = vmul.f32 0.0078125, %v6023_v44  ;;  %v6297_v62 = vpack.c.bf16 %v6171_v43, %v6170_v10  ;;  %v6186_v44 = vld [vmem:[#allocation22 + $0xe0] sm:$0xff] }
0x15f0   : > { %13221 = vrsqrt.f32 %v6030_v55  ;;  %v6031_v32 = vadd.f32 1e-05, %v6027_v8  ;;  %v6187_v55 = vld [vmem:[#allocation22 + $0xe8] sm:$0xff] }
0x15f1   : > { %v6364_v8 = vpack.c.bf16 %v6187_v55, %v6186_v44 }
0x15f2   : > { %v13218_v14 = vpop.eup %13217  ;;  %13223 = vrsqrt.f32 %v6031_v32  ;;  %v6172_v32 = vld [vmem:[#allocation22 + $0x70] sm:$0xff] }
0x15f3   : > { %v6036_v5 = vmul.f32 %v13218_v14, %v16076_v36  ;;  %v6158_v36 = vld [vmem:[#allocation22] sm:$0xff]  ;;  %12198 = vmatprep.subr.bf16.mxu0 %v6364_v8 }
0x15f4   : > { %v13220_v38 = vpop.eup %13219  ;;  %v6291_v27 = vpack.c.bf16 %v6159_v28, %v6158_v36  ;;  %12199 = vmatpush3.bf16.msra.mxu0 %v6364_v8  ;;  %v6194_v36 = vld [vmem:[#allocation22 + $0x120] sm:$0xff]  ;;  %v6195_v28 = vld [vmem:[#allocation22 + $0x128] sm:$0xff] }
0x15f5   : > { %v6037_v19 = vmul.f32 %v13220_v38, %v16078_v31  ;;  %v6044_v30 = vmul.f32 %v6043_v37, %v6036_v5  ;;  %v6188_v5 = vld [vmem:[#allocation22 + $0xf0] sm:$0xff]  ;;  %v6189_v38 = vld [vmem:[#allocation22 + $0xf8] sm:$0xff] }
0x15f7   : > { %v6045_v1 = vmul.f32 %v6043_v37, %v6037_v19  ;;  %v6052_v7 = vadd.f32 %v11021_v2, %v6044_v30  ;;  %v6365_v19 = vpack.c.bf16 %v6189_v38, %v6188_v5  ;;  %v6190_v30 = vld [vmem:[#allocation22 + $0x100] sm:$0xff] }
0x15f9   : > { %v6053_v13 = vadd.f32 %v11021_v2, %v6045_v1  ;;  %12200 = vmatprep.subr.bf16.mxu0 %v6365_v19 }
0x15fa   : > { %v13222_v26 = vpop.eup %13221  ;;  %12201 = vmatpush3.bf16.msra.mxu0 %v6365_v19 }
0x15fb   : > { %v12664_v18 = vpack.c.bf16 %v6053_v13, %v6052_v7  ;;  %v6038_v35 = vmul.f32 %v13222_v26, %v16084_v61  ;;  %v6292_v61 = vpack.c.bf16 %v6161_v12, %v6160_v39  ;;  %12226 = vmatprep.subr.bf16.mxu0 %v17363_v15  ;;  %v6198_v39 = vld [vmem:[#allocation22 + $0x140] sm:$0xff]  ;;  %v6199_v12 = vld [vmem:[#allocation22 + $0x148] sm:$0xff] }
0x15fc   : > { %v13224_v4 = vpop.eup %13223 }
0x15fd   : > { %12665 = vmatprep.subr.bf16.mxu1 %v12664_v18  ;;  %v6039_v3 = vmul.f32 %v13224_v4, %v16086_v45  ;;  %v6046_v51 = vmul.f32 %v6043_v37, %v6038_v35  ;;  %v6059_v45 = vld [vmem:[#allocation32 + $0x18] sm:$0xff]  ;;  %v6193_v35 = vld [vmem:[#allocation22 + $0x118] sm:$0xff] }
0x15fe   : > { %12667 = vmatpush3.bf16.msra.mxu1 %v12664_v18  ;;  %v6192_v18 = vld [vmem:[#allocation22 + $0x110] sm:$0xff] }
0x15ff   : > { %v6047_v56 = vmul.f32 %v6043_v37, %v6039_v3  ;;  %v6054_v9 = vadd.f32 %v11021_v2, %v6046_v51  ;;  %v6173_v37 = vld [vmem:[#allocation22 + $0x78] sm:$0xff] }
0x1600   : > { %v6298_v14 = vpack.c.bf16 %v6173_v37, %v6172_v32 }
0x1601   : > { %v6055_v31 = vadd.f32 %v11021_v2, %v6047_v56  ;;  %v6191_v2 = vld [vmem:[#allocation22 + $0x108] sm:$0xff]  ;;  %v6422_v56 = vpack.c.bf16 %v6193_v35, %v6192_v18 }
0x1602   : > { %v6421_v1 = vpack.c.bf16 %v6191_v2, %v6190_v30 }
0x1603   : > { %v12668_v29 = vpack.c.bf16 %v6055_v31, %v6054_v9  ;;  %v6423_v9 = vpack.c.bf16 %v6195_v28, %v6194_v36  ;;  %v6196_v31 = vld [vmem:[#allocation22 + $0x130] sm:$0xff] }
0x1605   : > { %12669 = vmatprep.subr.bf16.mxu1 %v12668_v29 }
0x1606   : > { %12671 = vmatpush3.bf16.msra.mxu1 %v12668_v29  ;;  %v6197_v29 = vld [vmem:[#allocation22 + $0x138] sm:$0xff] }
0x1607   : > { %12166 = vmatprep.subr.bf16.mxu1 %v6291_v27 }
0x1609   : > { %12161 = vmatmul.mubr.msk.f32.vlgmr.msra.gmra.mrb[120].mxu1 %vm6060_vm0, %v6057_v11  ;;  %v6425_v11 = vpack.c.bf16 %v6199_v12, %v6198_v39 }
0x160a   : > { %12163 = vmatprep.mubr.msk.f32.mxu1 %vm6060_vm0, %v6058_v52  ;;  %12167 = vmatpush3.bf16.msra.mxu1 %v6291_v27  ;;  %v6424_v27 = vpack.c.bf16 %v6197_v29, %v6196_v31  ;;  %v6200_v52 = vld [vmem:[#allocation22 + $0x150] sm:$0xff] }
0x160b   : > { %12168 = vmatprep.subr.bf16.mxu1 %v6292_v61 }
0x160d   : > { %12164 = vmatmul.mubr.msk.f32.gmra.mrb[122].mxu1 %vm6060_vm0, %v6059_v45  ;;  %v6203_v45 = vld [vmem:[#allocation22 + $0x168] sm:$0xff] }
0x160e   : > { %12169 = vmatpush3.bf16.msra.mxu1 %v6292_v61  ;;  %v6201_v61 = vld [vmem:[#allocation22 + $0x158] sm:$0xff] }
0x160f   : > { %12170 = vmatprep.subr.bf16.mxu1 %v6293_v22  ;;  %v6426_v54 = vpack.c.bf16 %v6201_v61, %v6200_v52 }
0x1612   : > { %12171 = vmatpush3.bf16.msra.mxu1 %v6293_v22  ;;  %v6427_v22 = vpack.c.bf16 %v6203_v45, %v6202_v40 }
0x1613   : > { %12172 = vmatprep.subr.bf16.mxu1 %v6294_v34 }
0x1616   : > { %12173 = vmatpush3.bf16.msra.mxu1 %v6294_v34  ;;  %v6428_v34 = vpack.c.bf16 %v6205_v50, %v6204_v48 }
0x1617   : > { %12174 = vmatprep.subr.bf16.mxu1 %v6295_v60 }
0x161a   : > { %12175 = vmatpush3.bf16.msra.mxu1 %v6295_v60  ;;  %v6488_v60 = vunpack.c.l.s4 %v14156_v46 }
0x161b   : > { %12176 = vmatprep.subr.bf16.mxu1 %v6296_v53 }
0x161c   : > { %v6489_v43 = vunpack.c.0.s8 %v6488_v60 }
0x161e   : > { %12177 = vmatpush3.bf16.msra.mxu1 %v6296_v53 }
0x161f   : > { %12178 = vmatprep.subr.bf16.mxu1 %v6297_v62 }
0x1622   : > { %12179 = vmatpush3.bf16.msra.mxu1 %v6297_v62 }
0x1623   : > { %12180 = vmatprep.subr.bf16.mxu1 %v6298_v14 }
0x1626   : > { %12181 = vmatpush3.bf16.msra.mxu1 %v6298_v14 }
0x1627   : > { %12206 = vmatprep.subr.bf16.mxu1 %v6421_v1 }
0x16dc   : > { %v16103_v7 = vpop.f32.mrb[120].mxu1 }
0x16dd   : > { %17468 = vst [vmem:[#allocation64_spill] sm:$0xff] %v16103_v7  ;;  %v16105_v13 = vpop.f32.mrb[121].mxu1 }
0x16de   : > { %17469 = vst [vmem:[#allocation65_spill] sm:$0xff] %v16105_v13  ;;  %v6289_v26 = vpack.c.bf16 %v16103_v7, %v16105_v13 }
0x16e0   : > { %v16109_v4 = vpop.f32.mrb[122].mxu1  ;;  %12182 = vmatprep.mubr.bf16.mxu1 %v6289_v26  ;;  %12202 = vmatprep.mubr.bf16.mxu0 %v6289_v26 }
0x16e1   : > { %17470 = vst [vmem:[#allocation66_spill] sm:$0xff] %v16109_v4  ;;  %v16111_v3 = vpop.f32.mrb[123].mxu1 }
0x16e2   : > { %17471 = vst [vmem:[#allocation67_spill] sm:$0xff] %v16111_v3  ;;  %v6290_v51 = vpack.c.bf16 %v16109_v4, %v16111_v3 }
0x16e4   : > { %12183 = vmatmul.mubr.bf16.vlgmr.msra.gmra.mrb[124].mxu1 %v6290_v51  ;;  %12203 = vmatmul.mubr.bf16.vlgmr.msra.gmra.mrb[112].mxu0 %v6290_v51 }
0x16e5   : > { %12207 = vmatpush3.bf16.msra.mxu1 %v6421_v1  ;;  %12222 = vmatprep.mubr.bf16.mxu1 %v6289_v26  ;;  %v16127_v1 = vsub.s32 %v6489_v43, %v14950_v17 }
0x16e6   : > { %12208 = vmatprep.subr.bf16.mxu1 %v6422_v56  ;;  %12228 = vmatprep.mubr.msk.bf16.mxu0 %vm14155_vm11, %v17363_v15 }
0x16e9   : > { %12209 = vmatpush3.bf16.msra.mxu1 %v6422_v56 }
0x16ea   : > { %12210 = vmatprep.subr.bf16.mxu1 %v6423_v9 }
0x16ed   : > { %12211 = vmatpush3.bf16.msra.mxu1 %v6423_v9 }
0x16ee   : > { %12212 = vmatprep.subr.bf16.mxu1 %v6424_v27 }
0x16f1   : > { %12213 = vmatpush3.bf16.msra.mxu1 %v6424_v27 }
0x16f2   : > { %12214 = vmatprep.subr.bf16.mxu1 %v6425_v11 }
0x16f5   : > { %12215 = vmatpush3.bf16.msra.mxu1 %v6425_v11 }
0x16f6   : > { %12216 = vmatprep.subr.bf16.mxu1 %v6426_v54 }
0x16f9   : > { %12217 = vmatpush3.bf16.msra.mxu1 %v6426_v54 }
0x16fa   : > { %12218 = vmatprep.subr.bf16.mxu1 %v6427_v22 }
0x16fd   : > { %12219 = vmatpush3.bf16.msra.mxu1 %v6427_v22 }
0x16fe   : > { %12220 = vmatprep.subr.bf16.mxu1 %v6428_v34 }
0x1701   : > { %12221 = vmatpush3.bf16.msra.mxu1 %v6428_v34 }
0x1702   : > { %12244 = vmatprep.subr.bf16.mxu1 %v17363_v15 }
0x1704   : > { %12223 = vmatmul.mubr.bf16.vlgmr.msra.gmra.mrb[128].mxu1 %v6290_v51 }
0x1705   : > { %12246 = vmatprep.mubr.msk.bf16.mxu1 %vm14155_vm11, %v17363_v15 }
0x17b7   : > { %v12184_v53 = vpop.f32.mrb[124].mxu1  ;;  %v12204_v10 = vpop.f32.mrb[112].mxu0 }
0x17b8   : > { %v6346_v62 = vadd.f32 %v12184_v53, %v6302_v6  ;;  %v6337_v44 = vpop.f32.mrb[125].mxu1  ;;  %v6404_v55 = vpop.f32.mrb[113].mxu0  ;;  %v6413_v14 = vadd.f32 %v12204_v10, %v6369_v47 }
0x17b9   : > { %v6338_v8 = vadd.f32 %v6337_v44, %v6302_v6  ;;  %v12185_v32 = vpop.f32.mrb[126].mxu1  ;;  %v12205_v37 = vpop.f32.mrb[114].mxu0  ;;  %v6405_v2 = vadd.f32 %v6404_v55, %v6369_v47 }
0x17ba   : > { %v6349_v5 = vadd.f32 %v12185_v32, %v6302_v6  ;;  %v6416_v38 = vadd.f32 %v12205_v37, %v6369_v47  ;;  %v6340_v19 = vpop.f32.mrb[127].mxu1  ;;  %v6407_v30 = vpop.f32.mrb[115].mxu0  ;;  %v6354_v35 = vmul.f32 0.17677669, %v6346_v62 }
0x17bb   : > { %v6341_v26 = vadd.f32 %v6340_v19, %v6302_v6  ;;  %v6408_v18 = vadd.f32 %v6407_v30, %v6369_v47  ;;  %v6352_v36 = vmul.f32 0.17677669, %v6338_v8  ;;  %v6432_v8 = vrot.slane %v16120_v16, %v14959_v23 }
0x17bc   : > { %v6355_v51 = vmul.f32 0.17677669, %v6349_v5  ;;  %v6420_v56 = vpack.c.bf16 %v6416_v38, %v6413_v14  ;;  %v11029_v46 = vpack.c.bf16 %v6416_v38, %v6416_v38 }
0x17bd   : > { %v6353_v28 = vmul.f32 0.17677669, %v6341_v26  ;;  %v6419_v9 = vpack.c.bf16 %v6408_v18, %v6405_v2  ;;  %v11028_v31 = vpack.c.bf16 %v6408_v18, %v6408_v18 }
0x17be   : > { %v6357_v29 = vpack.c.bf16 %v6355_v51, %v6354_v35  ;;  %v16154_v45 = vrot.slane %v6420_v56, %v16127_v1  ;;  %v11027_v47 = vpack.c.bf16 %v6355_v51, %v6355_v51  ;;  %v16188_v10 = vrot.slane %v11029_v46, %v16127_v1 }
0x17bf   : > { %v6356_v27 = vpack.c.bf16 %v6353_v28, %v6352_v36  ;;  %v11026_v39 = vpack.c.bf16 %v6353_v28, %v6353_v28  ;;  %v16130_v12 = vrot.slane %v6419_v9, %v16127_v1  ;;  %v16133_v11 = vrot.slane %v11028_v31, %v16127_v1 }
0x17c0   : > { %v16163_v50 = vrot.slane %v6357_v29, %v16127_v1  ;;  %v16170_v60 = vcombine.high %v16154_v45, %v16154_v45  ;;  %v16193_v62 = vrot.slane %v11027_v47, %v16127_v1  ;;  %v16200_v55 = vcombine.high %v16188_v10, %v16188_v10 }
0x17c1   : > { %v16136_v52 = vrot.slane %v11026_v39, %v16127_v1  ;;  %12227 = vmatpush3.bf16.xpose.msra.mxu0 %v16130_v12  ;;  %v16141_v61 = vcombine.high %v16133_v11, %v16133_v11  ;;  %v16144_v54 = vrot.slane %v6356_v27, %v16127_v1  ;;  %v16160_v48 = vcombine.high %v16130_v12, %v16130_v12 }
0x17c2   : > { %12232 = vmatprep.subr.bf16.mxu0 %v17363_v15  ;;  %v16184_v53 = vcombine.high %v16163_v50, %v16163_v50  ;;  %v16212_v32 = vcombine.high %v16193_v62, %v16193_v62  ;;  %v6620_v9 = vmul.bf16 %v16163_v50, %v14997_v41 }
0x17c3   : > { %12245 = vmatpush3.bf16.xpose.msra.mxu1 %v16141_v61  ;;  %v16150_v40 = vcombine.high %v16136_v52, %v16136_v52  ;;  %v6616_v22 = vmul.bf16 %v16144_v54, %v14997_v41  ;;  %v16176_v6 = vcombine.high %v16144_v54, %v16144_v54  ;;  %v6618_v37 = vmul.bf16 %v16136_v52, %v14997_v41 }
0x17c4   : > { %12256 = vmatprep.subr.bf16.mxu1 %v17363_v15  ;;  %v6621_v44 = vmul.bf16 %v16184_v53, %v14997_v41  ;;  %v6623_v19 = vmul.bf16 %v16212_v32, %v14997_v41 }
0x17c5   : > { %v6619_v34 = vmul.bf16 %v16150_v40, %v14997_v41  ;;  %v6617_v43 = vmul.bf16 %v16176_v6, %v14997_v41  ;;  %v6625_v27 = vmul.bf16 %v16176_v6, %v14999_v42 }
0x17c8   : > { %12229 = vmatmul.mubr.bf16.vlgmr.msra.gmra.mrb[116].mxu0 %v6616_v22 }
0x17c9   : > { %12233 = vmatpush3.bf16.xpose.msra.mxu0 %v16160_v48  ;;  %12234 = vmatprep.mubr.msk.bf16.mxu0 %vm14155_vm11, %v17363_v15 }
0x17ca   : > { %12247 = vmatmul.mubr.bf16.vlgmr.msra.gmra.mrb[132].mxu1 %v6619_v34  ;;  %12238 = vmatprep.subr.bf16.mxu0 %v17363_v15 }
0x17cb   : > { %12257 = vmatpush3.bf16.xpose.msra.mxu1 %v16170_v60  ;;  %12258 = vmatprep.mubr.msk.bf16.mxu1 %vm14155_vm11, %v17363_v15 }
0x17cc   : > { %12268 = vmatprep.subr.bf16.mxu1 %v17363_v15 }
0x17d0   : > { %12235 = vmatmul.mubr.bf16.vlgmr.msra.gmra.mrb[120].mxu0 %v6617_v43 }
0x17d1   : > { %12239 = vmatpush3.bf16.xpose.msra.mxu0 %v16133_v11  ;;  %12240 = vmatprep.mubr.msk.bf16.mxu0 %vm14155_vm11, %v17363_v15 }
0x17d2   : > { %12259 = vmatmul.mubr.bf16.vlgmr.msra.gmra.mrb[136].mxu1 %v6621_v44  ;;  %12250 = vmatprep.subr.bf16.mxu0 %v17363_v15 }
0x17d3   : > { %12269 = vmatpush3.bf16.xpose.msra.mxu1 %v16200_v55  ;;  %12270 = vmatprep.mubr.msk.bf16.mxu1 %vm14155_vm11, %v17363_v15 }
0x17d4   : > { %12280 = vmatprep.subr.bf16.mxu1 %v17363_v15 }
0x17d7   : > { %v12224_v14 = vpop.f32.mrb[128].mxu1 }
0x17d8   : > { %v6476_v5 = vadd.f32 %v12224_v14, %v6432_v8  ;;  %v6467_v38 = vpop.f32.mrb[129].mxu1  ;;  %12241 = vmatmul.mubr.bf16.vlgmr.msra.gmra.mrb[124].mxu0 %v6618_v37  ;;  %v6622_v14 = vmul.bf16 %v16193_v62, %v14997_v41 }
0x17d9   : > { %v12225_v30 = vpop.f32.mrb[130].mxu1  ;;  %12251 = vmatpush3.bf16.xpose.msra.mxu0 %v16154_v45  ;;  %12252 = vmatprep.mubr.msk.bf16.mxu0 %vm14155_vm11, %v17363_v15  ;;  %v6468_v2 = vadd.f32 %v6467_v38, %v6432_v8 }
0x17da   : > { %v6479_v23 = vadd.f32 %v12225_v30, %v6432_v8  ;;  %v6470_v16 = vpop.f32.mrb[131].mxu1  ;;  %12271 = vmatmul.mubr.bf16.vlgmr.msra.gmra.mrb[140].mxu1 %v6623_v19  ;;  %12262 = vmatprep.subr.bf16.mxu0 %v17363_v15 }
0x17db   : > { %v6471_v26 = vadd.f32 %v6470_v16, %v6432_v8  ;;  %12281 = vmatpush3.bf16.xpose.msra.mxu1 %v16160_v48  ;;  %12282 = vmatprep.mubr.msk.bf16.mxu1 %vm14155_vm11, %v17363_v15 }
0x17dc   : > { %v6483_v18 = vpack.c.bf16 %v6479_v23, %v6476_v5  ;;  %v11031_v35 = vpack.c.bf16 %v6479_v23, %v6479_v23  ;;  %12292 = vmatprep.subr.bf16.mxu1 %v17363_v15  ;;  %v6624_v5 = vmul.bf16 %v16144_v54, %v14999_v42 }
0x17dd   : > { %v6482_v51 = vpack.c.bf16 %v6471_v26, %v6468_v2  ;;  %v11030_v56 = vpack.c.bf16 %v6471_v26, %v6471_v26  ;;  %v6627_v26 = vmul.bf16 %v16150_v40, %v14999_v42 }
0x17de   : > { %v16228_v36 = vrot.slane %v6483_v18, %v16127_v1  ;;  %v16231_v28 = vrot.slane %v11031_v35, %v16127_v1 }
0x17df   : > { %v16236_v31 = vrot.slane %v6482_v51, %v16127_v1  ;;  %v16239_v29 = vrot.slane %v11030_v56, %v16127_v1 }
0x17e0   : > { %12253 = vmatmul.mubr.bf16.vlgmr.msra.gmra.mrb[128].mxu0 %v6620_v9  ;;  %v16245_v39 = vcombine.high %v16228_v36, %v16228_v36  ;;  %v6652_v22 = vmul.bf16 %v16228_v36, %v14997_v41  ;;  %v16251_v34 = vcombine.high %v16231_v28, %v16231_v28  ;;  %v6654_v1 = vmul.bf16 %v16231_v28, %v14997_v41 }
0x17e1   : > { %12263 = vmatpush3.bf16.xpose.msra.mxu0 %v16188_v10  ;;  %12264 = vmatprep.mubr.msk.bf16.mxu0 %vm14155_vm11, %v17363_v15  ;;  %v16260_v46 = vcombine.high %v16236_v31, %v16236_v31  ;;  %v6650_v47 = vmul.bf16 %v16239_v29, %v14997_v41  ;;  %v16267_v43 = vcombine.high %v16239_v29, %v16239_v29 }
0x17e2   : > { %12283 = vmatmul.mubr.bf16.vlgmr.msra.gmra.mrb[144].mxu1 %v6625_v27  ;;  %12274 = vmatprep.subr.bf16.mxu0 %v17363_v15  ;;  %v6653_v44 = vmul.bf16 %v16245_v39, %v14997_v41  ;;  %v16272_v8 = vsel %vm8349_vm2, %v6652_v22, 0  ;;  %v6655_v37 = vmul.bf16 %v16251_v34, %v14997_v41  ;;  %v16287_v19 = vsel %vm8349_vm2, %v6654_v1, 0 }
0x17e3   : > { %12293 = vmatpush3.bf16.xpose.msra.mxu1 %v16141_v61  ;;  %12294 = vmatprep.mubr.msk.bf16.mxu1 %vm14155_vm11, %v17363_v15  ;;  %v16284_v38 = vsel %vm8349_vm2, %v6650_v47, 0  ;;  %v6651_v30 = vmul.bf16 %v16267_v43, %v14997_v41  ;;  %v6657_v2 = vmul.bf16 %v16260_v46, %v14999_v42  ;;  %v6656_v18 = vmul.bf16 %v16236_v31, %v14999_v42 }
0x17e4   : > { %12304 = vmatprep.subr.bf16.mxu1 %v17363_v15  ;;  %v16293_v23 = vsel %vm8349_vm2, %v6653_v44, 0  ;;  %v16296_v16 = vsel %vm8349_vm2, %v6655_v37, 0  ;;  %v6658_v35 = vmul.bf16 %v16239_v29, %v14999_v42  ;;  %v6659_v51 = vmul.bf16 %v16267_v43, %v14999_v42 }
0x17e5   : > { %v16309_v56 = vsel %vm8349_vm2, %v6651_v30, 0  ;;  %v16312_v9 = vsel %vm8349_vm2, %v6657_v2, 0  ;;  %v6660_v27 = vmul.bf16 %v16228_v36, %v14999_v42  ;;  %v6661_v22 = vmul.bf16 %v16245_v39, %v14999_v42 }
0x17e6   : > { %v16319_v1 = vsel %vm8349_vm2, %v6656_v18, 0  ;;  %v16322_v47 = vsel %vm8349_vm2, %v6658_v35, 0  ;;  %v16325_v44 = vsel %vm8349_vm2, %v6659_v51, 0  ;;  %v6662_v37 = vmul.bf16 %v16231_v28, %v14999_v42 }
0x17e7   : > { %v16330_v30 = vsel %vm8349_vm2, %v6660_v27, 0  ;;  %v16333_v2 = vsel %vm8349_vm2, %v6661_v22, 0  ;;  %v6663_v18 = vmul.bf16 %v16251_v34, %v14999_v42  ;;  %v6664_v35 = vmul.bf16 %v16236_v31, %v15036_v63 }
0x17e8   : > { %12265 = vmatmul.mubr.bf16.vlgmr.msra.gmra.mrb[132].mxu0 %v6622_v14  ;;  %v16343_v51 = vsel %vm8349_vm2, %v6662_v37, 0  ;;  %v6665_v14 = vmul.bf16 %v16260_v46, %v15036_v63  ;;  %v6666_v27 = vmul.bf16 %v16239_v29, %v15036_v63  ;;  %v6667_v22 = vmul.bf16 %v16267_v43, %v15036_v63 }
0x17e9   : > { %12275 = vmatpush3.bf16.xpose.msra.mxu0 %v16130_v12  ;;  %12276 = vmatprep.mubr.msk.bf16.mxu0 %vm14155_vm11, %v17363_v15  ;;  %v16353_v0 = vsel %vm8349_vm2, %v6663_v18, 0  ;;  %v16356_v17 = vsel %vm8349_vm2, %v6664_v35, 0  ;;  %v6668_v37 = vmul.bf16 %v16228_v36, %v15036_v63  ;;  %v6669_v24 = vmul.bf16 %v16245_v39, %v15036_v63 }
0x17ea   : > { %12295 = vmatmul.mubr.bf16.vlgmr.msra.gmra.mrb[148].mxu1 %v6627_v26  ;;  %12286 = vmatprep.subr.bf16.mxu0 %v17363_v15  ;;  %v16366_v26 = vsel %vm8349_vm2, %v6665_v14, 0  ;;  %v16369_v18 = vsel %vm8349_vm2, %v6666_v27, 0  ;;  %v16372_v35 = vsel %vm8349_vm2, %v6667_v22, 0  ;;  %v6670_v49 = vmul.bf16 %v16231_v28, %v15036_v63 }
0x17eb   : > { %12305 = vmatpush3.bf16.xpose.msra.mxu1 %v16170_v60  ;;  %12306 = vmatprep.mubr.msk.bf16.mxu1 %vm14155_vm11, %v17363_v15  ;;  %17472 = vst [vmem:[#allocation68_spill] sm:$0xff] %v16369_v18  ;;  %v16378_v59 = vsel %vm8349_vm2, %v6668_v37, 0  ;;  %v16381_v21 = vsel %vm8349_vm2, %v6669_v24, 0  ;;  %v6671_v14 = vmul.bf16 %v16251_v34, %v15036_v63  ;;  %v6672_v27 = vmul.bf16 %v16236_v31, %v15074_v25 }
0x17ec   : > { %12316 = vmatprep.subr.bf16.mxu1 %v17363_v15  ;;  %17473 = vst [vmem:[#allocation69_spill] sm:$0xff] %v16378_v59  ;;  %17474 = vst [vmem:[#allocation70_spill] sm:$0xff] %v16381_v21  ;;  %v16388_v22 = vsel %vm8349_vm2, %v6670_v49, 0  ;;  %v6673_v20 = vmul.bf16 %v16260_v46, %v15074_v25  ;;  %v6674_v15 = vmul.bf16 %v16239_v29, %v15074_v25 }
0x17ed   : > { %17475 = vst [vmem:[#allocation71_spill] sm:$0xff] %v16388_v22  ;;  %v6675_v37 = vmul.bf16 %v16267_v43, %v15074_v25  ;;  %v16397_v24 = vsel %vm8349_vm2, %v6671_v14, 0  ;;  %v16400_v58 = vsel %vm8349_vm2, %v6672_v27, 0  ;;  %v6677_v57 = vmul.bf16 %v16245_v39, %v15074_v25 }
0x17ee   : > { %17476 = vst [vmem:[#allocation72_spill] sm:$0xff] %v16397_v24  ;;  %17477 = vst [vmem:[#allocation73_spill] sm:$0xff] %v16400_v58  ;;  %v6676_v49 = vmul.bf16 %v16228_v36, %v15074_v25  ;;  %v16407_v7 = vsel %vm8349_vm2, %v6673_v20, 0  ;;  %v16410_v29 = vsel %vm8349_vm2, %v6674_v15, 0  ;;  %v6678_v14 = vmul.bf16 %v16231_v28, %v15074_v25 }
0x17ef   : > { %17478 = vst [vmem:[#allocation74_spill] sm:$0xff] %v16407_v7  ;;  %17479 = vst [vmem:[#allocation75_spill] sm:$0xff] %v16410_v29  ;;  %v16413_v43 = vsel %vm8349_vm2, %v6675_v37, 0  ;;  %v6629_v27 = vmul.bf16 %v16184_v53, %v14999_v42  ;;  %v16420_v39 = vsel %vm8349_vm2, %v6677_v57, 0  ;;  %v6679_v15 = vmul.bf16 %v16251_v34, %v15074_v25 }
0x17f0   : > { %17480 = vst [vmem:[#allocation76_spill] sm:$0xff] %v16413_v43  ;;  %12277 = vmatmul.mubr.bf16.vlgmr.msra.gmra.mrb[136].mxu0 %v6624_v5  ;;  %17481 = vst [vmem:[#allocation77_spill] sm:$0xff] %v16420_v39  ;;  %v16423_v36 = vsel %vm8349_vm2, %v6676_v49, 0  ;;  %v17483_v20 = vmov 0.0   ;;  %v16431_v28 = vsel %vm8349_vm2, %v6678_v14, 0  ;;  %v6626_v34 = vmul.bf16 %v16136_v52, %v14999_v42 }
0x17f1   : > { %17482 = vst [vmem:[#allocation78_spill] sm:$0xff] %v16423_v36  ;;  %12287 = vmatpush3.bf16.xpose.msra.mxu0 %v16133_v11  ;;  %12288 = vmatprep.mubr.msk.bf16.mxu0 %vm14155_vm11, %v17483_v20  ;;  %17484 = vst [vmem:[#allocation79_spill] sm:$0xff] %v16431_v28  ;;  %v16435_v57 = vsel %vm8349_vm2, %v6679_v15, 0  ;;  %v6631_v5 = vmul.bf16 %v16212_v32, %v14999_v42  ;;  %v6628_v37 = vmul.bf16 %v16163_v50, %v14999_v42 }
0x17f2   : > { %12307 = vmatmul.mubr.bf16.vlgmr.msra.gmra.mrb[152].mxu1 %v6629_v27  ;;  %12298 = vmatprep.subr.bf16.mxu0 %v17483_v20  ;;  %17485 = vst [vmem:[#allocation80_spill] sm:$0xff] %v16435_v57  ;;  %v6633_v49 = vmul.bf16 %v16176_v6, %v15036_v63  ;;  %v6630_v14 = vmul.bf16 %v16193_v62, %v14999_v42 }
0x17f3   : > { %12317 = vmatpush3.bf16.xpose.msra.mxu1 %v16200_v55  ;;  %12318 = vmatprep.mubr.msk.bf16.mxu1 %vm14155_vm11, %v17483_v20  ;;  %v6635_v27 = vmul.bf16 %v16150_v40, %v15036_v63  ;;  %v6632_v42 = vmul.bf16 %v16144_v54, %v15036_v63  ;;  %v6637_v15 = vmul.bf16 %v16184_v53, %v15036_v63 }
0x17f4   : > { %12328 = vmatprep.subr.bf16.mxu1 %v17483_v20 }
0x17f8   : > { %12289 = vmatmul.mubr.bf16.vlgmr.msra.gmra.mrb[140].mxu0 %v6626_v34  ;;  %v6634_v34 = vmul.bf16 %v16136_v52, %v15036_v63 }
0x17f9   : > { %12299 = vmatpush3.bf16.xpose.msra.mxu0 %v16154_v45  ;;  %12300 = vmatprep.mubr.msk.bf16.mxu0 %vm14155_vm11, %v17483_v20 }
0x17fa   : > { %12319 = vmatmul.mubr.bf16.vlgmr.msra.gmra.mrb[156].mxu1 %v6631_v5  ;;  %12310 = vmatprep.subr.bf16.mxu0 %v17483_v20  ;;  %v6639_v5 = vmul.bf16 %v16212_v32, %v15036_v63 }
0x17fb   : > { %12329 = vmatpush3.bf16.xpose.msra.mxu1 %v16160_v48  ;;  %12330 = vmatprep.mubr.msk.bf16.mxu1 %vm14155_vm11, %v17483_v20 }
0x17fc   : > { %12340 = vmatprep.subr.bf16.mxu1 %v17483_v20 }
0x1800   : > { %12301 = vmatmul.mubr.bf16.vlgmr.msra.gmra.mrb[144].mxu0 %v6628_v37  ;;  %v6636_v37 = vmul.bf16 %v16163_v50, %v15036_v63 }
0x1801   : > { %12311 = vmatpush3.bf16.xpose.msra.mxu0 %v16188_v10  ;;  %12312 = vmatprep.mubr.msk.bf16.mxu0 %vm14155_vm11, %v17483_v20 }
0x1802   : > { %12331 = vmatmul.mubr.bf16.vlgmr.msra.gmra.mrb[160].mxu1 %v6633_v49  ;;  %12322 = vmatprep.subr.bf16.mxu0 %v17483_v20  ;;  %v6641_v49 = vmul.bf16 %v16176_v6, %v15074_v25  ;;  %v6643_v6 = vmul.bf16 %v16150_v40, %v15074_v25 }
0x1803   : > { %12341 = vmatpush3.bf16.xpose.msra.mxu1 %v16141_v61  ;;  %12342 = vmatprep.mubr.msk.bf16.mxu1 %vm14155_vm11, %v17483_v20 }
0x1804   : > { %12352 = vmatprep.subr.bf16.mxu1 %v17483_v20 }
0x1808   : > { %12313 = vmatmul.mubr.bf16.vlgmr.msra.gmra.mrb[148].mxu0 %v6630_v14 }
0x1809   : > { %12323 = vmatpush3.bf16.xpose.msra.mxu0 %v16130_v12  ;;  %12324 = vmatprep.mubr.msk.bf16.mxu0 %vm14155_vm11, %v17483_v20 }
0x180a   : > { %12343 = vmatmul.mubr.bf16.vlgmr.msra.gmra.mrb[164].mxu1 %v6635_v27  ;;  %12334 = vmatprep.subr.bf16.mxu0 %v17483_v20 }
0x180b   : > { %12353 = vmatpush3.bf16.xpose.msra.mxu1 %v16170_v60  ;;  %12354 = vmatprep.mubr.msk.bf16.mxu1 %vm14155_vm11, %v17483_v20 }
0x180c   : > { %12364 = vmatprep.subr.bf16.mxu1 %v17483_v20 }
0x1810   : > { %12325 = vmatmul.mubr.bf16.vlgmr.msra.gmra.mrb[152].mxu0 %v6632_v42 }
0x1811   : > { %12335 = vmatpush3.bf16.xpose.msra.mxu0 %v16133_v11  ;;  %12336 = vmatprep.mubr.msk.bf16.mxu0 %vm14155_vm11, %v17483_v20 }
0x1812   : > { %12355 = vmatmul.mubr.bf16.vlgmr.msra.gmra.mrb[168].mxu1 %v6637_v15  ;;  %12346 = vmatprep.subr.bf16.mxu0 %v17483_v20 }
0x1813   : > { %12365 = vmatpush3.bf16.xpose.msra.mxu1 %v16200_v55  ;;  %12366 = vmatprep.mubr.msk.bf16.mxu1 %vm14155_vm11, %v17483_v20 }
0x1814   : > { %12376 = vmatprep.subr.bf16.mxu1 %v17483_v20 }
0x1818   : > { %12337 = vmatmul.mubr.bf16.vlgmr.msra.gmra.mrb[156].mxu0 %v6634_v34 }
0x1819   : > { %12347 = vmatpush3.bf16.xpose.msra.mxu0 %v16154_v45  ;;  %12348 = vmatprep.mubr.msk.bf16.mxu0 %vm14155_vm11, %v17483_v20 }
0x181a   : > { %12367 = vmatmul.mubr.bf16.vlgmr.msra.gmra.mrb[172].mxu1 %v6639_v5  ;;  %12358 = vmatprep.subr.bf16.mxu0 %v17483_v20 }
0x181b   : > { %12377 = vmatpush3.bf16.xpose.msra.mxu1 %v16160_v48  ;;  %12378 = vmatprep.mubr.msk.bf16.mxu1 %vm14155_vm11, %v17483_v20  ;;  %v6638_v48 = vmul.bf16 %v16193_v62, %v15036_v63  ;;  %v6640_v63 = vmul.bf16 %v16144_v54, %v15074_v25  ;;  %v6649_v54 = vmul.bf16 %v16260_v46, %v14997_v41 }
0x181c   : > { %12388 = vmatprep.subr.bf16.mxu1 %v17483_v20 }
0x181d   : > { %v8397_v40 = vsel %vm8349_vm2, %v6649_v54, 0 }
0x1820   : > { %12349 = vmatmul.mubr.bf16.vlgmr.msra.gmra.mrb[160].mxu0 %v6636_v37 }
0x1821   : > { %12359 = vmatpush3.bf16.xpose.msra.mxu0 %v16188_v10  ;;  %12360 = vmatprep.mubr.msk.bf16.mxu0 %vm14155_vm11, %v17483_v20 }
0x1822   : > { %12379 = vmatmul.mubr.bf16.vlgmr.msra.gmra.mrb[176].mxu1 %v6641_v49  ;;  %12370 = vmatprep.subr.bf16.mxu0 %v17483_v20 }
0x1823   : > { %12389 = vmatpush3.bf16.xpose.msra.mxu1 %v16141_v61  ;;  %12390 = vmatprep.mubr.msk.bf16.mxu1 %vm14155_vm11, %v17483_v20  ;;  %v6642_v61 = vmul.bf16 %v16136_v52, %v15074_v25  ;;  %v6644_v52 = vmul.bf16 %v16163_v50, %v15074_v25 }
0x1824   : > { %12400 = vmatprep.subr.bf16.mxu1 %v17483_v20 }
0x1828   : > { %12361 = vmatmul.mubr.bf16.vlgmr.msra.gmra.mrb[164].mxu0 %v6638_v48 }
0x1829   : > { %12371 = vmatpush3.bf16.xpose.msra.mxu0 %v16130_v12  ;;  %12372 = vmatprep.mubr.msk.bf16.mxu0 %vm14155_vm11, %v17483_v20  ;;  %v6645_v12 = vmul.bf16 %v16184_v53, %v15074_v25 }
0x182a   : > { %12391 = vmatmul.mubr.bf16.vlgmr.msra.gmra.mrb[180].mxu1 %v6643_v6  ;;  %12382 = vmatprep.subr.bf16.mxu0 %v17483_v20 }
0x182b   : > { %12401 = vmatpush3.bf16.xpose.msra.mxu1 %v16170_v60  ;;  %12402 = vmatprep.mubr.msk.bf16.mxu1 %vm14155_vm11, %v17483_v20  ;;  %v6646_v60 = vmul.bf16 %v16193_v62, %v15074_v25 }
0x182c   : > { %12412 = vmatprep.subr.bf16.mxu1 %v17483_v20 }
0x1830   : > { %12373 = vmatmul.mubr.bf16.vlgmr.msra.gmra.mrb[168].mxu0 %v6640_v63 }
0x1831   : > { %12383 = vmatpush3.bf16.xpose.msra.mxu0 %v16133_v11  ;;  %12384 = vmatprep.mubr.msk.bf16.mxu0 %vm14155_vm11, %v17483_v20  ;;  %v6647_v11 = vmul.bf16 %v16212_v32, %v15074_v25 }
0x1832   : > { %12403 = vmatmul.mubr.bf16.vlgmr.msra.gmra.mrb[184].mxu1 %v6645_v12  ;;  %12394 = vmatprep.subr.bf16.mxu0 %v17483_v20 }
0x1833   : > { %12413 = vmatpush3.bf16.xpose.msra.mxu1 %v16200_v55  ;;  %12414 = vmatprep.mubr.msk.bf16.mxu1 %vm14155_vm11, %v17483_v20 }
0x1834   : > { %12424 = vmatprep.subr.bf16.mxu1 %v17483_v20 }
0x1838   : > { %12385 = vmatmul.mubr.bf16.vlgmr.msra.gmra.mrb[172].mxu0 %v6642_v61 }
0x1839   : > { %12395 = vmatpush3.bf16.xpose.msra.mxu0 %v16154_v45  ;;  %12396 = vmatprep.mubr.msk.bf16.mxu0 %vm14155_vm11, %v17483_v20  ;;  %v6648_v45 = vmul.bf16 %v16236_v31, %v14997_v41 }
0x183a   : > { %12415 = vmatmul.mubr.bf16.vlgmr.msra.gmra.mrb[188].mxu1 %v6647_v11  ;;  %12406 = vmatprep.subr.bf16.mxu0 %v17483_v20 }
0x183b   : > { %12425 = vmatpush3.bf16.msra.mxu1 %v8397_v40  ;;  %12426 = vmatprep.mubr.msk.bf16.mxu1 %vm14155_vm11, %v17483_v20  ;;  %v8351_v53 = vsel %vm8349_vm2, %v6648_v45, 0 }
0x183c   : > { %12436 = vmatprep.subr.bf16.mxu1 %v17483_v20 }
0x1840   : > { %12397 = vmatmul.mubr.bf16.vlgmr.msra.gmra.mrb[176].mxu0 %v6644_v52 }
0x1841   : > { %12407 = vmatpush3.bf16.xpose.msra.mxu0 %v16188_v10  ;;  %12408 = vmatprep.mubr.msk.bf16.mxu0 %vm14155_vm11, %v17483_v20 }
0x1842   : > { %12418 = vmatprep.subr.bf16.mxu0 %v17483_v20 }
0x1848   : > { %12409 = vmatmul.mubr.bf16.vlgmr.msra.gmra.mrb[180].mxu0 %v6646_v60 }
0x1849   : > { %12419 = vmatpush3.bf16.msra.mxu0 %v8351_v53  ;;  %12420 = vmatprep.mubr.msk.bf16.mxu0 %vm14155_vm11, %v17483_v20 }
0x184a   : > { %12430 = vmatprep.subr.bf16.mxu0 %v17483_v20 }
0x189b   : > { %v16565_v50 = vpop.f32.mrb[116].mxu0 }
0x189c   : > { %v12230_v10 = vpop.f32.mrb[117].mxu0  ;;  %v7961_v55 = vsel %vm7960_vm7, %v16565_v50, -inf }
0x189d   : > { %v16569_v41 = vpop.f32.mrb[132].mxu1  ;;  %7962 = vmax.xlane.f32.xlu1 %v7961_v55  ;;  %v6717_v25 = vpop.f32.mrb[118].mxu0 }
0x189e   : > { %v12231_v62 = vpop.f32.mrb[119].mxu0  ;;  %v12248_v32 = vpop.f32.mrb[133].mxu1  ;;  %v7970_v6 = vsel %vm7960_vm7, %v16569_v41, -inf }
0x189f   : > { %v6837_v31 = vpop.f32.mrb[134].mxu1 }
0x18a0   : > { %v12249_v46 = vpop.f32.mrb[135].mxu1 }
0x18a3   : > { %v16571_v14 = vpop.f32.mrb[120].mxu0 }
0x18a4   : > { %v12236_v27 = vpop.f32.mrb[121].mxu0  ;;  %v7964_v42 = vsel %vm7960_vm7, %v16571_v14, -inf }
0x18a5   : > { %v16575_v15 = vpop.f32.mrb[136].mxu1  ;;  %7965 = vmax.xlane.f32.xlu0 %v7964_v42  ;;  %v6757_v34 = vpop.f32.mrb[122].mxu0 }
0x18a6   : > { %v12237_v5 = vpop.f32.mrb[123].mxu0  ;;  %v12260_v37 = vpop.f32.mrb[137].mxu1  ;;  %v7976_v61 = vsel %vm7960_vm7, %v16575_v15, -inf }
0x18a7   : > { %v6917_v49 = vpop.f32.mrb[138].mxu1 }
0x18a8   : > { %v12261_v48 = vpop.f32.mrb[139].mxu1 }
0x18a9   : > { %7971 = vmax.xlane.f32.xlu0 %v7970_v6 }
0x18ab   : > { %v16579_v63 = vpop.f32.mrb[124].mxu0 }
0x18ac   : > { %v12242_v12 = vpop.f32.mrb[125].mxu0  ;;  %v7967_v54 = vsel %vm7960_vm7, %v16579_v63, -inf }
0x18ad   : > { %v16585_v11 = vpop.f32.mrb[140].mxu1  ;;  %7977 = vmax.xlane.f32.xlu0 %v7976_v61  ;;  %7968 = vmax.xlane.f32.xlu1 %v7967_v54  ;;  %v6797_v40 = vpop.f32.mrb[126].mxu0 }
0x18ae   : > { %v12243_v52 = vpop.f32.mrb[127].mxu0  ;;  %v12272_v45 = vpop.f32.mrb[141].mxu1  ;;  %v7982_v10 = vsel %vm7960_vm7, %v16585_v11, -inf }
0x18af   : > { %v6997_v60 = vpop.f32.mrb[142].mxu1 }
0x18b0   : > { %v12273_v53 = vpop.f32.mrb[143].mxu1 }
0x18b1   : > { %7983 = vmax.xlane.f32.xlu0 %v7982_v10 }
0x18b3   : > { %v16589_v55 = vpop.f32.mrb[128].mxu0 }
0x18b4   : > { %v12254_v25 = vpop.f32.mrb[129].mxu0  ;;  %v7973_v62 = vsel %vm7960_vm7, %v16589_v55, -inf }
0x18b5   : > { %v16593_v32 = vpop.f32.mrb[144].mxu1  ;;  %7974 = vmax.xlane.f32.xlu1 %v7973_v62  ;;  %v6877_v31 = vpop.f32.mrb[130].mxu0 }
0x18b6   : > { %v12255_v46 = vpop.f32.mrb[131].mxu0  ;;  %v12284_v27 = vpop.f32.mrb[145].mxu1  ;;  %v7988_v42 = vsel %vm7960_vm7, %v16593_v32, -inf }
0x18b7   : > { %v7077_v34 = vpop.f32.mrb[146].mxu1  ;;  %7989 = vmax.xlane.f32.xlu0 %v7988_v42 }
0x18b8   : > { %v12285_v5 = vpop.f32.mrb[147].mxu1 }
0x18bb   : > { %v16597_v37 = vpop.f32.mrb[132].mxu0 }
0x18bc   : > { %v12266_v49 = vpop.f32.mrb[133].mxu0  ;;  %v7979_v48 = vsel %vm7960_vm7, %v16597_v37, -inf }
0x18bd   : > { %v16601_v6 = vpop.f32.mrb[148].mxu1  ;;  %7980 = vmax.xlane.f32.xlu1 %v7979_v48  ;;  %v6957_v12 = vpop.f32.mrb[134].mxu0 }
0x18be   : > { %v12267_v61 = vpop.f32.mrb[135].mxu0  ;;  %v12296_v54 = vpop.f32.mrb[149].mxu1  ;;  %v7994_v40 = vsel %vm7960_vm7, %v16601_v6, -inf }
0x18bf   : > { %v7157_v52 = vpop.f32.mrb[150].mxu1  ;;  %7995 = vmax.xlane.f32.xlu0 %v7994_v40 }
0x18c0   : > { %v12297_v45 = vpop.f32.mrb[151].mxu1 }
0x18c3   : > { %v16605_v60 = vpop.f32.mrb[136].mxu0 }
0x18c4   : > { %v12278_v53 = vpop.f32.mrb[137].mxu0  ;;  %v7985_v10 = vsel %vm7960_vm7, %v16605_v60, -inf }
0x18c5   : > { %v16609_v25 = vpop.f32.mrb[152].mxu1  ;;  %7986 = vmax.xlane.f32.xlu1 %v7985_v10  ;;  %v7037_v62 = vpop.f32.mrb[138].mxu0 }
0x18c6   : > { %v12279_v31 = vpop.f32.mrb[139].mxu0  ;;  %v12308_v46 = vpop.f32.mrb[153].mxu1  ;;  %v8000_v27 = vsel %vm7960_vm7, %v16609_v25, -inf }
0x18c7   : > { %v7237_v42 = vpop.f32.mrb[154].mxu1  ;;  %8001 = vmax.xlane.f32.xlu0 %v8000_v27 }
0x18c8   : > { %v12309_v34 = vpop.f32.mrb[155].mxu1 }
0x18cb   : > { %v16613_v5 = vpop.f32.mrb[140].mxu0 }
0x18cc   : > { %v12290_v49 = vpop.f32.mrb[141].mxu0  ;;  %v7991_v48 = vsel %vm7960_vm7, %v16613_v5, -inf }
0x18cd   : > { %v16617_v12 = vpop.f32.mrb[156].mxu1  ;;  %7992 = vmax.xlane.f32.xlu1 %v7991_v48  ;;  %v7117_v61 = vpop.f32.mrb[142].mxu0 }
0x18ce   : > { %v12291_v54 = vpop.f32.mrb[143].mxu0  ;;  %v12320_v40 = vpop.f32.mrb[157].mxu1  ;;  %v8006_v52 = vsel %vm7960_vm7, %v16617_v12, -inf }
0x18cf   : > { %v7317_v45 = vpop.f32.mrb[158].mxu1  ;;  %8007 = vmax.xlane.f32.xlu0 %v8006_v52 }
0x18d0   : > { %v12321_v53 = vpop.f32.mrb[159].mxu1 }
0x18d3   : > { %v16621_v10 = vpop.f32.mrb[144].mxu0 }
0x18d4   : > { %v12302_v62 = vpop.f32.mrb[145].mxu0  ;;  %v7997_v31 = vsel %vm7960_vm7, %v16621_v10, -inf }
0x18d5   : > { %v16625_v46 = vpop.f32.mrb[160].mxu1  ;;  %7998 = vmax.xlane.f32.xlu1 %v7997_v31  ;;  %v7197_v27 = vpop.f32.mrb[146].mxu0 }
0x18d6   : > { %v12303_v42 = vpop.f32.mrb[147].mxu0  ;;  %v12332_v34 = vpop.f32.mrb[161].mxu1  ;;  %v8012_v49 = vsel %vm7960_vm7, %v16625_v46, -inf }
0x18d7   : > { %v7397_v48 = vpop.f32.mrb[162].mxu1  ;;  %8013 = vmax.xlane.f32.xlu0 %v8012_v49 }
0x18d8   : > { %v12333_v61 = vpop.f32.mrb[163].mxu1 }
0x18db   : > { %v16629_v54 = vpop.f32.mrb[148].mxu0 }
0x18dc   : > { %v12314_v40 = vpop.f32.mrb[149].mxu0  ;;  %v8003_v52 = vsel %vm7960_vm7, %v16629_v54, -inf }
0x18dd   : > { %v16633_v45 = vpop.f32.mrb[164].mxu1  ;;  %8004 = vmax.xlane.f32.xlu1 %v8003_v52  ;;  %v7277_v53 = vpop.f32.mrb[150].mxu0 }
0x18de   : > { %v12315_v62 = vpop.f32.mrb[151].mxu0  ;;  %v12344_v31 = vpop.f32.mrb[165].mxu1  ;;  %v8018_v27 = vsel %vm7960_vm7, %v16633_v45, -inf }
0x18df   : > { %v7477_v42 = vpop.f32.mrb[166].mxu1  ;;  %8019 = vmax.xlane.f32.xlu0 %v8018_v27 }
0x18e0   : > { %v12345_v34 = vpop.f32.mrb[167].mxu1 }
0x18e3   : > { %v16637_v49 = vpop.f32.mrb[152].mxu0 }
0x18e4   : > { %v12326_v48 = vpop.f32.mrb[153].mxu0  ;;  %v8009_v61 = vsel %vm7960_vm7, %v16637_v49, -inf }
0x18e5   : > { %v16641_v40 = vpop.f32.mrb[168].mxu1  ;;  %8010 = vmax.xlane.f32.xlu1 %v8009_v61  ;;  %v7357_v4 = vpop.f32.mrb[154].mxu0 }
0x18e6   : > { %v12327_v52 = vpop.f32.mrb[155].mxu0  ;;  %v12356_v53 = vpop.f32.mrb[169].mxu1  ;;  %v8024_v62 = vsel %vm7960_vm7, %v16641_v40, -inf }
0x18e7   : > { %v7557_v31 = vpop.f32.mrb[170].mxu1  ;;  %8025 = vmax.xlane.f32.xlu0 %v8024_v62 }
0x18e8   : > { %v12357_v42 = vpop.f32.mrb[171].mxu1 }
0x18eb   : > { %v16645_v27 = vpop.f32.mrb[156].mxu0 }
0x18ec   : > { %v12338_v34 = vpop.f32.mrb[157].mxu0  ;;  %v8015_v48 = vsel %vm7960_vm7, %v16645_v27, -inf }
0x18ed   : > { %v16649_v13 = vpop.f32.mrb[172].mxu1  ;;  %8016 = vmax.xlane.f32.xlu1 %v8015_v48  ;;  %v7437_v3 = vpop.f32.mrb[158].mxu0 }
0x18ee   : > { %v12339_v61 = vpop.f32.mrb[159].mxu0  ;;  %v12368_v4 = vpop.f32.mrb[173].mxu1  ;;  %v8030_v52 = vsel %vm7960_vm7, %v16649_v13, -inf }
0x18ef   : > { %v7637_v53 = vpop.f32.mrb[174].mxu1  ;;  %8031 = vmax.xlane.f32.xlu0 %v8030_v52 }
0x18f0   : > { %v12369_v31 = vpop.f32.mrb[175].mxu1 }
0x18f3   : > { %v16653_v62 = vpop.f32.mrb[160].mxu0 }
0x18f4   : > { %v12350_v42 = vpop.f32.mrb[161].mxu0  ;;  %v8021_v34 = vsel %vm7960_vm7, %v16653_v62, -inf }
0x18f5   : > { %v16657_v33 = vpop.f32.mrb[176].mxu1  ;;  %8022 = vmax.xlane.f32.xlu1 %v8021_v34  ;;  %v7517_v28 = vpop.f32.mrb[162].mxu0 }
0x18f6   : > { %v12351_v48 = vpop.f32.mrb[163].mxu0  ;;  %v12380_v3 = vpop.f32.mrb[177].mxu1 }
0x18f7   : > { %v7717_v61 = vpop.f32.mrb[178].mxu1 }
0x18f8   : > { %v12381_v4 = vpop.f32.mrb[179].mxu1 }
0x18fb   : > { %v16659_v57 = vpop.f32.mrb[164].mxu0 }
0x18fc   : > { %v12362_v36 = vpop.f32.mrb[165].mxu0  ;;  %v8027_v52 = vsel %vm7960_vm7, %v16659_v57, -inf }
0x18fd   : > { %v16663_v53 = vpop.f32.mrb[180].mxu1  ;;  %8028 = vmax.xlane.f32.xlu1 %v8027_v52  ;;  %v7597_v31 = vpop.f32.mrb[166].mxu0 }
0x18fe   : > { %v12363_v42 = vpop.f32.mrb[167].mxu0  ;;  %v12392_v39 = vpop.f32.mrb[181].mxu1 }
0x18ff   : > { %v7797_v43 = vpop.f32.mrb[182].mxu1 }
0x1900   : > { %v12393_v29 = vpop.f32.mrb[183].mxu1 }
0x1903   : > { %v16665_v34 = vpop.f32.mrb[168].mxu0 }
0x1904   : > { %v12374_v28 = vpop.f32.mrb[169].mxu0 }
0x1905   : > { %v7677_v48 = vpop.f32.mrb[170].mxu0  ;;  %v16667_v3 = vpop.f32.mrb[184].mxu1 }
0x1906   : > { %v12375_v61 = vpop.f32.mrb[171].mxu0  ;;  %v12404_v4 = vpop.f32.mrb[185].mxu1 }
0x1907   : > { %v7877_v36 = vpop.f32.mrb[186].mxu1 }
0x1908   : > { %v12405_v58 = vpop.f32.mrb[187].mxu1 }
0x190b   : > { %v16669_v7 = vpop.f32.mrb[172].mxu0 }
0x190c   : > { %v12386_v22 = vpop.f32.mrb[173].mxu0 }
0x190d   : > { %v7757_v24 = vpop.f32.mrb[174].mxu0  ;;  %v16671_v52 = vpop.f32.mrb[188].mxu1 }
0x190e   : > { %v12387_v31 = vpop.f32.mrb[175].mxu0  ;;  %v12416_v39 = vpop.f32.mrb[189].mxu1 }
0x190f   : > { %v7957_v43 = vpop.f32.mrb[190].mxu1 }
0x1910   : > { %v12417_v29 = vpop.f32.mrb[191].mxu1 }
0x1913   : > { %v16673_v42 = vpop.f32.mrb[176].mxu0 }
0x1914   : > { %v12398_v28 = vpop.f32.mrb[177].mxu0 }
0x1915   : > { %v7837_v48 = vpop.f32.mrb[178].mxu0 }
0x1916   : > { %v12399_v59 = vpop.f32.mrb[179].mxu0 }
0x191b   : > { %v16675_v21 = vpop.f32.mrb[180].mxu0 }
0x191c   : > { %v12410_v61 = vpop.f32.mrb[181].mxu0 }
0x191d   : > { %v7917_v4 = vpop.f32.mrb[182].mxu0 }
0x191e   : > { %v12411_v58 = vpop.f32.mrb[183].mxu0 }
0x192a   : > { %v7963_v36 = vpop.xlane.xlu1 %7962 }
0x192b   : > { %v8057_v22 = vsub.f32 %v16565_v50, %v7963_v36 }
0x192d   : > { %v8089_v24 = vmul.f32 1.442695, %v8057_v22 }
0x192f   : > { %13225 = vpow2.f32 %v8089_v24 }
0x1932   : > { %v7966_v18 = vpop.xlane.xlu0 %7965 }
0x1933   : > { %v8058_v31 = vsub.f32 %v16571_v14, %v7966_v18  ;;  %v8033_v14 = vsel %vm7960_vm7, %v16665_v34, -inf }
0x1935   : > { %v8091_v39 = vmul.f32 1.442695, %v8058_v31 }
0x1936   : > { %v7972_v43 = vpop.xlane.xlu0 %7971 }
0x1937   : > { %13227 = vpow2.f32 %v8091_v39  ;;  %v8060_v29 = vsub.f32 %v16569_v41, %v7972_v43  ;;  %v8036_v43 = vsel %vm7960_vm7, %v16657_v33, -inf }
0x1939   : > { %v16680_v28 = vpop.eup %13225  ;;  %v8095_v59 = vmul.f32 1.442695, %v8060_v29 }
0x193a   : > { %v7978_v48 = vpop.xlane.xlu0 %7977  ;;  %v7969_v61 = vpop.xlane.xlu1 %7968  ;;  %v8153_v4 = vsel %vm7960_vm7, %v16680_v28, 0.0 }
0x193b   : > { %v8059_v50 = vsub.f32 %v16579_v63, %v7969_v61  ;;  %8154 = vadd.xlane.f32.xlu1 %v8153_v4  ;;  %13229 = vpow2.f32 %v8095_v59  ;;  %v8062_v58 = vsub.f32 %v16575_v15, %v7978_v48 }
0x193d   : > { %v8093_v18 = vmul.f32 1.442695, %v8059_v50  ;;  %v8099_v36 = vmul.f32 1.442695, %v8062_v58 }
0x193e   : > { %v7984_v22 = vpop.xlane.xlu0 %7983 }
0x193f   : > { %8034 = vmax.xlane.f32.xlu1 %v8033_v14  ;;  %13231 = vpow2.f32 %v8093_v18  ;;  %v8064_v15 = vsub.f32 %v16585_v11, %v7984_v22 }
0x1940   : > { %13233 = vpow2.f32 %v8099_v36  ;;  %v8042_v36 = vsel %vm7960_vm7, %v16663_v53, -inf }
0x1941   : > { %v16688_v41 = vpop.eup %13227  ;;  %v8103_v59 = vmul.f32 1.442695, %v8064_v15 }
0x1942   : > { %v7975_v24 = vpop.xlane.xlu1 %7974  ;;  %v8156_v31 = vsel %vm7960_vm7, %v16688_v41, 0.0 }
0x1943   : > { %v8061_v63 = vsub.f32 %v16589_v55, %v7975_v24  ;;  %8157 = vadd.xlane.f32.xlu0 %v8156_v31 }
0x1944   : > { %v7990_v61 = vpop.xlane.xlu0 %7989 }
0x1945   : > { %v8097_v39 = vmul.f32 1.442695, %v8061_v63  ;;  %v16696_v29 = vpop.eup %13229  ;;  %v8066_v58 = vsub.f32 %v16593_v32, %v7990_v61 }
0x1946   : > { %v8162_v55 = vsel %vm7960_vm7, %v16696_v29, 0.0 }
0x1947   : > { %13235 = vpow2.f32 %v8097_v39  ;;  %8037 = vmax.xlane.f32.xlu0 %v8036_v43  ;;  %v8107_v31 = vmul.f32 1.442695, %v8066_v58 }
0x1948   : > { %13237 = vpow2.f32 %v8103_v59 }
0x1949   : > { %v16698_v48 = vpop.eup %13231 }
0x194a   : > { %v7981_v4 = vpop.xlane.xlu1 %7980  ;;  %v8159_v11 = vsel %vm7960_vm7, %v16698_v48, 0.0  ;;  %v16708_v22 = vpop.eup %13233 }
0x194b   : > { %v8063_v50 = vsub.f32 %v16597_v37, %v7981_v4  ;;  %8163 = vadd.xlane.f32.xlu0 %v8162_v55  ;;  %8160 = vadd.xlane.f32.xlu1 %v8159_v11  ;;  %v8039_v37 = vsel %vm7960_vm7, %v16669_v7, -inf  ;;  %v8168_v32 = vsel %vm7960_vm7, %v16708_v22, 0.0  ;;  %v8045_v11 = vsel %vm7960_vm7, %v16673_v42, -inf }
0x194c   : > { %v7996_v14 = vpop.xlane.xlu0 %7995 }
0x194d   : > { %v8101_v18 = vmul.f32 1.442695, %v8063_v50  ;;  %v8068_v63 = vsub.f32 %v16601_v6, %v7996_v14  ;;  %v8048_v6 = vsel %vm7960_vm7, %v16667_v3, -inf }
0x194f   : > { %13239 = vpow2.f32 %v8101_v18  ;;  %8043 = vmax.xlane.f32.xlu0 %v8042_v36  ;;  %8040 = vmax.xlane.f32.xlu1 %v8039_v37  ;;  %v8111_v61 = vmul.f32 1.442695, %v8068_v63 }
0x1950   : > { %13241 = vpow2.f32 %v8107_v31 }
0x1951   : > { %v16712_v24 = vpop.eup %13235 }
0x1952   : > { %v7987_v15 = vpop.xlane.xlu1 %7986  ;;  %v8165_v39 = vsel %vm7960_vm7, %v16712_v24, 0.0  ;;  %v16723_v50 = vpop.eup %13237 }
0x1953   : > { %v8065_v43 = vsub.f32 %v16605_v60, %v7987_v15  ;;  %8169 = vadd.xlane.f32.xlu0 %v8168_v32  ;;  %8166 = vadd.xlane.f32.xlu1 %v8165_v39  ;;  %v8174_v14 = vsel %vm7960_vm7, %v16723_v50, 0.0  ;;  %v8054_v15 = vsel %vm7960_vm7, %v16671_v52, -inf }
0x1954   : > { %v8002_v59 = vpop.xlane.xlu0 %8001 }
0x1955   : > { %v8105_v4 = vmul.f32 1.442695, %v8065_v43  ;;  %v8070_v55 = vsub.f32 %v16609_v25, %v8002_v59  ;;  %v8051_v43 = vsel %vm7960_vm7, %v16675_v21, -inf }
0x1957   : > { %13243 = vpow2.f32 %v8105_v4  ;;  %8049 = vmax.xlane.f32.xlu0 %v8048_v6  ;;  %8046 = vmax.xlane.f32.xlu1 %v8045_v11  ;;  %v8115_v58 = vmul.f32 1.442695, %v8070_v55 }
0x1958   : > { %13245 = vpow2.f32 %v8111_v61 }
0x1959   : > { %v16727_v60 = vpop.eup %13239  ;;  %13247 = vpow2.f32 %v8115_v58 }
0x195a   : > { %v7993_v18 = vpop.xlane.xlu1 %7992  ;;  %v8171_v25 = vsel %vm7960_vm7, %v16727_v60, 0.0  ;;  %v16737_v32 = vpop.eup %13241 }
0x195b   : > { %v8067_v36 = vsub.f32 %v16613_v5, %v7993_v18  ;;  %8175 = vadd.xlane.f32.xlu0 %v8174_v14  ;;  %8172 = vadd.xlane.f32.xlu1 %v8171_v25  ;;  %v8180_v61 = vsel %vm7960_vm7, %v16737_v32, 0.0 }
0x195c   : > { %v8008_v37 = vpop.xlane.xlu0 %8007 }
0x195d   : > { %v8109_v31 = vmul.f32 1.442695, %v8067_v36  ;;  %v8072_v63 = vsub.f32 %v16617_v12, %v8008_v37 }
0x195f   : > { %13249 = vpow2.f32 %v8109_v31  ;;  %v8119_v39 = vmul.f32 1.442695, %v8072_v63  ;;  %8055 = vmax.xlane.f32.xlu0 %v8054_v15  ;;  %8052 = vmax.xlane.f32.xlu1 %v8051_v43 }
0x1961   : > { %v16741_v5 = vpop.eup %13243  ;;  %13251 = vpow2.f32 %v8119_v39 }
0x1962   : > { %v7999_v59 = vpop.xlane.xlu1 %7998  ;;  %v8177_v12 = vsel %vm7960_vm7, %v16741_v5, 0.0  ;;  %v16747_v4 = vpop.eup %13245 }
0x1963   : > { %v8069_v55 = vsub.f32 %v16621_v10, %v7999_v59  ;;  %8181 = vadd.xlane.f32.xlu0 %v8180_v61  ;;  %8178 = vadd.xlane.f32.xlu1 %v8177_v12  ;;  %v8186_v18 = vsel %vm7960_vm7, %v16747_v4, 0.0  ;;  %v16753_v14 = vpop.eup %13247 }
0x1964   : > { %v8014_v6 = vpop.xlane.xlu0 %8013  ;;  %v8192_v10 = vsel %vm7960_vm7, %v16753_v14, 0.0 }
0x1965   : > { %v8113_v11 = vmul.f32 1.442695, %v8069_v55  ;;  %v8074_v58 = vsub.f32 %v16625_v46, %v8014_v6 }
0x1967   : > { %13253 = vpow2.f32 %v8113_v11  ;;  %v8123_v25 = vmul.f32 1.442695, %v8074_v58  ;;  %8187 = vadd.xlane.f32.xlu0 %v8186_v18 }
0x1969   : > { %v16755_v36 = vpop.eup %13249  ;;  %13255 = vpow2.f32 %v8123_v25 }
0x196a   : > { %v8005_v37 = vpop.xlane.xlu1 %8004  ;;  %v8183_v31 = vsel %vm7960_vm7, %v16755_v36, 0.0 }
0x196b   : > { %v16761_v63 = vpop.eup %13251  ;;  %v8071_v46 = vsub.f32 %v16629_v54, %v8005_v37  ;;  %8193 = vadd.xlane.f32.xlu0 %v8192_v10  ;;  %8184 = vadd.xlane.f32.xlu1 %v8183_v31 }
0x196c   : > { %v8020_v15 = vpop.xlane.xlu0 %8019  ;;  %v8198_v59 = vsel %vm7960_vm7, %v16761_v63, 0.0 }
0x196d   : > { %v8117_v39 = vmul.f32 1.442695, %v8071_v46  ;;  %v8076_v43 = vsub.f32 %v16633_v45, %v8020_v15 }
0x196f   : > { %13257 = vpow2.f32 %v8117_v39  ;;  %v8127_v61 = vmul.f32 1.442695, %v8076_v43  ;;  %8199 = vadd.xlane.f32.xlu0 %v8198_v59 }
0x1971   : > { %v16767_v12 = vpop.eup %13253  ;;  %13259 = vpow2.f32 %v8127_v61 }
0x1972   : > { %v8011_v55 = vpop.xlane.xlu1 %8010  ;;  %v8189_v6 = vsel %vm7960_vm7, %v16767_v12, 0.0 }
0x1973   : > { %v16771_v54 = vpop.eup %13255  ;;  %v8073_v11 = vsub.f32 %v16637_v49, %v8011_v55  ;;  %8190 = vadd.xlane.f32.xlu1 %v8189_v6 }
0x1974   : > { %v8026_v58 = vpop.xlane.xlu0 %8025  ;;  %v8204_v45 = vsel %vm7960_vm7, %v16771_v54, 0.0 }
0x1975   : > { %v8121_v18 = vmul.f32 1.442695, %v8073_v11  ;;  %v8078_v25 = vsub.f32 %v16641_v40, %v8026_v58  ;;  %8205 = vadd.xlane.f32.xlu0 %v8204_v45 }
0x1977   : > { %13261 = vpow2.f32 %v8121_v18  ;;  %v8131_v37 = vmul.f32 1.442695, %v8078_v25 }
0x1979   : > { %v16777_v10 = vpop.eup %13257  ;;  %13263 = vpow2.f32 %v8131_v37 }
0x197a   : > { %v8017_v31 = vpop.xlane.xlu1 %8016  ;;  %v8195_v46 = vsel %vm7960_vm7, %v16777_v10, 0.0 }
0x197b   : > { %v16781_v15 = vpop.eup %13259  ;;  %v8075_v49 = vsub.f32 %v16645_v27, %v8017_v31  ;;  %8196 = vadd.xlane.f32.xlu1 %v8195_v46 }
0x197c   : > { %v8032_v39 = vpop.xlane.xlu0 %8031  ;;  %v8210_v43 = vsel %vm7960_vm7, %v16781_v15, 0.0 }
0x197d   : > { %v8125_v40 = vmul.f32 1.442695, %v8075_v49  ;;  %v8080_v59 = vsub.f32 %v16649_v13, %v8032_v39  ;;  %8211 = vadd.xlane.f32.xlu0 %v8210_v43 }
0x197f   : > { %13265 = vpow2.f32 %v8125_v40  ;;  %v8135_v61 = vmul.f32 1.442695, %v8080_v59 }
0x1981   : > { %v16787_v55 = vpop.eup %13261  ;;  %13267 = vpow2.f32 %v8135_v61 }
0x1982   : > { %v8023_v6 = vpop.xlane.xlu1 %8022  ;;  %v8201_v11 = vsel %vm7960_vm7, %v16787_v55, 0.0 }
0x1983   : > { %v16791_v58 = vpop.eup %13263  ;;  %v8077_v27 = vsub.f32 %v16653_v62, %v8023_v6  ;;  %8202 = vadd.xlane.f32.xlu1 %v8201_v11 }
0x1984   : > { %v8216_v45 = vsel %vm7960_vm7, %v16791_v58, 0.0 }
0x1985   : > { %v8129_v18 = vmul.f32 1.442695, %v8077_v27  ;;  %8217 = vadd.xlane.f32.xlu0 %v8216_v45 }
0x1987   : > { %13269 = vpow2.f32 %v8129_v18 }
0x1989   : > { %v16796_v13 = vpop.eup %13265 }
0x198a   : > { %v8029_v25 = vpop.xlane.xlu1 %8028  ;;  %v8207_v37 = vsel %vm7960_vm7, %v16796_v13, 0.0 }
0x198b   : > { %v16800_v31 = vpop.eup %13267  ;;  %v8079_v46 = vsub.f32 %v16659_v57, %v8029_v25  ;;  %8208 = vadd.xlane.f32.xlu1 %v8207_v37 }
0x198c   : > { %v8222_v62 = vsel %vm7960_vm7, %v16800_v31, 0.0 }
0x198d   : > { %v8133_v49 = vmul.f32 1.442695, %v8079_v46  ;;  %8223 = vadd.xlane.f32.xlu0 %v8222_v62 }
0x198f   : > { %13271 = vpow2.f32 %v8133_v49 }
0x1991   : > { %v16805_v39 = vpop.eup %13269 }
0x1992   : > { %v8213_v43 = vsel %vm7960_vm7, %v16805_v39, 0.0 }
0x1993   : > { %8214 = vadd.xlane.f32.xlu1 %v8213_v43 }
0x1999   : > { %v16809_v40 = vpop.eup %13271 }
0x199a   : > { %v8219_v59 = vsel %vm7960_vm7, %v16809_v40, 0.0 }
0x199b   : > { %8220 = vadd.xlane.f32.xlu1 %v8219_v59 }
0x19c8   : > { %v8155_v57 = vpop.xlane.xlu1 %8154 }
0x19c9   : > { %13273 = vrcp.f32 %v8155_v57 }
0x19cc   : > { %v8035_v61 = vpop.xlane.xlu1 %8034 }
0x19cd   : > { %v8081_v6 = vsub.f32 %v16665_v34, %v8035_v61 }
0x19cf   : > { %v8137_v11 = vmul.f32 1.442695, %v8081_v6 }
0x19d0   : > { %v8158_v27 = vpop.xlane.xlu0 %8157 }
0x19d1   : > { %13275 = vpow2.f32 %v8137_v11 }
0x19d2   : > { %13277 = vrcp.f32 %v8158_v27 }
0x19d3   : > { %v13274_v45 = vpop.eup %13273 }
0x19d4   : > { %v8281_v18 = vmul.f32 %v13274_v45, %v16680_v28  ;;  %v8038_v25 = vpop.xlane.xlu0 %8037 }
0x19d5   : > { %v8082_v37 = vsub.f32 %v16657_v33, %v8038_v25 }
0x19d6   : > { %v8313_v46 = vpack.c.bf16 %v8281_v18, %v8281_v18 }
0x19d7   : > { %v8139_v62 = vmul.f32 1.442695, %v8082_v37 }
0x19d8   : > { %v8164_v49 = vpop.xlane.xlu0 %8163  ;;  %12421 = vmatmul.mubr.msk.bf16.vlgmr.msra.gmra.mrb[184].mxu0 %vm8345_vm8, %v8313_v46  ;;  %v8161_v34 = vpop.xlane.xlu1 %8160 }
0x19d9   : > { %13279 = vpow2.f32 %v8139_v62  ;;  %12431 = vmatpush3.bf16.msra.mxu0 %v16284_v38  ;;  %12432 = vmatprep.mubr.msk.bf16.mxu0 %vm14155_vm11, %v17483_v20 }
0x19da   : > { %13281 = vrcp.f32 %v8164_v49  ;;  %12442 = vmatprep.subr.bf16.mxu0 %v17483_v20 }
0x19db   : > { %v16821_v28 = vpop.eup %13275  ;;  %13283 = vrcp.f32 %v8161_v34 }
0x19dc   : > { %v13278_v33 = vpop.eup %13277  ;;  %v8044_v43 = vpop.xlane.xlu0 %8043  ;;  %v8225_v59 = vsel %vm7960_vm7, %v16821_v28, 0.0 }
0x19dd   : > { %v8282_v57 = vmul.f32 %v13278_v33, %v16688_v41  ;;  %v8084_v61 = vsub.f32 %v16663_v53, %v8044_v43  ;;  %v8041_v38 = vpop.xlane.xlu1 %8040  ;;  %8226 = vadd.xlane.f32.xlu1 %v8225_v59 }
0x19de   : > { %v8083_v6 = vsub.f32 %v16669_v7, %v8041_v38 }
0x19df   : > { %v8143_v11 = vmul.f32 1.442695, %v8084_v61  ;;  %v8314_v27 = vpack.c.bf16 %v8282_v57, %v8282_v57 }
0x19e0   : > { %v8141_v45 = vmul.f32 1.442695, %v8083_v6  ;;  %v8170_v18 = vpop.xlane.xlu0 %8169 }
0x19e1   : > { %13285 = vpow2.f32 %v8143_v11  ;;  %12427 = vmatmul.mubr.msk.bf16.vlgmr.msra.gmra.mrb[192].mxu1 %vm8345_vm8, %v8314_v27  ;;  %v8167_v25 = vpop.xlane.xlu1 %8166 }
0x19e2   : > { %13287 = vpow2.f32 %v8141_v45  ;;  %12437 = vmatpush3.bf16.msra.mxu1 %v16309_v56  ;;  %12438 = vmatprep.mubr.msk.bf16.mxu1 %vm14155_vm11, %v17483_v20 }
0x19e3   : > { %v16832_v41 = vpop.eup %13279  ;;  %13289 = vrcp.f32 %v8170_v18  ;;  %12448 = vmatprep.subr.bf16.mxu1 %v17483_v20 }
0x19e4   : > { %v13282_v7 = vpop.eup %13281  ;;  %13291 = vrcp.f32 %v8167_v25  ;;  %v8050_v53 = vpop.xlane.xlu0 %8049  ;;  %v8228_v37 = vsel %vm7960_vm7, %v16832_v41, 0.0 }
0x19e5   : > { %v13284_v46 = vpop.eup %13283  ;;  %v8284_v62 = vmul.f32 %v13282_v7, %v16696_v29  ;;  %v8086_v49 = vsub.f32 %v16667_v3, %v8050_v53  ;;  %v8047_v56 = vpop.xlane.xlu1 %8046  ;;  %8229 = vadd.xlane.f32.xlu0 %v8228_v37 }
0x19e6   : > { %v8283_v34 = vmul.f32 %v13284_v46, %v16698_v48  ;;  %v8085_v33 = vsub.f32 %v16673_v42, %v8047_v56 }
0x19e7   : > { %v8147_v43 = vmul.f32 1.442695, %v8086_v49  ;;  %v8316_v59 = vpack.c.bf16 %v8284_v62, %v8284_v62 }
0x19e8   : > { %v8145_v57 = vmul.f32 1.442695, %v8085_v33  ;;  %v8176_v61 = vpop.xlane.xlu0 %8175  ;;  %v8315_v38 = vpack.c.bf16 %v8283_v34, %v8283_v34 }
0x19e9   : > { %13293 = vpow2.f32 %v8147_v43  ;;  %12439 = vmatmul.mubr.msk.bf16.vlgmr.msra.gmra.mrb[196].mxu1 %vm8345_vm8, %v8316_v59  ;;  %v8173_v6 = vpop.xlane.xlu1 %8172 }
0x19ea   : > { %13295 = vpow2.f32 %v8145_v57  ;;  %12449 = vmatpush3.bf16.msra.mxu1 %v16293_v23  ;;  %12433 = vmatmul.mubr.msk.bf16.vlgmr.msra.gmra.mrb[188].mxu0 %vm8345_vm8, %v8315_v38 }
0x19eb   : > { %v16844_v3 = vpop.eup %13285  ;;  %13297 = vrcp.f32 %v8176_v61  ;;  %12443 = vmatpush3.bf16.msra.mxu0 %v16272_v8  ;;  %12444 = vmatprep.mubr.msk.bf16.mxu0 %vm14155_vm11, %v17483_v20 }
0x19ec   : > { %v16849_v42 = vpop.eup %13287  ;;  %13299 = vrcp.f32 %v8173_v6  ;;  %v8056_v29 = vpop.xlane.xlu0 %8055  ;;  %v8234_v48 = vsel %vm7960_vm7, %v16844_v3, 0.0  ;;  %12450 = vmatprep.mubr.msk.bf16.mxu1 %vm14155_vm11, %v17483_v20  ;;  %12454 = vmatprep.subr.bf16.mxu0 %v17483_v20 }
0x19ed   : > { %v13290_v23 = vpop.eup %13289  ;;  %v8088_v11 = vsub.f32 %v16671_v52, %v8056_v29  ;;  %v8053_v27 = vpop.xlane.xlu1 %8052  ;;  %8235 = vadd.xlane.f32.xlu0 %v8234_v48  ;;  %v8231_v8 = vsel %vm7960_vm7, %v16849_v42, 0.0  ;;  %12460 = vmatprep.subr.bf16.mxu1 %v17483_v20 }
0x19ee   : > { %v13292_v45 = vpop.eup %13291  ;;  %v8286_v18 = vmul.f32 %v13290_v23, %v16708_v22  ;;  %v8087_v25 = vsub.f32 %v16675_v21, %v8053_v27  ;;  %8232 = vadd.xlane.f32.xlu1 %v8231_v8 }
0x19ef   : > { %v8285_v7 = vmul.f32 %v13292_v45, %v16712_v24  ;;  %v8151_v53 = vmul.f32 1.442695, %v8088_v11 }
0x19f0   : > { %v8149_v37 = vmul.f32 1.442695, %v8087_v25  ;;  %v8318_v46 = vpack.c.bf16 %v8286_v18, %v8286_v18  ;;  %v8182_v62 = vpop.xlane.xlu0 %8181 }
0x19f1   : > { %13301 = vpow2.f32 %v8151_v53  ;;  %v8317_v52 = vpack.c.bf16 %v8285_v7, %v8285_v7  ;;  %v8179_v49 = vpop.xlane.xlu1 %8178 }
0x19f2   : > { %13303 = vpow2.f32 %v8149_v37  ;;  %12451 = vmatmul.mubr.msk.bf16.vlgmr.msra.gmra.mrb[200].mxu1 %vm8345_vm8, %v8318_v46 }
0x19f3   : > { %v16864_v56 = vpop.eup %13293  ;;  %12461 = vmatpush3.bf16.msra.mxu1 %v16296_v16  ;;  %13305 = vrcp.f32 %v8182_v62  ;;  %12445 = vmatmul.mubr.msk.bf16.vlgmr.msra.gmra.mrb[192].mxu0 %vm8345_vm8, %v8317_v52 }
0x19f4   : > { %v16868_v21 = vpop.eup %13295  ;;  %12455 = vmatpush3.bf16.msra.mxu0 %v16287_v19  ;;  %13307 = vrcp.f32 %v8179_v49  ;;  %v8188_v22 = vpop.xlane.xlu0 %8187  ;;  %v8240_v24 = vsel %vm7960_vm7, %v16864_v56, 0.0  ;;  %12456 = vmatprep.mubr.msk.bf16.mxu0 %vm14155_vm11, %v17483_v20 }
0x19f5   : > { %v13298_v34 = vpop.eup %13297  ;;  %8241 = vadd.xlane.f32.xlu0 %v8240_v24  ;;  %v8237_v16 = vsel %vm7960_vm7, %v16868_v21, 0.0  ;;  %12462 = vmatprep.mubr.msk.bf16.mxu1 %vm14155_vm11, %v17483_v20  ;;  %13309 = vrcp.f32 %v8188_v22 }
0x19f6   : > { %v13300_v33 = vpop.eup %13299  ;;  %v8288_v43 = vmul.f32 %v13298_v34, %v16723_v50  ;;  %8238 = vadd.xlane.f32.xlu1 %v8237_v16  ;;  %12466 = vmatprep.subr.bf16.mxu0 %v17483_v20 }
0x19f7   : > { %v8287_v19 = vmul.f32 %v13300_v33, %v16727_v60  ;;  %12472 = vmatprep.subr.bf16.mxu1 %v17483_v20 }
0x19f8   : > { %v8320_v59 = vpack.c.bf16 %v8288_v43, %v8288_v43  ;;  %v8185_v57 = vpop.xlane.xlu1 %8184  ;;  %v8194_v6 = vpop.xlane.xlu0 %8193 }
0x19f9   : > { %v8319_v61 = vpack.c.bf16 %v8287_v19, %v8287_v19  ;;  %13311 = vrcp.f32 %v8185_v57 }
0x19fa   : > { %12463 = vmatmul.mubr.msk.bf16.vlgmr.msra.gmra.mrb[204].mxu1 %vm8345_vm8, %v8320_v59  ;;  %13313 = vrcp.f32 %v8194_v6 }
0x19fb   : > { %v16884_v38 = vpop.eup %13301  ;;  %12473 = vmatpush3.bf16.msra.mxu1 %v16312_v9  ;;  %12457 = vmatmul.mubr.msk.bf16.vlgmr.msra.gmra.mrb[196].mxu0 %vm8345_vm8, %v8319_v61  ;;  %v17486_v61 = vld [vmem:[#allocation68_spill] sm:$0xff] }
0x19fc   : > { %v16888_v50 = vpop.eup %13303  ;;  %12467 = vmatpush3.bf16.msra.mxu0 %v16319_v1  ;;  %v8246_v60 = vsel %vm7960_vm7, %v16884_v38, 0.0  ;;  %12468 = vmatprep.mubr.msk.bf16.mxu0 %vm14155_vm11, %v17483_v20  ;;  %v8200_v25 = vpop.xlane.xlu0 %8199 }
0x19fd   : > { %v13306_v29 = vpop.eup %13305  ;;  %8247 = vadd.xlane.f32.xlu0 %v8246_v60  ;;  %v8243_v48 = vsel %vm7960_vm7, %v16888_v50, 0.0  ;;  %12474 = vmatprep.mubr.msk.bf16.mxu1 %vm14155_vm11, %v17483_v20 }
0x19fe   : > { %v13308_v9 = vpop.eup %13307  ;;  %v8290_v23 = vmul.f32 %v13306_v29, %v16737_v32  ;;  %8244 = vadd.xlane.f32.xlu1 %v8243_v48  ;;  %12478 = vmatprep.subr.bf16.mxu0 %v17483_v20  ;;  %v17487_v29 = vld [vmem:[#allocation70_spill] sm:$0xff] }
0x19ff   : > { %v8289_v1 = vmul.f32 %v13308_v9, %v16741_v5  ;;  %12484 = vmatprep.subr.bf16.mxu1 %v17483_v20  ;;  %v13310_v8 = vpop.eup %13309 }
0x1a00   : > { %v8322_v11 = vpack.c.bf16 %v8290_v23, %v8290_v23  ;;  %v8191_v27 = vpop.xlane.xlu1 %8190  ;;  %v8292_v18 = vmul.f32 %v13310_v8, %v16747_v4  ;;  %v17488_v23 = vld [vmem:[#allocation69_spill] sm:$0xff] }
0x1a01   : > { %v8321_v45 = vpack.c.bf16 %v8289_v1, %v8289_v1  ;;  %13315 = vrcp.f32 %v8191_v27 }
0x1a02   : > { %12475 = vmatmul.mubr.msk.bf16.vlgmr.msra.gmra.mrb[208].mxu1 %vm8345_vm8, %v8322_v11  ;;  %13317 = vrcp.f32 %v8200_v25  ;;  %v8324_v7 = vpack.c.bf16 %v8292_v18, %v8292_v18  ;;  %v8206_v46 = vpop.xlane.xlu0 %8205 }
0x1a03   : > { %12469 = vmatmul.mubr.msk.bf16.vlgmr.msra.gmra.mrb[200].mxu0 %vm8345_vm8, %v8321_v45  ;;  %12485 = vmatpush3.bf16.msra.mxu1 %v16325_v44  ;;  %v13312_v32 = vpop.eup %13311 }
0x1a04   : > { %12479 = vmatpush3.bf16.msra.mxu0 %v16322_v47  ;;  %12480 = vmatprep.mubr.msk.bf16.mxu0 %vm14155_vm11, %v17483_v20  ;;  %v8291_v5 = vmul.f32 %v13312_v32, %v16755_v36  ;;  %v13314_v4 = vpop.eup %13313  ;;  %v17490_v32 = vld [vmem:[#allocation71_spill] sm:$0xff] }
0x1a05   : > { %12486 = vmatprep.mubr.msk.bf16.mxu1 %vm14155_vm11, %v17483_v20  ;;  %12490 = vmatprep.subr.bf16.mxu0 %v17483_v20  ;;  %v8294_v36 = vmul.f32 %v13314_v4, %v16753_v14 }
0x1a06   : > { %12496 = vmatprep.subr.bf16.mxu1 %v17483_v20  ;;  %v8323_v44 = vpack.c.bf16 %v8291_v5, %v8291_v5 }
0x1a08   : > { %v8197_v53 = vpop.xlane.xlu1 %8196 }
0x1a09   : > { %13319 = vrcp.f32 %v8197_v53 }
0x1a0a   : > { %12487 = vmatmul.mubr.msk.bf16.vlgmr.msra.gmra.mrb[212].mxu1 %vm8345_vm8, %v8324_v7  ;;  %13321 = vrcp.f32 %v8206_v46  ;;  %v8212_v22 = vpop.xlane.xlu0 %8211 }
0x1a0b   : > { %v13316_v47 = vpop.eup %13315  ;;  %12481 = vmatmul.mubr.msk.bf16.vlgmr.msra.gmra.mrb[204].mxu0 %vm8345_vm8, %v8323_v44  ;;  %12497 = vmatpush3.bf16.msra.mxu1 %v16333_v2  ;;  %v8326_v2 = vpack.c.bf16 %v8294_v36, %v8294_v36  ;;  %v17493_v36 = vld [vmem:[#allocation75_spill] sm:$0xff] }
0x1a0c   : > { %v8293_v37 = vmul.f32 %v13316_v47, %v16767_v12  ;;  %12491 = vmatpush3.bf16.msra.mxu0 %v16330_v30  ;;  %12492 = vmatprep.mubr.msk.bf16.mxu0 %vm14155_vm11, %v17483_v20  ;;  %v13318_v14 = vpop.eup %13317 }
0x1a0d   : > { %12498 = vmatprep.mubr.msk.bf16.mxu1 %vm14155_vm11, %v17483_v20  ;;  %12502 = vmatprep.subr.bf16.mxu0 %v17483_v20  ;;  %v8296_v30 = vmul.f32 %v13318_v14, %v16761_v63 }
0x1a0e   : > { %12508 = vmatprep.subr.bf16.mxu1 %v17483_v20  ;;  %v8325_v62 = vpack.c.bf16 %v8293_v37, %v8293_v37 }
0x1a10   : > { %v8203_v52 = vpop.xlane.xlu1 %8202 }
0x1a11   : > { %13323 = vrcp.f32 %v8203_v52  ;;  %v17494_v52 = vld [vmem:[#allocation76_spill] sm:$0xff] }
0x1a12   : > { %12499 = vmatmul.mubr.msk.bf16.vlgmr.msra.gmra.mrb[216].mxu1 %vm8345_vm8, %v8326_v2  ;;  %13325 = vrcp.f32 %v8212_v22  ;;  %v8218_v33 = vpop.xlane.xlu0 %8217 }
0x1a13   : > { %v13320_v12 = vpop.eup %13319  ;;  %12493 = vmatmul.mubr.msk.bf16.vlgmr.msra.gmra.mrb[208].mxu0 %vm8345_vm8, %v8325_v62  ;;  %12509 = vmatpush3.bf16.msra.mxu1 %v16353_v0  ;;  %v8328_v0 = vpack.c.bf16 %v8296_v30, %v8296_v30 }
0x1a14   : > { %v8295_v49 = vmul.f32 %v13320_v12, %v16777_v10  ;;  %12503 = vmatpush3.bf16.msra.mxu0 %v16343_v51  ;;  %12504 = vmatprep.mubr.msk.bf16.mxu0 %vm14155_vm11, %v17483_v20  ;;  %v13322_v63 = vpop.eup %13321 }
0x1a15   : > { %12510 = vmatprep.mubr.msk.bf16.mxu1 %vm14155_vm11, %v17483_v20  ;;  %12514 = vmatprep.subr.bf16.mxu0 %v17483_v20  ;;  %v8298_v51 = vmul.f32 %v13322_v63, %v16771_v54 }
0x1a16   : > { %12520 = vmatprep.subr.bf16.mxu1 %v17483_v20  ;;  %v8327_v24 = vpack.c.bf16 %v8295_v49, %v8295_v49 }
0x1a18   : > { %v8209_v34 = vpop.xlane.xlu1 %8208 }
0x1a19   : > { %13327 = vrcp.f32 %v8209_v34  ;;  %v17495_v34 = vld [vmem:[#allocation77_spill] sm:$0xff] }
0x1a1a   : > { %12511 = vmatmul.mubr.msk.bf16.vlgmr.msra.gmra.mrb[220].mxu1 %vm8345_vm8, %v8328_v0  ;;  %13329 = vrcp.f32 %v8218_v33  ;;  %v8224_v57 = vpop.xlane.xlu0 %8223 }
0x1a1b   : > { %v13324_v10 = vpop.eup %13323  ;;  %12505 = vmatmul.mubr.msk.bf16.vlgmr.msra.gmra.mrb[212].mxu0 %vm8345_vm8, %v8327_v24  ;;  %12521 = vmatpush3.bf16.msra.mxu1 %v16366_v26  ;;  %v8330_v26 = vpack.c.bf16 %v8298_v51, %v8298_v51 }
0x1a1c   : > { %v8297_v16 = vmul.f32 %v13324_v10, %v16787_v55  ;;  %12515 = vmatpush3.bf16.msra.mxu0 %v16356_v17  ;;  %12516 = vmatprep.mubr.msk.bf16.mxu0 %vm14155_vm11, %v17483_v20  ;;  %v13326_v54 = vpop.eup %13325  ;;  %v17496_v10 = vld [vmem:[#allocation78_spill] sm:$0xff] }
0x1a1d   : > { %12522 = vmatprep.mubr.msk.bf16.mxu1 %vm14155_vm11, %v17483_v20  ;;  %12526 = vmatprep.subr.bf16.mxu0 %v17483_v20  ;;  %v8300_v17 = vmul.f32 %v13326_v54, %v16781_v15 }
0x1a1e   : > { %12532 = vmatprep.subr.bf16.mxu1 %v17483_v20  ;;  %v8329_v43 = vpack.c.bf16 %v8297_v16, %v8297_v16 }
0x1a20   : > { %v8215_v19 = vpop.xlane.xlu1 %8214 }
0x1a21   : > { %13331 = vrcp.f32 %v8215_v19  ;;  %v17498_v19 = vld [vmem:[#allocation79_spill] sm:$0xff] }
0x1a22   : > { %12523 = vmatmul.mubr.msk.bf16.vlgmr.msra.gmra.mrb[224].mxu1 %vm8345_vm8, %v8330_v26  ;;  %13333 = vrcp.f32 %v8224_v57  ;;  %v17497_v26 = vld [vmem:[#allocation80_spill] sm:$0xff]  ;;  %v17499_v57 = vmov 0  }
0x1a23   : > { %v13328_v55 = vpop.eup %13327  ;;  %12517 = vmatmul.mubr.msk.bf16.vlgmr.msra.gmra.mrb[216].mxu0 %vm8345_vm8, %v8329_v43  ;;  %12533 = vmatpush3.bf16.msra.mxu1 %v16372_v35  ;;  %v8332_v35 = vpack.c.bf16 %v8300_v17, %v8300_v17 }
0x1a24   : > { %v8299_v59 = vmul.f32 %v13328_v55, %v16796_v13  ;;  %12527 = vmatpush3.bf16.msra.mxu0 %v17486_v61  ;;  %12528 = vmatprep.mubr.msk.bf16.mxu0 %vm14155_vm11, %v17483_v20  ;;  %v13330_v15 = vpop.eup %13329 }
0x1a25   : > { %12534 = vmatprep.mubr.msk.bf16.mxu1 %vm14155_vm11, %v17483_v20  ;;  %12538 = vmatprep.subr.bf16.mxu0 %v17483_v20  ;;  %v8302_v48 = vmul.f32 %v13330_v15, %v16791_v58 }
0x1a26   : > { %12544 = vmatprep.subr.bf16.mxu1 %v17483_v20  ;;  %v8331_v6 = vpack.c.bf16 %v8299_v59, %v8299_v59 }
0x1a27   : > { %v8334_v11 = vpack.c.bf16 %v8302_v48, %v8302_v48 }
0x1a28   : > { %v8221_v60 = vpop.xlane.xlu1 %8220 }
0x1a29   : > { %13335 = vrcp.f32 %v8221_v60 }
0x1a2a   : > { %12535 = vmatmul.mubr.msk.bf16.vlgmr.msra.gmra.mrb[228].mxu1 %vm8345_vm8, %v8332_v35 }
0x1a2b   : > { %v13332_v13 = vpop.eup %13331  ;;  %12529 = vmatmul.mubr.msk.bf16.vlgmr.msra.gmra.mrb[220].mxu0 %vm8345_vm8, %v8331_v6  ;;  %12545 = vmatpush3.bf16.msra.mxu1 %v17487_v29 }
0x1a2c   : > { %v8301_v9 = vmul.f32 %v13332_v13, %v16805_v39  ;;  %12539 = vmatpush3.bf16.msra.mxu0 %v17488_v23  ;;  %12540 = vmatprep.mubr.msk.bf16.mxu0 %vm14155_vm11, %v17483_v20  ;;  %v13334_v27 = vpop.eup %13333  ;;  %v17489_v39 = vld [vmem:[#allocation72_spill] sm:$0xff] }
0x1a2d   : > { %12546 = vmatprep.mubr.msk.bf16.mxu1 %vm14155_vm11, %v17483_v20  ;;  %12550 = vmatprep.subr.bf16.mxu0 %v17483_v20  ;;  %v8304_v8 = vmul.f32 %v13334_v27, %v16800_v31  ;;  %v17491_v31 = vld [vmem:[#allocation74_spill] sm:$0xff] }
0x1a2e   : > { %12556 = vmatprep.subr.bf16.mxu1 %v17483_v20  ;;  %v8333_v1 = vpack.c.bf16 %v8301_v9, %v8301_v9 }
0x1a2f   : > { %v8336_v25 = vpack.c.bf16 %v8304_v8, %v8304_v8 }
0x1a32   : > { %12547 = vmatmul.mubr.msk.bf16.vlgmr.msra.gmra.mrb[232].mxu1 %vm8345_vm8, %v8334_v11 }
0x1a33   : > { %v13336_v58 = vpop.eup %13335  ;;  %12541 = vmatmul.mubr.msk.bf16.vlgmr.msra.gmra.mrb[224].mxu0 %vm8345_vm8, %v8333_v1  ;;  %12557 = vmatpush3.bf16.msra.mxu1 %v17489_v39 }
0x1a34   : > { %v8303_v45 = vmul.f32 %v13336_v58, %v16809_v40  ;;  %12551 = vmatpush3.bf16.msra.mxu0 %v17490_v32  ;;  %12552 = vmatprep.mubr.msk.bf16.mxu0 %vm14155_vm11, %v17483_v20  ;;  %v17492_v40 = vld [vmem:[#allocation73_spill] sm:$0xff] }
0x1a35   : > { %12558 = vmatprep.mubr.msk.bf16.mxu1 %vm14155_vm11, %v17483_v20  ;;  %12562 = vmatprep.subr.bf16.mxu0 %v17483_v20 }
0x1a36   : > { %12568 = vmatprep.subr.bf16.mxu1 %v17483_v20  ;;  %v8335_v18 = vpack.c.bf16 %v8303_v45, %v8303_v45 }
0x1a3a   : > { %12559 = vmatmul.mubr.msk.bf16.vlgmr.msra.gmra.mrb[236].mxu1 %vm8345_vm8, %v8336_v25 }
0x1a3b   : > { %12553 = vmatmul.mubr.msk.bf16.vlgmr.msra.gmra.mrb[228].mxu0 %vm8345_vm8, %v8335_v18  ;;  %12569 = vmatpush3.bf16.msra.mxu1 %v17491_v31 }
0x1a3c   : > { %12563 = vmatpush3.bf16.msra.mxu0 %v17492_v40  ;;  %12564 = vmatprep.mubr.msk.bf16.mxu0 %vm14155_vm11, %v17483_v20 }
0x1a3d   : > { %12574 = vmatprep.subr.bf16.mxu0 %v17483_v20  ;;  %12570 = vmatprep.mubr.msk.bf16.mxu1 %vm14155_vm11, %v17483_v20 }
0x1a3e   : > { %12580 = vmatprep.subr.bf16.mxu1 %v17483_v20 }
0x1a6a   : > { %v8227_v5 = vpop.xlane.xlu1 %8226 }
0x1a6b   : > { %13337 = vrcp.f32 %v8227_v5 }
0x1a72   : > { %v8230_v44 = vpop.xlane.xlu0 %8229 }
0x1a73   : > { %13339 = vrcp.f32 %v8230_v44 }
0x1a75   : > { %v13338_v7 = vpop.eup %13337 }
0x1a76   : > { %v8305_v53 = vmul.f32 %v13338_v7, %v16821_v28 }
0x1a78   : > { %v8337_v4 = vpack.c.bf16 %v8305_v53, %v8305_v53 }
0x1a7a   : > { %v8236_v47 = vpop.xlane.xlu0 %8235  ;;  %12565 = vmatmul.mubr.msk.bf16.vlgmr.msra.gmra.mrb[232].mxu0 %vm8345_vm8, %v8337_v4 }
0x1a7b   : > { %13341 = vrcp.f32 %v8236_v47  ;;  %12575 = vmatpush3.bf16.msra.mxu0 %v17493_v36  ;;  %v8233_v37 = vpop.xlane.xlu1 %8232  ;;  %12576 = vmatprep.mubr.msk.bf16.mxu0 %vm14155_vm11, %v17483_v20 }
0x1a7c   : > { %13343 = vrcp.f32 %v8233_v37  ;;  %12586 = vmatprep.subr.bf16.mxu0 %v17483_v20 }
0x1a7d   : > { %v13340_v46 = vpop.eup %13339 }
0x1a7e   : > { %v8306_v62 = vmul.f32 %v13340_v46, %v16832_v41 }
0x1a80   : > { %v8338_v2 = vpack.c.bf16 %v8306_v62, %v8306_v62 }
0x1a82   : > { %12571 = vmatmul.mubr.msk.bf16.vlgmr.msra.gmra.mrb[240].mxu1 %vm8345_vm8, %v8338_v2  ;;  %v8242_v28 = vpop.xlane.xlu0 %8241  ;;  %v6206_v2 = vld [vmem:[#allocation22 + $0x180] sm:$0xff] }
0x1a83   : > { %12581 = vmatpush3.bf16.msra.mxu1 %v17494_v52  ;;  %13345 = vrcp.f32 %v8242_v28  ;;  %v8239_v14 = vpop.xlane.xlu1 %8238  ;;  %12582 = vmatprep.mubr.msk.bf16.mxu1 %vm14155_vm11, %v17483_v20  ;;  %v6207_v28 = vld [vmem:[#allocation22 + $0x188] sm:$0xff] }
0x1a84   : > { %13347 = vrcp.f32 %v8239_v14  ;;  %12592 = vmatprep.subr.bf16.mxu1 %v17483_v20  ;;  %v9897_v14 = vpack.c.bf16 %v6207_v28, %v6206_v2 }
0x1a85   : > { %v13342_v12 = vpop.eup %13341 }
0x1a86   : > { %v13344_v30 = vpop.eup %13343  ;;  %v8308_v49 = vmul.f32 %v13342_v12, %v16844_v3 }
0x1a87   : > { %v8307_v41 = vmul.f32 %v13344_v30, %v16849_v42 }
0x1a88   : > { %v8340_v22 = vpack.c.bf16 %v8308_v49, %v8308_v49 }
0x1a89   : > { %v8339_v24 = vpack.c.bf16 %v8307_v41, %v8307_v41 }
0x1a8a   : > { %12583 = vmatmul.mubr.msk.bf16.vlgmr.msra.gmra.mrb[244].mxu1 %vm8345_vm8, %v8340_v22  ;;  %v8248_v0 = vpop.xlane.xlu0 %8247 }
0x1a8b   : > { %12593 = vmatpush3.bf16.msra.mxu1 %v17495_v34  ;;  %13349 = vrcp.f32 %v8248_v0  ;;  %12577 = vmatmul.mubr.msk.bf16.vlgmr.msra.gmra.mrb[236].mxu0 %vm8345_vm8, %v8339_v24  ;;  %v8245_v63 = vpop.xlane.xlu1 %8244 }
0x1a8c   : > { %12587 = vmatpush3.bf16.msra.mxu0 %v17496_v10  ;;  %13351 = vrcp.f32 %v8245_v63  ;;  %12588 = vmatprep.mubr.msk.bf16.mxu0 %vm14155_vm11, %v17483_v20  ;;  %v6208_v63 = vld [vmem:[#allocation22 + $0x190] sm:$0xff]  ;;  %v6209_v10 = vld [vmem:[#allocation22 + $0x198] sm:$0xff] }
0x1a8d   : > { %v13346_v3 = vpop.eup %13345  ;;  %12594 = vmatprep.mubr.msk.bf16.mxu1 %vm14155_vm11, %v17483_v20  ;;  %12598 = vmatprep.subr.bf16.mxu0 %v17483_v20 }
0x1a8e   : > { %v13348_v42 = vpop.eup %13347  ;;  %v8310_v51 = vmul.f32 %v13346_v3, %v16864_v56  ;;  %12604 = vmatprep.subr.bf16.mxu1 %v17483_v20  ;;  %v6210_v3 = vld [vmem:[#allocation22 + $0x1a0] sm:$0xff] }
0x1a8f   : > { %v8309_v16 = vmul.f32 %v13348_v42, %v16868_v21 }
0x1a90   : > { %v8342_v33 = vpack.c.bf16 %v8310_v51, %v8310_v51 }
0x1a91   : > { %v8341_v43 = vpack.c.bf16 %v8309_v16, %v8309_v16  ;;  %v9898_v16 = vpack.c.bf16 %v6209_v10, %v6208_v63 }
0x1a92   : > { %12595 = vmatmul.mubr.msk.bf16.vlgmr.msra.gmra.mrb[248].mxu1 %vm8345_vm8, %v8342_v33  ;;  %v6211_v33 = vld [vmem:[#allocation22 + $0x1a8] sm:$0xff] }
0x1a93   : > { %12589 = vmatmul.mubr.msk.bf16.vlgmr.msra.gmra.mrb[240].mxu0 %vm8345_vm8, %v8341_v43  ;;  %12605 = vmatpush3.bf16.msra.mxu1 %v17497_v26  ;;  %v9899_v43 = vpack.c.bf16 %v6211_v33, %v6210_v3 }
0x1a94   : > { %12599 = vmatpush3.bf16.msra.mxu0 %v17498_v19  ;;  %12600 = vmatprep.mubr.msk.bf16.mxu0 %vm14155_vm11, %v17483_v20 }
0x1a95   : > { %v13350_v54 = vpop.eup %13349  ;;  %12606 = vmatprep.mubr.msk.bf16.mxu1 %vm14155_vm11, %v17483_v20  ;;  %12610 = vmatprep.subr.bf16.mxu0 %v9897_v14 }
0x1a96   : > { %v13352_v56 = vpop.eup %13351  ;;  %v8312_v21 = vmul.f32 %v13350_v54, %v16884_v38 }
0x1a97   : > { %v8311_v55 = vmul.f32 %v13352_v56, %v16888_v50 }
0x1a98   : > { %v8344_v17 = vpack.c.bf16 %v8312_v21, %v8312_v21 }
0x1a99   : > { %v8343_v59 = vpack.c.bf16 %v8311_v55, %v8311_v55 }
0x1a9a   : > { %12607 = vmatmul.mubr.msk.bf16.vlgmr.msra.gmra.mrb[252].mxu1 %vm8345_vm8, %v8344_v17 }
0x1a9b   : > { %12601 = vmatmul.mubr.msk.bf16.vlgmr.msra.gmra.mrb[244].mxu0 %vm8345_vm8, %v8343_v59  ;;  %10083 = vmatprep.mubr.bf16.mxu1 %v17499_v57 }
0x1a9c   : > { %12611 = vmatpush3.bf16.msra.mxu0 %v9897_v14  ;;  %v6221_v14 = vld [vmem:[#allocation22 + $0x1f8] sm:$0xff] }
0x1a9d   : > { %12612 = vmatprep.subr.bf16.mxu0 %v9898_v16 }
0x1aa0   : > { %12613 = vmatpush3.bf16.msra.mxu0 %v9898_v16 }
0x1aa1   : > { %12614 = vmatprep.subr.bf16.mxu0 %v9899_v43 }
0x1aa4   : > { %12615 = vmatpush3.bf16.msra.mxu0 %v9899_v43 }
0x1aab   : > { %v8387_v61 = vpop.f32.mrb[184].mxu0 }
0x1aac   : > { %v12422_v6 = vpop.f32.mrb[185].mxu0 }
0x1aad   : > { %v8390_v35 = vpop.f32.mrb[186].mxu0 }
0x1aae   : > { %v12423_v60 = vpop.f32.mrb[187].mxu0  ;;  %v6212_v35 = vld [vmem:[#allocation22 + $0x1b0] sm:$0xff] }
0x1aaf   : > { %v6213_v60 = vld [vmem:[#allocation22 + $0x1b8] sm:$0xff] }
0x1ab4   : > { %v8433_v15 = vpop.f32.mrb[192].mxu1 }
0x1ab5   : > { %v9851_v13 = vcombine.low %v8387_v61, %v8433_v15  ;;  %v12428_v20 = vpop.f32.mrb[193].mxu1  ;;  %v6214_v15 = vld [vmem:[#allocation22 + $0x1c0] sm:$0xff] }
0x1ab6   : > { %v8436_v29 = vpop.f32.mrb[194].mxu1  ;;  %v6215_v20 = vld [vmem:[#allocation22 + $0x1c8] sm:$0xff] }
0x1ab7   : > { %v12429_v48 = vpop.f32.mrb[195].mxu1  ;;  %v9901_v29 = vpack.c.bf16 %v6215_v20, %v6214_v15 }
0x1abc   : > { %v8525_v38 = vpop.f32.mrb[196].mxu1 }
0x1abd   : > { %v8479_v9 = vpop.f32.mrb[188].mxu0  ;;  %v12440_v50 = vpop.f32.mrb[197].mxu1 }
0x1abe   : > { %v9852_v23 = vcombine.low %v8479_v9, %v8525_v38  ;;  %v12434_v1 = vpop.f32.mrb[189].mxu0  ;;  %v8528_v11 = vpop.f32.mrb[198].mxu1 }
0x1abf   : > { %v8482_v27 = vpop.f32.mrb[190].mxu0  ;;  %v12441_v58 = vpop.f32.mrb[199].mxu1 }
0x1ac0   : > { %v12435_v39 = vpop.f32.mrb[191].mxu0 }
0x1ac5   : > { %v17036_v8 = vpop.f32.mrb[200].mxu1 }
0x1ac6   : > { %v17038_v45 = vpop.f32.mrb[192].mxu0  ;;  %v12452_v32 = vpop.f32.mrb[201].mxu1 }
0x1ac7   : > { %v9853_v18 = vcombine.low %v17038_v45, %v17036_v8  ;;  %v12446_v25 = vpop.f32.mrb[193].mxu0  ;;  %v8620_v31 = vpop.f32.mrb[202].mxu1  ;;  %v6216_v32 = vld [vmem:[#allocation22 + $0x1d0] sm:$0xff] }
0x1ac8   : > { %v8574_v40 = vpop.f32.mrb[194].mxu0  ;;  %v12453_v5 = vpop.f32.mrb[203].mxu1  ;;  %v6217_v25 = vld [vmem:[#allocation22 + $0x1d8] sm:$0xff]  ;;  %v6218_v31 = vld [vmem:[#allocation22 + $0x1e0] sm:$0xff] }
0x1ac9   : > { %v12447_v44 = vpop.f32.mrb[195].mxu0  ;;  %v9902_v40 = vpack.c.bf16 %v6217_v25, %v6216_v32  ;;  %v6219_v5 = vld [vmem:[#allocation22 + $0x1e8] sm:$0xff] }
0x1aca   : > { %v9903_v44 = vpack.c.bf16 %v6219_v5, %v6218_v31 }
0x1acd   : > { %v17042_v7 = vpop.f32.mrb[204].mxu1 }
0x1ace   : > { %v17044_v53 = vpop.f32.mrb[196].mxu0  ;;  %v12464_v4 = vpop.f32.mrb[205].mxu1 }
0x1acf   : > { %v9854_v47 = vcombine.low %v17044_v53, %v17042_v7  ;;  %v12458_v36 = vpop.f32.mrb[197].mxu0  ;;  %v8712_v37 = vpop.f32.mrb[206].mxu1 }
0x1ad0   : > { %v8666_v46 = vpop.f32.mrb[198].mxu0  ;;  %v12465_v62 = vpop.f32.mrb[207].mxu1 }
0x1ad1   : > { %v12459_v52 = vpop.f32.mrb[199].mxu0 }
0x1ad2   : > { %v6220_v52 = vld [vmem:[#allocation22 + $0x1f0] sm:$0xff] }
0x1ad5   : > { %v8801_v12 = vpop.f32.mrb[208].mxu1 }
0x1ad6   : > { %v8755_v30 = vpop.f32.mrb[200].mxu0  ;;  %v12476_v49 = vpop.f32.mrb[209].mxu1 }
0x1ad7   : > { %v9855_v41 = vcombine.low %v8755_v30, %v8801_v12  ;;  %v12470_v22 = vpop.f32.mrb[201].mxu0  ;;  %v8804_v24 = vpop.f32.mrb[210].mxu1  ;;  %v9904_v12 = vpack.c.bf16 %v6221_v14, %v6220_v52 }
0x1ad8   : > { %v8758_v0 = vpop.f32.mrb[202].mxu0  ;;  %v12477_v34 = vpop.f32.mrb[211].mxu1 }
0x1ad9   : > { %v17048_v42 = vadd.f32 %v9855_v41, %v9851_v13  ;;  %v12471_v51 = vpop.f32.mrb[203].mxu0  ;;  %v9900_v13 = vpack.c.bf16 %v6213_v60, %v6212_v35 }
0x1adb   : > { %12616 = vmatprep.subr.bf16.mxu0 %v9900_v13 }
0x1adc   : > { %12617 = vmatpush3.bf16.msra.mxu0 %v9900_v13 }
0x1add   : > { %v8893_v26 = vpop.f32.mrb[212].mxu1  ;;  %12618 = vmatprep.subr.bf16.mxu0 %v9901_v29 }
0x1ade   : > { %v8847_v19 = vpop.f32.mrb[204].mxu0  ;;  %v12488_v54 = vpop.f32.mrb[213].mxu1 }
0x1adf   : > { %v9856_v56 = vcombine.low %v8847_v19, %v8893_v26  ;;  %v12482_v21 = vpop.f32.mrb[205].mxu0  ;;  %v8896_v55 = vpop.f32.mrb[214].mxu1 }
0x1ae0   : > { %v8850_v17 = vpop.f32.mrb[206].mxu0  ;;  %v12489_v59 = vpop.f32.mrb[215].mxu1  ;;  %12619 = vmatpush3.bf16.msra.mxu0 %v9901_v29 }
0x1ae1   : > { %v17050_v61 = vadd.f32 %v9856_v56, %v9852_v23  ;;  %v12483_v6 = vpop.f32.mrb[207].mxu0  ;;  %12620 = vmatprep.subr.bf16.mxu0 %v9902_v40 }
0x1ae4   : > { %12621 = vmatpush3.bf16.msra.mxu0 %v9902_v40 }
0x1ae5   : > { %v8985_v48 = vpop.f32.mrb[216].mxu1  ;;  %12622 = vmatprep.subr.bf16.mxu0 %v9903_v44 }
0x1ae6   : > { %v8939_v38 = vpop.f32.mrb[208].mxu0  ;;  %v12500_v9 = vpop.f32.mrb[217].mxu1 }
0x1ae7   : > { %v9857_v50 = vcombine.low %v8939_v38, %v8985_v48  ;;  %v12494_v1 = vpop.f32.mrb[209].mxu0  ;;  %v8988_v11 = vpop.f32.mrb[218].mxu1 }
0x1ae8   : > { %v8942_v27 = vpop.f32.mrb[210].mxu0  ;;  %v12501_v58 = vpop.f32.mrb[219].mxu1  ;;  %12623 = vmatpush3.bf16.msra.mxu0 %v9903_v44 }
0x1ae9   : > { %v9889_v23 = vadd.f32 %v9857_v50, %v9853_v18  ;;  %v12495_v39 = vpop.f32.mrb[211].mxu0  ;;  %12624 = vmatprep.subr.bf16.mxu0 %v9904_v12 }
0x1aec   : > { %12625 = vmatpush3.bf16.msra.mxu0 %v9904_v12 }
0x1aed   : > { %v9077_v4 = vpop.f32.mrb[220].mxu1 }
0x1aee   : > { %v9031_v36 = vpop.f32.mrb[212].mxu0  ;;  %v12512_v37 = vpop.f32.mrb[221].mxu1 }
0x1aef   : > { %v9858_v46 = vcombine.low %v9031_v36, %v9077_v4  ;;  %v12506_v62 = vpop.f32.mrb[213].mxu0  ;;  %v9080_v2 = vpop.f32.mrb[222].mxu1 }
0x1af0   : > { %v9034_v28 = vpop.f32.mrb[214].mxu0  ;;  %v12513_v8 = vpop.f32.mrb[223].mxu1 }
0x1af1   : > { %v9892_v45 = vadd.f32 %v9858_v46, %v9854_v47  ;;  %v12507_v18 = vpop.f32.mrb[215].mxu0 }
0x1af5   : > { %v9169_v30 = vpop.f32.mrb[224].mxu1 }
0x1af6   : > { %v9123_v49 = vpop.f32.mrb[216].mxu0  ;;  %v12524_v41 = vpop.f32.mrb[225].mxu1 }
0x1af7   : > { %v9859_v22 = vcombine.low %v9123_v49, %v9169_v30  ;;  %v12518_v24 = vpop.f32.mrb[217].mxu0  ;;  %v9172_v0 = vpop.f32.mrb[226].mxu1 }
0x1af8   : > { %v9126_v34 = vpop.f32.mrb[218].mxu0  ;;  %v12525_v63 = vpop.f32.mrb[227].mxu1 }
0x1af9   : > { %v9884_v10 = vadd.f32 %v17048_v42, %v9859_v22  ;;  %v12519_v3 = vpop.f32.mrb[219].mxu0 }
0x1afd   : > { %v9261_v7 = vpop.f32.mrb[228].mxu1 }
0x1afe   : > { %v9215_v53 = vpop.f32.mrb[220].mxu0  ;;  %v12536_v47 = vpop.f32.mrb[229].mxu1 }
0x1aff   : > { %v9860_v51 = vcombine.low %v9215_v53, %v9261_v7  ;;  %v12530_v16 = vpop.f32.mrb[221].mxu0  ;;  %v9264_v33 = vpop.f32.mrb[230].mxu1 }
0x1b00   : > { %v9218_v43 = vpop.f32.mrb[222].mxu0  ;;  %v12537_v26 = vpop.f32.mrb[231].mxu1 }
0x1b01   : > { %v9887_v19 = vadd.f32 %v17050_v61, %v9860_v51  ;;  %v12531_v54 = vpop.f32.mrb[223].mxu0 }
0x1b02   : > { %v17060_v54 = vld [vmem:[#allocation28] sm:$0xff] }
0x1b05   : > { %v9353_v56 = vpop.f32.mrb[232].mxu1 }
0x1b06   : > { %v9307_v21 = vpop.f32.mrb[224].mxu0  ;;  %v12548_v55 = vpop.f32.mrb[233].mxu1 }
0x1b07   : > { %v9861_v17 = vcombine.low %v9307_v21, %v9353_v56  ;;  %v12542_v59 = vpop.f32.mrb[225].mxu0  ;;  %v9356_v6 = vpop.f32.mrb[234].mxu1  ;;  %v17500_v56 = vld [vmem:[#allocation59_spill] sm:$0xff] }
0x1b08   : > { %v9310_v35 = vpop.f32.mrb[226].mxu0  ;;  %v12549_v42 = vpop.f32.mrb[235].mxu1  ;;  %v9908_v21 = vrot.slane %v17060_v54, %v17500_v56  ;;  %v6240_v56 = vld [vmem:[#allocation23 + $0x90] sm:$0xff] }
0x1b09   : > { %v9890_v60 = vadd.f32 %v9889_v23, %v9861_v17  ;;  %v12543_v15 = vpop.f32.mrb[227].mxu0  ;;  %v17501_v42 = vld [vmem:[#allocation67_spill] sm:$0xff] }
0x1b0d   : > { %v9445_v13 = vpop.f32.mrb[236].mxu1 }
0x1b0e   : > { %v9399_v20 = vpop.f32.mrb[228].mxu0  ;;  %v12560_v29 = vpop.f32.mrb[237].mxu1 }
0x1b0f   : > { %v9862_v48 = vcombine.low %v9399_v20, %v9445_v13  ;;  %v12554_v38 = vpop.f32.mrb[229].mxu0  ;;  %v9448_v9 = vpop.f32.mrb[238].mxu1  ;;  %v17502_v20 = vld [vmem:[#allocation65_spill] sm:$0xff] }
0x1b10   : > { %v9402_v50 = vpop.f32.mrb[230].mxu0  ;;  %v12561_v1 = vpop.f32.mrb[239].mxu1  ;;  %v17503_v38 = vld [vmem:[#allocation66_spill] sm:$0xff] }
0x1b11   : > { %v9893_v61 = vadd.f32 %v9892_v45, %v9862_v48  ;;  %v12555_v11 = vpop.f32.mrb[231].mxu0  ;;  %v17504_v50 = vld [vmem:[#allocation64_spill] sm:$0xff] }
0x1b12   : > { %v6225_v11 = vld [vmem:[#allocation23 + $0x18] sm:$0xff] }
0x1b4d   : > { %v9491_v27 = vpop.f32.mrb[232].mxu0 }
0x1b4e   : > { %v12566_v58 = vpop.f32.mrb[233].mxu0 }
0x1b4f   : > { %v9494_v39 = vpop.f32.mrb[234].mxu0 }
0x1b50   : > { %v12567_v32 = vpop.f32.mrb[235].mxu0  ;;  %v6224_v39 = vld [vmem:[#allocation23 + $0x10] sm:$0xff] }
0x1b51   : > { %v6227_v32 = vld [vmem:[#allocation23 + $0x28] sm:$0xff] }
0x1b55   : > { %v9537_v25 = vpop.f32.mrb[240].mxu1 }
0x1b56   : > { %v9863_v31 = vcombine.low %v9491_v27, %v9537_v25  ;;  %v12572_v40 = vpop.f32.mrb[241].mxu1  ;;  %v6222_v27 = vld [vmem:[#allocation23] sm:$0xff]  ;;  %v6229_v25 = vld [vmem:[#allocation23 + $0x38] sm:$0xff] }
0x1b57   : > { %v9540_v5 = vpop.f32.mrb[242].mxu1  ;;  %v10027_v40 = vpack.c.bf16 %v6229_v25, %v6227_v32 }
0x1b58   : > { %v9885_v23 = vadd.f32 %v9884_v10, %v9863_v31  ;;  %v12573_v44 = vpop.f32.mrb[243].mxu1  ;;  %v10024_v31 = vpack.c.bf16 %v6224_v39, %v6222_v27  ;;  %v6226_v5 = vld [vmem:[#allocation23 + $0x20] sm:$0xff] }
0x1b5d   : > { %v9629_v4 = vpop.f32.mrb[244].mxu1 }
0x1b5e   : > { %v9583_v36 = vpop.f32.mrb[236].mxu0  ;;  %v12584_v37 = vpop.f32.mrb[245].mxu1 }
0x1b5f   : > { %v9864_v46 = vcombine.low %v9583_v36, %v9629_v4  ;;  %v12578_v62 = vpop.f32.mrb[237].mxu0  ;;  %v9632_v2 = vpop.f32.mrb[246].mxu1 }
0x1b60   : > { %v9586_v28 = vpop.f32.mrb[238].mxu0  ;;  %v12585_v8 = vpop.f32.mrb[247].mxu1 }
0x1b61   : > { %v9888_v45 = vadd.f32 %v9887_v19, %v9864_v46  ;;  %v12579_v18 = vpop.f32.mrb[239].mxu0 }
0x1b63   : > { %v9895_v52 = vpack.c.bf16 %v9888_v45, %v9885_v23  ;;  %v6228_v23 = vld [vmem:[#allocation23 + $0x30] sm:$0xff] }
0x1b64   : > { %v10026_v44 = vpack.c.bf16 %v6228_v23, %v6226_v5 }
0x1b65   : > { %12626 = vmatprep.mubr.bf16.mxu0 %v9895_v52  ;;  %v9721_v14 = vpop.f32.mrb[248].mxu1 }
0x1b66   : > { %v9675_v12 = vpop.f32.mrb[240].mxu0  ;;  %v12596_v30 = vpop.f32.mrb[249].mxu1 }
0x1b67   : > { %v9865_v49 = vcombine.low %v9675_v12, %v9721_v14  ;;  %v12590_v41 = vpop.f32.mrb[241].mxu0  ;;  %v9724_v22 = vpop.f32.mrb[250].mxu1 }
0x1b68   : > { %v9678_v24 = vpop.f32.mrb[242].mxu0  ;;  %v12597_v0 = vpop.f32.mrb[251].mxu1  ;;  %v6231_v22 = vld [vmem:[#allocation23 + $0x48] sm:$0xff] }
0x1b69   : > { %v9891_v34 = vadd.f32 %v9890_v60, %v9865_v49  ;;  %v12591_v63 = vpop.f32.mrb[243].mxu0  ;;  %v6233_v24 = vld [vmem:[#allocation23 + $0x58] sm:$0xff] }
0x1b6a   : > { %v10029_v0 = vpack.c.bf16 %v6233_v24, %v6231_v22  ;;  %v6232_v63 = vld [vmem:[#allocation23 + $0x50] sm:$0xff] }
0x1b6d   : > { %v9813_v10 = vpop.f32.mrb[252].mxu1 }
0x1b6e   : > { %v9767_v3 = vpop.f32.mrb[244].mxu0  ;;  %v12608_v7 = vpop.f32.mrb[253].mxu1 }
0x1b6f   : > { %v9866_v53 = vcombine.low %v9767_v3, %v9813_v10  ;;  %v12602_v47 = vpop.f32.mrb[245].mxu0  ;;  %v9816_v51 = vpop.f32.mrb[254].mxu1  ;;  %v6235_v3 = vld [vmem:[#allocation23 + $0x68] sm:$0xff]  ;;  %v6237_v7 = vld [vmem:[#allocation23 + $0x78] sm:$0xff] }
0x1b70   : > { %v9770_v16 = vpop.f32.mrb[246].mxu0  ;;  %v12609_v33 = vpop.f32.mrb[255].mxu1  ;;  %v6234_v47 = vld [vmem:[#allocation23 + $0x60] sm:$0xff]  ;;  %v6236_v51 = vld [vmem:[#allocation23 + $0x70] sm:$0xff] }
0x1b71   : > { %v9894_v43 = vadd.f32 %v9893_v61, %v9866_v53  ;;  %v12603_v26 = vpop.f32.mrb[247].mxu0  ;;  %v6223_v61 = vld [vmem:[#allocation23 + $0x8] sm:$0xff]  ;;  %v10031_v53 = vpack.c.bf16 %v6237_v7, %v6235_v3  ;;  %v10030_v16 = vpack.c.bf16 %v6236_v51, %v6234_v47 }
0x1b72   : > { %v10025_v58 = vpack.c.bf16 %v6225_v11, %v6223_v61  ;;  %v6239_v33 = vld [vmem:[#allocation23 + $0x88] sm:$0xff]  ;;  %v6252_v61 = vld [vmem:[#allocation23 + $0xf0] sm:$0xff] }
0x1b73   : > { %v9896_v19 = vpack.c.bf16 %v9894_v43, %v9891_v34  ;;  %v6230_v34 = vld [vmem:[#allocation23 + $0x40] sm:$0xff]  ;;  %v6241_v43 = vld [vmem:[#allocation23 + $0x98] sm:$0xff] }
0x1b74   : > { %10051 = vmatprep.subr.bf16.mxu1 %v10025_v58  ;;  %v10028_v10 = vpack.c.bf16 %v6232_v63, %v6230_v34  ;;  %v10033_v26 = vpack.c.bf16 %v6241_v43, %v6239_v33  ;;  %v6271_v51 = vld [vmem:[#allocation26 + $0x80] sm:$0xff]  ;;  %v6256_v33 = vld [vmem:[#allocation26 + $0x8] sm:$0xff] }
0x1b75   : > { %12627 = vmatmul.mubr.bf16.vlgmr.msra.gmra.mrb[248].mxu0 %v9896_v19  ;;  %10052 = vmatpush1.bf16.msra.mxu1 %v10024_v31  ;;  %v6238_v19 = vld [vmem:[#allocation23 + $0x80] sm:$0xff] }
0x1b76   : > { %10053 = vmatprep.subr.bf16.mxu1 %v10027_v40 }
0x1b79   : > { %10054 = vmatpush1.bf16.msra.mxu1 %v10026_v44 }
0x1b7a   : > { %10055 = vmatprep.subr.bf16.mxu1 %v10029_v0 }
0x1b7d   : > { %10056 = vmatpush1.bf16.msra.mxu1 %v10028_v10 }
0x1b7e   : > { %10057 = vmatprep.subr.bf16.mxu1 %v10031_v53 }
0x1b81   : > { %10058 = vmatpush1.bf16.msra.mxu1 %v10030_v16 }
0x1b82   : > { %10059 = vmatprep.subr.bf16.mxu1 %v10033_v26  ;;  %v6273_v26 = vld [vmem:[#allocation26 + $0x90] sm:$0xff] }
0x1c48   : > { %v12628_v55 = vpop.f32.mrb[248].mxu0 }
0x1c49   : > { %v9952_v17 = vadd.f32 %v12628_v55, %v9908_v21  ;;  %v9943_v59 = vpop.f32.mrb[249].mxu0  ;;  %v6243_v55 = vld [vmem:[#allocation23 + $0xa8] sm:$0xff] }
0x1c4a   : > { %v9944_v6 = vadd.f32 %v9943_v59, %v9908_v21  ;;  %v12629_v35 = vpop.f32.mrb[250].mxu0 }
0x1c4b   : > { %v9960_v60 = vadd.f32 %v9952_v17, %v17501_v42  ;;  %v9955_v15 = vadd.f32 %v12629_v35, %v9908_v21  ;;  %v9946_v13 = vpop.f32.mrb[251].mxu0  ;;  %v6245_v17 = vld [vmem:[#allocation23 + $0xb8] sm:$0xff]  ;;  %v6244_v35 = vld [vmem:[#allocation23 + $0xb0] sm:$0xff] }
0x1c4c   : > { %v9958_v29 = vadd.f32 %v9944_v6, %v17502_v20  ;;  %v9947_v48 = vadd.f32 %v9946_v13, %v9908_v21  ;;  %v10032_v21 = vpack.c.bf16 %v6240_v56, %v6238_v19  ;;  %v10035_v59 = vpack.c.bf16 %v6245_v17, %v6243_v55  ;;  %v6242_v6 = vld [vmem:[#allocation23 + $0xa0] sm:$0xff] }
0x1c4d   : > { %v9961_v9 = vadd.f32 %v17503_v38, %v9955_v15  ;;  %v10034_v42 = vpack.c.bf16 %v6244_v35, %v6242_v6  ;;  %v6249_v15 = vld [vmem:[#allocation23 + $0xd8] sm:$0xff]  ;;  %v6246_v13 = vld [vmem:[#allocation23 + $0xc0] sm:$0xff] }
0x1c4e   : > { %v9959_v1 = vadd.f32 %v17504_v50, %v9947_v48  ;;  %9962 = vadd.xlane.f32.xlu1 %v9958_v29  ;;  %10060 = vmatpush1.bf16.msra.mxu1 %v10032_v21  ;;  %v6251_v48 = vld [vmem:[#allocation23 + $0xe8] sm:$0xff]  ;;  %v6253_v38 = vld [vmem:[#allocation23 + $0xf8] sm:$0xff] }
0x1c4f   : > { %10061 = vmatprep.subr.bf16.mxu1 %v10035_v59  ;;  %v10039_v50 = vpack.c.bf16 %v6253_v38, %v6251_v48  ;;  %v6274_v19 = vld [vmem:[#allocation26 + $0x98] sm:$0xff]  ;;  %v6275_v17 = vld [vmem:[#allocation26 + $0xa0] sm:$0xff]  ;;  %v6276_v59 = vld [vmem:[#allocation26 + $0xa8] sm:$0xff] }
0x1c50   : > { %9964 = vadd.xlane.f32.xlu0 %v9959_v1  ;;  %v10189_v56 = vpack.c.bf16 %v6274_v19, %v6273_v26  ;;  %v6258_v21 = vld [vmem:[#allocation26 + $0x18] sm:$0xff]  ;;  %v10190_v6 = vpack.c.bf16 %v6276_v59, %v6275_v17  ;;  %v6259_v35 = vld [vmem:[#allocation26 + $0x20] sm:$0xff] }
0x1c51   : > { %v6262_v48 = vld [vmem:[#allocation26 + $0x38] sm:$0xff] }
0x1c52   : > { %9966 = vadd.xlane.f32.xlu1 %v9960_v60  ;;  %10062 = vmatpush1.bf16.msra.mxu1 %v10034_v42  ;;  %v6260_v42 = vld [vmem:[#allocation26 + $0x28] sm:$0xff] }
0x1c54   : > { %9968 = vadd.xlane.f32.xlu0 %v9961_v9 }
0x1cdb   : > { %v9963_v4 = vpop.xlane.xlu1 %9962 }
0x1cdc   : > { %v9970_v36 = vmul.f32 0.0078125, %v9963_v4 }
0x1cdd   : > { %v9965_v37 = vpop.xlane.xlu0 %9964 }
0x1cde   : > { %v17068_v46 = vsub.f32 %v9958_v29, %v9970_v36  ;;  %v9971_v62 = vmul.f32 0.0078125, %v9965_v37  ;;  %v6248_v29 = vld [vmem:[#allocation23 + $0xd0] sm:$0xff]  ;;  %v17505_v37 = vld [vmem:[#allocation60_spill] sm:$0xff] }
0x1cdf   : > { %v9967_v2 = vpop.xlane.xlu1 %9966 }
0x1ce0   : > { %v17070_v28 = vsub.f32 %v9959_v1, %v9971_v62  ;;  %v9972_v8 = vmul.f32 0.0078125, %v9967_v2  ;;  %v9978_v45 = vmul.f32 %v17068_v46, %v17068_v46  ;;  %v6250_v1 = vld [vmem:[#allocation23 + $0xe0] sm:$0xff]  ;;  %v10009_v62 = vrot.slane %v17060_v54, %v17505_v37  ;;  %v6285_v37 = vld [vmem:[#allocation26 + $0xf0] sm:$0xff] }
0x1ce1   : > { %v9969_v18 = vpop.xlane.xlu0 %9968  ;;  %v10038_v11 = vpack.c.bf16 %v6252_v61, %v6250_v1  ;;  %v6263_v61 = vld [vmem:[#allocation26 + $0x40] sm:$0xff] }
0x1ce2   : > { %v17074_v52 = vsub.f32 %v9960_v60, %v9972_v8  ;;  %v9973_v14 = vmul.f32 0.0078125, %v9969_v18  ;;  %9982 = vadd.xlane.f32.xlu1 %v9978_v45  ;;  %v9979_v12 = vmul.f32 %v17070_v28, %v17070_v28  ;;  %v6247_v60 = vld [vmem:[#allocation23 + $0xc8] sm:$0xff] }
0x1ce3   : > { %v10037_v20 = vpack.c.bf16 %v6249_v15, %v6247_v60  ;;  %v17506_v18 = vld [vmem:[#allocation61_spill] sm:$0xff]  ;;  %v10182_v60 = vpack.c.bf16 %v6260_v42, %v6259_v35  ;;  %v6277_v15 = vld [vmem:[#allocation26 + $0xb0] sm:$0xff] }
0x1ce4   : > { %v17078_v30 = vsub.f32 %v9961_v9, %v9973_v14  ;;  %9984 = vadd.xlane.f32.xlu0 %v9979_v12  ;;  %v9980_v49 = vmul.f32 %v17074_v52, %v17074_v52  ;;  %v10036_v9 = vpack.c.bf16 %v6248_v29, %v6246_v13  ;;  %v10017_v14 = vrot.slane %v17060_v54, %v17506_v18  ;;  %v6278_v13 = vld [vmem:[#allocation26 + $0xb8] sm:$0xff]  ;;  %v6261_v29 = vld [vmem:[#allocation26 + $0x30] sm:$0xff] }
0x1ce5   : > { %10063 = vmatprep.subr.bf16.mxu1 %v10037_v20  ;;  %v10191_v20 = vpack.c.bf16 %v6278_v13, %v6277_v15  ;;  %v10183_v38 = vpack.c.bf16 %v6262_v48, %v6261_v29  ;;  %v6270_v18 = vld [vmem:[#allocation26 + $0x78] sm:$0xff] }
0x1ce6   : > { %9986 = vadd.xlane.f32.xlu1 %v9980_v49  ;;  %v9981_v41 = vmul.f32 %v17078_v30, %v17078_v30  ;;  %10064 = vmatpush1.bf16.msra.mxu1 %v10036_v9  ;;  %v6279_v9 = vld [vmem:[#allocation26 + $0xc0] sm:$0xff] }
0x1ce7   : > { %10065 = vmatprep.subr.bf16.mxu1 %v10039_v50  ;;  %v6280_v50 = vld [vmem:[#allocation26 + $0xc8] sm:$0xff] }
0x1ce8   : > { %9988 = vadd.xlane.f32.xlu0 %v9981_v41  ;;  %v10192_v1 = vpack.c.bf16 %v6280_v50, %v6279_v9 }
0x1cea   : > { %10066 = vmatpush1.bf16.msra.mxu1 %v10038_v11  ;;  %v6264_v11 = vld [vmem:[#allocation26 + $0x48] sm:$0xff] }
0x1d6f   : > { %v9983_v27 = vpop.xlane.xlu1 %9982 }
0x1d70   : > { %v9990_v58 = vmul.f32 0.0078125, %v9983_v27  ;;  %v10184_v27 = vpack.c.bf16 %v6264_v11, %v6263_v61 }
0x1d71   : > { %v9985_v39 = vpop.xlane.xlu0 %9984 }
0x1d72   : > { %v9994_v32 = vadd.f32 1e-05, %v9990_v58  ;;  %v9991_v25 = vmul.f32 0.0078125, %v9985_v39  ;;  %v6281_v58 = vld [vmem:[#allocation26 + $0xd0] sm:$0xff]  ;;  %v6282_v39 = vld [vmem:[#allocation26 + $0xd8] sm:$0xff] }
0x1d73   : > { %v9987_v31 = vpop.xlane.xlu1 %9986 }
0x1d74   : > { %13353 = vrsqrt.f32 %v9994_v32  ;;  %v9995_v40 = vadd.f32 1e-05, %v9991_v25  ;;  %v9992_v5 = vmul.f32 0.0078125, %v9987_v31  ;;  %v10193_v32 = vpack.c.bf16 %v6282_v39, %v6281_v58  ;;  %v6265_v25 = vld [vmem:[#allocation26 + $0x50] sm:$0xff]  ;;  %v6266_v31 = vld [vmem:[#allocation26 + $0x58] sm:$0xff] }
0x1d75   : > { %v9989_v23 = vpop.xlane.xlu0 %9988 }
0x1d76   : > { %13355 = vrsqrt.f32 %v9995_v40  ;;  %v9996_v44 = vadd.f32 1e-05, %v9992_v5  ;;  %v9993_v4 = vmul.f32 0.0078125, %v9989_v23  ;;  %v10185_v40 = vpack.c.bf16 %v6266_v31, %v6265_v25  ;;  %v6283_v5 = vld [vmem:[#allocation26 + $0xe0] sm:$0xff]  ;;  %v6284_v23 = vld [vmem:[#allocation26 + $0xe8] sm:$0xff] }
0x1d78   : > { %13357 = vrsqrt.f32 %v9996_v44  ;;  %v9997_v36 = vadd.f32 1e-05, %v9993_v4  ;;  %v6267_v44 = vld [vmem:[#allocation26 + $0x60] sm:$0xff]  ;;  %v10194_v4 = vpack.c.bf16 %v6284_v23, %v6283_v5 }
0x1d7a   : > { %13359 = vrsqrt.f32 %v9997_v36  ;;  %v6268_v36 = vld [vmem:[#allocation26 + $0x68] sm:$0xff] }
0x1d7e   : > { %v13354_v2 = vpop.eup %13353 }
0x1d7f   : > { %v10002_v8 = vmul.f32 %v13354_v2, %v17068_v46  ;;  %v10186_v2 = vpack.c.bf16 %v6268_v36, %v6267_v44 }
0x1d80   : > { %v13356_v45 = vpop.eup %13355 }
0x1d81   : > { %v10010_v12 = vmul.f32 %v10009_v62, %v10002_v8  ;;  %v10003_v49 = vmul.f32 %v13356_v45, %v17070_v28  ;;  %v6269_v45 = vld [vmem:[#allocation26 + $0x70] sm:$0xff] }
0x1d82   : > { %v13358_v41 = vpop.eup %13357 }
0x1d83   : > { %v10011_v22 = vmul.f32 %v10009_v62, %v10003_v49  ;;  %v17090_v0 = vadd.f32 %v10017_v14, %v10010_v12  ;;  %v10004_v63 = vmul.f32 %v13358_v41, %v17074_v52  ;;  %v6272_v52 = vld [vmem:[#allocation26 + $0x88] sm:$0xff]  ;;  %v6254_v12 = vld [vmem:[#allocation25] sm:$0x3] }
0x1d84   : > { %v13360_v24 = vpop.eup %13359  ;;  %v10188_v16 = vpack.c.bf16 %v6272_v52, %v6271_v51  ;;  %v17507_v49 = vld [vmem:[#allocation56_spill] sm:$0xff] }
0x1d85   : > { %v17092_v34 = vadd.f32 %v10017_v14, %v10011_v22  ;;  %v10005_v10 = vmul.f32 %v13360_v24, %v17078_v30  ;;  %v10012_v7 = vmul.f32 %v10009_v62, %v10004_v63  ;;  %v6255_v30 = vld [vmem:[#allocation26] sm:$0xff]  ;;  %v10044_v41 = vrot.slane %v6254_v12, %v17507_v49 }
0x1d86   : > { %v10180_v43 = vpack.c.bf16 %v6256_v33, %v6255_v30  ;;  %11550 = vmatprep.subr.bf16.mxu0 %v10188_v16  ;;  %v17508_v22 = vld [vmem:[#allocation57_spill] sm:$0xff] }
0x1d87   : > { %v10022_v46 = vpack.c.bf16 %v17092_v34, %v17090_v0  ;;  %v10013_v3 = vmul.f32 %v10009_v62, %v10005_v10  ;;  %v17101_v53 = vadd.f32 %v10017_v14, %v10012_v7  ;;  %v6286_v62 = vld [vmem:[#allocation26 + $0xf8] sm:$0xff]  ;;  %v10048_v24 = vrot.slane %v6254_v12, %v17508_v22 }
0x1d88   : > { %11551 = vmatpush3.bf16.msra.mxu0 %v10180_v43  ;;  %v10195_v8 = vpack.c.bf16 %v6286_v62, %v6285_v37 }
0x1d89   : > { %10084 = vmatmul.mubr.bf16.vlgmr.msra.gmra.mrb[0].mxu1 %v10022_v46  ;;  %v17099_v28 = vadd.f32 %v10017_v14, %v10013_v3  ;;  %11552 = vmatprep.subr.bf16.mxu0 %v10189_v56  ;;  %v10187_v14 = vpack.c.bf16 %v6270_v18, %v6269_v45 }
0x1d8a   : > { %10093 = vmatprep.mubr.bf16.mxu1 %v17499_v57  ;;  %v6257_v57 = vld [vmem:[#allocation26 + $0x10] sm:$0xff] }
0x1d8b   : > { %v10023_v47 = vpack.c.bf16 %v17099_v28, %v17101_v53  ;;  %v10181_v55 = vpack.c.bf16 %v6258_v21, %v6257_v57 }
0x1d8d   : > { %11553 = vmatpush3.bf16.msra.mxu0 %v10181_v55 }
0x1d8e   : > { %11554 = vmatprep.subr.bf16.mxu0 %v10190_v6 }
0x1d91   : > { %10094 = vmatmul.mubr.bf16.gmra.mrb[4].mxu1 %v10023_v47  ;;  %11555 = vmatpush3.bf16.msra.mxu0 %v10182_v60 }
0x1d92   : > { %11556 = vmatprep.subr.bf16.mxu0 %v10191_v20 }
0x1d95   : > { %11557 = vmatpush3.bf16.msra.mxu0 %v10183_v38 }
0x1d96   : > { %11558 = vmatprep.subr.bf16.mxu0 %v10192_v1 }
0x1d99   : > { %11559 = vmatpush3.bf16.msra.mxu0 %v10184_v27 }
0x1d9a   : > { %11560 = vmatprep.subr.bf16.mxu0 %v10193_v32 }
0x1d9d   : > { %11561 = vmatpush3.bf16.msra.mxu0 %v10185_v40 }
0x1d9e   : > { %11562 = vmatprep.subr.bf16.mxu0 %v10194_v4 }
0x1da1   : > { %11563 = vmatpush3.bf16.msra.mxu0 %v10186_v2 }
0x1da2   : > { %11564 = vmatprep.subr.bf16.mxu0 %v10195_v8 }
0x1da5   : > { %11565 = vmatpush3.bf16.msra.mxu0 %v10187_v14 }
0x1e5c   : > { %v10085_v63 = vpop.f32.mrb[0].mxu1 }
0x1e5d   : > { %v17107_v10 = vadd.f32 %v10085_v63, %v10044_v41  ;;  %v10087_v46 = vpop.f32.mrb[1].mxu1 }
0x1e5e   : > { %v17109_v3 = vadd.f32 %v10087_v46, %v10048_v24  ;;  %v10089_v7 = vpop.f32.mrb[2].mxu1 }
0x1e5f   : > { %v10104_v47 = vmul.f32 %v17107_v10, %v17107_v10  ;;  %v17113_v51 = vadd.f32 %v10089_v7, %v10044_v41  ;;  %v10091_v52 = vpop.f32.mrb[3].mxu1 }
0x1e60   : > { %v10105_v16 = vmul.f32 %v17109_v3, %v17109_v3  ;;  %v17117_v30 = vadd.f32 %v10091_v52, %v10048_v24 }
0x1e61   : > { %v10112_v33 = vmul.f32 %v10104_v47, %v17107_v10  ;;  %v10106_v43 = vmul.f32 %v17113_v51, %v17113_v51 }
0x1e62   : > { %v10113_v26 = vmul.f32 %v10105_v16, %v17109_v3  ;;  %v10107_v19 = vmul.f32 %v17117_v30, %v17117_v30 }
0x1e63   : > { %v10120_v56 = vmul.f32 0.044715, %v10112_v33  ;;  %v10114_v57 = vmul.f32 %v10106_v43, %v17113_v51 }
0x1e64   : > { %v10121_v21 = vmul.f32 0.044715, %v10113_v26  ;;  %v10115_v55 = vmul.f32 %v10107_v19, %v17117_v30  ;;  %v10095_v17 = vpop.f32.mrb[4].mxu1 }
0x1e65   : > { %v10128_v59 = vadd.f32 %v10120_v56, %v17107_v10  ;;  %v10122_v6 = vmul.f32 0.044715, %v10114_v57  ;;  %v17128_v35 = vadd.f32 %v10095_v17, %v10044_v41  ;;  %v10097_v42 = vpop.f32.mrb[5].mxu1 }
0x1e66   : > { %v10129_v60 = vadd.f32 %v10121_v21, %v17109_v3  ;;  %v10123_v15 = vmul.f32 0.044715, %v10115_v55  ;;  %v17131_v13 = vadd.f32 %v10097_v42, %v10048_v24  ;;  %v10099_v20 = vpop.f32.mrb[6].mxu1 }
0x1e67   : > { %v10136_v29 = vmul.f32 0.7978846, %v10128_v59  ;;  %v10130_v48 = vadd.f32 %v10122_v6, %v17113_v51  ;;  %v10108_v38 = vmul.f32 %v17128_v35, %v17128_v35  ;;  %v17136_v9 = vadd.f32 %v10099_v20, %v10044_v41  ;;  %v10101_v50 = vpop.f32.mrb[7].mxu1 }
0x1e68   : > { %v10137_v1 = vmul.f32 0.7978846, %v10129_v60  ;;  %v10131_v61 = vadd.f32 %v10123_v15, %v17117_v30  ;;  %v10109_v11 = vmul.f32 %v17131_v13, %v17131_v13  ;;  %v17141_v27 = vadd.f32 %v10101_v50, %v10048_v24 }
0x1e69   : > { %13361 = vtanh.f32 %v10136_v29  ;;  %v10138_v58 = vmul.f32 0.7978846, %v10130_v48  ;;  %v10116_v39 = vmul.f32 %v10108_v38, %v17128_v35  ;;  %v10110_v32 = vmul.f32 %v17136_v9, %v17136_v9 }
0x1e6a   : > { %13363 = vtanh.f32 %v10137_v1  ;;  %v10139_v25 = vmul.f32 0.7978846, %v10131_v61  ;;  %v10117_v31 = vmul.f32 %v10109_v11, %v17131_v13  ;;  %v10111_v40 = vmul.f32 %v17141_v27, %v17141_v27 }
0x1e6b   : > { %13365 = vtanh.f32 %v10138_v58  ;;  %v10124_v5 = vmul.f32 0.044715, %v10116_v39  ;;  %v10118_v23 = vmul.f32 %v10110_v32, %v17136_v9  ;;  %v17509_v32 = vld [vmem:[#allocation62_spill] sm:$0xff] }
0x1e6c   : > { %13367 = vtanh.f32 %v10139_v25  ;;  %v10125_v44 = vmul.f32 0.044715, %v10117_v31  ;;  %v10119_v4 = vmul.f32 %v10111_v40, %v17141_v27  ;;  %v10199_v25 = vrot.slane %v17060_v54, %v17509_v32 }
0x1e6d   : > { %v10132_v36 = vadd.f32 %v10124_v5, %v17128_v35  ;;  %v10126_v37 = vmul.f32 0.044715, %v10118_v23 }
0x1e6e   : > { %v10133_v62 = vadd.f32 %v10125_v44, %v17131_v13  ;;  %v10127_v2 = vmul.f32 0.044715, %v10119_v4 }
0x1e6f   : > { %v10140_v8 = vmul.f32 0.7978846, %v10132_v36  ;;  %v10134_v45 = vadd.f32 %v10126_v37, %v17136_v9 }
0x1e70   : > { %v10141_v18 = vmul.f32 0.7978846, %v10133_v62  ;;  %v10135_v14 = vadd.f32 %v10127_v2, %v17141_v27 }
0x1e71   : > { %13369 = vtanh.f32 %v10140_v8  ;;  %v10142_v12 = vmul.f32 0.7978846, %v10134_v45 }
0x1e72   : > { %13371 = vtanh.f32 %v10141_v18  ;;  %v10143_v49 = vmul.f32 0.7978846, %v10135_v14 }
0x1e73   : > { %v13362_v41 = vpop.eup %13361  ;;  %13373 = vtanh.f32 %v10142_v12 }
0x1e74   : > { %v13364_v22 = vpop.eup %13363  ;;  %v10152_v24 = vadd.f32 1.0, %v13362_v41  ;;  %13375 = vtanh.f32 %v10143_v49 }
0x1e75   : > { %v13366_v63 = vpop.eup %13365  ;;  %v10153_v46 = vadd.f32 1.0, %v13364_v22 }
0x1e76   : > { %v13368_v7 = vpop.eup %13367  ;;  %v10160_v47 = vmul.f32 0.5, %v10152_v24  ;;  %v10154_v52 = vadd.f32 1.0, %v13366_v63 }
0x1e77   : > { %v10155_v16 = vadd.f32 1.0, %v13368_v7  ;;  %v10161_v33 = vmul.f32 0.5, %v10153_v46 }
0x1e78   : > { %v10162_v43 = vmul.f32 0.5, %v10154_v52  ;;  %v10168_v19 = vmul.f32 %v10160_v47, %v17107_v10 }
0x1e79   : > { %v10163_v26 = vmul.f32 0.5, %v10155_v16  ;;  %v10169_v21 = vmul.f32 %v10161_v33, %v17109_v3 }
0x1e7a   : > { %v10170_v56 = vmul.f32 %v10162_v43, %v17113_v51 }
0x1e7b   : > { %v13370_v57 = vpop.eup %13369  ;;  %v10171_v55 = vmul.f32 %v10163_v26, %v17117_v30  ;;  %v10313_v26 = vld [vmem:[#allocation34] sm:$0xff] }
0x1e7c   : > { %v13372_v17 = vpop.eup %13371  ;;  %v10156_v59 = vadd.f32 1.0, %v13370_v57  ;;  %v10176_v6 = vpack.c.bf16 %v10170_v56, %v10168_v19  ;;  %12638 = vmatprep.mubr.msk.f32.mxu1 %vm6060_vm0, %v10313_v26 }
0x1e7d   : > { %v13374_v42 = vpop.eup %13373  ;;  %v10177_v60 = vpack.c.bf16 %v10171_v55, %v10169_v21  ;;  %v10157_v15 = vadd.f32 1.0, %v13372_v17 }
0x1e7e   : > { %v13376_v20 = vpop.eup %13375  ;;  %v10164_v29 = vmul.f32 0.5, %v10156_v59  ;;  %v10158_v48 = vadd.f32 1.0, %v13374_v42 }
0x1e7f   : > { %10232 = vmatprep.mubr.bf16.mxu0 %v10177_v60  ;;  %v10159_v38 = vadd.f32 1.0, %v13376_v20  ;;  %v10165_v50 = vmul.f32 0.5, %v10157_v15 }
0x1e80   : > { %v10166_v10 = vmul.f32 0.5, %v10158_v48  ;;  %10233 = vmatmul.mubr.bf16.vlgmr.msra.gmra.mrb[252].mxu0 %v10176_v6  ;;  %v10172_v1 = vmul.f32 %v10164_v29, %v17128_v35  ;;  %v17510_v29 = vld [vmem:[#allocation63_spill] sm:$0xff] }
0x1e81   : > { %v10167_v51 = vmul.f32 0.5, %v10159_v38  ;;  %v10173_v30 = vmul.f32 %v10165_v50, %v17131_v13  ;;  %v10300_v48 = vrot.slane %v17060_v54, %v17510_v29  ;;  %v10414_v54 = vld [vmem:[#allocation29] sm:$0xff] }
0x1e82   : > { %v10174_v3 = vmul.f32 %v10166_v10, %v17136_v9  ;;  %v13389_v29 = vld [vmem:[%s14870_s5] sm:$0xff] }
0x1e83   : > { %v10175_v61 = vmul.f32 %v10167_v51, %v17141_v27 }
0x1e84   : > { %v10178_v11 = vpack.c.bf16 %v10174_v3, %v10172_v1  ;;  %v11064_v3 = vld [vmem:[#allocation28 + $0x8] ss:$0 sm:$0xff] }
0x1e85   : > { %v10179_v58 = vpack.c.bf16 %v10175_v61, %v10173_v30 }
0x1e87   : > { %10240 = vmatprep.mubr.bf16.mxu0 %v10179_v58 }
0x1e88   : > { %10241 = vmatmul.mubr.bf16.gmra.mrb[0].mxu0 %v10178_v11 }
0x1f53   : > { %v11566_v39 = vpop.f32.mrb[252].mxu0 }
0x1f54   : > { %v11567_v31 = vpop.f32.mrb[253].mxu0 }
0x1f55   : > { %v11568_v40 = vadd.f32 %v11567_v31, %v11566_v39  ;;  %v11569_v5 = vpop.f32.mrb[254].mxu0 }
0x1f56   : > { %v11570_v23 = vpop.f32.mrb[255].mxu0 }
0x1f57   : > { %v10235_v44 = vadd.f32 %v11568_v40, %v10199_v25  ;;  %v11571_v35 = vadd.f32 %v11570_v23, %v11569_v5  ;;  %v10415_v23 = vld [vmem:[#allocation29 + $0x8] sm:$0xff] }
0x1f59   : > { %v10238_v4 = vadd.f32 %v11571_v35, %v10199_v25  ;;  %v10249_v9 = vadd.f32 %v10235_v44, %v17090_v0 }
0x1f5b   : > { %10253 = vadd.xlane.f32.xlu1 %v10249_v9  ;;  %v11572_v13 = vpop.f32.mrb[0].mxu0  ;;  %v10250_v27 = vadd.f32 %v10238_v4, %v17092_v34 }
0x1f5c   : > { %v11573_v36 = vpop.f32.mrb[1].mxu0 }
0x1f5d   : > { %v11574_v37 = vadd.f32 %v11573_v36, %v11572_v13  ;;  %10255 = vadd.xlane.f32.xlu0 %v10250_v27  ;;  %v11575_v62 = vpop.f32.mrb[2].mxu0  ;;  %v10416_v13 = vld [vmem:[#allocation29 + $0x10] sm:$0xff] }
0x1f5e   : > { %v11576_v2 = vpop.f32.mrb[3].mxu0  ;;  %v10314_v36 = vld [vmem:[#allocation34 + $0x8] sm:$0xff] }
0x1f5f   : > { %v10243_v8 = vadd.f32 %v11574_v37, %v10199_v25  ;;  %v11577_v45 = vadd.f32 %v11576_v2, %v11575_v62  ;;  %v10315_v37 = vld [vmem:[#allocation34 + $0x10] sm:$0xff]  ;;  %v10418_v2 = vld [vmem:[#allocation29 + $0x20] sm:$0xff] }
0x1f61   : > { %v10246_v18 = vadd.f32 %v11577_v45, %v10199_v25  ;;  %v10251_v14 = vadd.f32 %v10243_v8, %v17101_v53  ;;  %v10419_v8 = vld [vmem:[#allocation29 + $0x28] sm:$0xff]  ;;  %v10316_v45 = vld [vmem:[#allocation34 + $0x18] sm:$0xff] }
0x1f63   : > { %10257 = vadd.xlane.f32.xlu1 %v10251_v14  ;;  %v10252_v12 = vadd.f32 %v10246_v18, %v17099_v28  ;;  %v10434_v18 = vpack.c.bf16 %v10419_v8, %v10418_v2 }
0x1f65   : > { %10259 = vadd.xlane.f32.xlu0 %v10252_v12 }
0x1fe8   : > { %v10254_v49 = vpop.xlane.xlu1 %10253 }
0x1fe9   : > { %v10261_v0 = vmul.f32 0.0078125, %v10254_v49 }
0x1fea   : > { %v10256_v41 = vpop.xlane.xlu0 %10255 }
0x1feb   : > { %v10265_v22 = vsub.f32 %v10249_v9, %v10261_v0  ;;  %v10262_v24 = vmul.f32 0.0078125, %v10256_v41  ;;  %v10432_v9 = vpack.c.bf16 %v10415_v23, %v10414_v54  ;;  %v10422_v0 = vld [vmem:[#allocation29 + $0x40] sm:$0xff]  ;;  %v10423_v41 = vld [vmem:[#allocation29 + $0x48] sm:$0xff] }
0x1fed   : > { %v10266_v34 = vsub.f32 %v10250_v27, %v10262_v24  ;;  %v10269_v63 = vmul.f32 %v10265_v22, %v10265_v22  ;;  %v10417_v27 = vld [vmem:[#allocation29 + $0x18] sm:$0xff]  ;;  %v10424_v24 = vld [vmem:[#allocation29 + $0x50] sm:$0xff] }
0x1fee   : > { %v10433_v62 = vpack.c.bf16 %v10417_v27, %v10416_v13 }
0x1fef   : > { %10273 = vadd.xlane.f32.xlu1 %v10269_v63  ;;  %v10270_v46 = vmul.f32 %v10266_v34, %v10266_v34 }
0x1ff0   : > { %v10258_v7 = vpop.xlane.xlu1 %10257 }
0x1ff1   : > { %v10263_v47 = vmul.f32 0.0078125, %v10258_v7  ;;  %10275 = vadd.xlane.f32.xlu0 %v10270_v46  ;;  %v10426_v46 = vld [vmem:[#allocation29 + $0x60] sm:$0xff]  ;;  %v10427_v7 = vld [vmem:[#allocation29 + $0x68] sm:$0xff] }
0x1ff2   : > { %v10260_v52 = vpop.xlane.xlu0 %10259 }
0x1ff3   : > { %v10267_v16 = vsub.f32 %v10251_v14, %v10263_v47  ;;  %v10264_v33 = vmul.f32 0.0078125, %v10260_v52  ;;  %v10420_v14 = vld [vmem:[#allocation29 + $0x30] sm:$0xff]  ;;  %v10438_v47 = vpack.c.bf16 %v10427_v7, %v10426_v46 }
0x1ff4   : > { %v10428_v52 = vld [vmem:[#allocation29 + $0x70] sm:$0xff] }
0x1ff5   : > { %v10268_v53 = vsub.f32 %v10252_v12, %v10264_v33  ;;  %v10271_v43 = vmul.f32 %v10267_v16, %v10267_v16  ;;  %v10421_v12 = vld [vmem:[#allocation29 + $0x38] sm:$0xff] }
0x1ff6   : > { %v10435_v49 = vpack.c.bf16 %v10421_v12, %v10420_v14 }
0x1ff7   : > { %10277 = vadd.xlane.f32.xlu1 %v10271_v43  ;;  %v10272_v28 = vmul.f32 %v10268_v53, %v10268_v53 }
0x1ff9   : > { %10279 = vadd.xlane.f32.xlu0 %v10272_v28 }
0x207c   : > { %v10274_v19 = vpop.xlane.xlu1 %10273 }
0x207d   : > { %v10281_v56 = vmul.f32 0.0078125, %v10274_v19 }
0x207e   : > { %v10276_v57 = vpop.xlane.xlu0 %10275 }
0x207f   : > { %v10285_v21 = vadd.f32 1e-05, %v10281_v56  ;;  %v10282_v55 = vmul.f32 0.0078125, %v10276_v57  ;;  %v11069_v57 = vld [vmem:[#allocation31] ss:$0 sm:$0xff] }
0x2081   : > { %13377 = vrsqrt.f32 %v10285_v21  ;;  %v10286_v17 = vadd.f32 1e-05, %v10282_v55 }
0x2083   : > { %13379 = vrsqrt.f32 %v10286_v17 }
0x2084   : > { %v10278_v59 = vpop.xlane.xlu1 %10277 }
0x2085   : > { %v10283_v6 = vmul.f32 0.0078125, %v10278_v59 }
0x2086   : > { %v10280_v42 = vpop.xlane.xlu0 %10279 }
0x2087   : > { %v10287_v60 = vadd.f32 1e-05, %v10283_v6  ;;  %v10284_v15 = vmul.f32 0.0078125, %v10280_v42 }
0x2089   : > { %13381 = vrsqrt.f32 %v10287_v60  ;;  %v10288_v20 = vadd.f32 1e-05, %v10284_v15  ;;  %v13388_v15 = vld [vmem:[%s14870_s5 + $0x10] sm:$0xff] }
0x208b   : > { %v13378_v38 = vpop.eup %13377  ;;  %13383 = vrsqrt.f32 %v10288_v20 }
0x208c   : > { %v10293_v50 = vmul.f32 %v13378_v38, %v10265_v22  ;;  %v10436_v22 = vpack.c.bf16 %v10423_v41, %v10422_v0 }
0x208d   : > { %v13380_v10 = vpop.eup %13379 }
0x208e   : > { %v10294_v51 = vmul.f32 %v13380_v10, %v10266_v34  ;;  %v10301_v1 = vmul.f32 %v10300_v48, %v10293_v50  ;;  %v10425_v34 = vld [vmem:[#allocation29 + $0x58] sm:$0xff] }
0x208f   : > { %v10437_v63 = vpack.c.bf16 %v10425_v34, %v10424_v24  ;;  %v13390_v10 = vld [vmem:[%s14870_s5 + $0x18] sm:$0xff] }
0x2090   : > { %v10302_v30 = vmul.f32 %v10300_v48, %v10294_v51  ;;  %v10309_v61 = vadd.f32 %v11064_v3, %v10301_v1  ;;  %v13391_v1 = vld [vmem:[%s14870_s5 + $0x8] sm:$0xff] }
0x2092   : > { %v10310_v11 = vadd.f32 %v11064_v3, %v10302_v30 }
0x2093   : > { %v13382_v58 = vpop.eup %13381 }
0x2094   : > { %v12672_v39 = vpack.c.bf16 %v10310_v11, %v10309_v61  ;;  %v10295_v32 = vmul.f32 %v13382_v58, %v10267_v16  ;;  %v10429_v16 = vld [vmem:[#allocation29 + $0x78] sm:$0xff] }
0x2095   : > { %v13384_v25 = vpop.eup %13383  ;;  %v10439_v33 = vpack.c.bf16 %v10429_v16, %v10428_v52 }
0x2096   : > { %12673 = vmatprep.subr.bf16.mxu1 %v12672_v39  ;;  %v10296_v31 = vmul.f32 %v13384_v25, %v10268_v53  ;;  %v10303_v40 = vmul.f32 %v10300_v48, %v10295_v32 }
0x2097   : > { %12675 = vmatpush3.bf16.msra.mxu1 %v12672_v39 }
0x2098   : > { %v10304_v5 = vmul.f32 %v10300_v48, %v10296_v31  ;;  %v10311_v44 = vadd.f32 %v11064_v3, %v10303_v40 }
0x209a   : > { %v10312_v35 = vadd.f32 %v11064_v3, %v10304_v5 }
0x209c   : > { %v12676_v4 = vpack.c.bf16 %v10312_v35, %v10311_v44 }
0x209e   : > { %12677 = vmatprep.subr.bf16.mxu1 %v12676_v4 }
0x209f   : > { %12679 = vmatpush3.bf16.msra.mxu1 %v12676_v4 }
0x20a0   : > { %12644 = vmatprep.subr.bf16.mxu1 %v10432_v9 }
0x20a2   : > { %12639 = vmatmul.mubr.msk.f32.vlgmr.msra.gmra.mrb[8].mxu1 %vm6060_vm0, %v10314_v36 }
0x20a3   : > { %12641 = vmatprep.mubr.msk.f32.mxu1 %vm6060_vm0, %v10315_v37  ;;  %12645 = vmatpush3.bf16.msra.mxu1 %v10432_v9 }
0x20a4   : > { %12646 = vmatprep.subr.bf16.mxu1 %v10433_v62 }
0x20a6   : > { %12642 = vmatmul.mubr.msk.f32.gmra.mrb[10].mxu1 %vm6060_vm0, %v10316_v45 }
0x20a7   : > { %12647 = vmatpush3.bf16.msra.mxu1 %v10433_v62 }
0x20a8   : > { %12648 = vmatprep.subr.bf16.mxu1 %v10434_v18 }
0x20ab   : > { %12649 = vmatpush3.bf16.msra.mxu1 %v10434_v18 }
0x20ac   : > { %12650 = vmatprep.subr.bf16.mxu1 %v10435_v49 }
0x20af   : > { %12651 = vmatpush3.bf16.msra.mxu1 %v10435_v49 }
0x20b0   : > { %12652 = vmatprep.subr.bf16.mxu1 %v10436_v22 }
0x20b3   : > { %12653 = vmatpush3.bf16.msra.mxu1 %v10436_v22 }
0x20b4   : > { %12654 = vmatprep.subr.bf16.mxu1 %v10437_v63 }
0x20b7   : > { %12655 = vmatpush3.bf16.msra.mxu1 %v10437_v63 }
0x20b8   : > { %12656 = vmatprep.subr.bf16.mxu1 %v10438_v47 }
0x20bb   : > { %12657 = vmatpush3.bf16.msra.mxu1 %v10438_v47 }
0x20bc   : > { %12658 = vmatprep.subr.bf16.mxu1 %v10439_v33 }
0x20bf   : > { %12659 = vmatpush3.bf16.msra.mxu1 %v10439_v33 }
0x2175   : > { %v12640_v53 = vpop.f32.mrb[8].mxu1 }
0x2176   : > { %v10395_v43 = vpop.f32.mrb[9].mxu1 }
0x2177   : > { %v10430_v28 = vpack.c.bf16 %v12640_v53, %v10395_v43 }
0x2179   : > { %v12643_v26 = vpop.f32.mrb[10].mxu1  ;;  %12660 = vmatprep.mubr.bf16.mxu1 %v10430_v28 }
0x217a   : > { %v10405_v19 = vpop.f32.mrb[11].mxu1 }
0x217b   : > { %v10431_v56 = vpack.c.bf16 %v12643_v26, %v10405_v19 }
0x217d   : > { %12661 = vmatmul.mubr.bf16.vlgmr.msra.gmra.mrb[12].mxu1 %v10431_v56 }
0x2250   : > { %v12662_v21 = vpop.f32.mrb[12].mxu1 }
0x2251   : > { %v10490_v55 = vadd.f32 %v12662_v21, %v11069_v57  ;;  %v10481_v17 = vpop.f32.mrb[13].mxu1 }
0x2252   : > { %v10482_v59 = vadd.f32 %v11069_v57, %v10481_v17  ;;  %v12663_v6 = vpop.f32.mrb[14].mxu1 }
0x2253   : > { %10498 = vst.msk [vmem:[%s17176_s26 + $0x10] sm:$0xff] %vm1089_vm1, %v10490_v55  ;;  %v10493_v42 = vadd.f32 %v12663_v6, %v11069_v57  ;;  %v10484_v60 = vpop.f32.mrb[15].mxu1  ;;  %v10502_v20 = vsub.f32 %v13388_v15, %v10490_v55 }
0x2254   : > { %10496 = vst.msk [vmem:[%s17176_s26] sm:$0xff] %vm1089_vm1, %v10482_v59  ;;  %v10500_v48 = vsub.f32 %v13389_v29, %v10482_v59  ;;  %v10485_v38 = vadd.f32 %v11069_v57, %v10484_v60 }
0x2255   : > { %10499 = vst.msk [vmem:[%s17176_s26 + $0x18] sm:$0xff] %vm1089_vm1, %v10493_v42  ;;  %v10503_v51 = vsub.f32 %v13390_v10, %v10493_v42  ;;  %v10506_v30 = vmul.f32 %v10502_v20, %v10502_v20 }
0x2256   : > { %v10504_v50 = vmul.f32 %v10500_v48, %v10500_v48  ;;  %10497 = vst.msk [vmem:[%s17176_s26 + $0x8] sm:$0xff] %vm1089_vm1, %v10485_v38  ;;  %v10501_v3 = vsub.f32 %v13391_v1, %v10485_v38 }
0x2257   : > { %v10507_v58 = vmul.f32 %v10503_v51, %v10503_v51  ;;  %v10514_v32 = vsel %vm1089_vm1, %v10506_v30, 0.0 }
0x2258   : > { %v10505_v61 = vmul.f32 %v10501_v3, %v10501_v3  ;;  %v10508_v11 = vsel %vm1089_vm1, %v10504_v50, 0.0 }
0x2259   : > { %10509 = vadd.xlane.f32.xlu1 %v10508_v11  ;;  %v10517_v25 = vsel %vm1089_vm1, %v10507_v58, 0.0 }
0x225a   : > { %v10511_v39 = vsel %vm1089_vm1, %v10505_v61, 0.0 }
0x225b   : > { %10512 = vadd.xlane.f32.xlu0 %v10511_v39 }
0x225d   : > { %10515 = vadd.xlane.f32.xlu1 %v10514_v32 }
0x225f   : > { %10518 = vadd.xlane.f32.xlu0 %v10517_v25 }
0x2260   : > { %13999 = shalt.err (!%p13996_p11)
}
0x2261   : > { %s14000_s1 = scalar_lea.hbm %s17201_s16, 512  ;;  %s14004_s11 = scalar_lea.hbm %s17511_s13, 1024 }
0x2262   : > { %p14001_p13 = scmp.ne.s32.totalorder %s17201_s16, %s14000_s1  ;;  %p14005_p1 = scmp.lt.u32.totalorder %s17201_s16, %s17511_s13 }
0x2263   : > { %p14006_p0 = scmp.lt.u32.totalorder %s14004_s11, %s14000_s1  ;;  %p14008_p7 = scmp.lt.u32.totalorder %s14000_s1, %s17201_s16 }
0x2264   : > { %p14002_p2 = pnand %p14001_p13, %p17512_p8 }
0x2265   : > { %p14007_p5 = por %p14006_p0, %p14005_p1 }
0x2266   : > { %p14003_p9 = pneg %p14002_p2 }
0x2267   : > { %p14009_p6 = por %p14008_p7, %p14007_p5 }
0x2269   : > { %p14010_p4 = pnand %p14009_p6, %p14003_p9 }
0x226b   : > { %14013 = shalt.err (!%p14010_p4)
}
0x226c   : > { %s14158_s27 = smov 128   ;;  %s14159_s26 = smov 8   ;;  %v17513_v31 = vld [vmem:[#allocation58_spill] sm:$0xff]  ;;  %v17514_v23 = vld [vmem:[#allocation55_spill] sm:$0xff]  ;;  %vm10538_vm1 = vcmask 130112   ;;  %vm10545_vm9 = vcmask 195712  }
0x226d   : > { %12855 = dma.vmem_to_hbm [thread:$0]  (%p17512_p8), %s17195_s7, 512, %s17201_s16, %s10558_s4, %s14158_s27, %s14158_s27, %s14159_s26   ;;  %v10533_v40 = vadd.s32 4294967288, %v17513_v31  ;;  %v10540_v5 = vadd.s32 4294967280, %v17513_v31  ;;  %v10531_v44 = vsub.s32 %v17513_v31, %v17514_v23  ;;  %v10547_v9 = vadd.s32 4294967272, %v17513_v31 }
0x226e   : > { %s11073_s7 = sshll.u32 %s14297_s23, 4  ;;  %s1039_s8 = scalar_lea.vmem [#allocation36], %s14863_s30  ;;  %vm10552_vm10 = vcmask 261312   ;;  %vm10555_vm11 = vcmask 253952  }
0x226f   : > { %v10536_v4 = vsub.s32 %v10533_v40, %v17514_v23  ;;  %v10543_v36 = vsub.s32 %v10540_v5, %v17514_v23  ;;  %v10550_v45 = vsub.s32 %v10547_v9, %v17514_v23  ;;  %s10591_s20 = sshll.u32 %s1039_s8, 4  ;;  %s17515_s4 = sld [smem:[#allocation103_spill]]  ;;  %s17242_s20 = int_to_ptr.vmem [resolvable:$true] %s10591_s20 }
0x2270   : > { %s10563_s24 = scalar_lea.sflag [#allocation37], %s14863_s30  ;;  %s14014_s23 = scalar_lea.vmem %s17242_s20, 16 }
0x2271   : > { %p14015_p12 = scmp.ne.s32.totalorder %s17242_s20, %s14014_s23  ;;  %s14160_s22 = smov [#allocation36]  }
0x2272   : > { %s14018_s15 = sshll.u32 %s14160_s22, 4  ;;  %s14019_s15 = int_to_ptr.vmem [resolvable:$false] %s14018_s15 }
0x2273   : > { %p14016_p3 = pnand %p14015_p12, %p17512_p8  ;;  %s14020_s1 = scalar_lea.vmem %s14019_s15, 32 }
0x2274   : > { %p14021_p11 = scmp.lt.s32.totalorder %s17242_s20, %s14019_s15  ;;  %p14022_p13 = scmp.lt.s32.totalorder %s14020_s1, %s14014_s23 }
0x2275   : > { %s17240_s6 = scalar_lea.hbm %s17515_s4, %s11073_s7  ;;  %p14017_p10 = pneg %p14016_p3 }
0x2276   : > { %p14023_p2 = por %p14022_p13, %p14021_p11 }
0x2278   : > { %p14024_p9 = pnand %p14023_p2, %p14017_p10 }
0x22e6   : > { %v10510_v54 = vpop.xlane.xlu1 %10509 }
0x22e7   : > { %v10521_v35 = vmul.f32 0.0625, %v10510_v54 }
0x22e8   : > { %v10513_v13 = vpop.xlane.xlu0 %10512 }
0x22e9   : > { %v10522_v27 = vmul.f32 0.0625, %v10513_v13  ;;  %v10532_v62 = vrot.slane %v10521_v35, %v10531_v44 }
0x22ea   : > { %v10516_v37 = vpop.xlane.xlu1 %10515 }
0x22eb   : > { %v10537_v2 = vrot.slane %v10522_v27, %v10536_v4  ;;  %v10523_v8 = vmul.f32 0.0625, %v10516_v37 }
0x22ec   : > { %v10519_v18 = vpop.xlane.xlu0 %10518 }
0x22ed   : > { %v10539_v14 = vsel %vm10538_vm1, %v10537_v2, %v10532_v62  ;;  %v10544_v12 = vrot.slane %v10523_v8, %v10543_v36  ;;  %v10524_v49 = vmul.f32 0.0625, %v10519_v18 }
0x22ef   : > { %v10546_v0 = vsel %vm10545_vm9, %v10544_v12, %v10539_v14  ;;  %v10551_v41 = vrot.slane %v10524_v49, %v10550_v45 }
0x22f1   : > { %v10553_v22 = vsel %vm10552_vm10, %v10551_v41, %v10546_v0 }
0x22f2   : > { %10556 = vst.msk [vmem:[%s1039_s8] sm:$0x1] %vm10555_vm11, %v10553_v22 }
0x22f3   : > { %14027 = shalt.err (!%p14024_p9)
}
0x22f4   : > { %s14028_s30 = scalar_lea.hbm %s17240_s6, 16  ;;  %s14032_s11 = scalar_lea.hbm %s17515_s4, 32 }
0x22f5   : > { %p14029_p1 = scmp.ne.s32.totalorder %s17240_s6, %s14028_s30  ;;  %p14033_p7 = scmp.lt.u32.totalorder %s17240_s6, %s17515_s4 }
0x22f6   : > { %p14034_p6 = scmp.lt.u32.totalorder %s14032_s11, %s14028_s30  ;;  %p14036_p12 = scmp.lt.u32.totalorder %s14028_s30, %s17240_s6 }
0x22f7   : > { %p14030_p0 = pnand %p14029_p1, %p17512_p8 }
0x22f8   : > { %p14035_p4 = por %p14034_p6, %p14033_p7 }
0x22f9   : > { %p14031_p5 = pneg %p14030_p0 }
0x22fa   : > { %p14037_p3 = por %p14036_p12, %p14035_p4 }
0x22fc   : > { %p14038_p10 = pnand %p14037_p3, %p14031_p5 }
0x22fe   : > { %14041 = shalt.err (!%p14038_p10)
}
0x22ff   : > { %12856 = dma.vmem_to_hbm [thread:$0]  (%p17512_p8), %s17242_s20, 16, %s17240_s6, %s10563_s24  }
0x2300 PF: > { %s17516_s27 = sld [smem:[#allocation51_spill]]  ;;  %s10603_s26 = sand.u32 1, %s14112_s3  }
0x2301   : > { %p17517_p11 = scmp.ne.s32.totalorder %s17416_s2, 0  ;;  %s10604_s7 = scalar_lea.sflag [#allocation4], %s10603_s26 }
0x2306   : > { %p17518_p13 = scmp.ge.s32.totalorder %s17516_s27, 2 }
0x2308   : > { %p12925_p2 = pnand %p17518_p13, %p17517_p11 }
0x230a   : > { %14103 = dma.done.wait (!%p12925_p2), %s10604_s7, 512  }
0x230b   : > { %14105 = vsyncadd (!%p12925_p2), %s10604_s7, 4294966784  ;;  %s10613_s8 = scalar_lea.sflag [#allocation37], %s10603_s26 }
0x230c   : > { %14107 = dma.done.wait (!%p12925_p2), %s10613_s8, 16  }
0x230d   : > { %14109 = vsyncadd (!%p12925_p2), %s10613_s8, 4294967280  ;;  %s17519_s30 = sld [smem:[#allocation53_spill]]  ;;  %s17520_s14 = sld [smem:[#allocation54_spill]] }
0x230e   : > { %s17521_s3 = smov %s14116_s28  ;;  %s17522_s28 = smov %s14120_s29 }
0x2313   : > { %p51_p8 = scmp.ge.s32.totalorder %s17519_s30, 4   ;;  %s17523_s29 = smov %s17520_s14 }
0x2315   :  { %53 = sbr.rel (!%p51_p8) target bundleno = 42 (0x2a), region = 267 }
0x231c   :  { %10617 = vsyncpa [#allocation3], 1 }
0x231d   :  { %10619 = vsyncpa [#allocation3 + $0x1], 1 }
0x231e   :  { %10620 = vsyncpa [#allocation6], 1 }
0x231f   :  { %10622 = vsyncpa [#allocation6 + $0x1], 1 }
0x2320   :  { %10623 = vsyncpa [#allocation9], 1 }
0x2321   :  { %10624 = vsyncpa [#allocation12], 1 }
0x2322   :  { %10625 = vsyncpa [#allocation15], 1 }
0x2323   :  { %10626 = vsyncpa [#allocation18], 1 }
0x2324   :  { %10627 = vsyncpa [#allocation21], 1 }
0x2325   :  { %10628 = vsyncpa [#allocation24], 1 }
0x2326   :  { %10629 = vsyncpa [#allocation27], 1 }
0x2327   :  { %10630 = vsyncpa [#allocation30], 1 }
0x2328   :  { %10631 = vsyncpa [#allocation33], 1 }
0x2329   :  { %10632 = vsyncpa [#allocation4], 1 }
0x232a   :  { %10634 = vsyncpa [#allocation4 + $0x1], 1 }
0x232b   :  { %10635 = vsyncpa [#allocation37], 1 }
0x232c   :  { %10637 = vsyncpa [#allocation37 + $0x1], 1 }

</bundles_post_ra>
